<compile_context>
chip_gen: v7x
topology: tpu7x:2x2x1
jax: 0.10.0
libtpu: 0.0.40
codegen_flags: <defaults>
</compile_context>

<pallas_src>
import jax
import jax.numpy as jnp
from jax.experimental import pallas as pl
from jax.experimental.pallas import tpu as pltpu

EFF_FEAT = 1280      # EfficientNet-B0 feature width
RES_FEAT = 512       # ResNet-18 feature width
EFF_OUT = 1000       # torchvision efficientnet classifier output (ImageNet)
EFF_OUT_PAD = 1024   # padded to a multiple of 128 for lane-dense layout
NC_PAD = 128         # num_classes (7) padded to one full lane group


def _round_up(x, m):
    return ((x + m - 1) // m) * m


# ----------------------------------------------------------------------------
# Fused Pallas kernel: entire EnsembleClassifier forward (one M tile per step)
# ----------------------------------------------------------------------------
def _ensemble_fused_kernel(x_ref,
                           wstub_ref, sstub_ref, bstub_ref,
                           weff_ref, seff_ref, beff_ref,
                           wres_ref, bres_ref,
                           w1_ref, s1_ref, bfuse_ref, w2_ref,
                           wfc_ref, bfc_ref,
                           o_ref):
    x = x_ref[...]                                                    # [M, Kin] bf16

    # Shared stub projection (int8 weights, per-column dequant on the f32 acc).
    feat = (jnp.dot(x, wstub_ref[...].astype(jnp.bfloat16),
                    preferred_element_type=jnp.float32)
            * sstub_ref[...] + bstub_ref[...])                        # [M, 1792] f32
    eff_feat = feat[:, :EFF_FEAT].astype(jnp.bfloat16)                # [M, 1280]
    res_feat = feat[:, EFF_FEAT:].astype(jnp.bfloat16)                # [M, 512]

    # Branch heads (EfficientNet classifier padded 1000->1024, ResNet fc 7->128).
    eff_out = (jnp.dot(eff_feat, weff_ref[...].astype(jnp.bfloat16),
                       preferred_element_type=jnp.float32)
               * seff_ref[...] + beff_ref[...])                       # [M, 1024]
    res_out = (jnp.dot(res_feat, wres_ref[...],
                       preferred_element_type=jnp.float32)
               + bres_ref[...])                                       # [M, 128]

    # Fusion layer: torch.cat folded into two partial matmuls
    # (w_fusion split at row 1000; padded rows/cols are zero, hence inert).
    fused = (jnp.dot(eff_out.astype(jnp.bfloat16),
                     w1_ref[...].astype(jnp.bfloat16),
                     preferred_element_type=jnp.float32) * s1_ref[...]
             + jnp.dot(res_out.astype(jnp.bfloat16), w2_ref[...],
                       preferred_element_type=jnp.float32)
             + bfuse_ref[...])                                        # [M, 256]

    # Final classifier -> only HBM store of the whole forward.
    o_ref[...] = (jnp.dot(fused.astype(jnp.bfloat16), wfc_ref[...],
                          preferred_element_type=jnp.float32)
                  + bfc_ref[...]).astype(o_ref.dtype)                 # [M, 128]


def ensemble_classifier_forward(x, inf_params, num_classes=7, *, block_m_cap=256):
    """x: [B, C, H, W] -> logits [B, num_classes] in one fused pallas_call."""
    B = x.shape[0]
    x_flat = x.reshape(B, -1).astype(jnp.bfloat16)
    kin = x_flat.shape[1]

    # M tiling: >=16 (bf16 sublane friendly), capped so fp32 intermediates stay
    # small; weights remain resident across the (parallel) M grid axis.
    bm = min(block_m_cap, _round_up(B, 16))
    b_pad = _round_up(B, bm)
    if b_pad != B:
        x_flat = jnp.pad(x_flat, ((0, b_pad - B), (0, 0)))
    grid = (b_pad // bm,)

    (wstub, sstub, bstub, weff, seff, beff, wres, bres,
     w1, s1, bfuse, w2, wfc, bfc) = inf_params
    weights = (wstub, sstub, bstub, weff, seff, beff, wres, bres,
               w1, s1, bfuse, w2, wfc, bfc)
    args = (x_flat,) + weights

    fusion_out = wfc.shape[0]
    flops = 2 * b_pad * (kin * (EFF_FEAT + RES_FEAT)
                         + EFF_FEAT * EFF_OUT_PAD
                         + RES_FEAT * NC_PAD
                         + EFF_OUT_PAD * fusion_out
                         + NC_PAD * fusion_out
                         + fusion_out * NC_PAD)
    bytes_accessed = sum(int(a.size) * a.dtype.itemsize for a in args)
    bytes_accessed += b_pad * NC_PAD * 4   # fp32 logits store

    def weight_spec(arr):
        # Full-array block; block index constant across the M grid, so the DMA
        # happens once and the block stays resident in VMEM.
        return pl.BlockSpec(arr.shape, lambda i: (0, 0))

    in_specs = [pl.BlockSpec((bm, kin), lambda i: (i, 0))]
    in_specs += [weight_spec(a) for a in weights]

    out = pl.pallas_call(
        _ensemble_fused_kernel,
        out_shape=jax.ShapeDtypeStruct((b_pad, NC_PAD), jnp.float32),
        grid=grid,
        in_specs=in_specs,
        out_specs=pl.BlockSpec((bm, NC_PAD), lambda i: (i, 0)),
        compiler_params=pltpu.CompilerParams(
            dimension_semantics=("parallel",),
            vmem_limit_bytes=32 * 1024 * 1024),
        cost_estimate=pl.CostEstimate(flops=flops, transcendentals=0,
                                      bytes_accessed=bytes_accessed),
    )(*args)
    return out[:B, :num_classes]


# ----------------------------------------------------------------------------
# Deterministic parameter construction (PyTorch-shaped) + one-time packing
# ----------------------------------------------------------------------------
def _init_linear(key, fan_in, fan_out):
    kw, kb = jax.random.split(key)
    scale = 1.0 / jnp.sqrt(jnp.float32(fan_in))
    w = jax.random.uniform(kw, (fan_in, fan_out), jnp.float32, -scale, scale)
    b = jax.random.uniform(kb, (fan_out,), jnp.float32, -scale, scale)
    return w, b


def make_params(key, in_features, num_classes=7, fusion_out_features=256):
    ks = jax.random.split(key, 6)
    params = {}
    params["eff_stub"] = _init_linear(ks[0], in_features, EFF_FEAT)
    params["eff_cls"] = _init_linear(ks[1], EFF_FEAT, EFF_OUT)          # -> 1000
    params["res_stub"] = _init_linear(ks[2], in_features, RES_FEAT)
    params["res_fc"] = _init_linear(ks[3], RES_FEAT, num_classes)       # -> 7
    params["fusion"] = _init_linear(ks[4], EFF_OUT + num_classes, fusion_out_features)
    params["fc"] = _init_linear(ks[5], fusion_out_features, num_classes)
    return params


def _quantize_int8_per_col(w):
    """Symmetric per-output-column int8 quantization; returns (q, scale[1,N])."""
    amax = jnp.max(jnp.abs(w), axis=0, keepdims=True)                   # [1, N]
    scale = jnp.where(amax > 0, amax / 127.0, 1.0).astype(jnp.float32)
    q = jnp.clip(jnp.round(w / scale), -127, 127).astype(jnp.int8)
    return q, scale


def prepare_inference_params(params, num_classes=7):
    """One-time packing: concat stub weights, pad 1000->1024 and 7->128, split
    w_fusion at row 1000, int8-quantize the three large matrices (per-column
    scales), cast small weights to bf16 (biases/scales stay fp32 as [1, N])."""
    w_eff_stub, b_eff_stub = params["eff_stub"]
    w_res_stub, b_res_stub = params["res_stub"]
    wstub = jnp.concatenate([w_eff_stub, w_res_stub], axis=1)           # [Kin, 1792]
    bstub = jnp.concatenate([b_eff_stub, b_res_stub], axis=0)           # [1792]

    pad_n = EFF_OUT_PAD - EFF_OUT
    pad_c = NC_PAD - num_classes
    w_eff_cls, b_eff_cls = params["eff_cls"]
    weff = jnp.pad(w_eff_cls, ((0, 0), (0, pad_n)))                     # [1280, 1024]
    beff = jnp.pad(b_eff_cls, (0, pad_n))                               # [1024]

    w_res_fc, b_res_fc = params["res_fc"]
    wres = jnp.pad(w_res_fc, ((0, 0), (0, pad_c)))                      # [512, 128]
    bres = jnp.pad(b_res_fc, (0, pad_c))                                # [128]

    w_fusion, bfuse = params["fusion"]                                  # [1007, 256]
    w1 = jnp.pad(w_fusion[:EFF_OUT, :], ((0, pad_n), (0, 0)))           # [1024, 256]
    w2 = jnp.pad(w_fusion[EFF_OUT:, :], ((0, pad_c), (0, 0)))           # [128, 256]

    w_fc, b_fc = params["fc"]
    wfc = jnp.pad(w_fc, ((0, 0), (0, pad_c)))                           # [256, 128]
    bfc = jnp.pad(b_fc, (0, pad_c))                                     # [128]

    wstub_q, sstub = _quantize_int8_per_col(wstub)
    weff_q, seff = _quantize_int8_per_col(weff)
    w1_q, s1 = _quantize_int8_per_col(w1)

    bf16 = lambda w: w.astype(jnp.bfloat16)
    row = lambda b: b.reshape(1, -1).astype(jnp.float32)

    return (wstub_q, sstub, row(bstub),
            weff_q, seff, row(beff),
            bf16(wres), row(bres),
            w1_q, s1, row(bfuse), bf16(w2),
            bf16(wfc), row(bfc))


# ----------------------------------------------------------------------------
# References for correctness checks
# ----------------------------------------------------------------------------
def reference_forward_packed(x, inf_params, num_classes=7):
    """Pure-JAX replica of the fused kernel's arithmetic (same int8 dequant,
    bf16 casts, fp32 accumulation) — tight correctness reference."""
    (wstub, sstub, bstub, weff, seff, beff, wres, bres,
     w1, s1, bfuse, w2, wfc, bfc) = inf_params
    B = x.shape[0]
    xf = x.reshape(B, -1).astype(jnp.bfloat16)
    feat = (jnp.dot(xf, wstub.astype(jnp.bfloat16),
                    preferred_element_type=jnp.float32) * sstub + bstub)
    eff_feat = feat[:, :EFF_FEAT].astype(jnp.bfloat16)
    res_feat = feat[:, EFF_FEAT:].astype(jnp.bfloat16)
    eff_out = (jnp.dot(eff_feat, weff.astype(jnp.bfloat16),
                       preferred_element_type=jnp.float32) * seff + beff)
    res_out = jnp.dot(res_feat, wres, preferred_element_type=jnp.float32) + bres
    fused = (jnp.dot(eff_out.astype(jnp.bfloat16), w1.astype(jnp.bfloat16),
                     preferred_element_type=jnp.float32) * s1
             + jnp.dot(res_out.astype(jnp.bfloat16), w2,
                       preferred_element_type=jnp.float32)
             + bfuse)
    logits = (jnp.dot(fused.astype(jnp.bfloat16), wfc,
                      preferred_element_type=jnp.float32) + bfc)
    return logits[:, :num_classes]


def reference_forward_fp32(x, params):
    """Semantic (module-level) fp32 reference: two branches, concat, fusion, fc."""
    B = x.shape[0]
    xf = x.reshape(B, -1).astype(jnp.float32)
    eff_feat = xf @ params["eff_stub"][0] + params["eff_stub"][1]
    eff_out = eff_feat @ params["eff_cls"][0] + params["eff_cls"][1]
    res_feat = xf @ params["res_stub"][0] + params["res_stub"][1]
    res_out = res_feat @ params["res_fc"][0] + params["res_fc"][1]
    combined = jnp.concatenate([eff_out, res_out], axis=1)
    fused = combined @ params["fusion"][0] + params["fusion"][1]
    return fused @ params["fc"][0] + params["fc"][1]


if __name__ == "__main__":
    key = jax.random.PRNGKey(0)
    kx, kp = jax.random.split(key)

    B, C, H, W = 2, 4, 16, 16            # small NCHW image batch (Kin = 1024)
    x = jax.random.normal(kx, (B, C, H, W), jnp.float32)

    params = make_params(kp, in_features=C * H * W,
                         num_classes=7, fusion_out_features=256)
    inf_params = prepare_inference_params(params, num_classes=7)

    out = ensemble_classifier_forward(x, inf_params, num_classes=7)
    out = jax.block_until_ready(out)
    assert out.shape == (B, 7), out.shape

    # Tight check: kernel vs. identical int8/bf16/fp32-accumulate arithmetic.
    ref_packed = jax.block_until_ready(reference_forward_packed(x, inf_params))
    assert jnp.allclose(out, ref_packed, atol=2e-2, rtol=2e-2), \
        float(jnp.max(jnp.abs(out - ref_packed)))

    # Loose check: kernel vs. original fp32 module semantics (int8 weight
    # quantization + bf16 activations are the only deviations).
    ref_fp32 = jax.block_until_ready(reference_forward_fp32(x, params))
    err = float(jnp.max(jnp.abs(out - ref_fp32)))
    scale = float(jnp.max(jnp.abs(ref_fp32))) + 1e-6
    assert err / scale < 0.2, (err, scale)

    print("KERNEL_OK")
</pallas_src>

<mosaic_0001>
module attributes {stable_mosaic.version = 11 : i64} {
  func.func @_ensemble_fused_kernel(%arg0: i32, %arg1: memref<16x1024xbf16, #tpu.memory_space<vmem>>, %arg2: memref<1024x1792xi8, #tpu.memory_space<vmem>>, %arg3: memref<1x1792xf32, #tpu.memory_space<vmem>>, %arg4: memref<1x1792xf32, #tpu.memory_space<vmem>>, %arg5: memref<1280x1024xi8, #tpu.memory_space<vmem>>, %arg6: memref<1x1024xf32, #tpu.memory_space<vmem>>, %arg7: memref<1x1024xf32, #tpu.memory_space<vmem>>, %arg8: memref<512x128xbf16, #tpu.memory_space<vmem>>, %arg9: memref<1x128xf32, #tpu.memory_space<vmem>>, %arg10: memref<1024x256xi8, #tpu.memory_space<vmem>>, %arg11: memref<1x256xf32, #tpu.memory_space<vmem>>, %arg12: memref<1x256xf32, #tpu.memory_space<vmem>>, %arg13: memref<128x256xbf16, #tpu.memory_space<vmem>>, %arg14: memref<256x128xbf16, #tpu.memory_space<vmem>>, %arg15: memref<1x128xf32, #tpu.memory_space<vmem>>, %arg16: memref<16x128xf32, #tpu.memory_space<vmem>>) attributes {dimension_semantics = [#tpu.dimension_semantics<parallel>], iteration_bounds = array<i64: 1>, scalar_prefetch = 0 : i64, scratch_operands = 0 : i64, tpu.core_type = #tpu.core_type<tc>, window_params = [{transform_indices = @transform_0, window_bounds = array<i64: 16, 1024>}, {pipeline_mode = #tpu.pipeline_mode<synchronous>, transform_indices = @transform_1, window_bounds = array<i64: 1024, 1792>}, {pipeline_mode = #tpu.pipeline_mode<synchronous>, transform_indices = @transform_2, window_bounds = array<i64: 1, 1792>}, {pipeline_mode = #tpu.pipeline_mode<synchronous>, transform_indices = @transform_3, window_bounds = array<i64: 1, 1792>}, {pipeline_mode = #tpu.pipeline_mode<synchronous>, transform_indices = @transform_4, window_bounds = array<i64: 1280, 1024>}, {pipeline_mode = #tpu.pipeline_mode<synchronous>, transform_indices = @transform_5, window_bounds = array<i64: 1, 1024>}, {pipeline_mode = #tpu.pipeline_mode<synchronous>, transform_indices = @transform_6, window_bounds = array<i64: 1, 1024>}, {pipeline_mode = #tpu.pipeline_mode<synchronous>, transform_indices = @transform_7, window_bounds = array<i64: 512, 128>}, {pipeline_mode = #tpu.pipeline_mode<synchronous>, transform_indices = @transform_8, window_bounds = array<i64: 1, 128>}, {pipeline_mode = #tpu.pipeline_mode<synchronous>, transform_indices = @transform_9, window_bounds = array<i64: 1024, 256>}, {pipeline_mode = #tpu.pipeline_mode<synchronous>, transform_indices = @transform_10, window_bounds = array<i64: 1, 256>}, {pipeline_mode = #tpu.pipeline_mode<synchronous>, transform_indices = @transform_11, window_bounds = array<i64: 1, 256>}, {pipeline_mode = #tpu.pipeline_mode<synchronous>, transform_indices = @transform_12, window_bounds = array<i64: 128, 256>}, {pipeline_mode = #tpu.pipeline_mode<synchronous>, transform_indices = @transform_13, window_bounds = array<i64: 256, 128>}, {pipeline_mode = #tpu.pipeline_mode<synchronous>, transform_indices = @transform_14, window_bounds = array<i64: 1, 128>}, {transform_indices = @transform_15, window_bounds = array<i64: 16, 128>}]} {
    %c0 = arith.constant 0 : index
    %c0_0 = arith.constant 0 : index
    %0 = vector.load %arg1[%c0, %c0_0] : memref<16x1024xbf16, #tpu.memory_space<vmem>>, vector<16x1024xbf16>
    %c0_1 = arith.constant 0 : index
    %c0_2 = arith.constant 0 : index
    %1 = vector.load %arg2[%c0_1, %c0_2] : memref<1024x1792xi8, #tpu.memory_space<vmem>>, vector<1024x1792xi8>
    %2 = arith.sitofp %1 : vector<1024x1792xi8> to vector<1024x1792xbf16>
    %cst = arith.constant dense<0.000000e+00> : vector<16x1792xf32>
    %3 = tpu.matmul %0, %2, %cst {dimension_numbers = #tpu.dot_dimension_numbers<[1], [0], [0], [1], [0, 0, 1, 1], [], []>} : vector<16x1024xbf16>, vector<1024x1792xbf16>, vector<16x1792xf32> -> vector<16x1792xf32>
    %c0_3 = arith.constant 0 : index
    %c0_4 = arith.constant 0 : index
    %4 = vector.load %arg3[%c0_3, %c0_4] : memref<1x1792xf32, #tpu.memory_space<vmem>>, vector<1x1792xf32>
    %5 = vector.broadcast %4 : vector<1x1792xf32> to vector<16x1792xf32>
    %6 = arith.mulf %3, %5 : vector<16x1792xf32>
    %c0_5 = arith.constant 0 : index
    %c0_6 = arith.constant 0 : index
    %7 = vector.load %arg4[%c0_5, %c0_6] : memref<1x1792xf32, #tpu.memory_space<vmem>>, vector<1x1792xf32>
    %8 = vector.broadcast %7 : vector<1x1792xf32> to vector<16x1792xf32>
    %9 = arith.addf %6, %8 : vector<16x1792xf32>
    %10 = vector.extract_strided_slice %9 {offsets = [0, 0], sizes = [16, 1280], strides = [1, 1]} : vector<16x1792xf32> to vector<16x1280xf32>
    %11 = arith.truncf %10 : vector<16x1280xf32> to vector<16x1280xbf16>
    %12 = vector.extract_strided_slice %9 {offsets = [0, 1280], sizes = [16, 512], strides = [1, 1]} : vector<16x1792xf32> to vector<16x512xf32>
    %13 = arith.truncf %12 : vector<16x512xf32> to vector<16x512xbf16>
    %c0_7 = arith.constant 0 : index
    %c0_8 = arith.constant 0 : index
    %14 = vector.load %arg5[%c0_7, %c0_8] : memref<1280x1024xi8, #tpu.memory_space<vmem>>, vector<1280x1024xi8>
    %15 = arith.sitofp %14 : vector<1280x1024xi8> to vector<1280x1024xbf16>
    %cst_9 = arith.constant dense<0.000000e+00> : vector<16x1024xf32>
    %16 = tpu.matmul %11, %15, %cst_9 {dimension_numbers = #tpu.dot_dimension_numbers<[1], [0], [0], [1], [0, 0, 1, 1], [], []>} : vector<16x1280xbf16>, vector<1280x1024xbf16>, vector<16x1024xf32> -> vector<16x1024xf32>
    %c0_10 = arith.constant 0 : index
    %c0_11 = arith.constant 0 : index
    %17 = vector.load %arg6[%c0_10, %c0_11] : memref<1x1024xf32, #tpu.memory_space<vmem>>, vector<1x1024xf32>
    %18 = vector.broadcast %17 : vector<1x1024xf32> to vector<16x1024xf32>
    %19 = arith.mulf %16, %18 : vector<16x1024xf32>
    %c0_12 = arith.constant 0 : index
    %c0_13 = arith.constant 0 : index
    %20 = vector.load %arg7[%c0_12, %c0_13] : memref<1x1024xf32, #tpu.memory_space<vmem>>, vector<1x1024xf32>
    %21 = vector.broadcast %20 : vector<1x1024xf32> to vector<16x1024xf32>
    %22 = arith.addf %19, %21 : vector<16x1024xf32>
    %c0_14 = arith.constant 0 : index
    %c0_15 = arith.constant 0 : index
    %23 = vector.load %arg8[%c0_14, %c0_15] : memref<512x128xbf16, #tpu.memory_space<vmem>>, vector<512x128xbf16>
    %cst_16 = arith.constant dense<0.000000e+00> : vector<16x128xf32>
    %24 = tpu.matmul %13, %23, %cst_16 {dimension_numbers = #tpu.dot_dimension_numbers<[1], [0], [0], [1], [0, 0, 1, 1], [], []>} : vector<16x512xbf16>, vector<512x128xbf16>, vector<16x128xf32> -> vector<16x128xf32>
    %c0_17 = arith.constant 0 : index
    %c0_18 = arith.constant 0 : index
    %25 = vector.load %arg9[%c0_17, %c0_18] : memref<1x128xf32, #tpu.memory_space<vmem>>, vector<1x128xf32>
    %26 = vector.broadcast %25 : vector<1x128xf32> to vector<16x128xf32>
    %27 = arith.addf %24, %26 : vector<16x128xf32>
    %28 = arith.truncf %22 : vector<16x1024xf32> to vector<16x1024xbf16>
    %c0_19 = arith.constant 0 : index
    %c0_20 = arith.constant 0 : index
    %29 = vector.load %arg10[%c0_19, %c0_20] : memref<1024x256xi8, #tpu.memory_space<vmem>>, vector<1024x256xi8>
    %30 = arith.sitofp %29 : vector<1024x256xi8> to vector<1024x256xbf16>
    %cst_21 = arith.constant dense<0.000000e+00> : vector<16x256xf32>
    %31 = tpu.matmul %28, %30, %cst_21 {dimension_numbers = #tpu.dot_dimension_numbers<[1], [0], [0], [1], [0, 0, 1, 1], [], []>} : vector<16x1024xbf16>, vector<1024x256xbf16>, vector<16x256xf32> -> vector<16x256xf32>
    %c0_22 = arith.constant 0 : index
    %c0_23 = arith.constant 0 : index
    %32 = vector.load %arg11[%c0_22, %c0_23] : memref<1x256xf32, #tpu.memory_space<vmem>>, vector<1x256xf32>
    %33 = vector.broadcast %32 : vector<1x256xf32> to vector<16x256xf32>
    %34 = arith.mulf %31, %33 : vector<16x256xf32>
    %35 = arith.truncf %27 : vector<16x128xf32> to vector<16x128xbf16>
    %c0_24 = arith.constant 0 : index
    %c0_25 = arith.constant 0 : index
    %36 = vector.load %arg13[%c0_24, %c0_25] : memref<128x256xbf16, #tpu.memory_space<vmem>>, vector<128x256xbf16>
    %cst_26 = arith.constant dense<0.000000e+00> : vector<16x256xf32>
    %37 = tpu.matmul %35, %36, %cst_26 {dimension_numbers = #tpu.dot_dimension_numbers<[1], [0], [0], [1], [0, 0, 1, 1], [], []>} : vector<16x128xbf16>, vector<128x256xbf16>, vector<16x256xf32> -> vector<16x256xf32>
    %38 = arith.addf %34, %37 : vector<16x256xf32>
    %c0_27 = arith.constant 0 : index
    %c0_28 = arith.constant 0 : index
    %39 = vector.load %arg12[%c0_27, %c0_28] : memref<1x256xf32, #tpu.memory_space<vmem>>, vector<1x256xf32>
    %40 = vector.broadcast %39 : vector<1x256xf32> to vector<16x256xf32>
    %41 = arith.addf %38, %40 : vector<16x256xf32>
    %42 = arith.truncf %41 : vector<16x256xf32> to vector<16x256xbf16>
    %c0_29 = arith.constant 0 : index
    %c0_30 = arith.constant 0 : index
    %43 = vector.load %arg14[%c0_29, %c0_30] : memref<256x128xbf16, #tpu.memory_space<vmem>>, vector<256x128xbf16>
    %cst_31 = arith.constant dense<0.000000e+00> : vector<16x128xf32>
    %44 = tpu.matmul %42, %43, %cst_31 {dimension_numbers = #tpu.dot_dimension_numbers<[1], [0], [0], [1], [0, 0, 1, 1], [], []>} : vector<16x256xbf16>, vector<256x128xbf16>, vector<16x128xf32> -> vector<16x128xf32>
    %c0_32 = arith.constant 0 : index
    %c0_33 = arith.constant 0 : index
    %45 = vector.load %arg15[%c0_32, %c0_33] : memref<1x128xf32, #tpu.memory_space<vmem>>, vector<1x128xf32>
    %46 = vector.broadcast %45 : vector<1x128xf32> to vector<16x128xf32>
    %47 = arith.addf %44, %46 : vector<16x128xf32>
    %c0_34 = arith.constant 0 : index
    %c0_35 = arith.constant 0 : index
    %48 = vector.load %arg16[%c0_34, %c0_35] : memref<16x128xf32, #tpu.memory_space<vmem>>, vector<16x128xf32>
    tpu.vector_store %arg16[%c0_34, %c0_35], %47 {strides = array<i32>} : memref<16x128xf32, #tpu.memory_space<vmem>>, vector<16x128xf32>,
    return
  }
  func.func @transform_0(%arg0: i32) -> (i32, i32) {
    %c0_i32 = arith.constant 0 : i32
    %c0_i32_0 = arith.constant 0 : i32
    return %arg0, %c0_i32 : i32, i32
  }
  func.func @transform_1(%arg0: i32) -> (i32, i32) {
    %c0_i32 = arith.constant 0 : i32
    %c0_i32_0 = arith.constant 0 : i32
    %c0_i32_1 = arith.constant 0 : i32
    return %c0_i32, %c0_i32_0 : i32, i32
  }
  func.func @transform_2(%arg0: i32) -> (i32, i32) {
    %c0_i32 = arith.constant 0 : i32
    %c0_i32_0 = arith.constant 0 : i32
    %c0_i32_1 = arith.constant 0 : i32
    return %c0_i32, %c0_i32_0 : i32, i32
  }
  func.func @transform_3(%arg0: i32) -> (i32, i32) {
    %c0_i32 = arith.constant 0 : i32
    %c0_i32_0 = arith.constant 0 : i32
    %c0_i32_1 = arith.constant 0 : i32
    return %c0_i32, %c0_i32_0 : i32, i32
  }
  func.func @transform_4(%arg0: i32) -> (i32, i32) {
    %c0_i32 = arith.constant 0 : i32
    %c0_i32_0 = arith.constant 0 : i32
    %c0_i32_1 = arith.constant 0 : i32
    return %c0_i32, %c0_i32_0 : i32, i32
  }
  func.func @transform_5(%arg0: i32) -> (i32, i32) {
    %c0_i32 = arith.constant 0 : i32
    %c0_i32_0 = arith.constant 0 : i32
    %c0_i32_1 = arith.constant 0 : i32
    return %c0_i32, %c0_i32_0 : i32, i32
  }
  func.func @transform_6(%arg0: i32) -> (i32, i32) {
    %c0_i32 = arith.constant 0 : i32
    %c0_i32_0 = arith.constant 0 : i32
    %c0_i32_1 = arith.constant 0 : i32
    return %c0_i32, %c0_i32_0 : i32, i32
  }
  func.func @transform_7(%arg0: i32) -> (i32, i32) {
    %c0_i32 = arith.constant 0 : i32
    %c0_i32_0 = arith.constant 0 : i32
    %c0_i32_1 = arith.constant 0 : i32
    return %c0_i32, %c0_i32_0 : i32, i32
  }
  func.func @transform_8(%arg0: i32) -> (i32, i32) {
    %c0_i32 = arith.constant 0 : i32
    %c0_i32_0 = arith.constant 0 : i32
    %c0_i32_1 = arith.constant 0 : i32
    return %c0_i32, %c0_i32_0 : i32, i32
  }
  func.func @transform_9(%arg0: i32) -> (i32, i32) {
    %c0_i32 = arith.constant 0 : i32
    %c0_i32_0 = arith.constant 0 : i32
    %c0_i32_1 = arith.constant 0 : i32
    return %c0_i32, %c0_i32_0 : i32, i32
  }
  func.func @transform_10(%arg0: i32) -> (i32, i32) {
    %c0_i32 = arith.constant 0 : i32
    %c0_i32_0 = arith.constant 0 : i32
    %c0_i32_1 = arith.constant 0 : i32
    return %c0_i32, %c0_i32_0 : i32, i32
  }
  func.func @transform_11(%arg0: i32) -> (i32, i32) {
    %c0_i32 = arith.constant 0 : i32
    %c0_i32_0 = arith.constant 0 : i32
    %c0_i32_1 = arith.constant 0 : i32
    return %c0_i32, %c0_i32_0 : i32, i32
  }
  func.func @transform_12(%arg0: i32) -> (i32, i32) {
    %c0_i32 = arith.constant 0 : i32
    %c0_i32_0 = arith.constant 0 : i32
    %c0_i32_1 = arith.constant 0 : i32
    return %c0_i32, %c0_i32_0 : i32, i32
  }
  func.func @transform_13(%arg0: i32) -> (i32, i32) {
    %c0_i32 = arith.constant 0 : i32
    %c0_i32_0 = arith.constant 0 : i32
    %c0_i32_1 = arith.constant 0 : i32
    return %c0_i32, %c0_i32_0 : i32, i32
  }
  func.func @transform_14(%arg0: i32) -> (i32, i32) {
    %c0_i32 = arith.constant 0 : i32
    %c0_i32_0 = arith.constant 0 : i32
    %c0_i32_1 = arith.constant 0 : i32
    return %c0_i32, %c0_i32_0 : i32, i32
  }
  func.func @transform_15(%arg0: i32) -> (i32, i32) {
    %c0_i32 = arith.constant 0 : i32
    %c0_i32_0 = arith.constant 0 : i32
    return %arg0, %c0_i32 : i32, i32
  }
}

</mosaic_0001>

<bundles_post_ra>
// kernel: tpu_custom_call.1
= control target key start
LH: loop header
LB: loop body
LE: loop exit
PB: predicated region body
PF: predicated region fallthrough
CT: control target
= control target key end

     0   :  { %s7514_s0 = inlined_call_operand.hbm [shape: bf16[16,1024], index: 0, kind: input, shape index: {}]   ;;  %s7515_s1 = inlined_call_operand.hbm [shape: s8[1024,1792], index: 1, kind: input, shape index: {}]   ;;  %s7516_s2 = inlined_call_operand.hbm [shape: f32[1,1792], index: 2, kind: input, shape index: {}]   ;;  %s7517_s3 = inlined_call_operand.hbm [shape: f32[1,1792], index: 3, kind: input, shape index: {}]   ;;  %s7518_s4 = inlined_call_operand.hbm [shape: s8[1280,1024], index: 4, kind: input, shape index: {}]   ;;  %s7519_s5 = inlined_call_operand.hbm [shape: f32[1,1024], index: 5, kind: input, shape index: {}]   ;;  %s7520_s6 = inlined_call_operand.hbm [shape: f32[1,1024], index: 6, kind: input, shape index: {}]   ;;  %s7521_s7 = inlined_call_operand.hbm [shape: bf16[512,128], index: 7, kind: input, shape index: {}]   ;;  %s7522_s8 = inlined_call_operand.hbm [shape: f32[1,128], index: 8, kind: input, shape index: {}]   ;;  %s7523_s9 = inlined_call_operand.hbm [shape: s8[1024,256], index: 9, kind: input, shape index: {}]   ;;  %s7524_s10 = inlined_call_operand.hbm [shape: f32[1,256], index: 10, kind: input, shape index: {}]   ;;  %s7525_s11 = inlined_call_operand.hbm [shape: f32[1,256], index: 11, kind: input, shape index: {}]   ;;  %s7526_s12 = inlined_call_operand.hbm [shape: bf16[128,256], index: 12, kind: input, shape index: {}]   ;;  %s7527_s13 = inlined_call_operand.hbm [shape: bf16[256,128], index: 13, kind: input, shape index: {}]   ;;  %s7528_s14 = inlined_call_operand.hbm [shape: f32[1,128], index: 14, kind: input, shape index: {}]   ;;  %s7529_s15 = inlined_call_operand.hbm [shape: f32[16,128], index: 15, kind: output, shape index: {}]  }
   0x1   :  { %7531 = sst [smem:[#allocation36_spill]] %s7529_s15 }
   0x2   :  { %20 = vsyncpa [#allocation3], 0 }
   0x3   :  { %21 = vsyncpa [#allocation6], 0 }
   0x4   :  { %22 = vsyncpa [#allocation9], 0 }
   0x5   :  { %23 = vsyncpa [#allocation12], 0 }
   0x6   :  { %24 = vsyncpa [#allocation15], 0 }
   0x7   :  { %25 = vsyncpa [#allocation18], 0 }
   0x8   :  { %26 = vsyncpa [#allocation21], 0 }
   0x9   :  { %27 = vsyncpa [#allocation24], 0 }
   0xa   :  { %28 = vsyncpa [#allocation4], 0  ;;  %s6862_s18 = smov [#allocation5]   ;;  %s6492_s22 = scalar_lea.hbm %s7515_s1, 57344 }
   0xb   :  { %s46_s19 = sshll.u32 %s6862_s18, 4  ;;  %p6493_p0 = scmp.ne.s32.totalorder %s7515_s1, %s6492_s22  ;;  %s47_s19 = int_to_ptr.vmem [resolvable:$true] %s46_s19 }
   0xc   :  { %p6496_p1 = scmp.lt.u32.totalorder %s6492_s22, %s7515_s1 }
   0xe   :  { %p6498_p2 = pnand %p6496_p1, %p6493_p0 }
  0x10   :  { %6501 = shalt.err (!%p6498_p2)
}
  0x11   :  { %s6502_s27 = scalar_lea.vmem %s47_s19, 57344  ;;  %p6507_p4 = scmp.lt.s32.totalorder %s47_s19, %s47_s19 }
  0x12   :  { %p6503_p3 = scmp.ne.s32.totalorder %s47_s19, %s6502_s27  ;;  %p6508_p5 = scmp.lt.s32.totalorder %s6502_s27, %s6502_s27 }
  0x14   :  { %p6509_p6 = por %p6508_p5, %p6507_p4 }
  0x16   :  { %p6510_p7 = pnand %p6509_p6, %p6503_p3 }
  0x18   :  { %6513 = shalt.err (!%p6510_p7)
}
  0x19   :  { %s6863_s28 = smov 1792   ;;  %s6864_s29 = smov 112  }
  0x1a   :  { %52 = dma.hbm_to_vmem [thread:$0]  %s7515_s1, 57344, %s47_s19, [#allocation6], %s6863_s28, %s6863_s28, %s6864_s29  }
  0x1b   :  { %s6865_s17 = smov [#allocation8]   ;;  %s6866_s20 = smov [#allocation11]  }
  0x1c   :  { %s69_s18 = sshll.u32 %s6865_s17, 4  ;;  %s91_s21 = sshll.u32 %s6866_s20, 4  ;;  %s70_s18 = int_to_ptr.vmem [resolvable:$true] %s69_s18  ;;  %s92_s21 = int_to_ptr.vmem [resolvable:$true] %s91_s21 }
  0x1d   :  { %s6514_s24 = scalar_lea.hbm %s7517_s3, 224 }
  0x1e   :  { %p6515_p8 = scmp.ne.s32.totalorder %s7517_s3, %s6514_s24  ;;  %p6518_p9 = scmp.lt.u32.totalorder %s6514_s24, %s7517_s3 }
  0x20   :  { %p6520_p10 = pnand %p6518_p9, %p6515_p8 }
  0x22   :  { %6523 = shalt.err (!%p6520_p10)
}
  0x23   :  { %s6524_s1 = scalar_lea.vmem %s70_s18, 224  ;;  %p6529_p12 = scmp.lt.s32.totalorder %s70_s18, %s70_s18 }
  0x24   :  { %p6525_p11 = scmp.ne.s32.totalorder %s70_s18, %s6524_s1  ;;  %p6530_p13 = scmp.lt.s32.totalorder %s6524_s1, %s6524_s1 }
  0x26   :  { %p6531_p0 = por %p6530_p13, %p6529_p12 }
  0x28   :  { %p6532_p1 = pnand %p6531_p0, %p6525_p11 }
  0x2a   :  { %6535 = shalt.err (!%p6532_p1)
}
  0x2b   :  { %72 = dma.hbm_to_vmem [thread:$0]  %s7517_s3, 224, %s70_s18, [#allocation9]  }
  0x2c   :  { %s6536_s16 = scalar_lea.hbm %s7519_s5, 128 }
  0x2d   :  { %p6537_p2 = scmp.ne.s32.totalorder %s7519_s5, %s6536_s16  ;;  %p6540_p3 = scmp.lt.u32.totalorder %s6536_s16, %s7519_s5 }
  0x2f   :  { %p6542_p4 = pnand %p6540_p3, %p6537_p2 }
  0x31   :  { %6545 = shalt.err (!%p6542_p4)
}
  0x32   :  { %s6546_s23 = scalar_lea.vmem %s92_s21, 128  ;;  %p6551_p6 = scmp.lt.s32.totalorder %s92_s21, %s92_s21 }
  0x33   :  { %p6547_p5 = scmp.ne.s32.totalorder %s92_s21, %s6546_s23  ;;  %p6552_p7 = scmp.lt.s32.totalorder %s6546_s23, %s6546_s23 }
  0x35   :  { %p6553_p8 = por %p6552_p7, %p6551_p6 }
  0x37   :  { %p6554_p9 = pnand %p6553_p8, %p6547_p5 }
  0x39   :  { %6557 = shalt.err (!%p6554_p9)
}
  0x3a   :  { %94 = dma.hbm_to_vmem [thread:$0]  %s7519_s5, 128, %s92_s21, [#allocation12]  }
  0x3b   :  { %s6867_s24 = smov [#allocation14]   ;;  %s6868_s26 = smov [#allocation17]  }
  0x3c   :  { %s110_s25 = sshll.u32 %s6867_s24, 4  ;;  %s132_s27 = sshll.u32 %s6868_s26, 4  ;;  %s111_s25 = int_to_ptr.vmem [resolvable:$true] %s110_s25  ;;  %s133_s27 = int_to_ptr.vmem [resolvable:$true] %s132_s27 }
  0x3d   :  { %s6558_s28 = scalar_lea.hbm %s7521_s7, 4096 }
  0x3e   :  { %p6559_p10 = scmp.ne.s32.totalorder %s7521_s7, %s6558_s28  ;;  %p6562_p11 = scmp.lt.u32.totalorder %s6558_s28, %s7521_s7 }
  0x40   :  { %p6564_p12 = pnand %p6562_p11, %p6559_p10 }
  0x42   :  { %6567 = shalt.err (!%p6564_p12)
}
  0x43   :  { %s6568_s5 = scalar_lea.vmem %s111_s25, 4096  ;;  %p6573_p0 = scmp.lt.s32.totalorder %s111_s25, %s111_s25 }
  0x44   :  { %p6569_p13 = scmp.ne.s32.totalorder %s111_s25, %s6568_s5  ;;  %p6574_p1 = scmp.lt.s32.totalorder %s6568_s5, %s6568_s5 }
  0x46   :  { %p6575_p2 = por %p6574_p1, %p6573_p0 }
  0x48   :  { %p6576_p3 = pnand %p6575_p2, %p6569_p13 }
  0x4a   :  { %6579 = shalt.err (!%p6576_p3)
}
  0x4b   :  { %s6869_s21 = smov 64   ;;  %s6870_s17 = smov 4  }
  0x4c   :  { %116 = dma.hbm_to_vmem [thread:$0]  %s7521_s7, 4096, %s111_s25, [#allocation15], %s6869_s21, %s6869_s21, %s6870_s17  }
  0x4d   :  { %s6580_s18 = scalar_lea.hbm %s7523_s9, 8192 }
  0x4e   :  { %p6581_p4 = scmp.ne.s32.totalorder %s7523_s9, %s6580_s18  ;;  %p6584_p5 = scmp.lt.u32.totalorder %s6580_s18, %s7523_s9 }
  0x50   :  { %p6586_p6 = pnand %p6584_p5, %p6581_p4 }
  0x52   :  { %6589 = shalt.err (!%p6586_p6)
}
  0x53   :  { %s6590_s28 = scalar_lea.vmem %s133_s27, 8192  ;;  %p6595_p8 = scmp.lt.s32.totalorder %s133_s27, %s133_s27 }
  0x54   :  { %p6591_p7 = scmp.ne.s32.totalorder %s133_s27, %s6590_s28  ;;  %p6596_p9 = scmp.lt.s32.totalorder %s6590_s28, %s6590_s28 }
  0x56   :  { %p6597_p10 = por %p6596_p9, %p6595_p8 }
  0x58   :  { %p6598_p11 = pnand %p6597_p10, %p6591_p7 }
  0x5a   :  { %6601 = shalt.err (!%p6598_p11)
}
  0x5b   :  { %s6871_s7 = smov 256   ;;  %s6872_s25 = smov 16  }
  0x5c   :  { %138 = dma.hbm_to_vmem [thread:$0]  %s7523_s9, 8192, %s133_s27, [#allocation18], %s6871_s7, %s6871_s7, %s6872_s25  }
  0x5d   :  { %s6873_s16 = smov [#allocation20]   ;;  %s6874_s5 = smov [#allocation23]  }
  0x5e   :  { %s155_s15 = sshll.u32 %s6873_s16, 4  ;;  %s176_s20 = sshll.u32 %s6874_s5, 4  ;;  %s156_s15 = int_to_ptr.vmem [resolvable:$true] %s155_s15  ;;  %s177_s20 = int_to_ptr.vmem [resolvable:$true] %s176_s20 }
  0x5f   :  { %s6602_s3 = scalar_lea.hbm %s7525_s11, 32 }
  0x60   :  { %p6603_p12 = scmp.ne.s32.totalorder %s7525_s11, %s6602_s3  ;;  %p6606_p13 = scmp.lt.u32.totalorder %s6602_s3, %s7525_s11 }
  0x62   :  { %p6608_p0 = pnand %p6606_p13, %p6603_p12 }
  0x64   :  { %6611 = shalt.err (!%p6608_p0)
}
  0x65   :  { %s6612_s9 = scalar_lea.vmem %s156_s15, 32  ;;  %p6617_p2 = scmp.lt.s32.totalorder %s156_s15, %s156_s15 }
  0x66   :  { %p6613_p1 = scmp.ne.s32.totalorder %s156_s15, %s6612_s9  ;;  %p6618_p3 = scmp.lt.s32.totalorder %s6612_s9, %s6612_s9 }
  0x68   :  { %p6619_p4 = por %p6618_p3, %p6617_p2 }
  0x6a   :  { %p6620_p5 = pnand %p6619_p4, %p6613_p1 }
  0x6c   :  { %6623 = shalt.err (!%p6620_p5)
}
  0x6d   :  { %158 = dma.hbm_to_vmem [thread:$0]  %s7525_s11, 32, %s156_s15, [#allocation21]  }
  0x6e   :  { %s6624_s25 = scalar_lea.hbm %s7527_s13, 2048 }
  0x6f   :  { %p6625_p6 = scmp.ne.s32.totalorder %s7527_s13, %s6624_s25  ;;  %p6628_p7 = scmp.lt.u32.totalorder %s6624_s25, %s7527_s13 }
  0x71   :  { %p6630_p8 = pnand %p6628_p7, %p6625_p6 }
  0x73   :  { %6633 = shalt.err (!%p6630_p8)
}
  0x74   :  { %s6634_s22 = scalar_lea.vmem %s177_s20, 2048  ;;  %p6639_p10 = scmp.lt.s32.totalorder %s177_s20, %s177_s20 }
  0x75   :  { %p6635_p9 = scmp.ne.s32.totalorder %s177_s20, %s6634_s22  ;;  %p6640_p11 = scmp.lt.s32.totalorder %s6634_s22, %s6634_s22 }
  0x77   :  { %p6641_p12 = por %p6640_p11, %p6639_p10 }
  0x79   :  { %p6642_p13 = pnand %p6641_p12, %p6635_p9 }
  0x7b   :  { %6645 = shalt.err (!%p6642_p13)
}
  0x7c   :  { %182 = dma.hbm_to_vmem [thread:$0]  %s7527_s13, 2048, %s177_s20, [#allocation24], %s6869_s21, %s6869_s21, %s6870_s17  }
  0x7d   :  { %s6875_s23 = smov [#allocation2]   ;;  %s6646_s26 = scalar_lea.hbm %s7514_s0, 1024 }
  0x7e   :  { %s34_s3 = sshll.u32 %s6875_s23, 4  ;;  %p6647_p0 = scmp.ne.s32.totalorder %s7514_s0, %s6646_s26  ;;  %s35_s3 = int_to_ptr.vmem [resolvable:$true] %s34_s3 }
  0x7f   :  { %p6650_p1 = scmp.lt.u32.totalorder %s6646_s26, %s7514_s0 }
  0x81   :  { %p6652_p2 = pnand %p6650_p1, %p6647_p0 }
  0x83   :  { %6655 = shalt.err (!%p6652_p2)
}
  0x84   :  { %s6656_s28 = scalar_lea.vmem %s35_s3, 1024  ;;  %p6661_p4 = scmp.lt.s32.totalorder %s35_s3, %s35_s3 }
  0x85   :  { %p6657_p3 = scmp.ne.s32.totalorder %s35_s3, %s6656_s28  ;;  %p6662_p5 = scmp.lt.s32.totalorder %s6656_s28, %s6656_s28 }
  0x87   :  { %p6663_p6 = por %p6662_p5, %p6661_p4 }
  0x89   :  { %p6664_p7 = pnand %p6663_p6, %p6657_p3 }
  0x8b   :  { %6667 = shalt.err (!%p6664_p7)
}
  0x8c   :  { %s6876_s13 = smov 512   ;;  %s6877_s17 = smov 32  }
  0x8d   :  { %40 = dma.hbm_to_vmem [thread:$0]  %s7514_s0, 1024, %s35_s3, [#allocation3], %s6876_s13, %s6876_s13, %s6877_s17  }
  0x8e   :  { %s6878_s25 = smov [#allocation7]   ;;  %s6879_s30 = smov [#allocation10]  }
  0x8f   :  { %s59_s29 = sshll.u32 %s6878_s25, 4  ;;  %s78_s16 = sshll.u32 %s6879_s30, 4  ;;  %s60_s29 = int_to_ptr.vmem [resolvable:$true] %s59_s29  ;;  %s7072_s16 = int_to_ptr.vmem [resolvable:$true] %s78_s16 }
  0x90   :  { %s6668_s11 = scalar_lea.hbm %s7516_s2, 224 }
  0x91   :  { %p6669_p8 = scmp.ne.s32.totalorder %s7516_s2, %s6668_s11  ;;  %p6672_p9 = scmp.lt.u32.totalorder %s6668_s11, %s7516_s2 }
  0x93   :  { %p6674_p10 = pnand %p6672_p9, %p6669_p8 }
  0x95   :  { %6677 = shalt.err (!%p6674_p10)
}
  0x96   :  { %s6678_s0 = scalar_lea.vmem %s60_s29, 224  ;;  %p6683_p12 = scmp.lt.s32.totalorder %s60_s29, %s60_s29 }
  0x97   :  { %p6679_p11 = scmp.ne.s32.totalorder %s60_s29, %s6678_s0  ;;  %p6684_p13 = scmp.lt.s32.totalorder %s6678_s0, %s6678_s0 }
  0x99   :  { %p6685_p0 = por %p6684_p13, %p6683_p12 }
  0x9b   :  { %p6686_p1 = pnand %p6685_p0, %p6679_p11 }
  0x9d   :  { %6689 = shalt.err (!%p6686_p1)
}
  0x9e   :  { %62 = dma.hbm_to_vmem [thread:$0]  %s7516_s2, 224, %s60_s29, [#allocation6]  }
  0x9f   :  { %s6690_s27 = scalar_lea.hbm %s7518_s4, 40960 }
  0xa0   :  { %p6691_p2 = scmp.ne.s32.totalorder %s7518_s4, %s6690_s27  ;;  %p6694_p3 = scmp.lt.u32.totalorder %s6690_s27, %s7518_s4 }
  0xa2   :  { %p6696_p4 = pnand %p6694_p3, %p6691_p2 }
  0xa4   :  { %6699 = shalt.err (!%p6696_p4)
}
  0xa5   :  { %s6700_s20 = scalar_lea.vmem %s7072_s16, 40960  ;;  %p6705_p6 = scmp.lt.s32.totalorder %s7072_s16, %s7072_s16 }
  0xa6   :  { %p6701_p5 = scmp.ne.s32.totalorder %s7072_s16, %s6700_s20  ;;  %p6706_p7 = scmp.lt.s32.totalorder %s6700_s20, %s6700_s20 }
  0xa8   :  { %p6707_p8 = por %p6706_p7, %p6705_p6 }
  0xaa   :  { %p6708_p9 = pnand %p6707_p8, %p6701_p5 }
  0xac   :  { %6711 = shalt.err (!%p6708_p9)
}
  0xad   :  { %s6880_s2 = smov 1024   ;;  %s6881_s29 = smov [#allocation13]  }
  0xae   :  { %84 = dma.hbm_to_vmem [thread:$0]  %s7518_s4, 40960, %s7072_s16, [#allocation9], %s6880_s2, %s6880_s2, %s6869_s21  }
  0xaf   :  { %s101_s30 = sshll.u32 %s6881_s29, 4  ;;  %s6882_s5 = smov [#allocation16]   ;;  %s102_s30 = int_to_ptr.vmem [resolvable:$true] %s101_s30 }
  0xb0   :  { %s123_s22 = sshll.u32 %s6882_s5, 4  ;;  %s6712_s23 = scalar_lea.hbm %s7520_s6, 128  ;;  %s124_s22 = int_to_ptr.vmem [resolvable:$true] %s123_s22 }
  0xb1   :  { %p6713_p10 = scmp.ne.s32.totalorder %s7520_s6, %s6712_s23  ;;  %p6716_p11 = scmp.lt.u32.totalorder %s6712_s23, %s7520_s6 }
  0xb3   :  { %p6718_p12 = pnand %p6716_p11, %p6713_p10 }
  0xb5   :  { %6721 = shalt.err (!%p6718_p12)
}
  0xb6   :  { %s6722_s4 = scalar_lea.vmem %s102_s30, 128  ;;  %p6727_p0 = scmp.lt.s32.totalorder %s102_s30, %s102_s30 }
  0xb7   :  { %p6723_p13 = scmp.ne.s32.totalorder %s102_s30, %s6722_s4  ;;  %p6728_p1 = scmp.lt.s32.totalorder %s6722_s4, %s6722_s4 }
  0xb9   :  { %p6729_p2 = por %p6728_p1, %p6727_p0 }
  0xbb   :  { %p6730_p3 = pnand %p6729_p2, %p6723_p13 }
  0xbd   :  { %6733 = shalt.err (!%p6730_p3)
}
  0xbe   :  { %104 = dma.hbm_to_vmem [thread:$0]  %s7520_s6, 128, %s102_s30, [#allocation12]  }
  0xbf   :  { %s6734_s9 = scalar_lea.hbm %s7522_s8, 16 }
  0xc0   :  { %p6735_p4 = scmp.ne.s32.totalorder %s7522_s8, %s6734_s9  ;;  %p6738_p5 = scmp.lt.u32.totalorder %s6734_s9, %s7522_s8 }
  0xc2   :  { %p6740_p6 = pnand %p6738_p5, %p6735_p4 }
  0xc4   :  { %6743 = shalt.err (!%p6740_p6)
}
  0xc5   :  { %s6744_s17 = scalar_lea.vmem %s124_s22, 16  ;;  %s6748_s20 = scalar_lea.vmem %s124_s22, 32 }
  0xc6   :  { %p6745_p7 = scmp.ne.s32.totalorder %s124_s22, %s6744_s17  ;;  %p6749_p8 = scmp.lt.s32.totalorder %s124_s22, %s124_s22 }
  0xc7   :  { %p6750_p9 = scmp.lt.s32.totalorder %s6748_s20, %s6744_s17 }
  0xc9   :  { %p6751_p10 = por %p6750_p9, %p6749_p8 }
  0xcb   :  { %p6752_p11 = pnand %p6751_p10, %p6745_p7 }
  0xcd   :  { %6755 = shalt.err (!%p6752_p11)
}
  0xce   :  { %126 = dma.hbm_to_vmem [thread:$0]  %s7522_s8, 16, %s124_s22, [#allocation15]  }
  0xcf   :  { %s6883_s7 = smov [#allocation19]   ;;  %s6884_s29 = smov [#allocation22]  }
  0xd0   :  { %s145_s25 = sshll.u32 %s6883_s7, 4  ;;  %s164_s30 = sshll.u32 %s6884_s29, 4  ;;  %s146_s25 = int_to_ptr.vmem [resolvable:$true] %s145_s25  ;;  %s165_s30 = int_to_ptr.vmem [resolvable:$true] %s164_s30 }
  0xd1   :  { %s6756_s15 = scalar_lea.hbm %s7524_s10, 32 }
  0xd2   :  { %p6757_p12 = scmp.ne.s32.totalorder %s7524_s10, %s6756_s15  ;;  %p6760_p13 = scmp.lt.u32.totalorder %s6756_s15, %s7524_s10 }
  0xd4   :  { %p6762_p0 = pnand %p6760_p13, %p6757_p12 }
  0xd6   :  { %6765 = shalt.err (!%p6762_p0)
}
  0xd7   :  { %s6766_s8 = scalar_lea.vmem %s146_s25, 32  ;;  %p6771_p2 = scmp.lt.s32.totalorder %s146_s25, %s146_s25 }
  0xd8   :  { %p6767_p1 = scmp.ne.s32.totalorder %s146_s25, %s6766_s8  ;;  %p6772_p3 = scmp.lt.s32.totalorder %s6766_s8, %s6766_s8 }
  0xda   :  { %p6773_p4 = por %p6772_p3, %p6771_p2 }
  0xdc   :  { %p6774_p5 = pnand %p6773_p4, %p6767_p1 }
  0xde   :  { %6777 = shalt.err (!%p6774_p5)
}
  0xdf   :  { %148 = dma.hbm_to_vmem [thread:$0]  %s7524_s10, 32, %s146_s25, [#allocation18]  }
  0xe0   :  { %s6778_s16 = scalar_lea.hbm %s7526_s12, 2048 }
  0xe1   :  { %p6779_p6 = scmp.ne.s32.totalorder %s7526_s12, %s6778_s16  ;;  %p6782_p7 = scmp.lt.u32.totalorder %s6778_s16, %s7526_s12 }
  0xe3   :  { %p6784_p8 = pnand %p6782_p7, %p6779_p6 }
  0xe5   :  { %6787 = shalt.err (!%p6784_p8)
}
  0xe6   :  { %s6788_s19 = scalar_lea.vmem %s165_s30, 2048  ;;  %p6793_p10 = scmp.lt.s32.totalorder %s165_s30, %s165_s30 }
  0xe7   :  { %p6789_p9 = scmp.ne.s32.totalorder %s165_s30, %s6788_s19  ;;  %p6794_p11 = scmp.lt.s32.totalorder %s6788_s19, %s6788_s19 }
  0xe9   :  { %p6795_p12 = por %p6794_p11, %p6793_p10 }
  0xeb   :  { %p6796_p13 = pnand %p6795_p12, %p6789_p9 }
  0xed   :  { %6799 = shalt.err (!%p6796_p13)
}
  0xee   :  { %s6885_s10 = smov 128   ;;  %s6886_s28 = smov 8  }
  0xef   :  { %170 = dma.hbm_to_vmem [thread:$0]  %s7526_s12, 2048, %s165_s30, [#allocation21], %s6885_s10, %s6885_s10, %s6886_s28  }
  0xf0   :  { %s6887_s20 = smov [#allocation25]   ;;  %s6800_s25 = scalar_lea.hbm %s7528_s14, 16 }
  0xf1   :  { %s189_s6 = sshll.u32 %s6887_s20, 4  ;;  %p6801_p0 = scmp.ne.s32.totalorder %s7528_s14, %s6800_s25  ;;  %s190_s6 = int_to_ptr.vmem [resolvable:$true] %s189_s6 }
  0xf2   :  { %p6804_p1 = scmp.lt.u32.totalorder %s6800_s25, %s7528_s14 }
  0xf4   :  { %p6806_p2 = pnand %p6804_p1, %p6801_p0 }
  0xf6   :  { %6809 = shalt.err (!%p6806_p2)
}
  0xf7   :  { %s6810_s23 = scalar_lea.vmem %s190_s6, 16  ;;  %s6814_s12 = scalar_lea.vmem %s190_s6, 32 }
  0xf8   :  { %p6811_p3 = scmp.ne.s32.totalorder %s190_s6, %s6810_s23  ;;  %p6815_p4 = scmp.lt.s32.totalorder %s190_s6, %s190_s6 }
  0xf9   :  { %p6816_p5 = scmp.lt.s32.totalorder %s6814_s12, %s6810_s23 }
  0xfb   :  { %p6817_p6 = por %p6816_p5, %p6815_p4 }
  0xfd   :  { %p6818_p7 = pnand %p6817_p6, %p6811_p3 }
  0xff   :  { %6821 = shalt.err (!%p6818_p7)
}
 0x100   :  { %192 = dma.hbm_to_vmem [thread:$0]  %s7528_s14, 16, %s190_s6, [#allocation24]  }
 0x101   :  { %6844 = dma.done.wait [#allocation3], 1024  }
 0x102   :  { %6845 = vsyncadd [#allocation3], 4294966272 }
 0x103   :  { %6846 = dma.done.wait [#allocation6], 57568  }
 0x104   :  { %6847 = vsyncadd [#allocation6], 4294909728 }
 0x105   :  { %6848 = dma.done.wait [#allocation9], 41184  }
 0x106   :  { %6849 = vsyncadd [#allocation9], 4294926112 }
 0x107   :  { %6850 = dma.done.wait [#allocation12], 256  }
 0x108   :  { %6851 = vsyncadd [#allocation12], 4294967040 }
 0x109   :  { %6852 = dma.done.wait [#allocation15], 4112  }
 0x10a   :  { %6853 = vsyncadd [#allocation15], 4294963184 }
 0x10b   :  { %6854 = dma.done.wait [#allocation18], 8224  }
 0x10c   :  { %6855 = vsyncadd [#allocation18], 4294959072 }
 0x10d   :  { %6856 = dma.done.wait [#allocation21], 2080  }
 0x10e   :  { %6857 = vsyncadd [#allocation21], 4294965216 }
 0x10f   :  { %6858 = dma.done.wait [#allocation24], 2064  }
 0x110   :  { %6859 = vsyncadd [#allocation24], 4294965232  ;;  %v248_v0 = vld [vmem:[#allocation5 + $0x8] sm:$0xff]  ;;  %v250_v1 = vld [vmem:[#allocation5 + $0x18] sm:$0xff]  ;;  %s6889_s14 = smov [#allocation26]  }
 0x111   :  { %v247_v2 = vld [vmem:[#allocation5] sm:$0xff]  ;;  %v696_v3 = vunpack.c.l.s8.bf16 %v248_v0  ;;  %v710_v4 = vunpack.c.h.s8.bf16 %v248_v0  ;;  %v698_v5 = vunpack.c.l.s8.bf16 %v250_v1  ;;  %v712_v6 = vunpack.c.h.s8.bf16 %v250_v1  ;;  %v249_v7 = vld [vmem:[#allocation5 + $0x10] sm:$0xff]  ;;  %v262_v10 = vld [vmem:[#allocation5 + $0x78] sm:$0xff]  ;;  %s6067_s24 = sshll.u32 %s6889_s14, 4  ;;  %s6068_s24 = int_to_ptr.vmem [resolvable:$true] %s6067_s24 }
 0x112   :  { %v695_v8 = vunpack.c.l.s8.bf16 %v247_v2  ;;  %v697_v9 = vunpack.c.l.s8.bf16 %v249_v7  ;;  %v264_v11 = vld [vmem:[#allocation5 + $0x88] sm:$0xff]  ;;  %v709_v12 = vunpack.c.h.s8.bf16 %v247_v2  ;;  %v711_v13 = vunpack.c.h.s8.bf16 %v249_v7  ;;  %v261_v16 = vld [vmem:[#allocation5 + $0x70] sm:$0xff]  ;;  %v263_v17 = vld [vmem:[#allocation5 + $0x80] sm:$0xff]  ;;  %s6822_s0 = scalar_lea.vmem %s6068_s24, 256  ;;  %p6827_p9 = scmp.lt.s32.totalorder %s6068_s24, %s6068_s24 }
 0x113   :  { %1631 = vmatprep.subr.bf16.mxu0 %v696_v3  ;;  %1803 = vmatprep.subr.bf16.mxu1 %v698_v5  ;;  %v724_v14 = vunpack.c.l.s8.bf16 %v262_v10  ;;  %v726_v15 = vunpack.c.l.s8.bf16 %v264_v11  ;;  %v723_v18 = vunpack.c.l.s8.bf16 %v261_v16  ;;  %v725_v19 = vunpack.c.l.s8.bf16 %v263_v17  ;;  %v276_v22 = vld [vmem:[#allocation5 + $0xe8] sm:$0xff]  ;;  %v278_v23 = vld [vmem:[#allocation5 + $0xf8] sm:$0xff]  ;;  %v275_v28 = vld [vmem:[#allocation5 + $0xe0] sm:$0xff]  ;;  %p6823_p8 = scmp.ne.s32.totalorder %s6068_s24, %s6822_s0  ;;  %p6828_p10 = scmp.lt.s32.totalorder %s6822_s0, %s6822_s0 }
 0x114   :  { %1632 = vmatpush1.bf16.msra.mxu0 %v695_v8  ;;  %1804 = vmatpush1.bf16.msra.mxu1 %v697_v9  ;;  %v738_v20 = vunpack.c.h.s8.bf16 %v262_v10  ;;  %v740_v21 = vunpack.c.h.s8.bf16 %v264_v11  ;;  %v737_v24 = vunpack.c.h.s8.bf16 %v261_v16  ;;  %v739_v25 = vunpack.c.h.s8.bf16 %v263_v17  ;;  %v277_v29 = vld [vmem:[#allocation5 + $0xf0] sm:$0xff]  ;;  %v7167_v30 = vld [vmem:[#allocation2] sm:$0xff]  ;;  %v290_v37 = vld [vmem:[#allocation5 + $0x158] sm:$0xff] }
 0x115   :  { %1633 = vmatprep.subr.bf16.mxu0 %v710_v4  ;;  %1805 = vmatprep.subr.bf16.mxu1 %v712_v6  ;;  %v752_v26 = vunpack.c.l.s8.bf16 %v276_v22  ;;  %v754_v27 = vunpack.c.l.s8.bf16 %v278_v23  ;;  %v7169_v31 = vld [vmem:[#allocation2 + $0x20] sm:$0xff]  ;;  %v751_v32 = vunpack.c.l.s8.bf16 %v275_v28  ;;  %v753_v33 = vunpack.c.l.s8.bf16 %v277_v29  ;;  %v292_v38 = vld [vmem:[#allocation5 + $0x168] sm:$0xff]  ;;  %v289_v43 = vld [vmem:[#allocation5 + $0x150] sm:$0xff]  ;;  %p6829_p11 = por %p6828_p10, %p6827_p9 }
 0x116   :  { %v766_v34 = vunpack.c.h.s8.bf16 %v276_v22  ;;  %v768_v35 = vunpack.c.h.s8.bf16 %v278_v23  ;;  %v7173_v36 = vcombine.high %v7167_v30, %v7169_v31  ;;  %v765_v39 = vunpack.c.h.s8.bf16 %v275_v28  ;;  %v291_v44 = vld [vmem:[#allocation5 + $0x160] sm:$0xff]  ;;  %v304_v49 = vld [vmem:[#allocation5 + $0x1c8] sm:$0xff]  ;;  %v306_v50 = vld [vmem:[#allocation5 + $0x1d8] sm:$0xff] }
 0x117   :  { %v767_v40 = vunpack.c.h.s8.bf16 %v277_v29  ;;  %v780_v41 = vunpack.c.l.s8.bf16 %v290_v37  ;;  %v782_v42 = vunpack.c.l.s8.bf16 %v292_v38  ;;  %v779_v45 = vunpack.c.l.s8.bf16 %v289_v43  ;;  %v303_v51 = vld [vmem:[#allocation5 + $0x1c0] sm:$0xff]  ;;  %v305_v52 = vld [vmem:[#allocation5 + $0x1d0] sm:$0xff]  ;;  %v318_v61 = vld [vmem:[#allocation5 + $0x238] sm:$0xff]  ;;  %p6830_p12 = pnand %p6829_p11, %p6823_p8 }
 0x118   :  { %1634 = vmatpush1.bf16.msra.mxu0 %v709_v12  ;;  %1806 = vmatpush1.bf16.msra.mxu1 %v711_v13  ;;  %v781_v46 = vunpack.c.l.s8.bf16 %v291_v44  ;;  %v794_v47 = vunpack.c.h.s8.bf16 %v290_v37  ;;  %v796_v48 = vunpack.c.h.s8.bf16 %v292_v38  ;;  %v793_v53 = vunpack.c.h.s8.bf16 %v289_v43  ;;  %v320_v62 = vld [vmem:[#allocation5 + $0x248] sm:$0xff]  ;;  %v317_v63 = vld [vmem:[#allocation5 + $0x230] sm:$0xff]  ;;  %v319_v0 = vld [vmem:[#allocation5 + $0x240] sm:$0xff] }
 0x119   :  { %1635 = vmatprep.subr.bf16.mxu0 %v724_v14  ;;  %1807 = vmatprep.subr.bf16.mxu1 %v726_v15  ;;  %v795_v54 = vunpack.c.h.s8.bf16 %v291_v44  ;;  %v808_v55 = vunpack.c.l.s8.bf16 %v304_v49  ;;  %v810_v56 = vunpack.c.l.s8.bf16 %v306_v50  ;;  %v807_v57 = vunpack.c.l.s8.bf16 %v303_v51  ;;  %v332_v9 = vld [vmem:[#allocation5 + $0x2a8] sm:$0xff]  ;;  %v334_v10 = vld [vmem:[#allocation5 + $0x2b8] sm:$0xff]  ;;  %v331_v11 = vld [vmem:[#allocation5 + $0x2a0] sm:$0xff] }
 0x11a   :  { %1663 = vmatprep.mubr.bf16.mxu0 %v7173_v36  ;;  %1835 = vmatprep.mubr.bf16.mxu1 %v7173_v36  ;;  %v809_v58 = vunpack.c.l.s8.bf16 %v305_v52  ;;  %v822_v59 = vunpack.c.h.s8.bf16 %v304_v49  ;;  %v824_v60 = vunpack.c.h.s8.bf16 %v306_v50  ;;  %v821_v1 = vunpack.c.h.s8.bf16 %v303_v51  ;;  %v333_v12 = vld [vmem:[#allocation5 + $0x2b0] sm:$0xff]  ;;  %v348_v22 = vld [vmem:[#allocation5 + $0x328] sm:$0xff]  ;;  %v362_v37 = vld [vmem:[#allocation5 + $0x398] sm:$0xff] }
 0x11b   :  { %v823_v2 = vunpack.c.h.s8.bf16 %v305_v52  ;;  %v836_v3 = vunpack.c.l.s8.bf16 %v318_v61  ;;  %v838_v4 = vunpack.c.l.s8.bf16 %v320_v62  ;;  %v835_v5 = vunpack.c.l.s8.bf16 %v317_v63  ;;  %v345_v23 = vld [vmem:[#allocation5 + $0x310] sm:$0xff]  ;;  %v359_v38 = vld [vmem:[#allocation5 + $0x380] sm:$0xff]  ;;  %v7177_v44 = vld [vmem:[#allocation2 + $0x8] sm:$0xff] }
 0x11c   :  { %1636 = vmatpush1.bf16.msra.mxu0 %v723_v18  ;;  %1808 = vmatpush1.bf16.msra.mxu1 %v725_v19  ;;  %v837_v6 = vunpack.c.l.s8.bf16 %v319_v0  ;;  %v850_v7 = vunpack.c.h.s8.bf16 %v318_v61  ;;  %v852_v8 = vunpack.c.h.s8.bf16 %v320_v62  ;;  %v849_v13 = vunpack.c.h.s8.bf16 %v317_v63  ;;  %v374_v51 = vld [vmem:[#allocation5 + $0x3f8] sm:$0xff]  ;;  %v376_v52 = vld [vmem:[#allocation5 + $0x408] sm:$0xff] }
 0x11d   :  { %1637 = vmatprep.subr.bf16.mxu0 %v738_v20  ;;  %1809 = vmatprep.subr.bf16.mxu1 %v740_v21  ;;  %v851_v14 = vunpack.c.h.s8.bf16 %v319_v0  ;;  %v864_v15 = vunpack.c.l.s8.bf16 %v332_v9  ;;  %v866_v16 = vunpack.c.l.s8.bf16 %v334_v10  ;;  %v863_v17 = vunpack.c.l.s8.bf16 %v331_v11  ;;  %v346_v21 = vld [vmem:[#allocation5 + $0x318] sm:$0xff]  ;;  %v388_v62 = vld [vmem:[#allocation5 + $0x468] sm:$0xff] }
 0x11e   :  { %v865_v18 = vunpack.c.l.s8.bf16 %v333_v12  ;;  %v878_v19 = vunpack.c.h.s8.bf16 %v332_v9  ;;  %v880_v20 = vunpack.c.h.s8.bf16 %v334_v10  ;;  %v894_v28 = vunpack.c.l.s8.bf16 %v348_v22  ;;  %v390_v63 = vld [vmem:[#allocation5 + $0x478] sm:$0xff] }
 0x11f   :  { %v891_v29 = vunpack.c.l.s8.bf16 %v345_v23  ;;  %v922_v43 = vunpack.c.l.s8.bf16 %v362_v37  ;;  %v936_v50 = vunpack.c.h.s8.bf16 %v362_v37  ;;  %v964_v61 = vunpack.c.h.s8.bf16 %v376_v52  ;;  %v402_v10 = vld [vmem:[#allocation5 + $0x4d8] sm:$0xff] }
 0x120   :  { %1638 = vmatpush1.bf16.msra.mxu0 %v737_v24  ;;  %1810 = vmatpush1.bf16.msra.mxu1 %v739_v25  ;;  %v347_v24 = vld [vmem:[#allocation5 + $0x320] sm:$0xff]  ;;  %v877_v25 = vunpack.c.h.s8.bf16 %v331_v11  ;;  %v992_v9 = vunpack.c.h.s8.bf16 %v390_v63  ;;  %v404_v11 = vld [vmem:[#allocation5 + $0x4e8] sm:$0xff]  ;;  %v430_v37 = vld [vmem:[#allocation5 + $0x5b8] sm:$0xff] }
 0x121   :  { %1639 = vmatprep.subr.bf16.mxu0 %v752_v26  ;;  %1811 = vmatprep.subr.bf16.mxu1 %v754_v27  ;;  %v879_v26 = vunpack.c.h.s8.bf16 %v333_v12  ;;  %v892_v27 = vunpack.c.l.s8.bf16 %v346_v21 }
 0x124   :  { %1640 = vmatpush1.bf16.msra.mxu0 %v751_v32  ;;  %1812 = vmatpush1.bf16.msra.mxu1 %v753_v33  ;;  %v893_v32 = vunpack.c.l.s8.bf16 %v347_v24  ;;  %v906_v33 = vunpack.c.h.s8.bf16 %v346_v21  ;;  %v1020_v21 = vunpack.c.h.s8.bf16 %v404_v11 }
 0x125   :  { %1641 = vmatprep.subr.bf16.mxu0 %v766_v34  ;;  %1813 = vmatprep.subr.bf16.mxu1 %v768_v35  ;;  %v908_v34 = vunpack.c.h.s8.bf16 %v348_v22  ;;  %v360_v35 = vld [vmem:[#allocation5 + $0x388] sm:$0xff] }
 0x126   :  { %v934_v49 = vunpack.c.h.s8.bf16 %v360_v35  ;;  %v416_v22 = vld [vmem:[#allocation5 + $0x548] sm:$0xff] }
 0x128   :  { %1642 = vmatpush1.bf16.msra.mxu0 %v765_v39  ;;  %1814 = vmatpush1.bf16.msra.mxu1 %v767_v40  ;;  %v361_v39 = vld [vmem:[#allocation5 + $0x390] sm:$0xff]  ;;  %v905_v40 = vunpack.c.h.s8.bf16 %v345_v23  ;;  %v418_v23 = vld [vmem:[#allocation5 + $0x558] sm:$0xff] }
 0x129   :  { %1643 = vmatprep.subr.bf16.mxu0 %v780_v41  ;;  %1815 = vmatprep.subr.bf16.mxu1 %v782_v42  ;;  %v907_v41 = vunpack.c.h.s8.bf16 %v347_v24  ;;  %v920_v42 = vunpack.c.l.s8.bf16 %v360_v35  ;;  %v1048_v35 = vunpack.c.h.s8.bf16 %v418_v23 }
 0x12c   :  { %1644 = vmatpush1.bf16.msra.mxu0 %v779_v45  ;;  %1816 = vmatpush1.bf16.msra.mxu1 %v781_v46  ;;  %v7179_v45 = vld [vmem:[#allocation2 + $0x28] sm:$0xff]  ;;  %v7183_v46 = vcombine.low %v7167_v30, %v7169_v31  ;;  %v373_v30 = vld [vmem:[#allocation5 + $0x3f0] sm:$0xff]  ;;  %v375_v31 = vld [vmem:[#allocation5 + $0x400] sm:$0xff] }
 0x12d   :  { %1645 = vmatprep.subr.bf16.mxu0 %v794_v47  ;;  %1817 = vmatprep.subr.bf16.mxu1 %v796_v48  ;;  %v919_v47 = vunpack.c.l.s8.bf16 %v359_v38  ;;  %v921_v48 = vunpack.c.l.s8.bf16 %v361_v39  ;;  %v961_v0 = vunpack.c.h.s8.bf16 %v373_v30 }
 0x130   :  { %1646 = vmatpush1.bf16.msra.mxu0 %v793_v53  ;;  %1818 = vmatpush1.bf16.msra.mxu1 %v795_v54  ;;  %v7187_v53 = vcombine.high %v7177_v44, %v7179_v45  ;;  %v933_v54 = vunpack.c.h.s8.bf16 %v359_v38  ;;  %v432_v38 = vld [vmem:[#allocation5 + $0x5c8] sm:$0xff] }
 0x131   :  { %1647 = vmatprep.subr.bf16.mxu0 %v808_v55  ;;  %1819 = vmatprep.subr.bf16.mxu1 %v810_v56  ;;  %v935_v55 = vunpack.c.h.s8.bf16 %v361_v39  ;;  %v948_v56 = vunpack.c.l.s8.bf16 %v374_v51 }
 0x134   :  { %1648 = vmatpush1.bf16.msra.mxu0 %v807_v57  ;;  %1820 = vmatpush1.bf16.msra.mxu1 %v809_v58  ;;  %v950_v57 = vunpack.c.l.s8.bf16 %v376_v52  ;;  %v947_v58 = vunpack.c.l.s8.bf16 %v373_v30  ;;  %v444_v52 = vld [vmem:[#allocation5 + $0x628] sm:$0xff]  ;;  %v446_v30 = vld [vmem:[#allocation5 + $0x638] sm:$0xff] }
 0x135   :  { %1649 = vmatprep.subr.bf16.mxu0 %v822_v59  ;;  %1821 = vmatprep.subr.bf16.mxu1 %v824_v60  ;;  %v949_v59 = vunpack.c.l.s8.bf16 %v375_v31  ;;  %v962_v60 = vunpack.c.h.s8.bf16 %v374_v51  ;;  %v1076_v51 = vunpack.c.h.s8.bf16 %v432_v38 }
 0x138   :  { %1650 = vmatpush1.bf16.msra.mxu0 %v821_v1  ;;  %1822 = vmatpush1.bf16.msra.mxu1 %v823_v2  ;;  %v963_v1 = vunpack.c.h.s8.bf16 %v375_v31  ;;  %v976_v2 = vunpack.c.l.s8.bf16 %v388_v62 }
 0x139   :  { %1651 = vmatprep.subr.bf16.mxu0 %v836_v3  ;;  %1823 = vmatprep.subr.bf16.mxu1 %v838_v4  ;;  %v978_v3 = vunpack.c.l.s8.bf16 %v390_v63  ;;  %v387_v4 = vld [vmem:[#allocation5 + $0x460] sm:$0xff]  ;;  %v458_v63 = vld [vmem:[#allocation5 + $0x698] sm:$0xff] }
 0x13a   :  { %v989_v12 = vunpack.c.h.s8.bf16 %v387_v4 }
 0x13c   :  { %1652 = vmatpush1.bf16.msra.mxu0 %v835_v5  ;;  %1824 = vmatpush1.bf16.msra.mxu1 %v837_v6  ;;  %v389_v5 = vld [vmem:[#allocation5 + $0x470] sm:$0xff]  ;;  %v975_v6 = vunpack.c.l.s8.bf16 %v387_v4 }
 0x13d   :  { %1653 = vmatprep.subr.bf16.mxu0 %v850_v7  ;;  %1825 = vmatprep.subr.bf16.mxu1 %v852_v8  ;;  %v977_v7 = vunpack.c.l.s8.bf16 %v389_v5  ;;  %v990_v8 = vunpack.c.h.s8.bf16 %v388_v62  ;;  %v1104_v62 = vunpack.c.h.s8.bf16 %v446_v30 }
 0x140   :  { %1654 = vmatpush1.bf16.msra.mxu0 %v849_v13  ;;  %1826 = vmatpush1.bf16.msra.mxu1 %v851_v14  ;;  %v991_v13 = vunpack.c.h.s8.bf16 %v389_v5  ;;  %v1004_v14 = vunpack.c.l.s8.bf16 %v402_v10  ;;  %v457_v5 = vld [vmem:[#allocation5 + $0x690] sm:$0xff] }
 0x141   :  { %1655 = vmatprep.subr.bf16.mxu0 %v864_v15  ;;  %1827 = vmatprep.subr.bf16.mxu1 %v866_v16  ;;  %v1006_v15 = vunpack.c.l.s8.bf16 %v404_v11  ;;  %v401_v16 = vld [vmem:[#allocation5 + $0x4d0] sm:$0xff]  ;;  %v472_v11 = vld [vmem:[#allocation5 + $0x708] sm:$0xff] }
 0x142   :  { %v1017_v24 = vunpack.c.h.s8.bf16 %v401_v16 }
 0x144   :  { %1656 = vmatpush1.bf16.msra.mxu0 %v863_v17  ;;  %1828 = vmatpush1.bf16.msra.mxu1 %v865_v18  ;;  %v403_v17 = vld [vmem:[#allocation5 + $0x4e0] sm:$0xff]  ;;  %v1003_v18 = vunpack.c.l.s8.bf16 %v401_v16 }
 0x145   :  { %1657 = vmatprep.subr.bf16.mxu0 %v878_v19  ;;  %1829 = vmatprep.subr.bf16.mxu1 %v880_v20  ;;  %v1005_v19 = vunpack.c.l.s8.bf16 %v403_v17  ;;  %v1018_v20 = vunpack.c.h.s8.bf16 %v402_v10 }
 0x148   :  { %1658 = vmatpush1.bf16.msra.mxu0 %v877_v25  ;;  %1830 = vmatpush1.bf16.msra.mxu1 %v879_v26  ;;  %v1019_v25 = vunpack.c.h.s8.bf16 %v403_v17  ;;  %v1032_v26 = vunpack.c.l.s8.bf16 %v416_v22  ;;  %v471_v17 = vld [vmem:[#allocation5 + $0x700] sm:$0xff] }
 0x149   :  { %1659 = vmatprep.subr.bf16.mxu0 %v892_v27  ;;  %1831 = vmatprep.subr.bf16.mxu1 %v894_v28  ;;  %v1034_v27 = vunpack.c.l.s8.bf16 %v418_v23  ;;  %v415_v28 = vld [vmem:[#allocation5 + $0x540] sm:$0xff] }
 0x14a   :  { %v1045_v39 = vunpack.c.h.s8.bf16 %v415_v28 }
 0x14c   :  { %1660 = vmatpush1.bf16.msra.mxu0 %v891_v29  ;;  %1832 = vmatpush1.bf16.msra.mxu1 %v893_v32  ;;  %v417_v29 = vld [vmem:[#allocation5 + $0x550] sm:$0xff]  ;;  %v1031_v32 = vunpack.c.l.s8.bf16 %v415_v28 }
 0x14d   :  { %1661 = vmatprep.subr.bf16.mxu0 %v906_v33  ;;  %1833 = vmatprep.subr.bf16.mxu1 %v908_v34  ;;  %v1033_v33 = vunpack.c.l.s8.bf16 %v417_v29  ;;  %v1046_v34 = vunpack.c.h.s8.bf16 %v416_v22  ;;  %v1143_v22 = vunpack.c.l.s8.bf16 %v471_v17 }
 0x150   :  { %1662 = vmatpush1.bf16.msra.mxu0 %v905_v40  ;;  %1834 = vmatpush1.bf16.msra.mxu1 %v907_v41  ;;  %v1047_v40 = vunpack.c.h.s8.bf16 %v417_v29  ;;  %v1060_v41 = vunpack.c.l.s8.bf16 %v430_v37 }
 0x151   :  { %1674 = vmatprep.subr.bf16.mxu0 %v920_v42  ;;  %1846 = vmatprep.subr.bf16.mxu1 %v922_v43  ;;  %v1062_v42 = vunpack.c.l.s8.bf16 %v432_v38  ;;  %v429_v43 = vld [vmem:[#allocation5 + $0x5b0] sm:$0xff] }
 0x152   :  { %v1073_v31 = vunpack.c.h.s8.bf16 %v429_v43 }
 0x153   :  { %1664 = vmatmul.mubr.bf16.vlgmr.msra.gmra.mrb[0].mxu0 %v7183_v46  ;;  %1836 = vmatmul.mubr.bf16.vlgmr.msra.gmra.mrb[0].mxu1 %v7183_v46 }
 0x154   :  { %1675 = vmatpush1.bf16.msra.mxu0 %v919_v47  ;;  %1847 = vmatpush1.bf16.msra.mxu1 %v921_v48  ;;  %v431_v47 = vld [vmem:[#allocation5 + $0x5c0] sm:$0xff]  ;;  %v1059_v48 = vunpack.c.l.s8.bf16 %v429_v43 }
 0x155   :  { %1676 = vmatprep.subr.bf16.mxu0 %v934_v49  ;;  %1848 = vmatprep.subr.bf16.mxu1 %v936_v50  ;;  %v1061_v49 = vunpack.c.l.s8.bf16 %v431_v47  ;;  %v1074_v50 = vunpack.c.h.s8.bf16 %v430_v37 }
 0x156   :  { %1706 = vmatprep.mubr.bf16.mxu0 %v7187_v53  ;;  %1878 = vmatprep.mubr.bf16.mxu1 %v7187_v53 }
 0x158   :  { %1677 = vmatpush1.bf16.msra.mxu0 %v933_v54  ;;  %1849 = vmatpush1.bf16.msra.mxu1 %v935_v55  ;;  %v1075_v54 = vunpack.c.h.s8.bf16 %v431_v47  ;;  %v1088_v55 = vunpack.c.l.s8.bf16 %v444_v52 }
 0x159   :  { %1678 = vmatprep.subr.bf16.mxu0 %v948_v56  ;;  %1850 = vmatprep.subr.bf16.mxu1 %v950_v57  ;;  %v1090_v56 = vunpack.c.l.s8.bf16 %v446_v30  ;;  %v443_v57 = vld [vmem:[#allocation5 + $0x620] sm:$0xff] }
 0x15c   :  { %1679 = vmatpush1.bf16.msra.mxu0 %v947_v58  ;;  %1851 = vmatpush1.bf16.msra.mxu1 %v949_v59  ;;  %v445_v58 = vld [vmem:[#allocation5 + $0x630] sm:$0xff]  ;;  %v1087_v59 = vunpack.c.l.s8.bf16 %v443_v57 }
 0x15d   :  { %1680 = vmatprep.subr.bf16.mxu0 %v962_v60  ;;  %1852 = vmatprep.subr.bf16.mxu1 %v964_v61  ;;  %v1089_v60 = vunpack.c.l.s8.bf16 %v445_v58  ;;  %v1102_v61 = vunpack.c.h.s8.bf16 %v444_v52 }
 0x160   :  { %1681 = vmatpush1.bf16.msra.mxu0 %v961_v0  ;;  %1853 = vmatpush1.bf16.msra.mxu1 %v963_v1  ;;  %v460_v0 = vld [vmem:[#allocation5 + $0x6a8] sm:$0xff]  ;;  %v1101_v1 = vunpack.c.h.s8.bf16 %v443_v57 }
 0x161   :  { %1682 = vmatprep.subr.bf16.mxu0 %v976_v2  ;;  %1854 = vmatprep.subr.bf16.mxu1 %v978_v3  ;;  %v1103_v2 = vunpack.c.h.s8.bf16 %v445_v58  ;;  %v1116_v3 = vunpack.c.l.s8.bf16 %v458_v63  ;;  %v1118_v4 = vunpack.c.l.s8.bf16 %v460_v0  ;;  %v1132_v10 = vunpack.c.h.s8.bf16 %v460_v0 }
 0x164   :  { %1683 = vmatpush1.bf16.msra.mxu0 %v975_v6  ;;  %1855 = vmatpush1.bf16.msra.mxu1 %v977_v7  ;;  %v459_v6 = vld [vmem:[#allocation5 + $0x6a0] sm:$0xff]  ;;  %v1115_v7 = vunpack.c.l.s8.bf16 %v457_v5 }
 0x165   :  { %1684 = vmatprep.subr.bf16.mxu0 %v990_v8  ;;  %1856 = vmatprep.subr.bf16.mxu1 %v992_v9  ;;  %v1117_v8 = vunpack.c.l.s8.bf16 %v459_v6  ;;  %v1130_v9 = vunpack.c.h.s8.bf16 %v458_v63 }
 0x168   :  { %1685 = vmatpush1.bf16.msra.mxu0 %v989_v12  ;;  %1857 = vmatpush1.bf16.msra.mxu1 %v991_v13  ;;  %v474_v12 = vld [vmem:[#allocation5 + $0x718] sm:$0xff]  ;;  %v1129_v13 = vunpack.c.h.s8.bf16 %v457_v5 }
 0x169   :  { %1686 = vmatprep.subr.bf16.mxu0 %v1004_v14  ;;  %1858 = vmatprep.subr.bf16.mxu1 %v1006_v15  ;;  %v1131_v14 = vunpack.c.h.s8.bf16 %v459_v6  ;;  %v1144_v15 = vunpack.c.l.s8.bf16 %v472_v11  ;;  %v1146_v16 = vunpack.c.l.s8.bf16 %v474_v12 }
 0x16c   :  { %1687 = vmatpush1.bf16.msra.mxu0 %v1003_v18  ;;  %1859 = vmatpush1.bf16.msra.mxu1 %v1005_v19  ;;  %v473_v18 = vld [vmem:[#allocation5 + $0x710] sm:$0xff]  ;;  %v7195_v19 = vcombine.low %v7177_v44, %v7179_v45  ;;  %v1157_v44 = vunpack.c.h.s8.bf16 %v471_v17 }
 0x16d   :  { %1688 = vmatprep.subr.bf16.mxu0 %v1018_v20  ;;  %1860 = vmatprep.subr.bf16.mxu1 %v1020_v21  ;;  %v7197_v20 = vld [vmem:[#allocation2 + $0x10] sm:$0xff]  ;;  %v1145_v23 = vunpack.c.l.s8.bf16 %v473_v18  ;;  %v1159_v45 = vunpack.c.h.s8.bf16 %v473_v18 }
 0x16e   :  { %v7199_v21 = vld [vmem:[#allocation2 + $0x30] sm:$0xff] }
 0x16f   :  { %v7203_v28 = vcombine.high %v7197_v20, %v7199_v21 }
 0x170   :  { %1689 = vmatpush1.bf16.msra.mxu0 %v1017_v24  ;;  %1861 = vmatpush1.bf16.msra.mxu1 %v1019_v25  ;;  %v1158_v24 = vunpack.c.h.s8.bf16 %v472_v11  ;;  %v1160_v25 = vunpack.c.h.s8.bf16 %v474_v12 }
 0x171   :  { %1690 = vmatprep.subr.bf16.mxu0 %v1032_v26  ;;  %1862 = vmatprep.subr.bf16.mxu1 %v1034_v27  ;;  %v486_v26 = vld [vmem:[#allocation5 + $0x778] sm:$0xff]  ;;  %v488_v27 = vld [vmem:[#allocation5 + $0x788] sm:$0xff] }
 0x172   :  { %v1172_v29 = vunpack.c.l.s8.bf16 %v486_v26  ;;  %v1186_v38 = vunpack.c.h.s8.bf16 %v486_v26 }
 0x174   :  { %1691 = vmatpush1.bf16.msra.mxu0 %v1031_v32  ;;  %1863 = vmatpush1.bf16.msra.mxu1 %v1033_v33  ;;  %v1174_v32 = vunpack.c.l.s8.bf16 %v488_v27  ;;  %v485_v33 = vld [vmem:[#allocation5 + $0x770] sm:$0xff] }
 0x175   :  { %1692 = vmatprep.subr.bf16.mxu0 %v1046_v34  ;;  %1864 = vmatprep.subr.bf16.mxu1 %v1048_v35  ;;  %v487_v34 = vld [vmem:[#allocation5 + $0x780] sm:$0xff]  ;;  %v1171_v35 = vunpack.c.l.s8.bf16 %v485_v33 }
 0x176   :  { %v1173_v37 = vunpack.c.l.s8.bf16 %v487_v34  ;;  %v1187_v43 = vunpack.c.h.s8.bf16 %v487_v34 }
 0x178   :  { %1693 = vmatpush1.bf16.msra.mxu0 %v1045_v39  ;;  %1865 = vmatpush1.bf16.msra.mxu1 %v1047_v40  ;;  %v1188_v39 = vunpack.c.h.s8.bf16 %v488_v27  ;;  %v500_v40 = vld [vmem:[#allocation5 + $0x7e8] sm:$0xff] }
 0x179   :  { %1694 = vmatprep.subr.bf16.mxu0 %v1060_v41  ;;  %1866 = vmatprep.subr.bf16.mxu1 %v1062_v42  ;;  %v502_v41 = vld [vmem:[#allocation5 + $0x7f8] sm:$0xff]  ;;  %v1185_v42 = vunpack.c.h.s8.bf16 %v485_v33  ;;  %v1200_v47 = vunpack.c.l.s8.bf16 %v500_v40  ;;  %v1214_v30 = vunpack.c.h.s8.bf16 %v500_v40 }
 0x17c   :  { %1695 = vmatpush1.bf16.msra.mxu0 %v1059_v48  ;;  %1867 = vmatpush1.bf16.msra.mxu1 %v1061_v49  ;;  %v1202_v48 = vunpack.c.l.s8.bf16 %v502_v41  ;;  %v499_v49 = vld [vmem:[#allocation5 + $0x7e0] sm:$0xff] }
 0x17d   :  { %1696 = vmatprep.subr.bf16.mxu0 %v1074_v50  ;;  %1868 = vmatprep.subr.bf16.mxu1 %v1076_v51  ;;  %v501_v50 = vld [vmem:[#allocation5 + $0x7f0] sm:$0xff]  ;;  %v1199_v51 = vunpack.c.l.s8.bf16 %v499_v49 }
 0x17e   :  { %v1201_v52 = vunpack.c.l.s8.bf16 %v501_v50  ;;  %v1215_v57 = vunpack.c.h.s8.bf16 %v501_v50 }
 0x180   :  { %1697 = vmatpush1.bf16.msra.mxu0 %v1073_v31  ;;  %1869 = vmatpush1.bf16.msra.mxu1 %v1075_v54  ;;  %v1216_v31 = vunpack.c.h.s8.bf16 %v502_v41  ;;  %v514_v54 = vld [vmem:[#allocation5 + $0x858] sm:$0xff] }
 0x181   :  { %1698 = vmatprep.subr.bf16.mxu0 %v1088_v55  ;;  %1870 = vmatprep.subr.bf16.mxu1 %v1090_v56  ;;  %v516_v55 = vld [vmem:[#allocation5 + $0x868] sm:$0xff]  ;;  %v1213_v56 = vunpack.c.h.s8.bf16 %v499_v49  ;;  %v1228_v58 = vunpack.c.l.s8.bf16 %v514_v54  ;;  %v1242_v0 = vunpack.c.h.s8.bf16 %v514_v54 }
 0x184   :  { %1699 = vmatpush1.bf16.msra.mxu0 %v1087_v59  ;;  %1871 = vmatpush1.bf16.msra.mxu1 %v1089_v60  ;;  %v1230_v59 = vunpack.c.l.s8.bf16 %v516_v55  ;;  %v513_v60 = vld [vmem:[#allocation5 + $0x850] sm:$0xff] }
 0x185   :  { %1700 = vmatprep.subr.bf16.mxu0 %v1102_v61  ;;  %1872 = vmatprep.subr.bf16.mxu1 %v1104_v62  ;;  %v515_v61 = vld [vmem:[#allocation5 + $0x860] sm:$0xff]  ;;  %v1227_v62 = vunpack.c.l.s8.bf16 %v513_v60 }
 0x186   :  { %v1229_v63 = vunpack.c.l.s8.bf16 %v515_v61  ;;  %v1243_v5 = vunpack.c.h.s8.bf16 %v515_v61 }
 0x188   :  { %1701 = vmatpush1.bf16.msra.mxu0 %v1101_v1  ;;  %1873 = vmatpush1.bf16.msra.mxu1 %v1103_v2  ;;  %v1244_v1 = vunpack.c.h.s8.bf16 %v516_v55  ;;  %v528_v2 = vld [vmem:[#allocation5 + $0x8c8] sm:$0xff] }
 0x189   :  { %1702 = vmatprep.subr.bf16.mxu0 %v1116_v3  ;;  %1874 = vmatprep.subr.bf16.mxu1 %v1118_v4  ;;  %v530_v3 = vld [vmem:[#allocation5 + $0x8d8] sm:$0xff]  ;;  %v1241_v4 = vunpack.c.h.s8.bf16 %v513_v60  ;;  %v1256_v6 = vunpack.c.l.s8.bf16 %v528_v2  ;;  %v1270_v12 = vunpack.c.h.s8.bf16 %v528_v2 }
 0x18a   :  { %v7213_v2 = vld [vmem:[#allocation2 + $0x18] sm:$0xff] }
 0x18c   :  { %1703 = vmatpush1.bf16.msra.mxu0 %v1115_v7  ;;  %1875 = vmatpush1.bf16.msra.mxu1 %v1117_v8  ;;  %v1258_v7 = vunpack.c.l.s8.bf16 %v530_v3  ;;  %v527_v8 = vld [vmem:[#allocation5 + $0x8c0] sm:$0xff] }
 0x18d   :  { %1704 = vmatprep.subr.bf16.mxu0 %v1130_v9  ;;  %1876 = vmatprep.subr.bf16.mxu1 %v1132_v10  ;;  %v529_v9 = vld [vmem:[#allocation5 + $0x8d0] sm:$0xff]  ;;  %v1255_v10 = vunpack.c.l.s8.bf16 %v527_v8 }
 0x18e   :  { %v1257_v11 = vunpack.c.l.s8.bf16 %v529_v9  ;;  %v1271_v17 = vunpack.c.h.s8.bf16 %v529_v9  ;;  %v600_v9 = vld [vmem:[#allocation5 + $0xb08] sm:$0xff] }
 0x190   :  { %1705 = vmatpush1.bf16.msra.mxu0 %v1129_v13  ;;  %1877 = vmatpush1.bf16.msra.mxu1 %v1131_v14  ;;  %v1272_v13 = vunpack.c.h.s8.bf16 %v530_v3  ;;  %v542_v14 = vld [vmem:[#allocation5 + $0x938] sm:$0xff] }
 0x191   :  { %1717 = vmatprep.subr.bf16.mxu0 %v1144_v15  ;;  %1889 = vmatprep.subr.bf16.mxu1 %v1146_v16  ;;  %v544_v15 = vld [vmem:[#allocation5 + $0x948] sm:$0xff]  ;;  %v1269_v16 = vunpack.c.h.s8.bf16 %v527_v8  ;;  %v1284_v18 = vunpack.c.l.s8.bf16 %v542_v14  ;;  %v1298_v27 = vunpack.c.h.s8.bf16 %v542_v14  ;;  %v7215_v3 = vld [vmem:[#allocation2 + $0x38] sm:$0xff]  ;;  %v599_v14 = vld [vmem:[#allocation5 + $0xb00] sm:$0xff] }
 0x192   :  { %v598_v8 = vld [vmem:[#allocation5 + $0xaf8] sm:$0xff] }
 0x193   :  { %1707 = vmatmul.mubr.bf16.vlgmr.msra.gmra.mrb[0].mxu0 %v7195_v19  ;;  %1879 = vmatmul.mubr.bf16.vlgmr.msra.gmra.mrb[0].mxu1 %v7195_v19 }
 0x194   :  { %1718 = vmatpush1.bf16.msra.mxu0 %v1143_v22  ;;  %1890 = vmatpush1.bf16.msra.mxu1 %v1145_v23  ;;  %v1286_v22 = vunpack.c.l.s8.bf16 %v544_v15  ;;  %v541_v23 = vld [vmem:[#allocation5 + $0x930] sm:$0xff] }
 0x195   :  { %1719 = vmatprep.subr.bf16.mxu0 %v1158_v24  ;;  %1891 = vmatprep.subr.bf16.mxu1 %v1160_v25  ;;  %v543_v24 = vld [vmem:[#allocation5 + $0x940] sm:$0xff]  ;;  %v1283_v25 = vunpack.c.l.s8.bf16 %v541_v23 }
 0x196   :  { %1749 = vmatprep.mubr.bf16.mxu0 %v7203_v28  ;;  %1921 = vmatprep.mubr.bf16.mxu1 %v7203_v28  ;;  %v1285_v26 = vunpack.c.l.s8.bf16 %v543_v24  ;;  %v1299_v33 = vunpack.c.h.s8.bf16 %v543_v24 }
 0x198   :  { %1720 = vmatpush1.bf16.msra.mxu0 %v1157_v44  ;;  %1892 = vmatpush1.bf16.msra.mxu1 %v1159_v45  ;;  %v1300_v44 = vunpack.c.h.s8.bf16 %v544_v15  ;;  %v556_v45 = vld [vmem:[#allocation5 + $0x9a8] sm:$0xff] }
 0x199   :  { %1721 = vmatprep.subr.bf16.mxu0 %v1172_v29  ;;  %1893 = vmatprep.subr.bf16.mxu1 %v1174_v32  ;;  %v558_v29 = vld [vmem:[#allocation5 + $0x9b8] sm:$0xff]  ;;  %v1297_v32 = vunpack.c.h.s8.bf16 %v541_v23  ;;  %v1312_v34 = vunpack.c.l.s8.bf16 %v556_v45  ;;  %v1326_v41 = vunpack.c.h.s8.bf16 %v556_v45  ;;  %v613_v45 = vld [vmem:[#allocation5 + $0xb70] sm:$0xff] }
 0x19a   :  { %v614_v23 = vld [vmem:[#allocation5 + $0xb78] sm:$0xff] }
 0x19c   :  { %1722 = vmatpush1.bf16.msra.mxu0 %v1171_v35  ;;  %1894 = vmatpush1.bf16.msra.mxu1 %v1173_v37  ;;  %v1314_v35 = vunpack.c.l.s8.bf16 %v558_v29  ;;  %v555_v37 = vld [vmem:[#allocation5 + $0x9a0] sm:$0xff] }
 0x19d   :  { %1723 = vmatprep.subr.bf16.mxu0 %v1186_v38  ;;  %1895 = vmatprep.subr.bf16.mxu1 %v1188_v39  ;;  %v557_v38 = vld [vmem:[#allocation5 + $0x9b0] sm:$0xff]  ;;  %v1311_v39 = vunpack.c.l.s8.bf16 %v555_v37 }
 0x19e   :  { %v1313_v40 = vunpack.c.l.s8.bf16 %v557_v38  ;;  %v1327_v49 = vunpack.c.h.s8.bf16 %v557_v38 }
 0x1a0   :  { %1724 = vmatpush1.bf16.msra.mxu0 %v1185_v42  ;;  %1896 = vmatpush1.bf16.msra.mxu1 %v1187_v43  ;;  %v1328_v42 = vunpack.c.h.s8.bf16 %v558_v29  ;;  %v570_v43 = vld [vmem:[#allocation5 + $0xa18] sm:$0xff] }
 0x1a1   :  { %1725 = vmatprep.subr.bf16.mxu0 %v1200_v47  ;;  %1897 = vmatprep.subr.bf16.mxu1 %v1202_v48  ;;  %v572_v47 = vld [vmem:[#allocation5 + $0xa28] sm:$0xff]  ;;  %v1325_v48 = vunpack.c.h.s8.bf16 %v555_v37  ;;  %v1340_v50 = vunpack.c.l.s8.bf16 %v570_v43  ;;  %v1354_v55 = vunpack.c.h.s8.bf16 %v570_v43  ;;  %v627_v43 = vld [vmem:[#allocation5 + $0xbe0] sm:$0xff] }
 0x1a2   :  { %v628_v37 = vld [vmem:[#allocation5 + $0xbe8] sm:$0xff] }
 0x1a4   :  { %1726 = vmatpush1.bf16.msra.mxu0 %v1199_v51  ;;  %1898 = vmatpush1.bf16.msra.mxu1 %v1201_v52  ;;  %v1342_v51 = vunpack.c.l.s8.bf16 %v572_v47  ;;  %v569_v52 = vld [vmem:[#allocation5 + $0xa10] sm:$0xff] }
 0x1a5   :  { %1727 = vmatprep.subr.bf16.mxu0 %v1214_v30  ;;  %1899 = vmatprep.subr.bf16.mxu1 %v1216_v31  ;;  %v571_v30 = vld [vmem:[#allocation5 + $0xa20] sm:$0xff]  ;;  %v1339_v31 = vunpack.c.l.s8.bf16 %v569_v52 }
 0x1a6   :  { %v1341_v54 = vunpack.c.l.s8.bf16 %v571_v30  ;;  %v1355_v60 = vunpack.c.h.s8.bf16 %v571_v30 }
 0x1a8   :  { %1728 = vmatpush1.bf16.msra.mxu0 %v1213_v56  ;;  %1900 = vmatpush1.bf16.msra.mxu1 %v1215_v57  ;;  %v1356_v56 = vunpack.c.h.s8.bf16 %v572_v47  ;;  %v584_v57 = vld [vmem:[#allocation5 + $0xa88] sm:$0xff] }
 0x1a9   :  { %1729 = vmatprep.subr.bf16.mxu0 %v1228_v58  ;;  %1901 = vmatprep.subr.bf16.mxu1 %v1230_v59  ;;  %v586_v58 = vld [vmem:[#allocation5 + $0xa98] sm:$0xff]  ;;  %v1353_v59 = vunpack.c.h.s8.bf16 %v569_v52  ;;  %v1368_v61 = vunpack.c.l.s8.bf16 %v584_v57 }
 0x1aa   :  { %v642_v52 = vld [vmem:[#allocation5 + $0xc58] sm:$0xff] }
 0x1ac   :  { %1730 = vmatpush1.bf16.msra.mxu0 %v1227_v62  ;;  %1902 = vmatpush1.bf16.msra.mxu1 %v1229_v63  ;;  %v1370_v62 = vunpack.c.l.s8.bf16 %v586_v58  ;;  %v583_v63 = vld [vmem:[#allocation5 + $0xa80] sm:$0xff] }
 0x1ad   :  { %1731 = vmatprep.subr.bf16.mxu0 %v1242_v0  ;;  %1903 = vmatprep.subr.bf16.mxu1 %v1244_v1  ;;  %v585_v0 = vld [vmem:[#allocation5 + $0xa90] sm:$0xff]  ;;  %v7211_v1 = vcombine.low %v7197_v20, %v7199_v21  ;;  %v1381_v20 = vunpack.c.h.s8.bf16 %v583_v63 }
 0x1ae   :  { %v1383_v21 = vunpack.c.h.s8.bf16 %v585_v0 }
 0x1b0   :  { %1732 = vmatpush1.bf16.msra.mxu0 %v1241_v4  ;;  %1904 = vmatpush1.bf16.msra.mxu1 %v1243_v5  ;;  %v1367_v4 = vunpack.c.l.s8.bf16 %v583_v63  ;;  %v1369_v5 = vunpack.c.l.s8.bf16 %v585_v0  ;;  %v656_v63 = vld [vmem:[#allocation5 + $0xcc8] sm:$0xff] }
 0x1b1   :  { %1733 = vmatprep.subr.bf16.mxu0 %v1256_v6  ;;  %1905 = vmatprep.subr.bf16.mxu1 %v1258_v7  ;;  %v1382_v6 = vunpack.c.h.s8.bf16 %v584_v57  ;;  %v1384_v7 = vunpack.c.h.s8.bf16 %v586_v58  ;;  %v641_v57 = vld [vmem:[#allocation5 + $0xc50] sm:$0xff] }
 0x1b4   :  { %1734 = vmatpush1.bf16.msra.mxu0 %v1255_v10  ;;  %1906 = vmatpush1.bf16.msra.mxu1 %v1257_v11  ;;  %v7219_v10 = vcombine.high %v7213_v2, %v7215_v3  ;;  %v1396_v11 = vunpack.c.l.s8.bf16 %v598_v8 }
 0x1b5   :  { %1735 = vmatprep.subr.bf16.mxu0 %v1270_v12  ;;  %1907 = vmatprep.subr.bf16.mxu1 %v1272_v13  ;;  %v1398_v12 = vunpack.c.l.s8.bf16 %v600_v9  ;;  %v597_v13 = vld [vmem:[#allocation5 + $0xaf0] sm:$0xff] }
 0x1b6   :  { %v1395_v15 = vunpack.c.l.s8.bf16 %v597_v13  ;;  %v1409_v24 = vunpack.c.h.s8.bf16 %v597_v13  ;;  %v670_v13 = vld [vmem:[#allocation5 + $0xd38] sm:$0xff] }
 0x1b8   :  { %1736 = vmatpush1.bf16.msra.mxu0 %v1269_v16  ;;  %1908 = vmatpush1.bf16.msra.mxu1 %v1271_v17  ;;  %v1397_v16 = vunpack.c.l.s8.bf16 %v599_v14  ;;  %v1410_v17 = vunpack.c.h.s8.bf16 %v598_v8  ;;  %v655_v8 = vld [vmem:[#allocation5 + $0xcc0] sm:$0xff] }
 0x1b9   :  { %1737 = vmatprep.subr.bf16.mxu0 %v1284_v18  ;;  %1909 = vmatprep.subr.bf16.mxu1 %v1286_v22  ;;  %v1412_v18 = vunpack.c.h.s8.bf16 %v600_v9  ;;  %v612_v22 = vld [vmem:[#allocation5 + $0xb68] sm:$0xff] }
 0x1bc   :  { %1738 = vmatpush1.bf16.msra.mxu0 %v1283_v25  ;;  %1910 = vmatpush1.bf16.msra.mxu1 %v1285_v26  ;;  %v1411_v25 = vunpack.c.h.s8.bf16 %v599_v14  ;;  %v1424_v26 = vunpack.c.l.s8.bf16 %v612_v22 }
 0x1bd   :  { %1739 = vmatprep.subr.bf16.mxu0 %v1298_v27  ;;  %1911 = vmatprep.subr.bf16.mxu1 %v1300_v44  ;;  %v1426_v27 = vunpack.c.l.s8.bf16 %v614_v23  ;;  %v611_v44 = vld [vmem:[#allocation5 + $0xb60] sm:$0xff] }
 0x1be   :  { %v1423_v29 = vunpack.c.l.s8.bf16 %v611_v44  ;;  %v1437_v38 = vunpack.c.h.s8.bf16 %v611_v44  ;;  %v684_v44 = vld [vmem:[#allocation5 + $0xda8] sm:$0xff] }
 0x1c0   :  { %1740 = vmatpush1.bf16.msra.mxu0 %v1297_v32  ;;  %1912 = vmatpush1.bf16.msra.mxu1 %v1299_v33  ;;  %v1425_v32 = vunpack.c.l.s8.bf16 %v613_v45  ;;  %v1438_v33 = vunpack.c.h.s8.bf16 %v612_v22  ;;  %v669_v22 = vld [vmem:[#allocation5 + $0xd30] sm:$0xff] }
 0x1c1   :  { %1741 = vmatprep.subr.bf16.mxu0 %v1312_v34  ;;  %1913 = vmatprep.subr.bf16.mxu1 %v1314_v35  ;;  %v1440_v34 = vunpack.c.h.s8.bf16 %v614_v23  ;;  %v626_v35 = vld [vmem:[#allocation5 + $0xbd8] sm:$0xff] }
 0x1c4   :  { %1742 = vmatpush1.bf16.msra.mxu0 %v1311_v39  ;;  %1914 = vmatpush1.bf16.msra.mxu1 %v1313_v40  ;;  %v1439_v39 = vunpack.c.h.s8.bf16 %v613_v45  ;;  %v1452_v40 = vunpack.c.l.s8.bf16 %v626_v35 }
 0x1c5   :  { %1743 = vmatprep.subr.bf16.mxu0 %v1326_v41  ;;  %1915 = vmatprep.subr.bf16.mxu1 %v1328_v42  ;;  %v1454_v41 = vunpack.c.l.s8.bf16 %v628_v37  ;;  %v625_v42 = vld [vmem:[#allocation5 + $0xbd0] sm:$0xff] }
 0x1c6   :  { %v1451_v47 = vunpack.c.l.s8.bf16 %v625_v42  ;;  %v1465_v30 = vunpack.c.h.s8.bf16 %v625_v42  ;;  %v254_v42 = vld [vmem:[#allocation5 + $0x38] sm:$0xff] }
 0x1c8   :  { %1744 = vmatpush1.bf16.msra.mxu0 %v1325_v48  ;;  %1916 = vmatpush1.bf16.msra.mxu1 %v1327_v49  ;;  %v1453_v48 = vunpack.c.l.s8.bf16 %v627_v43  ;;  %v1466_v49 = vunpack.c.h.s8.bf16 %v626_v35  ;;  %v683_v35 = vld [vmem:[#allocation5 + $0xda0] sm:$0xff] }
 0x1c9   :  { %1745 = vmatprep.subr.bf16.mxu0 %v1340_v50  ;;  %1917 = vmatprep.subr.bf16.mxu1 %v1342_v51  ;;  %v1468_v50 = vunpack.c.h.s8.bf16 %v628_v37  ;;  %v640_v51 = vld [vmem:[#allocation5 + $0xc48] sm:$0xff] }
 0x1cc   :  { %1746 = vmatpush1.bf16.msra.mxu0 %v1339_v31  ;;  %1918 = vmatpush1.bf16.msra.mxu1 %v1341_v54  ;;  %v1467_v31 = vunpack.c.h.s8.bf16 %v627_v43  ;;  %v1480_v54 = vunpack.c.l.s8.bf16 %v640_v51 }
 0x1cd   :  { %1747 = vmatprep.subr.bf16.mxu0 %v1354_v55  ;;  %1919 = vmatprep.subr.bf16.mxu1 %v1356_v56  ;;  %v1482_v55 = vunpack.c.l.s8.bf16 %v642_v52  ;;  %v639_v56 = vld [vmem:[#allocation5 + $0xc40] sm:$0xff] }
 0x1ce   :  { %v1479_v58 = vunpack.c.l.s8.bf16 %v639_v56  ;;  %v1493_v0 = vunpack.c.h.s8.bf16 %v639_v56  ;;  %v266_v56 = vld [vmem:[#allocation5 + $0x98] sm:$0xff] }
 0x1d0   :  { %1748 = vmatpush1.bf16.msra.mxu0 %v1353_v59  ;;  %1920 = vmatpush1.bf16.msra.mxu1 %v1355_v60  ;;  %v1481_v59 = vunpack.c.l.s8.bf16 %v641_v57  ;;  %v1494_v60 = vunpack.c.h.s8.bf16 %v640_v51  ;;  %v253_v51 = vld [vmem:[#allocation5 + $0x30] sm:$0xff] }
 0x1d1   :  { %1760 = vmatprep.subr.bf16.mxu0 %v1368_v61  ;;  %1932 = vmatprep.subr.bf16.mxu1 %v1370_v62  ;;  %v1496_v61 = vunpack.c.h.s8.bf16 %v642_v52  ;;  %v654_v62 = vld [vmem:[#allocation5 + $0xcb8] sm:$0xff]  ;;  %v7227_v52 = vcombine.low %v7213_v2, %v7215_v3  ;;  %v728_v2 = vunpack.c.l.s8.bf16 %v266_v56 }
 0x1d3   :  { %1750 = vmatmul.mubr.bf16.vlgmr.msra.gmra.mrb[0].mxu0 %v7211_v1  ;;  %1922 = vmatmul.mubr.bf16.vlgmr.msra.gmra.mrb[0].mxu1 %v7211_v1 }
 0x1d4   :  { %1761 = vmatpush1.bf16.msra.mxu0 %v1367_v4  ;;  %1933 = vmatpush1.bf16.msra.mxu1 %v1369_v5  ;;  %v1495_v4 = vunpack.c.h.s8.bf16 %v641_v57  ;;  %v1508_v5 = vunpack.c.l.s8.bf16 %v654_v62  ;;  %v268_v57 = vld [vmem:[#allocation5 + $0xa8] sm:$0xff] }
 0x1d5   :  { %1762 = vmatprep.subr.bf16.mxu0 %v1382_v6  ;;  %1934 = vmatprep.subr.bf16.mxu1 %v1384_v7  ;;  %v1510_v6 = vunpack.c.l.s8.bf16 %v656_v63  ;;  %v653_v7 = vld [vmem:[#allocation5 + $0xcb0] sm:$0xff]  ;;  %v730_v3 = vunpack.c.l.s8.bf16 %v268_v57 }
 0x1d6   :  { %1792 = vmatprep.mubr.bf16.mxu0 %v7219_v10  ;;  %1964 = vmatprep.mubr.bf16.mxu1 %v7219_v10  ;;  %v1507_v9 = vunpack.c.l.s8.bf16 %v653_v7  ;;  %v1521_v14 = vunpack.c.h.s8.bf16 %v653_v7 }
 0x1d8   :  { %1763 = vmatpush1.bf16.msra.mxu0 %v1381_v20  ;;  %1935 = vmatpush1.bf16.msra.mxu1 %v1383_v21  ;;  %v1509_v20 = vunpack.c.l.s8.bf16 %v655_v8  ;;  %v1522_v21 = vunpack.c.h.s8.bf16 %v654_v62 }
 0x1d9   :  { %1764 = vmatprep.subr.bf16.mxu0 %v1396_v11  ;;  %1936 = vmatprep.subr.bf16.mxu1 %v1398_v12  ;;  %v1524_v11 = vunpack.c.h.s8.bf16 %v656_v63  ;;  %v668_v12 = vld [vmem:[#allocation5 + $0xd28] sm:$0xff] }
 0x1dc   :  { %1765 = vmatpush1.bf16.msra.mxu0 %v1395_v15  ;;  %1937 = vmatpush1.bf16.msra.mxu1 %v1397_v16  ;;  %v1523_v15 = vunpack.c.h.s8.bf16 %v655_v8  ;;  %v1536_v16 = vunpack.c.l.s8.bf16 %v668_v12 }
 0x1dd   :  { %1766 = vmatprep.subr.bf16.mxu0 %v1410_v17  ;;  %1938 = vmatprep.subr.bf16.mxu1 %v1412_v18  ;;  %v1538_v17 = vunpack.c.l.s8.bf16 %v670_v13  ;;  %v667_v18 = vld [vmem:[#allocation5 + $0xd20] sm:$0xff] }
 0x1de   :  { %v1535_v23 = vunpack.c.l.s8.bf16 %v667_v18  ;;  %v1549_v45 = vunpack.c.h.s8.bf16 %v667_v18 }
 0x1e0   :  { %1767 = vmatpush1.bf16.msra.mxu0 %v1409_v24  ;;  %1939 = vmatpush1.bf16.msra.mxu1 %v1411_v25  ;;  %v1537_v24 = vunpack.c.l.s8.bf16 %v669_v22  ;;  %v1550_v25 = vunpack.c.h.s8.bf16 %v668_v12 }
 0x1e1   :  { %1768 = vmatprep.subr.bf16.mxu0 %v1424_v26  ;;  %1940 = vmatprep.subr.bf16.mxu1 %v1426_v27  ;;  %v1552_v26 = vunpack.c.h.s8.bf16 %v670_v13  ;;  %v682_v27 = vld [vmem:[#allocation5 + $0xd98] sm:$0xff] }
 0x1e4   :  { %1769 = vmatpush1.bf16.msra.mxu0 %v1423_v29  ;;  %1941 = vmatpush1.bf16.msra.mxu1 %v1425_v32  ;;  %v1551_v29 = vunpack.c.h.s8.bf16 %v669_v22  ;;  %v1564_v32 = vunpack.c.l.s8.bf16 %v682_v27 }
 0x1e5   :  { %1770 = vmatprep.subr.bf16.mxu0 %v1438_v33  ;;  %1942 = vmatprep.subr.bf16.mxu1 %v1440_v34  ;;  %v1566_v33 = vunpack.c.l.s8.bf16 %v684_v44  ;;  %v681_v34 = vld [vmem:[#allocation5 + $0xd90] sm:$0xff] }
 0x1e6   :  { %v1563_v37 = vunpack.c.l.s8.bf16 %v681_v34  ;;  %v1577_v43 = vunpack.c.h.s8.bf16 %v681_v34 }
 0x1e8   :  { %1771 = vmatpush1.bf16.msra.mxu0 %v1437_v38  ;;  %1943 = vmatpush1.bf16.msra.mxu1 %v1439_v39  ;;  %v1565_v38 = vunpack.c.l.s8.bf16 %v683_v35  ;;  %v1578_v39 = vunpack.c.h.s8.bf16 %v682_v27 }
 0x1e9   :  { %1772 = vmatprep.subr.bf16.mxu0 %v1452_v40  ;;  %1944 = vmatprep.subr.bf16.mxu1 %v1454_v41  ;;  %v1580_v40 = vunpack.c.h.s8.bf16 %v684_v44  ;;  %v252_v41 = vld [vmem:[#allocation5 + $0x28] sm:$0xff] }
 0x1ec   :  { %1773 = vmatpush1.bf16.msra.mxu0 %v1451_v47  ;;  %1945 = vmatpush1.bf16.msra.mxu1 %v1453_v48  ;;  %v1579_v47 = vunpack.c.h.s8.bf16 %v683_v35  ;;  %v700_v48 = vunpack.c.l.s8.bf16 %v252_v41 }
 0x1ed   :  { %1774 = vmatprep.subr.bf16.mxu0 %v1466_v49  ;;  %1946 = vmatprep.subr.bf16.mxu1 %v1468_v50  ;;  %v702_v49 = vunpack.c.l.s8.bf16 %v254_v42  ;;  %v251_v50 = vld [vmem:[#allocation5 + $0x20] sm:$0xff] }
 0x1f0   :  { %1775 = vmatpush1.bf16.msra.mxu0 %v1465_v30  ;;  %1947 = vmatpush1.bf16.msra.mxu1 %v1467_v31  ;;  %v699_v30 = vunpack.c.l.s8.bf16 %v251_v50  ;;  %v701_v31 = vunpack.c.l.s8.bf16 %v253_v51 }
 0x1f1   :  { %1776 = vmatprep.subr.bf16.mxu0 %v1480_v54  ;;  %1948 = vmatprep.subr.bf16.mxu1 %v1482_v55  ;;  %v714_v54 = vunpack.c.h.s8.bf16 %v252_v41  ;;  %v716_v55 = vunpack.c.h.s8.bf16 %v254_v42 }
 0x1f4   :  { %1777 = vmatpush1.bf16.msra.mxu0 %v1479_v58  ;;  %1949 = vmatpush1.bf16.msra.mxu1 %v1481_v59  ;;  %v713_v58 = vunpack.c.h.s8.bf16 %v251_v50  ;;  %v715_v59 = vunpack.c.h.s8.bf16 %v253_v51 }
 0x1f5   :  { %1778 = vmatprep.subr.bf16.mxu0 %v1494_v60  ;;  %1950 = vmatprep.subr.bf16.mxu1 %v1496_v61  ;;  %v265_v60 = vld [vmem:[#allocation5 + $0x90] sm:$0xff]  ;;  %v267_v61 = vld [vmem:[#allocation5 + $0xa0] sm:$0xff] }
 0x1f6   :  { %v727_v62 = vunpack.c.l.s8.bf16 %v265_v60  ;;  %v729_v63 = vunpack.c.l.s8.bf16 %v267_v61  ;;  %v741_v7 = vunpack.c.h.s8.bf16 %v265_v60  ;;  %v743_v8 = vunpack.c.h.s8.bf16 %v267_v61 }
 0x1f8   :  { %1779 = vmatpush1.bf16.msra.mxu0 %v1493_v0  ;;  %1951 = vmatpush1.bf16.msra.mxu1 %v1495_v4  ;;  %v742_v0 = vunpack.c.h.s8.bf16 %v266_v56  ;;  %v744_v4 = vunpack.c.h.s8.bf16 %v268_v57 }
 0x1f9   :  { %1780 = vmatprep.subr.bf16.mxu0 %v1508_v5  ;;  %1952 = vmatprep.subr.bf16.mxu1 %v1510_v6  ;;  %v280_v5 = vld [vmem:[#allocation5 + $0x108] sm:$0xff]  ;;  %v282_v6 = vld [vmem:[#allocation5 + $0x118] sm:$0xff] }
 0x1fc   :  { %1781 = vmatpush1.bf16.msra.mxu0 %v1507_v9  ;;  %1953 = vmatpush1.bf16.msra.mxu1 %v1509_v20  ;;  %v756_v9 = vunpack.c.l.s8.bf16 %v280_v5  ;;  %v758_v20 = vunpack.c.l.s8.bf16 %v282_v6 }
 0x1fd   :  { %1782 = vmatprep.subr.bf16.mxu0 %v1522_v21  ;;  %1954 = vmatprep.subr.bf16.mxu1 %v1524_v11  ;;  %v279_v21 = vld [vmem:[#allocation5 + $0x100] sm:$0xff]  ;;  %v281_v11 = vld [vmem:[#allocation5 + $0x110] sm:$0xff] }
 0x1fe   :  { %v755_v12 = vunpack.c.l.s8.bf16 %v279_v21  ;;  %v757_v13 = vunpack.c.l.s8.bf16 %v281_v11  ;;  %v769_v18 = vunpack.c.h.s8.bf16 %v279_v21  ;;  %v771_v22 = vunpack.c.h.s8.bf16 %v281_v11 }
 0x200   :  { %1783 = vmatpush1.bf16.msra.mxu0 %v1521_v14  ;;  %1955 = vmatpush1.bf16.msra.mxu1 %v1523_v15  ;;  %v770_v14 = vunpack.c.h.s8.bf16 %v280_v5  ;;  %v772_v15 = vunpack.c.h.s8.bf16 %v282_v6 }
 0x201   :  { %1784 = vmatprep.subr.bf16.mxu0 %v1536_v16  ;;  %1956 = vmatprep.subr.bf16.mxu1 %v1538_v17  ;;  %v294_v16 = vld [vmem:[#allocation5 + $0x178] sm:$0xff]  ;;  %v296_v17 = vld [vmem:[#allocation5 + $0x188] sm:$0xff] }
 0x204   :  { %1785 = vmatpush1.bf16.msra.mxu0 %v1535_v23  ;;  %1957 = vmatpush1.bf16.msra.mxu1 %v1537_v24  ;;  %v784_v23 = vunpack.c.l.s8.bf16 %v294_v16  ;;  %v786_v24 = vunpack.c.l.s8.bf16 %v296_v17 }
 0x205   :  { %1786 = vmatprep.subr.bf16.mxu0 %v1550_v25  ;;  %1958 = vmatprep.subr.bf16.mxu1 %v1552_v26  ;;  %v293_v25 = vld [vmem:[#allocation5 + $0x170] sm:$0xff]  ;;  %v295_v26 = vld [vmem:[#allocation5 + $0x180] sm:$0xff] }
 0x206   :  { %v783_v27 = vunpack.c.l.s8.bf16 %v293_v25  ;;  %v785_v44 = vunpack.c.l.s8.bf16 %v295_v26  ;;  %v797_v34 = vunpack.c.h.s8.bf16 %v293_v25  ;;  %v799_v35 = vunpack.c.h.s8.bf16 %v295_v26 }
 0x208   :  { %1787 = vmatpush1.bf16.msra.mxu0 %v1549_v45  ;;  %1959 = vmatpush1.bf16.msra.mxu1 %v1551_v29  ;;  %v798_v45 = vunpack.c.h.s8.bf16 %v294_v16  ;;  %v800_v29 = vunpack.c.h.s8.bf16 %v296_v17 }
 0x209   :  { %1788 = vmatprep.subr.bf16.mxu0 %v1564_v32  ;;  %1960 = vmatprep.subr.bf16.mxu1 %v1566_v33  ;;  %v308_v32 = vld [vmem:[#allocation5 + $0x1e8] sm:$0xff]  ;;  %v310_v33 = vld [vmem:[#allocation5 + $0x1f8] sm:$0xff] }
 0x20c   :  { %1789 = vmatpush1.bf16.msra.mxu0 %v1563_v37  ;;  %1961 = vmatpush1.bf16.msra.mxu1 %v1565_v38  ;;  %v812_v37 = vunpack.c.l.s8.bf16 %v308_v32  ;;  %v814_v38 = vunpack.c.l.s8.bf16 %v310_v33 }
 0x20d   :  { %1790 = vmatprep.subr.bf16.mxu0 %v1578_v39  ;;  %1962 = vmatprep.subr.bf16.mxu1 %v1580_v40  ;;  %v307_v39 = vld [vmem:[#allocation5 + $0x1e0] sm:$0xff]  ;;  %v309_v40 = vld [vmem:[#allocation5 + $0x1f0] sm:$0xff] }
 0x20e   :  { %v811_v41 = vunpack.c.l.s8.bf16 %v307_v39  ;;  %v813_v42 = vunpack.c.l.s8.bf16 %v309_v40  ;;  %v825_v50 = vunpack.c.h.s8.bf16 %v307_v39  ;;  %v827_v51 = vunpack.c.h.s8.bf16 %v309_v40 }
 0x210   :  { %1791 = vmatpush1.bf16.msra.mxu0 %v1577_v43  ;;  %1963 = vmatpush1.bf16.msra.mxu1 %v1579_v47  ;;  %v826_v43 = vunpack.c.h.s8.bf16 %v308_v32  ;;  %v828_v47 = vunpack.c.h.s8.bf16 %v310_v33 }
 0x211   :  { %1975 = vmatprep.subr.bf16.mxu0 %v700_v48  ;;  %2147 = vmatprep.subr.bf16.mxu1 %v702_v49  ;;  %v322_v48 = vld [vmem:[#allocation5 + $0x258] sm:$0xff]  ;;  %v324_v49 = vld [vmem:[#allocation5 + $0x268] sm:$0xff] }
 0x213   :  { %1793 = vmatmul.mubr.bf16.vlgmr.msra.gmra.mrb[0].mxu0 %v7227_v52  ;;  %1965 = vmatmul.mubr.bf16.vlgmr.msra.gmra.mrb[0].mxu1 %v7227_v52 }
 0x214   :  { %1976 = vmatpush1.bf16.msra.mxu0 %v699_v30  ;;  %2148 = vmatpush1.bf16.msra.mxu1 %v701_v31  ;;  %v840_v30 = vunpack.c.l.s8.bf16 %v322_v48  ;;  %v842_v31 = vunpack.c.l.s8.bf16 %v324_v49 }
 0x215   :  { %1977 = vmatprep.subr.bf16.mxu0 %v714_v54  ;;  %2149 = vmatprep.subr.bf16.mxu1 %v716_v55  ;;  %v321_v54 = vld [vmem:[#allocation5 + $0x250] sm:$0xff]  ;;  %v323_v55 = vld [vmem:[#allocation5 + $0x260] sm:$0xff] }
 0x216   :  { %2007 = vmatprep.mubr.bf16.mxu0 %v7173_v36  ;;  %2179 = vmatprep.mubr.bf16.mxu1 %v7173_v36  ;;  %v839_v56 = vunpack.c.l.s8.bf16 %v321_v54  ;;  %v841_v57 = vunpack.c.l.s8.bf16 %v323_v55  ;;  %v853_v60 = vunpack.c.h.s8.bf16 %v321_v54  ;;  %v855_v61 = vunpack.c.h.s8.bf16 %v323_v55 }
 0x218   :  { %1978 = vmatpush1.bf16.msra.mxu0 %v713_v58  ;;  %2150 = vmatpush1.bf16.msra.mxu1 %v715_v59  ;;  %v854_v58 = vunpack.c.h.s8.bf16 %v322_v48  ;;  %v856_v59 = vunpack.c.h.s8.bf16 %v324_v49 }
 0x219   :  { %1979 = vmatprep.subr.bf16.mxu0 %v728_v2  ;;  %2151 = vmatprep.subr.bf16.mxu1 %v730_v3  ;;  %v336_v2 = vld [vmem:[#allocation5 + $0x2c8] sm:$0xff]  ;;  %v338_v3 = vld [vmem:[#allocation5 + $0x2d8] sm:$0xff] }
 0x21c   :  { %1980 = vmatpush1.bf16.msra.mxu0 %v727_v62  ;;  %2152 = vmatpush1.bf16.msra.mxu1 %v729_v63  ;;  %v868_v62 = vunpack.c.l.s8.bf16 %v336_v2  ;;  %v870_v63 = vunpack.c.l.s8.bf16 %v338_v3 }
 0x21d   :  { %1981 = vmatprep.subr.bf16.mxu0 %v742_v0  ;;  %2153 = vmatprep.subr.bf16.mxu1 %v744_v4  ;;  %v335_v0 = vld [vmem:[#allocation5 + $0x2c0] sm:$0xff]  ;;  %v337_v4 = vld [vmem:[#allocation5 + $0x2d0] sm:$0xff] }
 0x21e   :  { %v867_v5 = vunpack.c.l.s8.bf16 %v335_v0  ;;  %v869_v6 = vunpack.c.l.s8.bf16 %v337_v4  ;;  %v881_v21 = vunpack.c.h.s8.bf16 %v335_v0  ;;  %v883_v11 = vunpack.c.h.s8.bf16 %v337_v4 }
 0x220   :  { %1982 = vmatpush1.bf16.msra.mxu0 %v741_v7  ;;  %2154 = vmatpush1.bf16.msra.mxu1 %v743_v8  ;;  %v882_v7 = vunpack.c.h.s8.bf16 %v336_v2  ;;  %v884_v8 = vunpack.c.h.s8.bf16 %v338_v3 }
 0x221   :  { %1983 = vmatprep.subr.bf16.mxu0 %v756_v9  ;;  %2155 = vmatprep.subr.bf16.mxu1 %v758_v20  ;;  %v350_v9 = vld [vmem:[#allocation5 + $0x338] sm:$0xff]  ;;  %v352_v20 = vld [vmem:[#allocation5 + $0x348] sm:$0xff] }
 0x224   :  { %1984 = vmatpush1.bf16.msra.mxu0 %v755_v12  ;;  %2156 = vmatpush1.bf16.msra.mxu1 %v757_v13  ;;  %v896_v12 = vunpack.c.l.s8.bf16 %v350_v9  ;;  %v898_v13 = vunpack.c.l.s8.bf16 %v352_v20 }
 0x225   :  { %1985 = vmatprep.subr.bf16.mxu0 %v770_v14  ;;  %2157 = vmatprep.subr.bf16.mxu1 %v772_v15  ;;  %v349_v14 = vld [vmem:[#allocation5 + $0x330] sm:$0xff]  ;;  %v351_v15 = vld [vmem:[#allocation5 + $0x340] sm:$0xff] }
 0x226   :  { %v895_v16 = vunpack.c.l.s8.bf16 %v349_v14  ;;  %v897_v17 = vunpack.c.l.s8.bf16 %v351_v15  ;;  %v909_v25 = vunpack.c.h.s8.bf16 %v349_v14  ;;  %v911_v26 = vunpack.c.h.s8.bf16 %v351_v15 }
 0x228   :  { %1986 = vmatpush1.bf16.msra.mxu0 %v769_v18  ;;  %2158 = vmatpush1.bf16.msra.mxu1 %v771_v22  ;;  %v910_v18 = vunpack.c.h.s8.bf16 %v350_v9  ;;  %v912_v22 = vunpack.c.h.s8.bf16 %v352_v20 }
 0x229   :  { %1987 = vmatprep.subr.bf16.mxu0 %v784_v23  ;;  %2159 = vmatprep.subr.bf16.mxu1 %v786_v24  ;;  %v364_v23 = vld [vmem:[#allocation5 + $0x3a8] sm:$0xff]  ;;  %v366_v24 = vld [vmem:[#allocation5 + $0x3b8] sm:$0xff] }
 0x22c   :  { %1988 = vmatpush1.bf16.msra.mxu0 %v783_v27  ;;  %2160 = vmatpush1.bf16.msra.mxu1 %v785_v44  ;;  %v924_v27 = vunpack.c.l.s8.bf16 %v364_v23  ;;  %v926_v44 = vunpack.c.l.s8.bf16 %v366_v24 }
 0x22d   :  { %1989 = vmatprep.subr.bf16.mxu0 %v798_v45  ;;  %2161 = vmatprep.subr.bf16.mxu1 %v800_v29  ;;  %v363_v45 = vld [vmem:[#allocation5 + $0x3a0] sm:$0xff]  ;;  %v365_v29 = vld [vmem:[#allocation5 + $0x3b0] sm:$0xff] }
 0x22e   :  { %v923_v32 = vunpack.c.l.s8.bf16 %v363_v45  ;;  %v925_v33 = vunpack.c.l.s8.bf16 %v365_v29  ;;  %v937_v39 = vunpack.c.h.s8.bf16 %v363_v45  ;;  %v939_v40 = vunpack.c.h.s8.bf16 %v365_v29 }
 0x230   :  { %1990 = vmatpush1.bf16.msra.mxu0 %v797_v34  ;;  %2162 = vmatpush1.bf16.msra.mxu1 %v799_v35  ;;  %v938_v34 = vunpack.c.h.s8.bf16 %v364_v23  ;;  %v940_v35 = vunpack.c.h.s8.bf16 %v366_v24 }
 0x231   :  { %1991 = vmatprep.subr.bf16.mxu0 %v812_v37  ;;  %2163 = vmatprep.subr.bf16.mxu1 %v814_v38  ;;  %v378_v37 = vld [vmem:[#allocation5 + $0x418] sm:$0xff]  ;;  %v380_v38 = vld [vmem:[#allocation5 + $0x428] sm:$0xff] }
 0x234   :  { %1992 = vmatpush1.bf16.msra.mxu0 %v811_v41  ;;  %2164 = vmatpush1.bf16.msra.mxu1 %v813_v42  ;;  %v952_v41 = vunpack.c.l.s8.bf16 %v378_v37  ;;  %v954_v42 = vunpack.c.l.s8.bf16 %v380_v38 }
 0x235   :  { %1993 = vmatprep.subr.bf16.mxu0 %v826_v43  ;;  %2165 = vmatprep.subr.bf16.mxu1 %v828_v47  ;;  %v377_v43 = vld [vmem:[#allocation5 + $0x410] sm:$0xff]  ;;  %v379_v47 = vld [vmem:[#allocation5 + $0x420] sm:$0xff] }
 0x236   :  { %v951_v48 = vunpack.c.l.s8.bf16 %v377_v43  ;;  %v953_v49 = vunpack.c.l.s8.bf16 %v379_v47  ;;  %v965_v54 = vunpack.c.h.s8.bf16 %v377_v43  ;;  %v967_v55 = vunpack.c.h.s8.bf16 %v379_v47 }
 0x238   :  { %1994 = vmatpush1.bf16.msra.mxu0 %v825_v50  ;;  %2166 = vmatpush1.bf16.msra.mxu1 %v827_v51  ;;  %v966_v50 = vunpack.c.h.s8.bf16 %v378_v37  ;;  %v968_v51 = vunpack.c.h.s8.bf16 %v380_v38 }
 0x239   :  { %1995 = vmatprep.subr.bf16.mxu0 %v840_v30  ;;  %2167 = vmatprep.subr.bf16.mxu1 %v842_v31  ;;  %v392_v30 = vld [vmem:[#allocation5 + $0x488] sm:$0xff]  ;;  %v394_v31 = vld [vmem:[#allocation5 + $0x498] sm:$0xff] }
 0x23c   :  { %1996 = vmatpush1.bf16.msra.mxu0 %v839_v56  ;;  %2168 = vmatpush1.bf16.msra.mxu1 %v841_v57  ;;  %v980_v56 = vunpack.c.l.s8.bf16 %v392_v30  ;;  %v982_v57 = vunpack.c.l.s8.bf16 %v394_v31 }
 0x23d   :  { %1997 = vmatprep.subr.bf16.mxu0 %v854_v58  ;;  %2169 = vmatprep.subr.bf16.mxu1 %v856_v59  ;;  %v391_v58 = vld [vmem:[#allocation5 + $0x480] sm:$0xff]  ;;  %v393_v59 = vld [vmem:[#allocation5 + $0x490] sm:$0xff] }
 0x23e   :  { %v979_v2 = vunpack.c.l.s8.bf16 %v391_v58  ;;  %v981_v3 = vunpack.c.l.s8.bf16 %v393_v59  ;;  %v993_v0 = vunpack.c.h.s8.bf16 %v391_v58  ;;  %v995_v4 = vunpack.c.h.s8.bf16 %v393_v59 }
 0x240   :  { %1998 = vmatpush1.bf16.msra.mxu0 %v853_v60  ;;  %2170 = vmatpush1.bf16.msra.mxu1 %v855_v61  ;;  %v994_v60 = vunpack.c.h.s8.bf16 %v392_v30  ;;  %v996_v61 = vunpack.c.h.s8.bf16 %v394_v31 }
 0x241   :  { %1999 = vmatprep.subr.bf16.mxu0 %v868_v62  ;;  %2171 = vmatprep.subr.bf16.mxu1 %v870_v63  ;;  %v406_v62 = vld [vmem:[#allocation5 + $0x4f8] sm:$0xff]  ;;  %v408_v63 = vld [vmem:[#allocation5 + $0x508] sm:$0xff] }
 0x244   :  { %2000 = vmatpush1.bf16.msra.mxu0 %v867_v5  ;;  %2172 = vmatpush1.bf16.msra.mxu1 %v869_v6  ;;  %v1008_v5 = vunpack.c.l.s8.bf16 %v406_v62  ;;  %v1010_v6 = vunpack.c.l.s8.bf16 %v408_v63 }
 0x245   :  { %2001 = vmatprep.subr.bf16.mxu0 %v882_v7  ;;  %2173 = vmatprep.subr.bf16.mxu1 %v884_v8  ;;  %v405_v7 = vld [vmem:[#allocation5 + $0x4f0] sm:$0xff]  ;;  %v407_v8 = vld [vmem:[#allocation5 + $0x500] sm:$0xff] }
 0x246   :  { %v1007_v9 = vunpack.c.l.s8.bf16 %v405_v7  ;;  %v1009_v20 = vunpack.c.l.s8.bf16 %v407_v8  ;;  %v1021_v14 = vunpack.c.h.s8.bf16 %v405_v7  ;;  %v1023_v15 = vunpack.c.h.s8.bf16 %v407_v8 }
 0x248   :  { %2002 = vmatpush1.bf16.msra.mxu0 %v881_v21  ;;  %2174 = vmatpush1.bf16.msra.mxu1 %v883_v11  ;;  %v1022_v21 = vunpack.c.h.s8.bf16 %v406_v62  ;;  %v1024_v11 = vunpack.c.h.s8.bf16 %v408_v63 }
 0x249   :  { %2003 = vmatprep.subr.bf16.mxu0 %v896_v12  ;;  %2175 = vmatprep.subr.bf16.mxu1 %v898_v13  ;;  %v420_v12 = vld [vmem:[#allocation5 + $0x568] sm:$0xff]  ;;  %v422_v13 = vld [vmem:[#allocation5 + $0x578] sm:$0xff] }
 0x24c   :  { %2004 = vmatpush1.bf16.msra.mxu0 %v895_v16  ;;  %2176 = vmatpush1.bf16.msra.mxu1 %v897_v17  ;;  %v1036_v16 = vunpack.c.l.s8.bf16 %v420_v12  ;;  %v1038_v17 = vunpack.c.l.s8.bf16 %v422_v13 }
 0x24d   :  { %2005 = vmatprep.subr.bf16.mxu0 %v910_v18  ;;  %2177 = vmatprep.subr.bf16.mxu1 %v912_v22  ;;  %v419_v18 = vld [vmem:[#allocation5 + $0x560] sm:$0xff]  ;;  %v421_v22 = vld [vmem:[#allocation5 + $0x570] sm:$0xff] }
 0x24e   :  { %v1035_v23 = vunpack.c.l.s8.bf16 %v419_v18  ;;  %v1037_v24 = vunpack.c.l.s8.bf16 %v421_v22  ;;  %v1049_v45 = vunpack.c.h.s8.bf16 %v419_v18  ;;  %v1051_v29 = vunpack.c.h.s8.bf16 %v421_v22 }
 0x250   :  { %2006 = vmatpush1.bf16.msra.mxu0 %v909_v25  ;;  %2178 = vmatpush1.bf16.msra.mxu1 %v911_v26  ;;  %v1050_v25 = vunpack.c.h.s8.bf16 %v420_v12  ;;  %v1052_v26 = vunpack.c.h.s8.bf16 %v422_v13 }
 0x251   :  { %2018 = vmatprep.subr.bf16.mxu0 %v924_v27  ;;  %2190 = vmatprep.subr.bf16.mxu1 %v926_v44  ;;  %v434_v27 = vld [vmem:[#allocation5 + $0x5d8] sm:$0xff]  ;;  %v436_v44 = vld [vmem:[#allocation5 + $0x5e8] sm:$0xff] }
 0x253   :  { %2008 = vmatmul.mubr.bf16.vlgmr.msra.gmra.mrb[4].mxu0 %v7183_v46  ;;  %2180 = vmatmul.mubr.bf16.vlgmr.msra.gmra.mrb[4].mxu1 %v7183_v46 }
 0x254   :  { %2019 = vmatpush1.bf16.msra.mxu0 %v923_v32  ;;  %2191 = vmatpush1.bf16.msra.mxu1 %v925_v33  ;;  %v1064_v32 = vunpack.c.l.s8.bf16 %v434_v27  ;;  %v1066_v33 = vunpack.c.l.s8.bf16 %v436_v44 }
 0x255   :  { %2020 = vmatprep.subr.bf16.mxu0 %v938_v34  ;;  %2192 = vmatprep.subr.bf16.mxu1 %v940_v35  ;;  %v433_v34 = vld [vmem:[#allocation5 + $0x5d0] sm:$0xff]  ;;  %v435_v35 = vld [vmem:[#allocation5 + $0x5e0] sm:$0xff] }
 0x256   :  { %2050 = vmatprep.mubr.bf16.mxu0 %v7187_v53  ;;  %2222 = vmatprep.mubr.bf16.mxu1 %v7187_v53  ;;  %v1063_v37 = vunpack.c.l.s8.bf16 %v433_v34  ;;  %v1065_v38 = vunpack.c.l.s8.bf16 %v435_v35  ;;  %v1077_v43 = vunpack.c.h.s8.bf16 %v433_v34  ;;  %v1079_v47 = vunpack.c.h.s8.bf16 %v435_v35 }
 0x258   :  { %2021 = vmatpush1.bf16.msra.mxu0 %v937_v39  ;;  %2193 = vmatpush1.bf16.msra.mxu1 %v939_v40  ;;  %v1078_v39 = vunpack.c.h.s8.bf16 %v434_v27  ;;  %v1080_v40 = vunpack.c.h.s8.bf16 %v436_v44 }
 0x259   :  { %2022 = vmatprep.subr.bf16.mxu0 %v952_v41  ;;  %2194 = vmatprep.subr.bf16.mxu1 %v954_v42  ;;  %v448_v41 = vld [vmem:[#allocation5 + $0x648] sm:$0xff]  ;;  %v450_v42 = vld [vmem:[#allocation5 + $0x658] sm:$0xff] }
 0x25c   :  { %2023 = vmatpush1.bf16.msra.mxu0 %v951_v48  ;;  %2195 = vmatpush1.bf16.msra.mxu1 %v953_v49  ;;  %v1092_v48 = vunpack.c.l.s8.bf16 %v448_v41  ;;  %v1094_v49 = vunpack.c.l.s8.bf16 %v450_v42 }
 0x25d   :  { %2024 = vmatprep.subr.bf16.mxu0 %v966_v50  ;;  %2196 = vmatprep.subr.bf16.mxu1 %v968_v51  ;;  %v447_v50 = vld [vmem:[#allocation5 + $0x640] sm:$0xff]  ;;  %v449_v51 = vld [vmem:[#allocation5 + $0x650] sm:$0xff] }
 0x25e   :  { %v1091_v30 = vunpack.c.l.s8.bf16 %v447_v50  ;;  %v1093_v31 = vunpack.c.l.s8.bf16 %v449_v51  ;;  %v1105_v58 = vunpack.c.h.s8.bf16 %v447_v50  ;;  %v1107_v59 = vunpack.c.h.s8.bf16 %v449_v51 }
 0x260   :  { %2025 = vmatpush1.bf16.msra.mxu0 %v965_v54  ;;  %2197 = vmatpush1.bf16.msra.mxu1 %v967_v55  ;;  %v1106_v54 = vunpack.c.h.s8.bf16 %v448_v41  ;;  %v1108_v55 = vunpack.c.h.s8.bf16 %v450_v42 }
 0x261   :  { %2026 = vmatprep.subr.bf16.mxu0 %v980_v56  ;;  %2198 = vmatprep.subr.bf16.mxu1 %v982_v57  ;;  %v462_v56 = vld [vmem:[#allocation5 + $0x6b8] sm:$0xff]  ;;  %v464_v57 = vld [vmem:[#allocation5 + $0x6c8] sm:$0xff] }
 0x264   :  { %2027 = vmatpush1.bf16.msra.mxu0 %v979_v2  ;;  %2199 = vmatpush1.bf16.msra.mxu1 %v981_v3  ;;  %v1120_v2 = vunpack.c.l.s8.bf16 %v462_v56  ;;  %v1122_v3 = vunpack.c.l.s8.bf16 %v464_v57 }
 0x265   :  { %2028 = vmatprep.subr.bf16.mxu0 %v994_v60  ;;  %2200 = vmatprep.subr.bf16.mxu1 %v996_v61  ;;  %v461_v60 = vld [vmem:[#allocation5 + $0x6b0] sm:$0xff]  ;;  %v463_v61 = vld [vmem:[#allocation5 + $0x6c0] sm:$0xff] }
 0x266   :  { %v1119_v62 = vunpack.c.l.s8.bf16 %v461_v60  ;;  %v1121_v63 = vunpack.c.l.s8.bf16 %v463_v61  ;;  %v1133_v7 = vunpack.c.h.s8.bf16 %v461_v60  ;;  %v1135_v8 = vunpack.c.h.s8.bf16 %v463_v61 }
 0x268   :  { %2029 = vmatpush1.bf16.msra.mxu0 %v993_v0  ;;  %2201 = vmatpush1.bf16.msra.mxu1 %v995_v4  ;;  %v1134_v0 = vunpack.c.h.s8.bf16 %v462_v56  ;;  %v1136_v4 = vunpack.c.h.s8.bf16 %v464_v57 }
 0x269   :  { %2030 = vmatprep.subr.bf16.mxu0 %v1008_v5  ;;  %2202 = vmatprep.subr.bf16.mxu1 %v1010_v6  ;;  %v476_v5 = vld [vmem:[#allocation5 + $0x728] sm:$0xff]  ;;  %v478_v6 = vld [vmem:[#allocation5 + $0x738] sm:$0xff] }
 0x26c   :  { %2031 = vmatpush1.bf16.msra.mxu0 %v1007_v9  ;;  %2203 = vmatpush1.bf16.msra.mxu1 %v1009_v20  ;;  %v1148_v9 = vunpack.c.l.s8.bf16 %v476_v5  ;;  %v1150_v20 = vunpack.c.l.s8.bf16 %v478_v6 }
 0x26d   :  { %2032 = vmatprep.subr.bf16.mxu0 %v1022_v21  ;;  %2204 = vmatprep.subr.bf16.mxu1 %v1024_v11  ;;  %v475_v21 = vld [vmem:[#allocation5 + $0x720] sm:$0xff]  ;;  %v477_v11 = vld [vmem:[#allocation5 + $0x730] sm:$0xff] }
 0x26e   :  { %v1147_v12 = vunpack.c.l.s8.bf16 %v475_v21  ;;  %v1149_v13 = vunpack.c.l.s8.bf16 %v477_v11  ;;  %v1161_v18 = vunpack.c.h.s8.bf16 %v475_v21  ;;  %v1163_v22 = vunpack.c.h.s8.bf16 %v477_v11 }
 0x270   :  { %2033 = vmatpush1.bf16.msra.mxu0 %v1021_v14  ;;  %2205 = vmatpush1.bf16.msra.mxu1 %v1023_v15  ;;  %v1162_v14 = vunpack.c.h.s8.bf16 %v476_v5  ;;  %v1164_v15 = vunpack.c.h.s8.bf16 %v478_v6 }
 0x271   :  { %2034 = vmatprep.subr.bf16.mxu0 %v1036_v16  ;;  %2206 = vmatprep.subr.bf16.mxu1 %v1038_v17  ;;  %v490_v16 = vld [vmem:[#allocation5 + $0x798] sm:$0xff]  ;;  %v492_v17 = vld [vmem:[#allocation5 + $0x7a8] sm:$0xff] }
 0x274   :  { %2035 = vmatpush1.bf16.msra.mxu0 %v1035_v23  ;;  %2207 = vmatpush1.bf16.msra.mxu1 %v1037_v24  ;;  %v1176_v23 = vunpack.c.l.s8.bf16 %v490_v16  ;;  %v1178_v24 = vunpack.c.l.s8.bf16 %v492_v17 }
 0x275   :  { %2036 = vmatprep.subr.bf16.mxu0 %v1050_v25  ;;  %2208 = vmatprep.subr.bf16.mxu1 %v1052_v26  ;;  %v489_v25 = vld [vmem:[#allocation5 + $0x790] sm:$0xff]  ;;  %v491_v26 = vld [vmem:[#allocation5 + $0x7a0] sm:$0xff] }
 0x276   :  { %v1175_v27 = vunpack.c.l.s8.bf16 %v489_v25  ;;  %v1177_v44 = vunpack.c.l.s8.bf16 %v491_v26  ;;  %v1189_v34 = vunpack.c.h.s8.bf16 %v489_v25  ;;  %v1191_v35 = vunpack.c.h.s8.bf16 %v491_v26 }
 0x278   :  { %2037 = vmatpush1.bf16.msra.mxu0 %v1049_v45  ;;  %2209 = vmatpush1.bf16.msra.mxu1 %v1051_v29  ;;  %v1190_v45 = vunpack.c.h.s8.bf16 %v490_v16  ;;  %v1192_v29 = vunpack.c.h.s8.bf16 %v492_v17 }
 0x279   :  { %2038 = vmatprep.subr.bf16.mxu0 %v1064_v32  ;;  %2210 = vmatprep.subr.bf16.mxu1 %v1066_v33  ;;  %v504_v32 = vld [vmem:[#allocation5 + $0x808] sm:$0xff]  ;;  %v506_v33 = vld [vmem:[#allocation5 + $0x818] sm:$0xff] }
 0x27c   :  { %2039 = vmatpush1.bf16.msra.mxu0 %v1063_v37  ;;  %2211 = vmatpush1.bf16.msra.mxu1 %v1065_v38  ;;  %v1204_v37 = vunpack.c.l.s8.bf16 %v504_v32  ;;  %v1206_v38 = vunpack.c.l.s8.bf16 %v506_v33 }
 0x27d   :  { %2040 = vmatprep.subr.bf16.mxu0 %v1078_v39  ;;  %2212 = vmatprep.subr.bf16.mxu1 %v1080_v40  ;;  %v503_v39 = vld [vmem:[#allocation5 + $0x800] sm:$0xff]  ;;  %v505_v40 = vld [vmem:[#allocation5 + $0x810] sm:$0xff] }
 0x27e   :  { %v1203_v41 = vunpack.c.l.s8.bf16 %v503_v39  ;;  %v1205_v42 = vunpack.c.l.s8.bf16 %v505_v40  ;;  %v1217_v50 = vunpack.c.h.s8.bf16 %v503_v39  ;;  %v1219_v51 = vunpack.c.h.s8.bf16 %v505_v40 }
 0x280   :  { %2041 = vmatpush1.bf16.msra.mxu0 %v1077_v43  ;;  %2213 = vmatpush1.bf16.msra.mxu1 %v1079_v47  ;;  %v1218_v43 = vunpack.c.h.s8.bf16 %v504_v32  ;;  %v1220_v47 = vunpack.c.h.s8.bf16 %v506_v33 }
 0x281   :  { %2042 = vmatprep.subr.bf16.mxu0 %v1092_v48  ;;  %2214 = vmatprep.subr.bf16.mxu1 %v1094_v49  ;;  %v518_v48 = vld [vmem:[#allocation5 + $0x878] sm:$0xff]  ;;  %v520_v49 = vld [vmem:[#allocation5 + $0x888] sm:$0xff] }
 0x284   :  { %2043 = vmatpush1.bf16.msra.mxu0 %v1091_v30  ;;  %2215 = vmatpush1.bf16.msra.mxu1 %v1093_v31  ;;  %v1232_v30 = vunpack.c.l.s8.bf16 %v518_v48  ;;  %v1234_v31 = vunpack.c.l.s8.bf16 %v520_v49 }
 0x285   :  { %2044 = vmatprep.subr.bf16.mxu0 %v1106_v54  ;;  %2216 = vmatprep.subr.bf16.mxu1 %v1108_v55  ;;  %v517_v54 = vld [vmem:[#allocation5 + $0x870] sm:$0xff]  ;;  %v519_v55 = vld [vmem:[#allocation5 + $0x880] sm:$0xff] }
 0x286   :  { %v1231_v56 = vunpack.c.l.s8.bf16 %v517_v54  ;;  %v1233_v57 = vunpack.c.l.s8.bf16 %v519_v55  ;;  %v1245_v60 = vunpack.c.h.s8.bf16 %v517_v54  ;;  %v1247_v61 = vunpack.c.h.s8.bf16 %v519_v55 }
 0x288   :  { %2045 = vmatpush1.bf16.msra.mxu0 %v1105_v58  ;;  %2217 = vmatpush1.bf16.msra.mxu1 %v1107_v59  ;;  %v1246_v58 = vunpack.c.h.s8.bf16 %v518_v48  ;;  %v1248_v59 = vunpack.c.h.s8.bf16 %v520_v49 }
 0x289   :  { %2046 = vmatprep.subr.bf16.mxu0 %v1120_v2  ;;  %2218 = vmatprep.subr.bf16.mxu1 %v1122_v3  ;;  %v532_v2 = vld [vmem:[#allocation5 + $0x8e8] sm:$0xff]  ;;  %v534_v3 = vld [vmem:[#allocation5 + $0x8f8] sm:$0xff] }
 0x28c   :  { %2047 = vmatpush1.bf16.msra.mxu0 %v1119_v62  ;;  %2219 = vmatpush1.bf16.msra.mxu1 %v1121_v63  ;;  %v1260_v62 = vunpack.c.l.s8.bf16 %v532_v2  ;;  %v1262_v63 = vunpack.c.l.s8.bf16 %v534_v3 }
 0x28d   :  { %2048 = vmatprep.subr.bf16.mxu0 %v1134_v0  ;;  %2220 = vmatprep.subr.bf16.mxu1 %v1136_v4  ;;  %v531_v0 = vld [vmem:[#allocation5 + $0x8e0] sm:$0xff]  ;;  %v533_v4 = vld [vmem:[#allocation5 + $0x8f0] sm:$0xff] }
 0x28e   :  { %v1259_v5 = vunpack.c.l.s8.bf16 %v531_v0  ;;  %v1261_v6 = vunpack.c.l.s8.bf16 %v533_v4  ;;  %v1273_v21 = vunpack.c.h.s8.bf16 %v531_v0  ;;  %v1275_v11 = vunpack.c.h.s8.bf16 %v533_v4 }
 0x290   :  { %2049 = vmatpush1.bf16.msra.mxu0 %v1133_v7  ;;  %2221 = vmatpush1.bf16.msra.mxu1 %v1135_v8  ;;  %v1274_v7 = vunpack.c.h.s8.bf16 %v532_v2  ;;  %v1276_v8 = vunpack.c.h.s8.bf16 %v534_v3 }
 0x291   :  { %2061 = vmatprep.subr.bf16.mxu0 %v1148_v9  ;;  %2233 = vmatprep.subr.bf16.mxu1 %v1150_v20  ;;  %v546_v9 = vld [vmem:[#allocation5 + $0x958] sm:$0xff]  ;;  %v548_v20 = vld [vmem:[#allocation5 + $0x968] sm:$0xff] }
 0x293   :  { %2051 = vmatmul.mubr.bf16.vlgmr.msra.gmra.mrb[4].mxu0 %v7195_v19  ;;  %2223 = vmatmul.mubr.bf16.vlgmr.msra.gmra.mrb[4].mxu1 %v7195_v19 }
 0x294   :  { %2062 = vmatpush1.bf16.msra.mxu0 %v1147_v12  ;;  %2234 = vmatpush1.bf16.msra.mxu1 %v1149_v13  ;;  %v1288_v12 = vunpack.c.l.s8.bf16 %v546_v9  ;;  %v1290_v13 = vunpack.c.l.s8.bf16 %v548_v20 }
 0x295   :  { %2063 = vmatprep.subr.bf16.mxu0 %v1162_v14  ;;  %2235 = vmatprep.subr.bf16.mxu1 %v1164_v15  ;;  %v545_v14 = vld [vmem:[#allocation5 + $0x950] sm:$0xff]  ;;  %v547_v15 = vld [vmem:[#allocation5 + $0x960] sm:$0xff] }
 0x296   :  { %2093 = vmatprep.mubr.bf16.mxu0 %v7203_v28  ;;  %2265 = vmatprep.mubr.bf16.mxu1 %v7203_v28  ;;  %v1287_v16 = vunpack.c.l.s8.bf16 %v545_v14  ;;  %v1289_v17 = vunpack.c.l.s8.bf16 %v547_v15  ;;  %v1301_v25 = vunpack.c.h.s8.bf16 %v545_v14  ;;  %v1303_v26 = vunpack.c.h.s8.bf16 %v547_v15  ;;  %v618_v14 = vld [vmem:[#allocation5 + $0xb98] sm:$0xff] }
 0x298   :  { %2064 = vmatpush1.bf16.msra.mxu0 %v1161_v18  ;;  %2236 = vmatpush1.bf16.msra.mxu1 %v1163_v22  ;;  %v1302_v18 = vunpack.c.h.s8.bf16 %v546_v9  ;;  %v1304_v22 = vunpack.c.h.s8.bf16 %v548_v20  ;;  %v2839_v9 = vlaneseq }
 0x299   :  { %2065 = vmatprep.subr.bf16.mxu0 %v1176_v23  ;;  %2237 = vmatprep.subr.bf16.mxu1 %v1178_v24  ;;  %v560_v23 = vld [vmem:[#allocation5 + $0x9c8] sm:$0xff]  ;;  %v562_v24 = vld [vmem:[#allocation5 + $0x9d8] sm:$0xff] }
 0x29a   :  { %v7245_v15 = vshrl.u32 %v2839_v9, 7 }
 0x29c   :  { %2066 = vmatpush1.bf16.msra.mxu0 %v1175_v27  ;;  %2238 = vmatpush1.bf16.msra.mxu1 %v1177_v44  ;;  %v1316_v27 = vunpack.c.l.s8.bf16 %v560_v23  ;;  %v1318_v44 = vunpack.c.l.s8.bf16 %v562_v24 }
 0x29d   :  { %2067 = vmatprep.subr.bf16.mxu0 %v1190_v45  ;;  %2239 = vmatprep.subr.bf16.mxu1 %v1192_v29  ;;  %v559_v45 = vld [vmem:[#allocation5 + $0x9c0] sm:$0xff]  ;;  %v561_v29 = vld [vmem:[#allocation5 + $0x9d0] sm:$0xff] }
 0x29e   :  { %v1315_v32 = vunpack.c.l.s8.bf16 %v559_v45  ;;  %v1317_v33 = vunpack.c.l.s8.bf16 %v561_v29  ;;  %v1329_v39 = vunpack.c.h.s8.bf16 %v559_v45  ;;  %v1331_v40 = vunpack.c.h.s8.bf16 %v561_v29  ;;  %v2835_v45 = vld [vmem:[#allocation7] sm:$0xff] }
 0x29f   :  { %v7254_v29 = vsub.s32 1, %v7245_v15 }
 0x2a0   :  { %2068 = vmatpush1.bf16.msra.mxu0 %v1189_v34  ;;  %2240 = vmatpush1.bf16.msra.mxu1 %v1191_v35  ;;  %v1330_v34 = vunpack.c.h.s8.bf16 %v560_v23  ;;  %v1332_v35 = vunpack.c.h.s8.bf16 %v562_v24  ;;  %v615_v23 = vld [vmem:[#allocation5 + $0xb80] sm:$0xff]  ;;  %v617_v24 = vld [vmem:[#allocation5 + $0xb90] sm:$0xff] }
 0x2a1   :  { %2069 = vmatprep.subr.bf16.mxu0 %v1204_v37  ;;  %2241 = vmatprep.subr.bf16.mxu1 %v1206_v38  ;;  %v574_v37 = vld [vmem:[#allocation5 + $0xa38] sm:$0xff]  ;;  %v576_v38 = vld [vmem:[#allocation5 + $0xa48] sm:$0xff] }
 0x2a4   :  { %2070 = vmatpush1.bf16.msra.mxu0 %v1203_v41  ;;  %2242 = vmatpush1.bf16.msra.mxu1 %v1205_v42  ;;  %v1344_v41 = vunpack.c.l.s8.bf16 %v574_v37  ;;  %v1346_v42 = vunpack.c.l.s8.bf16 %v576_v38 }
 0x2a5   :  { %2071 = vmatprep.subr.bf16.mxu0 %v1218_v43  ;;  %2243 = vmatprep.subr.bf16.mxu1 %v1220_v47  ;;  %v573_v43 = vld [vmem:[#allocation5 + $0xa30] sm:$0xff]  ;;  %v575_v47 = vld [vmem:[#allocation5 + $0xa40] sm:$0xff] }
 0x2a6   :  { %v1343_v48 = vunpack.c.l.s8.bf16 %v573_v43  ;;  %v1345_v49 = vunpack.c.l.s8.bf16 %v575_v47  ;;  %v1357_v54 = vunpack.c.h.s8.bf16 %v573_v43  ;;  %v1359_v55 = vunpack.c.h.s8.bf16 %v575_v47 }
 0x2a7   :  { %v1441_v43 = vunpack.c.h.s8.bf16 %v615_v23  ;;  %v1443_v47 = vunpack.c.h.s8.bf16 %v617_v24 }
 0x2a8   :  { %2072 = vmatpush1.bf16.msra.mxu0 %v1217_v50  ;;  %2244 = vmatpush1.bf16.msra.mxu1 %v1219_v51  ;;  %v1358_v50 = vunpack.c.h.s8.bf16 %v574_v37  ;;  %v1360_v51 = vunpack.c.h.s8.bf16 %v576_v38  ;;  %v2937_v38 = vld [vmem:[#allocation8] sm:$0xff] }
 0x2a9   :  { %2073 = vmatprep.subr.bf16.mxu0 %v1232_v30  ;;  %2245 = vmatprep.subr.bf16.mxu1 %v1234_v31  ;;  %v588_v30 = vld [vmem:[#allocation5 + $0xaa8] sm:$0xff]  ;;  %v590_v31 = vld [vmem:[#allocation5 + $0xab8] sm:$0xff] }
 0x2ac   :  { %2074 = vmatpush1.bf16.msra.mxu0 %v1231_v56  ;;  %2246 = vmatpush1.bf16.msra.mxu1 %v1233_v57  ;;  %v1372_v56 = vunpack.c.l.s8.bf16 %v588_v30  ;;  %v1374_v57 = vunpack.c.l.s8.bf16 %v590_v31 }
 0x2ad   :  { %2075 = vmatprep.subr.bf16.mxu0 %v1246_v58  ;;  %2247 = vmatprep.subr.bf16.mxu1 %v1248_v59  ;;  %v587_v58 = vld [vmem:[#allocation5 + $0xaa0] sm:$0xff]  ;;  %v589_v59 = vld [vmem:[#allocation5 + $0xab0] sm:$0xff] }
 0x2ae   :  { %v1371_v2 = vunpack.c.l.s8.bf16 %v587_v58  ;;  %v1373_v3 = vunpack.c.l.s8.bf16 %v589_v59  ;;  %v1385_v0 = vunpack.c.h.s8.bf16 %v587_v58  ;;  %v1387_v4 = vunpack.c.h.s8.bf16 %v589_v59 }
 0x2af   :  { %v2948_v59 = vrot.slane %v2937_v38, %v7254_v29 }
 0x2b0   :  { %2076 = vmatpush1.bf16.msra.mxu0 %v1245_v60  ;;  %2248 = vmatpush1.bf16.msra.mxu1 %v1247_v61  ;;  %v1386_v60 = vunpack.c.h.s8.bf16 %v588_v30  ;;  %v1388_v61 = vunpack.c.h.s8.bf16 %v590_v31 }
 0x2b1   :  { %2077 = vmatprep.subr.bf16.mxu0 %v1260_v62  ;;  %2249 = vmatprep.subr.bf16.mxu1 %v1262_v63  ;;  %v602_v62 = vld [vmem:[#allocation5 + $0xb18] sm:$0xff]  ;;  %v604_v63 = vld [vmem:[#allocation5 + $0xb28] sm:$0xff] }
 0x2b4   :  { %2078 = vmatpush1.bf16.msra.mxu0 %v1259_v5  ;;  %2250 = vmatpush1.bf16.msra.mxu1 %v1261_v6  ;;  %v1400_v5 = vunpack.c.l.s8.bf16 %v602_v62  ;;  %v1402_v6 = vunpack.c.l.s8.bf16 %v604_v63 }
 0x2b5   :  { %2079 = vmatprep.subr.bf16.mxu0 %v1274_v7  ;;  %2251 = vmatprep.subr.bf16.mxu1 %v1276_v8  ;;  %v601_v7 = vld [vmem:[#allocation5 + $0xb10] sm:$0xff]  ;;  %v603_v8 = vld [vmem:[#allocation5 + $0xb20] sm:$0xff] }
 0x2b6   :  { %v1399_v20 = vunpack.c.l.s8.bf16 %v601_v7 }
 0x2b8   :  { %2080 = vmatpush1.bf16.msra.mxu0 %v1273_v21  ;;  %2252 = vmatpush1.bf16.msra.mxu1 %v1275_v11  ;;  %v1401_v21 = vunpack.c.l.s8.bf16 %v603_v8  ;;  %v1414_v11 = vunpack.c.h.s8.bf16 %v602_v62 }
 0x2b9   :  { %2081 = vmatprep.subr.bf16.mxu0 %v1288_v12  ;;  %2253 = vmatprep.subr.bf16.mxu1 %v1290_v13  ;;  %v1416_v12 = vunpack.c.h.s8.bf16 %v604_v63  ;;  %v616_v13 = vld [vmem:[#allocation5 + $0xb88] sm:$0xff] }
 0x2bc   :  { %2082 = vmatpush1.bf16.msra.mxu0 %v1287_v16  ;;  %2254 = vmatpush1.bf16.msra.mxu1 %v1289_v17  ;;  %v1413_v16 = vunpack.c.h.s8.bf16 %v601_v7  ;;  %v1415_v17 = vunpack.c.h.s8.bf16 %v603_v8 }
 0x2bd   :  { %2083 = vmatprep.subr.bf16.mxu0 %v1302_v18  ;;  %2255 = vmatprep.subr.bf16.mxu1 %v1304_v22  ;;  %v1428_v18 = vunpack.c.l.s8.bf16 %v616_v13  ;;  %v1430_v22 = vunpack.c.l.s8.bf16 %v618_v14 }
 0x2c0   :  { %2084 = vmatpush1.bf16.msra.mxu0 %v1301_v25  ;;  %2256 = vmatpush1.bf16.msra.mxu1 %v1303_v26  ;;  %v7248_v25 = vsub.s32 0, %v7245_v15  ;;  %v7251_v26 = vsub.s32 2, %v7245_v15 }
 0x2c1   :  { %2085 = vmatprep.subr.bf16.mxu0 %v1316_v27  ;;  %2257 = vmatprep.subr.bf16.mxu1 %v1318_v44  ;;  %v1427_v27 = vunpack.c.l.s8.bf16 %v615_v23  ;;  %v1429_v44 = vunpack.c.l.s8.bf16 %v617_v24 }
 0x2c2   :  { %v2842_v37 = vrot.slane %v2835_v45, %v7248_v25  ;;  %v2944_v30 = vrot.slane %v2937_v38, %v7248_v25 }
 0x2c4   :  { %2086 = vmatpush1.bf16.msra.mxu0 %v1315_v32  ;;  %2258 = vmatpush1.bf16.msra.mxu1 %v1317_v33  ;;  %v7257_v32 = vsub.s32 3, %v7245_v15  ;;  %v1442_v33 = vunpack.c.h.s8.bf16 %v616_v13 }
 0x2c5   :  { %2087 = vmatprep.subr.bf16.mxu0 %v1330_v34  ;;  %2259 = vmatprep.subr.bf16.mxu1 %v1332_v35  ;;  %v1444_v34 = vunpack.c.h.s8.bf16 %v618_v14  ;;  %v630_v35 = vld [vmem:[#allocation5 + $0xbf8] sm:$0xff]  ;;  %v644_v14 = vld [vmem:[#allocation5 + $0xc68] sm:$0xff] }
 0x2c6   :  { %v1470_v9 = vunpack.c.h.s8.bf16 %v630_v35 }
 0x2c8   :  { %2088 = vmatpush1.bf16.msra.mxu0 %v1329_v39  ;;  %2260 = vmatpush1.bf16.msra.mxu1 %v1331_v40  ;;  %v2850_v39 = vrot.slane %v2835_v45, %v7251_v26  ;;  %v632_v40 = vld [vmem:[#allocation5 + $0xc08] sm:$0xff] }
 0x2c9   :  { %2089 = vmatprep.subr.bf16.mxu0 %v1344_v41  ;;  %2261 = vmatprep.subr.bf16.mxu1 %v1346_v42  ;;  %v2846_v41 = vrot.slane %v2835_v45, %v7254_v29  ;;  %v2854_v42 = vrot.slane %v2835_v45, %v7257_v32 }
 0x2cc   :  { %2090 = vmatpush1.bf16.msra.mxu0 %v1343_v48  ;;  %2262 = vmatpush1.bf16.msra.mxu1 %v1345_v49  ;;  %v1456_v48 = vunpack.c.l.s8.bf16 %v630_v35  ;;  %v629_v49 = vld [vmem:[#allocation5 + $0xbf0] sm:$0xff]  ;;  %v1484_v35 = vunpack.c.l.s8.bf16 %v644_v14 }
 0x2cd   :  { %2091 = vmatprep.subr.bf16.mxu0 %v1358_v50  ;;  %2263 = vmatprep.subr.bf16.mxu1 %v1360_v51  ;;  %v631_v50 = vld [vmem:[#allocation5 + $0xc00] sm:$0xff]  ;;  %v1469_v13 = vunpack.c.h.s8.bf16 %v629_v49 }
 0x2ce   :  { %v1471_v45 = vunpack.c.h.s8.bf16 %v631_v50 }
 0x2d0   :  { %2092 = vmatpush1.bf16.msra.mxu0 %v1357_v54  ;;  %2264 = vmatpush1.bf16.msra.mxu1 %v1359_v55  ;;  %v2952_v54 = vrot.slane %v2937_v38, %v7251_v26  ;;  %v1458_v55 = vunpack.c.l.s8.bf16 %v632_v40 }
 0x2d1   :  { %2104 = vmatprep.subr.bf16.mxu0 %v1372_v56  ;;  %2276 = vmatprep.subr.bf16.mxu1 %v1374_v57 }
 0x2d3   :  { %2094 = vmatmul.mubr.bf16.vlgmr.msra.gmra.mrb[4].mxu0 %v7211_v1  ;;  %2266 = vmatmul.mubr.bf16.vlgmr.msra.gmra.mrb[4].mxu1 %v7211_v1 }
 0x2d4   :  { %2105 = vmatpush1.bf16.msra.mxu0 %v1371_v2  ;;  %2277 = vmatpush1.bf16.msra.mxu1 %v1373_v3  ;;  %v2956_v3 = vrot.slane %v2937_v38, %v7257_v32  ;;  %v643_v38 = vld [vmem:[#allocation5 + $0xc60] sm:$0xff] }
 0x2d5   :  { %2106 = vmatprep.subr.bf16.mxu0 %v1386_v60  ;;  %2278 = vmatprep.subr.bf16.mxu1 %v1388_v61 }
 0x2d6   :  { %2136 = vmatprep.mubr.bf16.mxu0 %v7219_v10  ;;  %2308 = vmatprep.mubr.bf16.mxu1 %v7219_v10 }
 0x2d8   :  { %2107 = vmatpush1.bf16.msra.mxu0 %v1385_v0  ;;  %2279 = vmatpush1.bf16.msra.mxu1 %v1387_v4  ;;  %v1455_v0 = vunpack.c.l.s8.bf16 %v629_v49  ;;  %v1457_v4 = vunpack.c.l.s8.bf16 %v631_v50  ;;  %v658_v49 = vld [vmem:[#allocation5 + $0xcd8] sm:$0xff]  ;;  %v660_v50 = vld [vmem:[#allocation5 + $0xce8] sm:$0xff] }
 0x2d9   :  { %2108 = vmatprep.subr.bf16.mxu0 %v1400_v5  ;;  %2280 = vmatprep.subr.bf16.mxu1 %v1402_v6 }
 0x2dc   :  { %2109 = vmatpush1.bf16.msra.mxu0 %v1399_v20  ;;  %2281 = vmatpush1.bf16.msra.mxu1 %v1401_v21  ;;  %v1472_v20 = vunpack.c.h.s8.bf16 %v632_v40 }
 0x2dd   :  { %2110 = vmatprep.subr.bf16.mxu0 %v1414_v11  ;;  %2282 = vmatprep.subr.bf16.mxu1 %v1416_v12 }
 0x2e0   :  { %2111 = vmatpush1.bf16.msra.mxu0 %v1413_v16  ;;  %2283 = vmatpush1.bf16.msra.mxu1 %v1415_v17  ;;  %v646_v16 = vld [vmem:[#allocation5 + $0xc78] sm:$0xff] }
 0x2e1   :  { %2112 = vmatprep.subr.bf16.mxu0 %v1428_v18  ;;  %2284 = vmatprep.subr.bf16.mxu1 %v1430_v22 }
 0x2e4   :  { %2113 = vmatpush1.bf16.msra.mxu0 %v1427_v27  ;;  %2285 = vmatpush1.bf16.msra.mxu1 %v1429_v44 }
 0x2e5   :  { %2114 = vmatprep.subr.bf16.mxu0 %v1442_v33  ;;  %2286 = vmatprep.subr.bf16.mxu1 %v1444_v34 }
 0x2e6   :  { %v1794_v51 = vpop.f32.mrb[0].mxu0  ;;  %v1966_v31 = vpop.f32.mrb[0].mxu1 }
 0x2e7   :  { %v2909_v56 = vmul.f32 %v2842_v37, %v1794_v51  ;;  %v2911_v57 = vmul.f32 %v2850_v39, %v1966_v31  ;;  %v1796_v58 = vpop.f32.mrb[1].mxu0  ;;  %v1968_v2 = vpop.f32.mrb[1].mxu1  ;;  %v1497_v51 = vunpack.c.h.s8.bf16 %v643_v38  ;;  %v1512_v31 = vunpack.c.l.s8.bf16 %v658_v49 }
 0x2e8   :  { %v2910_v60 = vmul.f32 %v2846_v41, %v1796_v58  ;;  %v2912_v61 = vmul.f32 %v2854_v42, %v1968_v2  ;;  %v1798_v62 = vpop.f32.mrb[2].mxu0  ;;  %v1970_v63 = vpop.f32.mrb[2].mxu1  ;;  %2115 = vmatpush1.bf16.msra.mxu0 %v1441_v43  ;;  %2287 = vmatpush1.bf16.msra.mxu1 %v1443_v47  ;;  %v1498_v47 = vunpack.c.h.s8.bf16 %v644_v14  ;;  %v1528_v2 = vunpack.c.h.s8.bf16 %v660_v50 }
 0x2e9   :  { %v2923_v5 = vmul.f32 %v2842_v37, %v1798_v62  ;;  %v2925_v6 = vmul.f32 %v2850_v39, %v1970_v63  ;;  %v1800_v7 = vpop.f32.mrb[3].mxu0  ;;  %v1972_v8 = vpop.f32.mrb[3].mxu1  ;;  %2116 = vmatprep.subr.bf16.mxu0 %v1456_v48  ;;  %v3011_v21 = vadd.f32 %v2944_v30, %v2909_v56  ;;  %2288 = vmatprep.subr.bf16.mxu1 %v1458_v55  ;;  %v1486_v37 = vunpack.c.l.s8.bf16 %v646_v16  ;;  %v645_v39 = vld [vmem:[#allocation5 + $0xc70] sm:$0xff]  ;;  %v659_v56 = vld [vmem:[#allocation5 + $0xce0] sm:$0xff] }
 0x2ea   :  { %v2924_v11 = vmul.f32 %v2846_v41, %v1800_v7  ;;  %v2926_v12 = vmul.f32 %v2854_v42, %v1972_v8  ;;  %v3013_v17 = vadd.f32 %v2952_v54, %v2911_v57  ;;  %v3012_v18 = vadd.f32 %v2948_v59, %v2910_v60  ;;  %v657_v55 = vld [vmem:[#allocation5 + $0xcd0] sm:$0xff]  ;;  %v674_v60 = vld [vmem:[#allocation5 + $0xd58] sm:$0xff] }
 0x2eb   :  { %v3025_v22 = vadd.f32 %v2944_v30, %v2923_v5  ;;  %v3027_v23 = vadd.f32 %v2952_v54, %v2925_v6  ;;  %v3014_v24 = vadd.f32 %v2956_v3, %v2912_v61  ;;  %v1483_v42 = vunpack.c.l.s8.bf16 %v643_v38  ;;  %v673_v5 = vld [vmem:[#allocation5 + $0xd50] sm:$0xff] }
 0x2ec   :  { %v3026_v27 = vadd.f32 %v2948_v59, %v2924_v11  ;;  %v3028_v44 = vadd.f32 %v2956_v3, %v2926_v12  ;;  %2117 = vmatpush1.bf16.msra.mxu0 %v1455_v0  ;;  %2289 = vmatpush1.bf16.msra.mxu1 %v1457_v4  ;;  %v1485_v43 = vunpack.c.l.s8.bf16 %v645_v39  ;;  %v1500_v48 = vunpack.c.h.s8.bf16 %v646_v16  ;;  %v672_v3 = vld [vmem:[#allocation5 + $0xd48] sm:$0xff]  ;;  %v671_v4 = vld [vmem:[#allocation5 + $0xd40] sm:$0xff]  ;;  %v685_v16 = vld [vmem:[#allocation5 + $0xdb0] sm:$0xff] }
 0x2ed   :  { %v7267_v33 = vpack.c.bf16 %v3025_v22, %v3011_v21  ;;  %v7269_v34 = vpack.c.bf16 %v3027_v23, %v3013_v17  ;;  %2118 = vmatprep.subr.bf16.mxu0 %v1470_v9  ;;  %2290 = vmatprep.subr.bf16.mxu1 %v1472_v20  ;;  %v1499_v30 = vunpack.c.h.s8.bf16 %v645_v39  ;;  %v1514_v54 = vunpack.c.l.s8.bf16 %v660_v50  ;;  %v686_v20 = vld [vmem:[#allocation5 + $0xdb8] sm:$0xff]  ;;  %v688_v21 = vld [vmem:[#allocation5 + $0xdc8] sm:$0xff]  ;;  %v687_v17 = vld [vmem:[#allocation5 + $0xdc0] sm:$0xff] }
 0x2ee   :  { %v7271_v40 = vpack.c.bf16 %v3026_v27, %v3012_v18  ;;  %v7273_v41 = vpack.c.bf16 %v3028_v44, %v3014_v24  ;;  %v1511_v57 = vunpack.c.l.s8.bf16 %v657_v55  ;;  %v1513_v58 = vunpack.c.l.s8.bf16 %v659_v56  ;;  %v256_v27 = vld [vmem:[#allocation5 + $0x48] sm:$0xff]  ;;  %v258_v44 = vld [vmem:[#allocation5 + $0x58] sm:$0xff]  ;;  %v255_v39 = vld [vmem:[#allocation5 + $0x40] sm:$0xff] }
 0x2ef   :  { %v1526_v59 = vunpack.c.h.s8.bf16 %v658_v49  ;;  %v1525_v61 = vunpack.c.h.s8.bf16 %v657_v55  ;;  %v1527_v62 = vunpack.c.h.s8.bf16 %v659_v56  ;;  %v1540_v63 = vunpack.c.l.s8.bf16 %v672_v3  ;;  %v270_v50 = vld [vmem:[#allocation5 + $0xb8] sm:$0xff]  ;;  %v269_v56 = vld [vmem:[#allocation5 + $0xb0] sm:$0xff] }
 0x2f0   :  { %2119 = vmatpush1.bf16.msra.mxu0 %v1469_v13  ;;  %2291 = vmatpush1.bf16.msra.mxu1 %v1471_v45  ;;  %v1542_v0 = vunpack.c.l.s8.bf16 %v674_v60  ;;  %v1539_v6 = vunpack.c.l.s8.bf16 %v671_v4  ;;  %v1541_v7 = vunpack.c.l.s8.bf16 %v673_v5  ;;  %v1554_v8 = vunpack.c.h.s8.bf16 %v672_v3 }
 0x2f1   :  { %2120 = vmatprep.subr.bf16.mxu0 %v1484_v35  ;;  %2292 = vmatprep.subr.bf16.mxu1 %v1486_v37  ;;  %v1556_v9 = vunpack.c.h.s8.bf16 %v674_v60  ;;  %v1553_v11 = vunpack.c.h.s8.bf16 %v671_v4  ;;  %v1555_v12 = vunpack.c.h.s8.bf16 %v673_v5  ;;  %v1568_v13 = vunpack.c.l.s8.bf16 %v686_v20  ;;  %v284_v60 = vld [vmem:[#allocation5 + $0x128] sm:$0xff]  ;;  %v283_v5 = vld [vmem:[#allocation5 + $0x120] sm:$0xff] }
 0x2f2   :  { %v1570_v14 = vunpack.c.l.s8.bf16 %v688_v21  ;;  %v1567_v18 = vunpack.c.l.s8.bf16 %v685_v16  ;;  %v1569_v22 = vunpack.c.l.s8.bf16 %v687_v17  ;;  %v1582_v23 = vunpack.c.h.s8.bf16 %v686_v20 }
 0x2f3   :  { %v1584_v24 = vunpack.c.h.s8.bf16 %v688_v21  ;;  %v1581_v45 = vunpack.c.h.s8.bf16 %v685_v16  ;;  %v1583_v35 = vunpack.c.h.s8.bf16 %v687_v17  ;;  %v704_v37 = vunpack.c.l.s8.bf16 %v256_v27  ;;  %v298_v21 = vld [vmem:[#allocation5 + $0x198] sm:$0xff]  ;;  %v297_v17 = vld [vmem:[#allocation5 + $0x190] sm:$0xff] }
 0x2f4   :  { %2121 = vmatpush1.bf16.msra.mxu0 %v1483_v42  ;;  %2293 = vmatpush1.bf16.msra.mxu1 %v1485_v43  ;;  %v706_v38 = vunpack.c.l.s8.bf16 %v258_v44  ;;  %v257_v42 = vld [vmem:[#allocation5 + $0x50] sm:$0xff]  ;;  %v703_v43 = vunpack.c.l.s8.bf16 %v255_v39  ;;  %v720_v49 = vunpack.c.h.s8.bf16 %v258_v44  ;;  %v312_v44 = vld [vmem:[#allocation5 + $0x208] sm:$0xff] }
 0x2f5   :  { %2122 = vmatprep.subr.bf16.mxu0 %v1498_v47  ;;  %2294 = vmatprep.subr.bf16.mxu1 %v1500_v48  ;;  %v705_v47 = vunpack.c.l.s8.bf16 %v257_v42  ;;  %v718_v48 = vunpack.c.h.s8.bf16 %v256_v27 }
 0x2f8   :  { %2123 = vmatpush1.bf16.msra.mxu0 %v1497_v51  ;;  %2295 = vmatpush1.bf16.msra.mxu1 %v1499_v30  ;;  %v272_v51 = vld [vmem:[#allocation5 + $0xc8] sm:$0xff]  ;;  %v717_v30 = vunpack.c.h.s8.bf16 %v255_v39 }
 0x2f9   :  { %2124 = vmatprep.subr.bf16.mxu0 %v1512_v31  ;;  %2296 = vmatprep.subr.bf16.mxu1 %v1514_v54  ;;  %v719_v31 = vunpack.c.h.s8.bf16 %v257_v42  ;;  %v732_v54 = vunpack.c.l.s8.bf16 %v270_v50  ;;  %v734_v55 = vunpack.c.l.s8.bf16 %v272_v51  ;;  %v748_v3 = vunpack.c.h.s8.bf16 %v272_v51  ;;  %v311_v42 = vld [vmem:[#allocation5 + $0x200] sm:$0xff]  ;;  %v326_v51 = vld [vmem:[#allocation5 + $0x278] sm:$0xff] }
 0x2fc   :  { %2125 = vmatpush1.bf16.msra.mxu0 %v1511_v57  ;;  %2297 = vmatpush1.bf16.msra.mxu1 %v1513_v58  ;;  %v271_v57 = vld [vmem:[#allocation5 + $0xc0] sm:$0xff]  ;;  %v731_v58 = vunpack.c.l.s8.bf16 %v269_v56 }
 0x2fd   :  { %2126 = vmatprep.subr.bf16.mxu0 %v1526_v59  ;;  %2298 = vmatprep.subr.bf16.mxu1 %v1528_v2  ;;  %v733_v59 = vunpack.c.l.s8.bf16 %v271_v57  ;;  %v746_v2 = vunpack.c.h.s8.bf16 %v270_v50 }
 0x300   :  { %2127 = vmatpush1.bf16.msra.mxu0 %v1525_v61  ;;  %2299 = vmatpush1.bf16.msra.mxu1 %v1527_v62  ;;  %v286_v61 = vld [vmem:[#allocation5 + $0x138] sm:$0xff]  ;;  %v745_v62 = vunpack.c.h.s8.bf16 %v269_v56 }
 0x301   :  { %2128 = vmatprep.subr.bf16.mxu0 %v1540_v63  ;;  %2300 = vmatprep.subr.bf16.mxu1 %v1542_v0  ;;  %v747_v63 = vunpack.c.h.s8.bf16 %v271_v57  ;;  %v760_v0 = vunpack.c.l.s8.bf16 %v284_v60  ;;  %v762_v4 = vunpack.c.l.s8.bf16 %v286_v61  ;;  %v776_v20 = vunpack.c.h.s8.bf16 %v286_v61  ;;  %v325_v57 = vld [vmem:[#allocation5 + $0x270] sm:$0xff]  ;;  %v340_v61 = vld [vmem:[#allocation5 + $0x2e8] sm:$0xff] }
 0x304   :  { %2129 = vmatpush1.bf16.msra.mxu0 %v1539_v6  ;;  %2301 = vmatpush1.bf16.msra.mxu1 %v1541_v7  ;;  %v285_v6 = vld [vmem:[#allocation5 + $0x130] sm:$0xff]  ;;  %v759_v7 = vunpack.c.l.s8.bf16 %v283_v5 }
 0x305   :  { %2130 = vmatprep.subr.bf16.mxu0 %v1554_v8  ;;  %2302 = vmatprep.subr.bf16.mxu1 %v1556_v9  ;;  %v761_v8 = vunpack.c.l.s8.bf16 %v285_v6  ;;  %v774_v9 = vunpack.c.h.s8.bf16 %v284_v60 }
 0x308   :  { %2131 = vmatpush1.bf16.msra.mxu0 %v1553_v11  ;;  %2303 = vmatpush1.bf16.msra.mxu1 %v1555_v12  ;;  %v300_v11 = vld [vmem:[#allocation5 + $0x1a8] sm:$0xff]  ;;  %v773_v12 = vunpack.c.h.s8.bf16 %v283_v5 }
 0x309   :  { %2132 = vmatprep.subr.bf16.mxu0 %v1568_v13  ;;  %2304 = vmatprep.subr.bf16.mxu1 %v1570_v14  ;;  %v775_v13 = vunpack.c.h.s8.bf16 %v285_v6  ;;  %v788_v14 = vunpack.c.l.s8.bf16 %v298_v21  ;;  %v790_v16 = vunpack.c.l.s8.bf16 %v300_v11  ;;  %v804_v27 = vunpack.c.h.s8.bf16 %v300_v11  ;;  %v339_v6 = vld [vmem:[#allocation5 + $0x2e0] sm:$0xff]  ;;  %v354_v11 = vld [vmem:[#allocation5 + $0x358] sm:$0xff] }
 0x30c   :  { %2133 = vmatpush1.bf16.msra.mxu0 %v1567_v18  ;;  %2305 = vmatpush1.bf16.msra.mxu1 %v1569_v22  ;;  %v299_v18 = vld [vmem:[#allocation5 + $0x1a0] sm:$0xff]  ;;  %v787_v22 = vunpack.c.l.s8.bf16 %v297_v17 }
 0x30d   :  { %2134 = vmatprep.subr.bf16.mxu0 %v1582_v23  ;;  %2306 = vmatprep.subr.bf16.mxu1 %v1584_v24  ;;  %v789_v23 = vunpack.c.l.s8.bf16 %v299_v18  ;;  %v802_v24 = vunpack.c.h.s8.bf16 %v298_v21 }
 0x310   :  { %2135 = vmatpush1.bf16.msra.mxu0 %v1581_v45  ;;  %2307 = vmatpush1.bf16.msra.mxu1 %v1583_v35  ;;  %v314_v45 = vld [vmem:[#allocation5 + $0x218] sm:$0xff]  ;;  %v801_v35 = vunpack.c.h.s8.bf16 %v297_v17 }
 0x311   :  { %2319 = vmatprep.subr.bf16.mxu0 %v704_v37  ;;  %2491 = vmatprep.subr.bf16.mxu1 %v706_v38  ;;  %v803_v37 = vunpack.c.h.s8.bf16 %v299_v18  ;;  %v816_v38 = vunpack.c.l.s8.bf16 %v312_v44  ;;  %v818_v39 = vunpack.c.l.s8.bf16 %v314_v45  ;;  %v832_v50 = vunpack.c.h.s8.bf16 %v314_v45  ;;  %v353_v18 = vld [vmem:[#allocation5 + $0x350] sm:$0xff]  ;;  %v368_v45 = vld [vmem:[#allocation5 + $0x3c8] sm:$0xff] }
 0x313   :  { %2137 = vmatmul.mubr.bf16.vlgmr.msra.gmra.mrb[4].mxu0 %v7227_v52  ;;  %2309 = vmatmul.mubr.bf16.vlgmr.msra.gmra.mrb[4].mxu1 %v7227_v52 }
 0x314   :  { %2320 = vmatpush1.bf16.msra.mxu0 %v703_v43  ;;  %2492 = vmatpush1.bf16.msra.mxu1 %v705_v47  ;;  %v313_v43 = vld [vmem:[#allocation5 + $0x210] sm:$0xff]  ;;  %v815_v47 = vunpack.c.l.s8.bf16 %v311_v42 }
 0x315   :  { %2321 = vmatprep.subr.bf16.mxu0 %v718_v48  ;;  %2493 = vmatprep.subr.bf16.mxu1 %v720_v49  ;;  %v817_v48 = vunpack.c.l.s8.bf16 %v313_v43  ;;  %v830_v49 = vunpack.c.h.s8.bf16 %v312_v44 }
 0x316   :  { %2351 = vmatprep.mubr.bf16.mxu0 %v7173_v36  ;;  %2523 = vmatprep.mubr.bf16.mxu1 %v7173_v36 }
 0x318   :  { %2322 = vmatpush1.bf16.msra.mxu0 %v717_v30  ;;  %2494 = vmatpush1.bf16.msra.mxu1 %v719_v31  ;;  %v328_v30 = vld [vmem:[#allocation5 + $0x288] sm:$0xff]  ;;  %v829_v31 = vunpack.c.h.s8.bf16 %v311_v42 }
 0x319   :  { %2323 = vmatprep.subr.bf16.mxu0 %v732_v54  ;;  %2495 = vmatprep.subr.bf16.mxu1 %v734_v55  ;;  %v831_v54 = vunpack.c.h.s8.bf16 %v313_v43  ;;  %v844_v55 = vunpack.c.l.s8.bf16 %v326_v51  ;;  %v846_v56 = vunpack.c.l.s8.bf16 %v328_v30  ;;  %v860_v60 = vunpack.c.h.s8.bf16 %v328_v30  ;;  %v367_v43 = vld [vmem:[#allocation5 + $0x3c0] sm:$0xff]  ;;  %v382_v30 = vld [vmem:[#allocation5 + $0x438] sm:$0xff] }
 0x31c   :  { %2324 = vmatpush1.bf16.msra.mxu0 %v731_v58  ;;  %2496 = vmatpush1.bf16.msra.mxu1 %v733_v59  ;;  %v327_v58 = vld [vmem:[#allocation5 + $0x280] sm:$0xff]  ;;  %v843_v59 = vunpack.c.l.s8.bf16 %v325_v57 }
 0x31d   :  { %2325 = vmatprep.subr.bf16.mxu0 %v746_v2  ;;  %2497 = vmatprep.subr.bf16.mxu1 %v748_v3  ;;  %v845_v2 = vunpack.c.l.s8.bf16 %v327_v58  ;;  %v858_v3 = vunpack.c.h.s8.bf16 %v326_v51 }
 0x320   :  { %2326 = vmatpush1.bf16.msra.mxu0 %v745_v62  ;;  %2498 = vmatpush1.bf16.msra.mxu1 %v747_v63  ;;  %v342_v62 = vld [vmem:[#allocation5 + $0x2f8] sm:$0xff]  ;;  %v857_v63 = vunpack.c.h.s8.bf16 %v325_v57 }
 0x321   :  { %2327 = vmatprep.subr.bf16.mxu0 %v760_v0  ;;  %2499 = vmatprep.subr.bf16.mxu1 %v762_v4  ;;  %v859_v0 = vunpack.c.h.s8.bf16 %v327_v58  ;;  %v872_v4 = vunpack.c.l.s8.bf16 %v340_v61  ;;  %v874_v5 = vunpack.c.l.s8.bf16 %v342_v62  ;;  %v888_v21 = vunpack.c.h.s8.bf16 %v342_v62  ;;  %v381_v58 = vld [vmem:[#allocation5 + $0x430] sm:$0xff]  ;;  %v396_v62 = vld [vmem:[#allocation5 + $0x4a8] sm:$0xff] }
 0x324   :  { %2328 = vmatpush1.bf16.msra.mxu0 %v759_v7  ;;  %2500 = vmatpush1.bf16.msra.mxu1 %v761_v8  ;;  %v341_v7 = vld [vmem:[#allocation5 + $0x2f0] sm:$0xff]  ;;  %v871_v8 = vunpack.c.l.s8.bf16 %v339_v6 }
 0x325   :  { %2329 = vmatprep.subr.bf16.mxu0 %v774_v9  ;;  %2501 = vmatprep.subr.bf16.mxu1 %v776_v20  ;;  %v873_v9 = vunpack.c.l.s8.bf16 %v341_v7  ;;  %v886_v20 = vunpack.c.h.s8.bf16 %v340_v61 }
 0x328   :  { %2330 = vmatpush1.bf16.msra.mxu0 %v773_v12  ;;  %2502 = vmatpush1.bf16.msra.mxu1 %v775_v13  ;;  %v356_v12 = vld [vmem:[#allocation5 + $0x368] sm:$0xff]  ;;  %v885_v13 = vunpack.c.h.s8.bf16 %v339_v6 }
 0x329   :  { %2331 = vmatprep.subr.bf16.mxu0 %v788_v14  ;;  %2503 = vmatprep.subr.bf16.mxu1 %v790_v16  ;;  %v887_v14 = vunpack.c.h.s8.bf16 %v341_v7  ;;  %v900_v16 = vunpack.c.l.s8.bf16 %v354_v11  ;;  %v902_v17 = vunpack.c.l.s8.bf16 %v356_v12  ;;  %v916_v44 = vunpack.c.h.s8.bf16 %v356_v12  ;;  %v395_v7 = vld [vmem:[#allocation5 + $0x4a0] sm:$0xff]  ;;  %v410_v12 = vld [vmem:[#allocation5 + $0x518] sm:$0xff] }
 0x32c   :  { %2332 = vmatpush1.bf16.msra.mxu0 %v787_v22  ;;  %2504 = vmatpush1.bf16.msra.mxu1 %v789_v23  ;;  %v355_v22 = vld [vmem:[#allocation5 + $0x360] sm:$0xff]  ;;  %v899_v23 = vunpack.c.l.s8.bf16 %v353_v18 }
 0x32d   :  { %2333 = vmatprep.subr.bf16.mxu0 %v802_v24  ;;  %2505 = vmatprep.subr.bf16.mxu1 %v804_v27  ;;  %v901_v24 = vunpack.c.l.s8.bf16 %v355_v22  ;;  %v914_v27 = vunpack.c.h.s8.bf16 %v354_v11 }
 0x330   :  { %2334 = vmatpush1.bf16.msra.mxu0 %v801_v35  ;;  %2506 = vmatpush1.bf16.msra.mxu1 %v803_v37  ;;  %v370_v35 = vld [vmem:[#allocation5 + $0x3d8] sm:$0xff]  ;;  %v913_v37 = vunpack.c.h.s8.bf16 %v353_v18 }
 0x331   :  { %2335 = vmatprep.subr.bf16.mxu0 %v816_v38  ;;  %2507 = vmatprep.subr.bf16.mxu1 %v818_v39  ;;  %v915_v38 = vunpack.c.h.s8.bf16 %v355_v22  ;;  %v928_v39 = vunpack.c.l.s8.bf16 %v368_v45  ;;  %v930_v42 = vunpack.c.l.s8.bf16 %v370_v35  ;;  %v944_v51 = vunpack.c.h.s8.bf16 %v370_v35  ;;  %v409_v22 = vld [vmem:[#allocation5 + $0x510] sm:$0xff]  ;;  %v424_v35 = vld [vmem:[#allocation5 + $0x588] sm:$0xff] }
 0x334   :  { %2336 = vmatpush1.bf16.msra.mxu0 %v815_v47  ;;  %2508 = vmatpush1.bf16.msra.mxu1 %v817_v48  ;;  %v369_v47 = vld [vmem:[#allocation5 + $0x3d0] sm:$0xff]  ;;  %v927_v48 = vunpack.c.l.s8.bf16 %v367_v43 }
 0x335   :  { %2337 = vmatprep.subr.bf16.mxu0 %v830_v49  ;;  %2509 = vmatprep.subr.bf16.mxu1 %v832_v50  ;;  %v929_v49 = vunpack.c.l.s8.bf16 %v369_v47  ;;  %v942_v50 = vunpack.c.h.s8.bf16 %v368_v45 }
 0x338   :  { %2338 = vmatpush1.bf16.msra.mxu0 %v829_v31  ;;  %2510 = vmatpush1.bf16.msra.mxu1 %v831_v54  ;;  %v384_v31 = vld [vmem:[#allocation5 + $0x448] sm:$0xff]  ;;  %v941_v54 = vunpack.c.h.s8.bf16 %v367_v43 }
 0x339   :  { %2339 = vmatprep.subr.bf16.mxu0 %v844_v55  ;;  %2511 = vmatprep.subr.bf16.mxu1 %v846_v56  ;;  %v943_v55 = vunpack.c.h.s8.bf16 %v369_v47  ;;  %v956_v56 = vunpack.c.l.s8.bf16 %v382_v30  ;;  %v958_v57 = vunpack.c.l.s8.bf16 %v384_v31  ;;  %v972_v61 = vunpack.c.h.s8.bf16 %v384_v31  ;;  %v423_v47 = vld [vmem:[#allocation5 + $0x580] sm:$0xff]  ;;  %v438_v31 = vld [vmem:[#allocation5 + $0x5f8] sm:$0xff] }
 0x33c   :  { %2340 = vmatpush1.bf16.msra.mxu0 %v843_v59  ;;  %2512 = vmatpush1.bf16.msra.mxu1 %v845_v2  ;;  %v383_v59 = vld [vmem:[#allocation5 + $0x440] sm:$0xff]  ;;  %v955_v2 = vunpack.c.l.s8.bf16 %v381_v58 }
 0x33d   :  { %2341 = vmatprep.subr.bf16.mxu0 %v858_v3  ;;  %2513 = vmatprep.subr.bf16.mxu1 %v860_v60  ;;  %v957_v3 = vunpack.c.l.s8.bf16 %v383_v59  ;;  %v970_v60 = vunpack.c.h.s8.bf16 %v382_v30 }
 0x340   :  { %2342 = vmatpush1.bf16.msra.mxu0 %v857_v63  ;;  %2514 = vmatpush1.bf16.msra.mxu1 %v859_v0  ;;  %v398_v63 = vld [vmem:[#allocation5 + $0x4b8] sm:$0xff]  ;;  %v969_v0 = vunpack.c.h.s8.bf16 %v381_v58 }
 0x341   :  { %2343 = vmatprep.subr.bf16.mxu0 %v872_v4  ;;  %2515 = vmatprep.subr.bf16.mxu1 %v874_v5  ;;  %v971_v4 = vunpack.c.h.s8.bf16 %v383_v59  ;;  %v984_v5 = vunpack.c.l.s8.bf16 %v396_v62  ;;  %v986_v6 = vunpack.c.l.s8.bf16 %v398_v63  ;;  %v1000_v11 = vunpack.c.h.s8.bf16 %v398_v63  ;;  %v437_v59 = vld [vmem:[#allocation5 + $0x5f0] sm:$0xff]  ;;  %v452_v63 = vld [vmem:[#allocation5 + $0x668] sm:$0xff] }
 0x344   :  { %2344 = vmatpush1.bf16.msra.mxu0 %v871_v8  ;;  %2516 = vmatpush1.bf16.msra.mxu1 %v873_v9  ;;  %v397_v8 = vld [vmem:[#allocation5 + $0x4b0] sm:$0xff]  ;;  %v983_v9 = vunpack.c.l.s8.bf16 %v395_v7 }
 0x345   :  { %2345 = vmatprep.subr.bf16.mxu0 %v886_v20  ;;  %2517 = vmatprep.subr.bf16.mxu1 %v888_v21  ;;  %v985_v20 = vunpack.c.l.s8.bf16 %v397_v8  ;;  %v998_v21 = vunpack.c.h.s8.bf16 %v396_v62 }
 0x348   :  { %2346 = vmatpush1.bf16.msra.mxu0 %v885_v13  ;;  %2518 = vmatpush1.bf16.msra.mxu1 %v887_v14  ;;  %v412_v13 = vld [vmem:[#allocation5 + $0x528] sm:$0xff]  ;;  %v997_v14 = vunpack.c.h.s8.bf16 %v395_v7 }
 0x349   :  { %2347 = vmatprep.subr.bf16.mxu0 %v900_v16  ;;  %2519 = vmatprep.subr.bf16.mxu1 %v902_v17  ;;  %v999_v16 = vunpack.c.h.s8.bf16 %v397_v8  ;;  %v1012_v17 = vunpack.c.l.s8.bf16 %v410_v12  ;;  %v1014_v18 = vunpack.c.l.s8.bf16 %v412_v13  ;;  %v1028_v45 = vunpack.c.h.s8.bf16 %v412_v13  ;;  %v451_v8 = vld [vmem:[#allocation5 + $0x660] sm:$0xff]  ;;  %v466_v13 = vld [vmem:[#allocation5 + $0x6d8] sm:$0xff] }
 0x34c   :  { %2348 = vmatpush1.bf16.msra.mxu0 %v899_v23  ;;  %2520 = vmatpush1.bf16.msra.mxu1 %v901_v24  ;;  %v411_v23 = vld [vmem:[#allocation5 + $0x520] sm:$0xff]  ;;  %v1011_v24 = vunpack.c.l.s8.bf16 %v409_v22 }
 0x34d   :  { %2349 = vmatprep.subr.bf16.mxu0 %v914_v27  ;;  %2521 = vmatprep.subr.bf16.mxu1 %v916_v44  ;;  %v1013_v27 = vunpack.c.l.s8.bf16 %v411_v23  ;;  %v1026_v44 = vunpack.c.h.s8.bf16 %v410_v12 }
 0x350   :  { %2350 = vmatpush1.bf16.msra.mxu0 %v913_v37  ;;  %2522 = vmatpush1.bf16.msra.mxu1 %v915_v38  ;;  %v426_v37 = vld [vmem:[#allocation5 + $0x598] sm:$0xff]  ;;  %v1025_v38 = vunpack.c.h.s8.bf16 %v409_v22 }
 0x351   :  { %2362 = vmatprep.subr.bf16.mxu0 %v928_v39  ;;  %2534 = vmatprep.subr.bf16.mxu1 %v930_v42  ;;  %v1027_v39 = vunpack.c.h.s8.bf16 %v411_v23  ;;  %v1040_v42 = vunpack.c.l.s8.bf16 %v424_v35  ;;  %v1042_v43 = vunpack.c.l.s8.bf16 %v426_v37  ;;  %v1056_v30 = vunpack.c.h.s8.bf16 %v426_v37  ;;  %v465_v23 = vld [vmem:[#allocation5 + $0x6d0] sm:$0xff]  ;;  %v480_v37 = vld [vmem:[#allocation5 + $0x748] sm:$0xff] }
 0x353   :  { %2352 = vmatmul.mubr.bf16.vlgmr.msra.gmra.mrb[8].mxu0 %v7183_v46  ;;  %2524 = vmatmul.mubr.bf16.vlgmr.msra.gmra.mrb[8].mxu1 %v7183_v46 }
 0x354   :  { %2363 = vmatpush1.bf16.msra.mxu0 %v927_v48  ;;  %2535 = vmatpush1.bf16.msra.mxu1 %v929_v49  ;;  %v425_v48 = vld [vmem:[#allocation5 + $0x590] sm:$0xff]  ;;  %v1039_v49 = vunpack.c.l.s8.bf16 %v423_v47 }
 0x355   :  { %2364 = vmatprep.subr.bf16.mxu0 %v942_v50  ;;  %2536 = vmatprep.subr.bf16.mxu1 %v944_v51  ;;  %v1041_v50 = vunpack.c.l.s8.bf16 %v425_v48  ;;  %v1054_v51 = vunpack.c.h.s8.bf16 %v424_v35 }
 0x356   :  { %2394 = vmatprep.mubr.bf16.mxu0 %v7187_v53  ;;  %2566 = vmatprep.mubr.bf16.mxu1 %v7187_v53 }
 0x358   :  { %2365 = vmatpush1.bf16.msra.mxu0 %v941_v54  ;;  %2537 = vmatpush1.bf16.msra.mxu1 %v943_v55  ;;  %v440_v54 = vld [vmem:[#allocation5 + $0x608] sm:$0xff]  ;;  %v1053_v55 = vunpack.c.h.s8.bf16 %v423_v47 }
 0x359   :  { %2366 = vmatprep.subr.bf16.mxu0 %v956_v56  ;;  %2538 = vmatprep.subr.bf16.mxu1 %v958_v57  ;;  %v1055_v56 = vunpack.c.h.s8.bf16 %v425_v48  ;;  %v1068_v57 = vunpack.c.l.s8.bf16 %v438_v31  ;;  %v1070_v58 = vunpack.c.l.s8.bf16 %v440_v54  ;;  %v1084_v62 = vunpack.c.h.s8.bf16 %v440_v54  ;;  %v479_v48 = vld [vmem:[#allocation5 + $0x740] sm:$0xff]  ;;  %v494_v54 = vld [vmem:[#allocation5 + $0x7b8] sm:$0xff] }
 0x35c   :  { %2367 = vmatpush1.bf16.msra.mxu0 %v955_v2  ;;  %2539 = vmatpush1.bf16.msra.mxu1 %v957_v3  ;;  %v439_v2 = vld [vmem:[#allocation5 + $0x600] sm:$0xff]  ;;  %v1067_v3 = vunpack.c.l.s8.bf16 %v437_v59 }
 0x35d   :  { %2368 = vmatprep.subr.bf16.mxu0 %v970_v60  ;;  %2540 = vmatprep.subr.bf16.mxu1 %v972_v61  ;;  %v1069_v60 = vunpack.c.l.s8.bf16 %v439_v2  ;;  %v1082_v61 = vunpack.c.h.s8.bf16 %v438_v31 }
 0x360   :  { %2369 = vmatpush1.bf16.msra.mxu0 %v969_v0  ;;  %2541 = vmatpush1.bf16.msra.mxu1 %v971_v4  ;;  %v454_v0 = vld [vmem:[#allocation5 + $0x678] sm:$0xff]  ;;  %v1081_v4 = vunpack.c.h.s8.bf16 %v437_v59 }
 0x361   :  { %2370 = vmatprep.subr.bf16.mxu0 %v984_v5  ;;  %2542 = vmatprep.subr.bf16.mxu1 %v986_v6  ;;  %v1083_v5 = vunpack.c.h.s8.bf16 %v439_v2  ;;  %v1096_v6 = vunpack.c.l.s8.bf16 %v452_v63  ;;  %v1098_v7 = vunpack.c.l.s8.bf16 %v454_v0  ;;  %v1112_v12 = vunpack.c.h.s8.bf16 %v454_v0  ;;  %v493_v2 = vld [vmem:[#allocation5 + $0x7b0] sm:$0xff]  ;;  %v508_v0 = vld [vmem:[#allocation5 + $0x828] sm:$0xff] }
 0x364   :  { %2371 = vmatpush1.bf16.msra.mxu0 %v983_v9  ;;  %2543 = vmatpush1.bf16.msra.mxu1 %v985_v20  ;;  %v453_v9 = vld [vmem:[#allocation5 + $0x670] sm:$0xff]  ;;  %v1095_v20 = vunpack.c.l.s8.bf16 %v451_v8 }
 0x365   :  { %2372 = vmatprep.subr.bf16.mxu0 %v998_v21  ;;  %2544 = vmatprep.subr.bf16.mxu1 %v1000_v11  ;;  %v1097_v21 = vunpack.c.l.s8.bf16 %v453_v9  ;;  %v1110_v11 = vunpack.c.h.s8.bf16 %v452_v63 }
 0x368   :  { %2373 = vmatpush1.bf16.msra.mxu0 %v997_v14  ;;  %2545 = vmatpush1.bf16.msra.mxu1 %v999_v16  ;;  %v468_v14 = vld [vmem:[#allocation5 + $0x6e8] sm:$0xff]  ;;  %v1109_v16 = vunpack.c.h.s8.bf16 %v451_v8 }
 0x369   :  { %2374 = vmatprep.subr.bf16.mxu0 %v1012_v17  ;;  %2546 = vmatprep.subr.bf16.mxu1 %v1014_v18  ;;  %v1111_v17 = vunpack.c.h.s8.bf16 %v453_v9  ;;  %v1124_v18 = vunpack.c.l.s8.bf16 %v466_v13  ;;  %v1126_v22 = vunpack.c.l.s8.bf16 %v468_v14  ;;  %v1140_v35 = vunpack.c.h.s8.bf16 %v468_v14  ;;  %v507_v9 = vld [vmem:[#allocation5 + $0x820] sm:$0xff]  ;;  %v522_v14 = vld [vmem:[#allocation5 + $0x898] sm:$0xff] }
 0x36c   :  { %2375 = vmatpush1.bf16.msra.mxu0 %v1011_v24  ;;  %2547 = vmatpush1.bf16.msra.mxu1 %v1013_v27  ;;  %v467_v24 = vld [vmem:[#allocation5 + $0x6e0] sm:$0xff]  ;;  %v1123_v27 = vunpack.c.l.s8.bf16 %v465_v23 }
 0x36d   :  { %2376 = vmatprep.subr.bf16.mxu0 %v1026_v44  ;;  %2548 = vmatprep.subr.bf16.mxu1 %v1028_v45  ;;  %v1125_v44 = vunpack.c.l.s8.bf16 %v467_v24  ;;  %v1138_v45 = vunpack.c.h.s8.bf16 %v466_v13 }
 0x370   :  { %2377 = vmatpush1.bf16.msra.mxu0 %v1025_v38  ;;  %2549 = vmatpush1.bf16.msra.mxu1 %v1027_v39  ;;  %v482_v38 = vld [vmem:[#allocation5 + $0x758] sm:$0xff]  ;;  %v1137_v39 = vunpack.c.h.s8.bf16 %v465_v23 }
 0x371   :  { %2378 = vmatprep.subr.bf16.mxu0 %v1040_v42  ;;  %2550 = vmatprep.subr.bf16.mxu1 %v1042_v43  ;;  %v1139_v42 = vunpack.c.h.s8.bf16 %v467_v24  ;;  %v1152_v43 = vunpack.c.l.s8.bf16 %v480_v37  ;;  %v1154_v47 = vunpack.c.l.s8.bf16 %v482_v38  ;;  %v1168_v31 = vunpack.c.h.s8.bf16 %v482_v38  ;;  %v521_v24 = vld [vmem:[#allocation5 + $0x890] sm:$0xff]  ;;  %v536_v38 = vld [vmem:[#allocation5 + $0x908] sm:$0xff] }
 0x374   :  { %2379 = vmatpush1.bf16.msra.mxu0 %v1039_v49  ;;  %2551 = vmatpush1.bf16.msra.mxu1 %v1041_v50  ;;  %v481_v49 = vld [vmem:[#allocation5 + $0x750] sm:$0xff]  ;;  %v1151_v50 = vunpack.c.l.s8.bf16 %v479_v48 }
 0x375   :  { %2380 = vmatprep.subr.bf16.mxu0 %v1054_v51  ;;  %2552 = vmatprep.subr.bf16.mxu1 %v1056_v30  ;;  %v1153_v51 = vunpack.c.l.s8.bf16 %v481_v49  ;;  %v1166_v30 = vunpack.c.h.s8.bf16 %v480_v37 }
 0x378   :  { %2381 = vmatpush1.bf16.msra.mxu0 %v1053_v55  ;;  %2553 = vmatpush1.bf16.msra.mxu1 %v1055_v56  ;;  %v496_v55 = vld [vmem:[#allocation5 + $0x7c8] sm:$0xff]  ;;  %v1165_v56 = vunpack.c.h.s8.bf16 %v479_v48 }
 0x379   :  { %2382 = vmatprep.subr.bf16.mxu0 %v1068_v57  ;;  %2554 = vmatprep.subr.bf16.mxu1 %v1070_v58  ;;  %v1167_v57 = vunpack.c.h.s8.bf16 %v481_v49  ;;  %v1180_v58 = vunpack.c.l.s8.bf16 %v494_v54  ;;  %v1182_v59 = vunpack.c.l.s8.bf16 %v496_v55  ;;  %v1196_v63 = vunpack.c.h.s8.bf16 %v496_v55  ;;  %v535_v49 = vld [vmem:[#allocation5 + $0x900] sm:$0xff]  ;;  %v550_v55 = vld [vmem:[#allocation5 + $0x978] sm:$0xff] }
 0x37c   :  { %2383 = vmatpush1.bf16.msra.mxu0 %v1067_v3  ;;  %2555 = vmatpush1.bf16.msra.mxu1 %v1069_v60  ;;  %v495_v3 = vld [vmem:[#allocation5 + $0x7c0] sm:$0xff]  ;;  %v1179_v60 = vunpack.c.l.s8.bf16 %v493_v2 }
 0x37d   :  { %2384 = vmatprep.subr.bf16.mxu0 %v1082_v61  ;;  %2556 = vmatprep.subr.bf16.mxu1 %v1084_v62  ;;  %v1181_v61 = vunpack.c.l.s8.bf16 %v495_v3  ;;  %v1194_v62 = vunpack.c.h.s8.bf16 %v494_v54 }
 0x380   :  { %2385 = vmatpush1.bf16.msra.mxu0 %v1081_v4  ;;  %2557 = vmatpush1.bf16.msra.mxu1 %v1083_v5  ;;  %v510_v4 = vld [vmem:[#allocation5 + $0x838] sm:$0xff]  ;;  %v1193_v5 = vunpack.c.h.s8.bf16 %v493_v2 }
 0x381   :  { %2386 = vmatprep.subr.bf16.mxu0 %v1096_v6  ;;  %2558 = vmatprep.subr.bf16.mxu1 %v1098_v7  ;;  %v1195_v6 = vunpack.c.h.s8.bf16 %v495_v3  ;;  %v1208_v7 = vunpack.c.l.s8.bf16 %v508_v0  ;;  %v1210_v8 = vunpack.c.l.s8.bf16 %v510_v4  ;;  %v1224_v13 = vunpack.c.h.s8.bf16 %v510_v4  ;;  %v549_v3 = vld [vmem:[#allocation5 + $0x970] sm:$0xff]  ;;  %v564_v4 = vld [vmem:[#allocation5 + $0x9e8] sm:$0xff] }
 0x384   :  { %2387 = vmatpush1.bf16.msra.mxu0 %v1095_v20  ;;  %2559 = vmatpush1.bf16.msra.mxu1 %v1097_v21  ;;  %v509_v20 = vld [vmem:[#allocation5 + $0x830] sm:$0xff]  ;;  %v1207_v21 = vunpack.c.l.s8.bf16 %v507_v9 }
 0x385   :  { %2388 = vmatprep.subr.bf16.mxu0 %v1110_v11  ;;  %2560 = vmatprep.subr.bf16.mxu1 %v1112_v12  ;;  %v1209_v11 = vunpack.c.l.s8.bf16 %v509_v20  ;;  %v1222_v12 = vunpack.c.h.s8.bf16 %v508_v0 }
 0x388   :  { %2389 = vmatpush1.bf16.msra.mxu0 %v1109_v16  ;;  %2561 = vmatpush1.bf16.msra.mxu1 %v1111_v17  ;;  %v524_v16 = vld [vmem:[#allocation5 + $0x8a8] sm:$0xff]  ;;  %v1221_v17 = vunpack.c.h.s8.bf16 %v507_v9 }
 0x389   :  { %2390 = vmatprep.subr.bf16.mxu0 %v1124_v18  ;;  %2562 = vmatprep.subr.bf16.mxu1 %v1126_v22  ;;  %v1223_v18 = vunpack.c.h.s8.bf16 %v509_v20  ;;  %v1236_v22 = vunpack.c.l.s8.bf16 %v522_v14  ;;  %v1238_v23 = vunpack.c.l.s8.bf16 %v524_v16  ;;  %v1252_v37 = vunpack.c.h.s8.bf16 %v524_v16  ;;  %v563_v20 = vld [vmem:[#allocation5 + $0x9e0] sm:$0xff]  ;;  %v578_v16 = vld [vmem:[#allocation5 + $0xa58] sm:$0xff] }
 0x38c   :  { %2391 = vmatpush1.bf16.msra.mxu0 %v1123_v27  ;;  %2563 = vmatpush1.bf16.msra.mxu1 %v1125_v44  ;;  %v523_v27 = vld [vmem:[#allocation5 + $0x8a0] sm:$0xff]  ;;  %v1235_v44 = vunpack.c.l.s8.bf16 %v521_v24 }
 0x38d   :  { %2392 = vmatprep.subr.bf16.mxu0 %v1138_v45  ;;  %2564 = vmatprep.subr.bf16.mxu1 %v1140_v35  ;;  %v1237_v45 = vunpack.c.l.s8.bf16 %v523_v27  ;;  %v1250_v35 = vunpack.c.h.s8.bf16 %v522_v14 }
 0x390   :  { %2393 = vmatpush1.bf16.msra.mxu0 %v1137_v39  ;;  %2565 = vmatpush1.bf16.msra.mxu1 %v1139_v42  ;;  %v538_v39 = vld [vmem:[#allocation5 + $0x918] sm:$0xff]  ;;  %v1249_v42 = vunpack.c.h.s8.bf16 %v521_v24 }
 0x391   :  { %2405 = vmatprep.subr.bf16.mxu0 %v1152_v43  ;;  %2577 = vmatprep.subr.bf16.mxu1 %v1154_v47  ;;  %v1251_v43 = vunpack.c.h.s8.bf16 %v523_v27  ;;  %v1264_v47 = vunpack.c.l.s8.bf16 %v536_v38  ;;  %v1266_v48 = vunpack.c.l.s8.bf16 %v538_v39  ;;  %v1280_v54 = vunpack.c.h.s8.bf16 %v538_v39  ;;  %v577_v27 = vld [vmem:[#allocation5 + $0xa50] sm:$0xff]  ;;  %v592_v39 = vld [vmem:[#allocation5 + $0xac8] sm:$0xff] }
 0x393   :  { %2395 = vmatmul.mubr.bf16.vlgmr.msra.gmra.mrb[8].mxu0 %v7195_v19  ;;  %2567 = vmatmul.mubr.bf16.vlgmr.msra.gmra.mrb[8].mxu1 %v7195_v19 }
 0x394   :  { %2406 = vmatpush1.bf16.msra.mxu0 %v1151_v50  ;;  %2578 = vmatpush1.bf16.msra.mxu1 %v1153_v51  ;;  %v537_v50 = vld [vmem:[#allocation5 + $0x910] sm:$0xff]  ;;  %v1263_v51 = vunpack.c.l.s8.bf16 %v535_v49 }
 0x395   :  { %2407 = vmatprep.subr.bf16.mxu0 %v1166_v30  ;;  %2579 = vmatprep.subr.bf16.mxu1 %v1168_v31  ;;  %v1265_v30 = vunpack.c.l.s8.bf16 %v537_v50  ;;  %v1278_v31 = vunpack.c.h.s8.bf16 %v536_v38 }
 0x396   :  { %2437 = vmatprep.mubr.bf16.mxu0 %v7203_v28  ;;  %2609 = vmatprep.mubr.bf16.mxu1 %v7203_v28 }
 0x398   :  { %2408 = vmatpush1.bf16.msra.mxu0 %v1165_v56  ;;  %2580 = vmatpush1.bf16.msra.mxu1 %v1167_v57  ;;  %v552_v56 = vld [vmem:[#allocation5 + $0x988] sm:$0xff]  ;;  %v1277_v57 = vunpack.c.h.s8.bf16 %v535_v49 }
 0x399   :  { %2409 = vmatprep.subr.bf16.mxu0 %v1180_v58  ;;  %2581 = vmatprep.subr.bf16.mxu1 %v1182_v59  ;;  %v1279_v58 = vunpack.c.h.s8.bf16 %v537_v50  ;;  %v1292_v59 = vunpack.c.l.s8.bf16 %v550_v55  ;;  %v1294_v2 = vunpack.c.l.s8.bf16 %v552_v56  ;;  %v1308_v0 = vunpack.c.h.s8.bf16 %v552_v56  ;;  %v591_v50 = vld [vmem:[#allocation5 + $0xac0] sm:$0xff]  ;;  %v606_v56 = vld [vmem:[#allocation5 + $0xb38] sm:$0xff] }
 0x39c   :  { %2410 = vmatpush1.bf16.msra.mxu0 %v1179_v60  ;;  %2582 = vmatpush1.bf16.msra.mxu1 %v1181_v61  ;;  %v551_v60 = vld [vmem:[#allocation5 + $0x980] sm:$0xff]  ;;  %v1291_v61 = vunpack.c.l.s8.bf16 %v549_v3 }
 0x39d   :  { %2411 = vmatprep.subr.bf16.mxu0 %v1194_v62  ;;  %2583 = vmatprep.subr.bf16.mxu1 %v1196_v63  ;;  %v1293_v62 = vunpack.c.l.s8.bf16 %v551_v60  ;;  %v1306_v63 = vunpack.c.h.s8.bf16 %v550_v55 }
 0x3a0   :  { %2412 = vmatpush1.bf16.msra.mxu0 %v1193_v5  ;;  %2584 = vmatpush1.bf16.msra.mxu1 %v1195_v6  ;;  %v566_v5 = vld [vmem:[#allocation5 + $0x9f8] sm:$0xff]  ;;  %v1305_v6 = vunpack.c.h.s8.bf16 %v549_v3 }
 0x3a1   :  { %2413 = vmatprep.subr.bf16.mxu0 %v1208_v7  ;;  %2585 = vmatprep.subr.bf16.mxu1 %v1210_v8  ;;  %v1307_v7 = vunpack.c.h.s8.bf16 %v551_v60  ;;  %v1320_v8 = vunpack.c.l.s8.bf16 %v564_v4  ;;  %v1322_v9 = vunpack.c.l.s8.bf16 %v566_v5  ;;  %v1336_v14 = vunpack.c.h.s8.bf16 %v566_v5  ;;  %v605_v60 = vld [vmem:[#allocation5 + $0xb30] sm:$0xff]  ;;  %v620_v5 = vld [vmem:[#allocation5 + $0xba8] sm:$0xff] }
 0x3a4   :  { %2414 = vmatpush1.bf16.msra.mxu0 %v1207_v21  ;;  %2586 = vmatpush1.bf16.msra.mxu1 %v1209_v11  ;;  %v565_v21 = vld [vmem:[#allocation5 + $0x9f0] sm:$0xff]  ;;  %v1319_v11 = vunpack.c.l.s8.bf16 %v563_v20 }
 0x3a5   :  { %2415 = vmatprep.subr.bf16.mxu0 %v1222_v12  ;;  %2587 = vmatprep.subr.bf16.mxu1 %v1224_v13  ;;  %v1321_v12 = vunpack.c.l.s8.bf16 %v565_v21  ;;  %v1334_v13 = vunpack.c.h.s8.bf16 %v564_v4 }
 0x3a8   :  { %2416 = vmatpush1.bf16.msra.mxu0 %v1221_v17  ;;  %2588 = vmatpush1.bf16.msra.mxu1 %v1223_v18  ;;  %v580_v17 = vld [vmem:[#allocation5 + $0xa68] sm:$0xff]  ;;  %v1333_v18 = vunpack.c.h.s8.bf16 %v563_v20 }
 0x3a9   :  { %2417 = vmatprep.subr.bf16.mxu0 %v1236_v22  ;;  %2589 = vmatprep.subr.bf16.mxu1 %v1238_v23  ;;  %v1335_v22 = vunpack.c.h.s8.bf16 %v565_v21  ;;  %v1348_v23 = vunpack.c.l.s8.bf16 %v578_v16  ;;  %v1350_v24 = vunpack.c.l.s8.bf16 %v580_v17  ;;  %v1364_v38 = vunpack.c.h.s8.bf16 %v580_v17  ;;  %v619_v21 = vld [vmem:[#allocation5 + $0xba0] sm:$0xff] }
 0x3aa   :  { %v7298_v17 = vsub.s32 5, %v7245_v15 }
 0x3ac   :  { %2418 = vmatpush1.bf16.msra.mxu0 %v1235_v44  ;;  %2590 = vmatpush1.bf16.msra.mxu1 %v1237_v45  ;;  %v579_v44 = vld [vmem:[#allocation5 + $0xa60] sm:$0xff]  ;;  %v1347_v45 = vunpack.c.l.s8.bf16 %v577_v27 }
 0x3ad   :  { %2419 = vmatprep.subr.bf16.mxu0 %v1250_v35  ;;  %2591 = vmatprep.subr.bf16.mxu1 %v1252_v37  ;;  %v1349_v35 = vunpack.c.l.s8.bf16 %v579_v44  ;;  %v1362_v37 = vunpack.c.h.s8.bf16 %v578_v16 }
 0x3b0   :  { %2420 = vmatpush1.bf16.msra.mxu0 %v1249_v42  ;;  %2592 = vmatpush1.bf16.msra.mxu1 %v1251_v43  ;;  %v594_v42 = vld [vmem:[#allocation5 + $0xad8] sm:$0xff]  ;;  %v1361_v43 = vunpack.c.h.s8.bf16 %v577_v27  ;;  %v6486_v27 = vld [vmem:[#allocation7] sm:$0xff] }
 0x3b1   :  { %2421 = vmatprep.subr.bf16.mxu0 %v1264_v47  ;;  %2593 = vmatprep.subr.bf16.mxu1 %v1266_v48  ;;  %v1363_v47 = vunpack.c.h.s8.bf16 %v579_v44  ;;  %v1376_v48 = vunpack.c.l.s8.bf16 %v592_v39  ;;  %v1378_v49 = vunpack.c.l.s8.bf16 %v594_v42  ;;  %v1392_v55 = vunpack.c.h.s8.bf16 %v594_v42 }
 0x3b4   :  { %2422 = vmatpush1.bf16.msra.mxu0 %v1263_v51  ;;  %2594 = vmatpush1.bf16.msra.mxu1 %v1265_v30  ;;  %v593_v51 = vld [vmem:[#allocation5 + $0xad0] sm:$0xff]  ;;  %v1375_v30 = vunpack.c.l.s8.bf16 %v591_v50 }
 0x3b5   :  { %2423 = vmatprep.subr.bf16.mxu0 %v1278_v31  ;;  %2595 = vmatprep.subr.bf16.mxu1 %v1280_v54  ;;  %v1377_v31 = vunpack.c.l.s8.bf16 %v593_v51  ;;  %v1390_v54 = vunpack.c.h.s8.bf16 %v592_v39  ;;  %v1445_v39 = vunpack.c.h.s8.bf16 %v619_v21 }
 0x3b8   :  { %2424 = vmatpush1.bf16.msra.mxu0 %v1277_v57  ;;  %2596 = vmatpush1.bf16.msra.mxu1 %v1279_v58  ;;  %v608_v57 = vld [vmem:[#allocation5 + $0xb48] sm:$0xff]  ;;  %v1389_v58 = vunpack.c.h.s8.bf16 %v591_v50 }
 0x3b9   :  { %2425 = vmatprep.subr.bf16.mxu0 %v1292_v59  ;;  %2597 = vmatprep.subr.bf16.mxu1 %v1294_v2  ;;  %v1391_v59 = vunpack.c.h.s8.bf16 %v593_v51  ;;  %v1404_v2 = vunpack.c.l.s8.bf16 %v606_v56  ;;  %v1406_v3 = vunpack.c.l.s8.bf16 %v608_v57  ;;  %v1420_v4 = vunpack.c.h.s8.bf16 %v608_v57 }
 0x3bc   :  { %2426 = vmatpush1.bf16.msra.mxu0 %v1291_v61  ;;  %2598 = vmatpush1.bf16.msra.mxu1 %v1293_v62  ;;  %v607_v61 = vld [vmem:[#allocation5 + $0xb40] sm:$0xff]  ;;  %v1403_v62 = vunpack.c.l.s8.bf16 %v605_v60 }
 0x3bd   :  { %2427 = vmatprep.subr.bf16.mxu0 %v1306_v63  ;;  %2599 = vmatprep.subr.bf16.mxu1 %v1308_v0  ;;  %v1405_v63 = vunpack.c.l.s8.bf16 %v607_v61  ;;  %v1418_v0 = vunpack.c.h.s8.bf16 %v606_v56 }
 0x3c0   :  { %2428 = vmatpush1.bf16.msra.mxu0 %v1305_v6  ;;  %2600 = vmatpush1.bf16.msra.mxu1 %v1307_v7  ;;  %v622_v6 = vld [vmem:[#allocation5 + $0xbb8] sm:$0xff]  ;;  %v1417_v7 = vunpack.c.h.s8.bf16 %v605_v60 }
 0x3c1   :  { %2429 = vmatprep.subr.bf16.mxu0 %v1320_v8  ;;  %2601 = vmatprep.subr.bf16.mxu1 %v1322_v9  ;;  %v1419_v8 = vunpack.c.h.s8.bf16 %v607_v61  ;;  %v1432_v9 = vunpack.c.l.s8.bf16 %v620_v5  ;;  %v1434_v20 = vunpack.c.l.s8.bf16 %v622_v6 }
 0x3c4   :  { %2430 = vmatpush1.bf16.msra.mxu0 %v1319_v11  ;;  %2602 = vmatpush1.bf16.msra.mxu1 %v1321_v12  ;;  %v621_v11 = vld [vmem:[#allocation5 + $0xbb0] sm:$0xff]  ;;  %v7292_v12 = vsub.s32 4, %v7245_v15 }
 0x3c5   :  { %2431 = vmatprep.subr.bf16.mxu0 %v1334_v13  ;;  %2603 = vmatprep.subr.bf16.mxu1 %v1336_v14  ;;  %v7295_v13 = vsub.s32 6, %v7245_v15  ;;  %v1431_v14 = vunpack.c.l.s8.bf16 %v619_v21  ;;  %v1433_v16 = vunpack.c.l.s8.bf16 %v621_v11 }
 0x3c6   :  { %v2858_v44 = vrot.slane %v6486_v27, %v7292_v12 }
 0x3c8   :  { %2432 = vmatpush1.bf16.msra.mxu0 %v1333_v18  ;;  %2604 = vmatpush1.bf16.msra.mxu1 %v1335_v22  ;;  %v7301_v18 = vsub.s32 7, %v7245_v15  ;;  %v1446_v22 = vunpack.c.h.s8.bf16 %v620_v5  ;;  %v1447_v15 = vunpack.c.h.s8.bf16 %v621_v11 }
 0x3c9   :  { %2433 = vmatprep.subr.bf16.mxu0 %v1348_v23  ;;  %2605 = vmatprep.subr.bf16.mxu1 %v1350_v24  ;;  %v1448_v23 = vunpack.c.h.s8.bf16 %v622_v6  ;;  %v634_v24 = vld [vmem:[#allocation5 + $0xc18] sm:$0xff] }
 0x3ca   :  { %v1460_v42 = vunpack.c.l.s8.bf16 %v634_v24 }
 0x3cc   :  { %2434 = vmatpush1.bf16.msra.mxu0 %v1347_v45  ;;  %2606 = vmatpush1.bf16.msra.mxu1 %v1349_v35  ;;  %v2866_v45 = vrot.slane %v6486_v27, %v7295_v13  ;;  %v636_v35 = vld [vmem:[#allocation5 + $0xc28] sm:$0xff] }
 0x3cd   :  { %2435 = vmatprep.subr.bf16.mxu0 %v1362_v37  ;;  %2607 = vmatprep.subr.bf16.mxu1 %v1364_v38  ;;  %v2862_v37 = vrot.slane %v6486_v27, %v7298_v17  ;;  %v2870_v38 = vrot.slane %v6486_v27, %v7301_v18 }
 0x3d0   :  { %2436 = vmatpush1.bf16.msra.mxu0 %v1361_v43  ;;  %2608 = vmatpush1.bf16.msra.mxu1 %v1363_v47  ;;  %v633_v43 = vld [vmem:[#allocation5 + $0xc10] sm:$0xff]  ;;  %v635_v47 = vld [vmem:[#allocation5 + $0xc20] sm:$0xff] }
 0x3d1   :  { %2448 = vmatprep.subr.bf16.mxu0 %v1376_v48  ;;  %2620 = vmatprep.subr.bf16.mxu1 %v1378_v49  ;;  %v6487_v49 = vld [vmem:[#allocation8] sm:$0xff]  ;;  %v1473_v11 = vunpack.c.h.s8.bf16 %v633_v43 }
 0x3d2   :  { %v2960_v50 = vrot.slane %v6487_v49, %v7292_v12  ;;  %v2964_v57 = vrot.slane %v6487_v49, %v7298_v17 }
 0x3d3   :  { %2438 = vmatmul.mubr.bf16.vlgmr.msra.gmra.mrb[8].mxu0 %v7211_v1  ;;  %2610 = vmatmul.mubr.bf16.vlgmr.msra.gmra.mrb[8].mxu1 %v7211_v1 }
 0x3d4   :  { %2449 = vmatpush1.bf16.msra.mxu0 %v1375_v30  ;;  %2621 = vmatpush1.bf16.msra.mxu1 %v1377_v31  ;;  %v2968_v30 = vrot.slane %v6487_v49, %v7295_v13  ;;  %v1462_v31 = vunpack.c.l.s8.bf16 %v636_v35 }
 0x3d5   :  { %2450 = vmatprep.subr.bf16.mxu0 %v1390_v54  ;;  %2622 = vmatprep.subr.bf16.mxu1 %v1392_v55 }
 0x3d6   :  { %2480 = vmatprep.mubr.bf16.mxu0 %v7219_v10  ;;  %2652 = vmatprep.mubr.bf16.mxu1 %v7219_v10 }
 0x3d8   :  { %2451 = vmatpush1.bf16.msra.mxu0 %v1389_v58  ;;  %2623 = vmatpush1.bf16.msra.mxu1 %v1391_v59  ;;  %v2972_v59 = vrot.slane %v6487_v49, %v7301_v18 }
 0x3d9   :  { %2452 = vmatprep.subr.bf16.mxu0 %v1404_v2  ;;  %2624 = vmatprep.subr.bf16.mxu1 %v1406_v3 }
 0x3dc   :  { %2453 = vmatpush1.bf16.msra.mxu0 %v1403_v62  ;;  %2625 = vmatpush1.bf16.msra.mxu1 %v1405_v63  ;;  %v1459_v62 = vunpack.c.l.s8.bf16 %v633_v43  ;;  %v1461_v63 = vunpack.c.l.s8.bf16 %v635_v47  ;;  %v649_v43 = vld [vmem:[#allocation5 + $0xc90] sm:$0xff] }
 0x3dd   :  { %2454 = vmatprep.subr.bf16.mxu0 %v1418_v0  ;;  %2626 = vmatprep.subr.bf16.mxu1 %v1420_v4 }
 0x3e0   :  { %2455 = vmatpush1.bf16.msra.mxu0 %v1417_v7  ;;  %2627 = vmatpush1.bf16.msra.mxu1 %v1419_v8  ;;  %v1474_v7 = vunpack.c.h.s8.bf16 %v634_v24  ;;  %v1476_v8 = vunpack.c.h.s8.bf16 %v636_v35 }
 0x3e1   :  { %2456 = vmatprep.subr.bf16.mxu0 %v1432_v9  ;;  %2628 = vmatprep.subr.bf16.mxu1 %v1434_v20 }
 0x3e4   :  { %2457 = vmatpush1.bf16.msra.mxu0 %v1431_v14  ;;  %2629 = vmatpush1.bf16.msra.mxu1 %v1433_v16  ;;  %v648_v14 = vld [vmem:[#allocation5 + $0xc88] sm:$0xff]  ;;  %v650_v16 = vld [vmem:[#allocation5 + $0xc98] sm:$0xff] }
 0x3e5   :  { %2458 = vmatprep.subr.bf16.mxu0 %v1446_v22  ;;  %2630 = vmatprep.subr.bf16.mxu1 %v1448_v23  ;;  %v1488_v35 = vunpack.c.l.s8.bf16 %v648_v14 }
 0x3e6   :  { %v2138_v48 = vpop.f32.mrb[4].mxu0  ;;  %v2310_v51 = vpop.f32.mrb[4].mxu1 }
 0x3e7   :  { %v2913_v54 = vmul.f32 %v2858_v44, %v2138_v48  ;;  %v2915_v55 = vmul.f32 %v2866_v45, %v2310_v51  ;;  %v2140_v56 = vpop.f32.mrb[5].mxu0  ;;  %v2312_v58 = vpop.f32.mrb[5].mxu1 }
 0x3e8   :  { %v2914_v2 = vmul.f32 %v2862_v37, %v2140_v56  ;;  %v2916_v3 = vmul.f32 %v2870_v38, %v2312_v58  ;;  %v2142_v60 = vpop.f32.mrb[6].mxu0  ;;  %v2314_v61 = vpop.f32.mrb[6].mxu1  ;;  %2459 = vmatpush1.bf16.msra.mxu0 %v1445_v39  ;;  %2631 = vmatpush1.bf16.msra.mxu1 %v1447_v15 }
 0x3e9   :  { %v2927_v0 = vmul.f32 %v2858_v44, %v2142_v60  ;;  %v2929_v4 = vmul.f32 %v2866_v45, %v2314_v61  ;;  %v2144_v5 = vpop.f32.mrb[7].mxu0  ;;  %v2316_v6 = vpop.f32.mrb[7].mxu1  ;;  %2460 = vmatprep.subr.bf16.mxu0 %v1460_v42  ;;  %v3015_v9 = vadd.f32 %v2960_v50, %v2913_v54  ;;  %2632 = vmatprep.subr.bf16.mxu1 %v1462_v31  ;;  %v1475_v45 = vunpack.c.h.s8.bf16 %v635_v47  ;;  %v662_v54 = vld [vmem:[#allocation5 + $0xcf8] sm:$0xff] }
 0x3ea   :  { %v2928_v20 = vmul.f32 %v2862_v37, %v2144_v5  ;;  %v2930_v21 = vmul.f32 %v2870_v38, %v2316_v6  ;;  %v3017_v22 = vadd.f32 %v2968_v30, %v2915_v55  ;;  %v3016_v23 = vadd.f32 %v2964_v57, %v2914_v2  ;;  %v647_v38 = vld [vmem:[#allocation5 + $0xc80] sm:$0xff]  ;;  %v664_v55 = vld [vmem:[#allocation5 + $0xd08] sm:$0xff]  ;;  %v661_v2 = vld [vmem:[#allocation5 + $0xcf0] sm:$0xff] }
 0x3eb   :  { %v3029_v27 = vadd.f32 %v2960_v50, %v2927_v0  ;;  %v3031_v39 = vadd.f32 %v2968_v30, %v2929_v4  ;;  %v3018_v15 = vadd.f32 %v2972_v59, %v2916_v3  ;;  %v1490_v37 = vunpack.c.l.s8.bf16 %v650_v16  ;;  %v663_v3 = vld [vmem:[#allocation5 + $0xd00] sm:$0xff]  ;;  %v676_v0 = vld [vmem:[#allocation5 + $0xd68] sm:$0xff]  ;;  %v678_v4 = vld [vmem:[#allocation5 + $0xd78] sm:$0xff] }
 0x3ec   :  { %v3030_v48 = vadd.f32 %v2964_v57, %v2928_v20  ;;  %v3032_v44 = vadd.f32 %v2972_v59, %v2930_v21  ;;  %2461 = vmatpush1.bf16.msra.mxu0 %v1459_v62  ;;  %2633 = vmatpush1.bf16.msra.mxu1 %v1461_v63  ;;  %v1487_v51 = vunpack.c.l.s8.bf16 %v647_v38  ;;  %v1489_v30 = vunpack.c.l.s8.bf16 %v649_v43  ;;  %v677_v20 = vld [vmem:[#allocation5 + $0xd70] sm:$0xff] }
 0x3ed   :  { %v7311_v42 = vpack.c.bf16 %v3029_v27, %v3015_v9  ;;  %v7313_v24 = vpack.c.bf16 %v3031_v39, %v3017_v22  ;;  %2462 = vmatprep.subr.bf16.mxu0 %v1474_v7  ;;  %2634 = vmatprep.subr.bf16.mxu1 %v1476_v8  ;;  %v1502_v47 = vunpack.c.h.s8.bf16 %v648_v14  ;;  %v1504_v31 = vunpack.c.h.s8.bf16 %v650_v16  ;;  %v675_v9 = vld [vmem:[#allocation5 + $0xd60] sm:$0xff]  ;;  %v690_v22 = vld [vmem:[#allocation5 + $0xdd8] sm:$0xff] }
 0x3ee   :  { %v7315_v49 = vpack.c.bf16 %v3030_v48, %v3016_v23  ;;  %v7317_v50 = vpack.c.bf16 %v3032_v44, %v3018_v15  ;;  %v1501_v56 = vunpack.c.h.s8.bf16 %v647_v38  ;;  %v1503_v57 = vunpack.c.h.s8.bf16 %v649_v43  ;;  %v692_v23 = vld [vmem:[#allocation5 + $0xde8] sm:$0xff]  ;;  %v689_v44 = vld [vmem:[#allocation5 + $0xdd0] sm:$0xff] }
 0x3ef   :  { %v1516_v58 = vunpack.c.l.s8.bf16 %v662_v54  ;;  %v1518_v59 = vunpack.c.l.s8.bf16 %v664_v55  ;;  %v1515_v60 = vunpack.c.l.s8.bf16 %v661_v2  ;;  %v1517_v61 = vunpack.c.l.s8.bf16 %v663_v3 }
 0x3f0   :  { %2463 = vmatpush1.bf16.msra.mxu0 %v1473_v11  ;;  %2635 = vmatpush1.bf16.msra.mxu1 %v1475_v45  ;;  %v1530_v62 = vunpack.c.h.s8.bf16 %v662_v54  ;;  %v1532_v63 = vunpack.c.h.s8.bf16 %v664_v55  ;;  %v1529_v5 = vunpack.c.h.s8.bf16 %v661_v2  ;;  %v1531_v6 = vunpack.c.h.s8.bf16 %v663_v3  ;;  %v691_v45 = vld [vmem:[#allocation5 + $0xde0] sm:$0xff] }
 0x3f1   :  { %2464 = vmatprep.subr.bf16.mxu0 %v1488_v35  ;;  %2636 = vmatprep.subr.bf16.mxu1 %v1490_v37  ;;  %v1544_v7 = vunpack.c.l.s8.bf16 %v676_v0  ;;  %v1546_v8 = vunpack.c.l.s8.bf16 %v678_v4  ;;  %v1543_v21 = vunpack.c.l.s8.bf16 %v675_v9  ;;  %v1545_v11 = vunpack.c.l.s8.bf16 %v677_v20 }
 0x3f2   :  { %v1558_v14 = vunpack.c.h.s8.bf16 %v676_v0  ;;  %v1560_v16 = vunpack.c.h.s8.bf16 %v678_v4  ;;  %v1557_v27 = vunpack.c.h.s8.bf16 %v675_v9  ;;  %v1559_v39 = vunpack.c.h.s8.bf16 %v677_v20 }
 0x3f3   :  { %v1572_v15 = vunpack.c.l.s8.bf16 %v690_v22  ;;  %v1574_v48 = vunpack.c.l.s8.bf16 %v692_v23  ;;  %v1571_v35 = vunpack.c.l.s8.bf16 %v689_v44  ;;  %v1573_v37 = vunpack.c.l.s8.bf16 %v691_v45 }
 0x3f4   :  { %2465 = vmatpush1.bf16.msra.mxu0 %v1487_v51  ;;  %2637 = vmatpush1.bf16.msra.mxu1 %v1489_v30  ;;  %v1586_v38 = vunpack.c.h.s8.bf16 %v690_v22  ;;  %v1588_v43 = vunpack.c.h.s8.bf16 %v692_v23  ;;  %v260_v51 = vld [vmem:[#allocation5 + $0x68] sm:$0xff] }
 0x3f5   :  { %2466 = vmatprep.subr.bf16.mxu0 %v1502_v47  ;;  %2638 = vmatprep.subr.bf16.mxu1 %v1504_v31  ;;  %v3054_v30 = vld [vmem:[#allocation10 + $0x8] sm:$0xff]  ;;  %v1585_v47 = vunpack.c.h.s8.bf16 %v689_v44  ;;  %v1587_v31 = vunpack.c.h.s8.bf16 %v691_v45  ;;  %v708_v54 = vunpack.c.l.s8.bf16 %v260_v51  ;;  %v722_v2 = vunpack.c.h.s8.bf16 %v260_v51  ;;  %v302_v45 = vld [vmem:[#allocation5 + $0x1b8] sm:$0xff] }
 0x3f6   :  { %v3374_v55 = vunpack.c.l.s8.bf16 %v3054_v30  ;;  %v3382_v3 = vunpack.c.h.s8.bf16 %v3054_v30  ;;  %v301_v30 = vld [vmem:[#allocation5 + $0x1b0] sm:$0xff] }
 0x3f8   :  { %2467 = vmatpush1.bf16.msra.mxu0 %v1501_v56  ;;  %2639 = vmatpush1.bf16.msra.mxu1 %v1503_v57  ;;  %v259_v56 = vld [vmem:[#allocation5 + $0x60] sm:$0xff] }
 0x3f9   :  { %2468 = vmatprep.subr.bf16.mxu0 %v1516_v58  ;;  %2640 = vmatprep.subr.bf16.mxu1 %v1518_v59  ;;  %v3053_v57 = vld [vmem:[#allocation10] sm:$0xff]  ;;  %v707_v58 = vunpack.c.l.s8.bf16 %v259_v56 }
 0x3fa   :  { %v3373_v59 = vunpack.c.l.s8.bf16 %v3053_v57 }
 0x3fc   :  { %2469 = vmatpush1.bf16.msra.mxu0 %v1515_v60  ;;  %2641 = vmatpush1.bf16.msra.mxu1 %v1517_v61  ;;  %v274_v60 = vld [vmem:[#allocation5 + $0xd8] sm:$0xff]  ;;  %v3062_v61 = vld [vmem:[#allocation10 + $0x48] sm:$0xff] }
 0x3fd   :  { %2470 = vmatprep.subr.bf16.mxu0 %v1530_v62  ;;  %2642 = vmatprep.subr.bf16.mxu1 %v1532_v63  ;;  %v721_v62 = vunpack.c.h.s8.bf16 %v259_v56  ;;  %v3381_v63 = vunpack.c.h.s8.bf16 %v3053_v57  ;;  %v736_v0 = vunpack.c.l.s8.bf16 %v274_v60  ;;  %v3390_v4 = vunpack.c.l.s8.bf16 %v3062_v61  ;;  %v316_v57 = vld [vmem:[#allocation5 + $0x228] sm:$0xff] }
 0x3fe   :  { %v750_v9 = vunpack.c.h.s8.bf16 %v274_v60  ;;  %v3398_v20 = vunpack.c.h.s8.bf16 %v3062_v61  ;;  %v315_v61 = vld [vmem:[#allocation5 + $0x220] sm:$0xff] }
 0x400   :  { %2471 = vmatpush1.bf16.msra.mxu0 %v1529_v5  ;;  %2643 = vmatpush1.bf16.msra.mxu1 %v1531_v6  ;;  %v273_v5 = vld [vmem:[#allocation5 + $0xd0] sm:$0xff]  ;;  %v3061_v6 = vld [vmem:[#allocation10 + $0x40] sm:$0xff] }
 0x401   :  { %2472 = vmatprep.subr.bf16.mxu0 %v1544_v7  ;;  %2644 = vmatprep.subr.bf16.mxu1 %v1546_v8  ;;  %v735_v7 = vunpack.c.l.s8.bf16 %v273_v5  ;;  %v3389_v8 = vunpack.c.l.s8.bf16 %v3061_v6 }
 0x404   :  { %2473 = vmatpush1.bf16.msra.mxu0 %v1543_v21  ;;  %2645 = vmatpush1.bf16.msra.mxu1 %v1545_v11  ;;  %v288_v21 = vld [vmem:[#allocation5 + $0x148] sm:$0xff] }
 0x405   :  { %2474 = vmatprep.subr.bf16.mxu0 %v1558_v14  ;;  %2646 = vmatprep.subr.bf16.mxu1 %v1560_v16  ;;  %v3070_v11 = vld [vmem:[#allocation10 + $0x88] sm:$0xff]  ;;  %v749_v14 = vunpack.c.h.s8.bf16 %v273_v5  ;;  %v3397_v16 = vunpack.c.h.s8.bf16 %v3061_v6  ;;  %v764_v22 = vunpack.c.l.s8.bf16 %v288_v21  ;;  %v330_v6 = vld [vmem:[#allocation5 + $0x298] sm:$0xff] }
 0x406   :  { %v3406_v23 = vunpack.c.l.s8.bf16 %v3070_v11  ;;  %v3414_v44 = vunpack.c.h.s8.bf16 %v3070_v11  ;;  %v329_v11 = vld [vmem:[#allocation5 + $0x290] sm:$0xff] }
 0x408   :  { %2475 = vmatpush1.bf16.msra.mxu0 %v1557_v27  ;;  %2647 = vmatpush1.bf16.msra.mxu1 %v1559_v39  ;;  %v287_v27 = vld [vmem:[#allocation5 + $0x140] sm:$0xff] }
 0x409   :  { %2476 = vmatprep.subr.bf16.mxu0 %v1572_v15  ;;  %2648 = vmatprep.subr.bf16.mxu1 %v1574_v48  ;;  %v763_v39 = vunpack.c.l.s8.bf16 %v287_v27  ;;  %v778_v48 = vunpack.c.h.s8.bf16 %v288_v21 }
 0x40c   :  { %2477 = vmatpush1.bf16.msra.mxu0 %v1571_v35  ;;  %2649 = vmatpush1.bf16.msra.mxu1 %v1573_v37  ;;  %v3078_v35 = vld [vmem:[#allocation10 + $0xc8] sm:$0xff]  ;;  %v777_v37 = vunpack.c.h.s8.bf16 %v287_v27 }
 0x40d   :  { %2478 = vmatprep.subr.bf16.mxu0 %v1586_v38  ;;  %2650 = vmatprep.subr.bf16.mxu1 %v1588_v43  ;;  %v792_v43 = vunpack.c.l.s8.bf16 %v302_v45  ;;  %v3422_v51 = vunpack.c.l.s8.bf16 %v3078_v35  ;;  %v3430_v56 = vunpack.c.h.s8.bf16 %v3078_v35  ;;  %v343_v35 = vld [vmem:[#allocation5 + $0x300] sm:$0xff] }
 0x410   :  { %2479 = vmatpush1.bf16.msra.mxu0 %v1585_v47  ;;  %2651 = vmatpush1.bf16.msra.mxu1 %v1587_v31  ;;  %v3077_v47 = vld [vmem:[#allocation10 + $0xc0] sm:$0xff]  ;;  %v791_v31 = vunpack.c.l.s8.bf16 %v301_v30 }
 0x411   :  { %2663 = vmatprep.subr.bf16.mxu0 %v708_v54  ;;  %4013 = vmatprep.subr.bf16.mxu1 %v3374_v55  ;;  %v3421_v54 = vunpack.c.l.s8.bf16 %v3077_v47  ;;  %v806_v55 = vunpack.c.h.s8.bf16 %v302_v45 }
 0x413   :  { %2481 = vmatmul.mubr.bf16.vlgmr.msra.gmra.mrb[8].mxu0 %v7227_v52  ;;  %2653 = vmatmul.mubr.bf16.vlgmr.msra.gmra.mrb[8].mxu1 %v7227_v52 }
 0x414   :  { %2664 = vmatpush1.bf16.msra.mxu0 %v707_v58  ;;  %4014 = vmatpush1.bf16.msra.mxu1 %v3373_v59  ;;  %v3086_v58 = vld [vmem:[#allocation10 + $0x108] sm:$0xff]  ;;  %v805_v59 = vunpack.c.h.s8.bf16 %v301_v30 }
 0x415   :  { %4045 = vmatprep.mubr.bf16.mxu1 %v7271_v40  ;;  %2665 = vmatprep.subr.bf16.mxu0 %v722_v2  ;;  %v3429_v2 = vunpack.c.h.s8.bf16 %v3077_v47  ;;  %v3438_v60 = vunpack.c.l.s8.bf16 %v3086_v58  ;;  %v3446_v5 = vunpack.c.h.s8.bf16 %v3086_v58  ;;  %v358_v47 = vld [vmem:[#allocation5 + $0x378] sm:$0xff]  ;;  %v357_v58 = vld [vmem:[#allocation5 + $0x370] sm:$0xff] }
 0x416   :  { %4015 = vmatprep.subr.bf16.mxu1 %v3382_v3  ;;  %2695 = vmatprep.mubr.bf16.mxu0 %v7173_v36  ;;  %v3069_v36 = vld [vmem:[#allocation10 + $0x80] sm:$0xff]  ;;  %v820_v3 = vunpack.c.l.s8.bf16 %v316_v57 }
 0x417   :  { %v3405_v15 = vunpack.c.l.s8.bf16 %v3069_v36  ;;  %v3413_v38 = vunpack.c.h.s8.bf16 %v3069_v36  ;;  %v344_v36 = vld [vmem:[#allocation5 + $0x308] sm:$0xff] }
 0x418   :  { %2666 = vmatpush1.bf16.msra.mxu0 %v721_v62  ;;  %4016 = vmatpush1.bf16.msra.mxu1 %v3381_v63  ;;  %v3085_v62 = vld [vmem:[#allocation10 + $0x100] sm:$0xff]  ;;  %v819_v63 = vunpack.c.l.s8.bf16 %v315_v61 }
 0x419   :  { %2667 = vmatprep.subr.bf16.mxu0 %v736_v0  ;;  %4017 = vmatprep.subr.bf16.mxu1 %v3390_v4  ;;  %v3437_v0 = vunpack.c.l.s8.bf16 %v3085_v62  ;;  %v834_v4 = vunpack.c.h.s8.bf16 %v316_v57 }
 0x41c   :  { %2668 = vmatpush1.bf16.msra.mxu0 %v735_v7  ;;  %4018 = vmatpush1.bf16.msra.mxu1 %v3389_v8  ;;  %v3094_v7 = vld [vmem:[#allocation10 + $0x148] sm:$0xff]  ;;  %v833_v8 = vunpack.c.h.s8.bf16 %v315_v61 }
 0x41d   :  { %2669 = vmatprep.subr.bf16.mxu0 %v750_v9  ;;  %4019 = vmatprep.subr.bf16.mxu1 %v3398_v20  ;;  %v3445_v9 = vunpack.c.h.s8.bf16 %v3085_v62  ;;  %v848_v20 = vunpack.c.l.s8.bf16 %v330_v6  ;;  %v3454_v21 = vunpack.c.l.s8.bf16 %v3094_v7  ;;  %v3462_v27 = vunpack.c.h.s8.bf16 %v3094_v7  ;;  %v372_v62 = vld [vmem:[#allocation5 + $0x3e8] sm:$0xff]  ;;  %v371_v7 = vld [vmem:[#allocation5 + $0x3e0] sm:$0xff] }
 0x420   :  { %2670 = vmatpush1.bf16.msra.mxu0 %v749_v14  ;;  %4020 = vmatpush1.bf16.msra.mxu1 %v3397_v16  ;;  %v3093_v14 = vld [vmem:[#allocation10 + $0x140] sm:$0xff]  ;;  %v847_v16 = vunpack.c.l.s8.bf16 %v329_v11 }
 0x421   :  { %2671 = vmatprep.subr.bf16.mxu0 %v764_v22  ;;  %4021 = vmatprep.subr.bf16.mxu1 %v3406_v23  ;;  %v3453_v22 = vunpack.c.l.s8.bf16 %v3093_v14  ;;  %v862_v23 = vunpack.c.h.s8.bf16 %v330_v6 }
 0x424   :  { %2672 = vmatpush1.bf16.msra.mxu0 %v763_v39  ;;  %4022 = vmatpush1.bf16.msra.mxu1 %v3405_v15  ;;  %v3102_v39 = vld [vmem:[#allocation10 + $0x188] sm:$0xff]  ;;  %v861_v15 = vunpack.c.h.s8.bf16 %v329_v11 }
 0x425   :  { %2673 = vmatprep.subr.bf16.mxu0 %v778_v48  ;;  %4023 = vmatprep.subr.bf16.mxu1 %v3414_v44  ;;  %v3461_v48 = vunpack.c.h.s8.bf16 %v3093_v14  ;;  %v876_v44 = vunpack.c.l.s8.bf16 %v344_v36  ;;  %v3470_v45 = vunpack.c.l.s8.bf16 %v3102_v39  ;;  %v3478_v30 = vunpack.c.h.s8.bf16 %v3102_v39  ;;  %v386_v14 = vld [vmem:[#allocation5 + $0x458] sm:$0xff]  ;;  %v385_v39 = vld [vmem:[#allocation5 + $0x450] sm:$0xff] }
 0x428   :  { %2674 = vmatpush1.bf16.msra.mxu0 %v777_v37  ;;  %4024 = vmatpush1.bf16.msra.mxu1 %v3413_v38  ;;  %v3101_v37 = vld [vmem:[#allocation10 + $0x180] sm:$0xff]  ;;  %v875_v38 = vunpack.c.l.s8.bf16 %v343_v35 }
 0x429   :  { %2675 = vmatprep.subr.bf16.mxu0 %v792_v43  ;;  %4025 = vmatprep.subr.bf16.mxu1 %v3422_v51  ;;  %v3469_v43 = vunpack.c.l.s8.bf16 %v3101_v37  ;;  %v890_v51 = vunpack.c.h.s8.bf16 %v344_v36 }
 0x42c   :  { %2676 = vmatpush1.bf16.msra.mxu0 %v791_v31  ;;  %4026 = vmatpush1.bf16.msra.mxu1 %v3421_v54  ;;  %v3110_v31 = vld [vmem:[#allocation10 + $0x1c8] sm:$0xff]  ;;  %v889_v54 = vunpack.c.h.s8.bf16 %v343_v35 }
 0x42d   :  { %2677 = vmatprep.subr.bf16.mxu0 %v806_v55  ;;  %4027 = vmatprep.subr.bf16.mxu1 %v3430_v56  ;;  %v3477_v55 = vunpack.c.h.s8.bf16 %v3101_v37  ;;  %v904_v56 = vunpack.c.l.s8.bf16 %v358_v47  ;;  %v3486_v57 = vunpack.c.l.s8.bf16 %v3110_v31  ;;  %v3494_v61 = vunpack.c.h.s8.bf16 %v3110_v31  ;;  %v400_v35 = vld [vmem:[#allocation5 + $0x4c8] sm:$0xff] }
 0x42e   :  { %v3134_v37 = vld [vmem:[#allocation10 + $0x288] sm:$0xff] }
 0x430   :  { %2678 = vmatpush1.bf16.msra.mxu0 %v805_v59  ;;  %4028 = vmatpush1.bf16.msra.mxu1 %v3429_v2  ;;  %v3109_v59 = vld [vmem:[#allocation10 + $0x1c0] sm:$0xff]  ;;  %v903_v2 = vunpack.c.l.s8.bf16 %v357_v58 }
 0x431   :  { %2679 = vmatprep.subr.bf16.mxu0 %v820_v3  ;;  %4029 = vmatprep.subr.bf16.mxu1 %v3438_v60  ;;  %v3485_v3 = vunpack.c.l.s8.bf16 %v3109_v59  ;;  %v918_v60 = vunpack.c.h.s8.bf16 %v358_v47  ;;  %v399_v47 = vld [vmem:[#allocation5 + $0x4c0] sm:$0xff] }
 0x432   :  { %v987_v31 = vunpack.c.l.s8.bf16 %v399_v47 }
 0x434   :  { %2680 = vmatpush1.bf16.msra.mxu0 %v819_v63  ;;  %4030 = vmatpush1.bf16.msra.mxu1 %v3437_v0  ;;  %v3118_v63 = vld [vmem:[#allocation10 + $0x208] sm:$0xff]  ;;  %v917_v0 = vunpack.c.h.s8.bf16 %v357_v58 }
 0x435   :  { %2681 = vmatprep.subr.bf16.mxu0 %v834_v4  ;;  %4031 = vmatprep.subr.bf16.mxu1 %v3446_v5  ;;  %v3493_v4 = vunpack.c.h.s8.bf16 %v3109_v59  ;;  %v932_v5 = vunpack.c.l.s8.bf16 %v372_v62  ;;  %v3502_v6 = vunpack.c.l.s8.bf16 %v3118_v63  ;;  %v3510_v11 = vunpack.c.h.s8.bf16 %v3118_v63  ;;  %v3142_v58 = vld [vmem:[#allocation10 + $0x2c8] sm:$0xff] }
 0x436   :  { %v1001_v59 = vunpack.c.h.s8.bf16 %v399_v47  ;;  %v3166_v47 = vld [vmem:[#allocation10 + $0x388] sm:$0xff] }
 0x438   :  { %2682 = vmatpush1.bf16.msra.mxu0 %v833_v8  ;;  %4032 = vmatpush1.bf16.msra.mxu1 %v3445_v9  ;;  %v3117_v8 = vld [vmem:[#allocation10 + $0x200] sm:$0xff]  ;;  %v931_v9 = vunpack.c.l.s8.bf16 %v371_v7 }
 0x439   :  { %2683 = vmatprep.subr.bf16.mxu0 %v848_v20  ;;  %4033 = vmatprep.subr.bf16.mxu1 %v3454_v21  ;;  %v3501_v20 = vunpack.c.l.s8.bf16 %v3117_v8  ;;  %v946_v21 = vunpack.c.h.s8.bf16 %v372_v62  ;;  %v3141_v62 = vld [vmem:[#allocation10 + $0x2c0] sm:$0xff] }
 0x43c   :  { %2684 = vmatpush1.bf16.msra.mxu0 %v847_v16  ;;  %4034 = vmatpush1.bf16.msra.mxu1 %v3453_v22  ;;  %v3126_v16 = vld [vmem:[#allocation10 + $0x248] sm:$0xff]  ;;  %v945_v22 = vunpack.c.h.s8.bf16 %v371_v7 }
 0x43d   :  { %2685 = vmatprep.subr.bf16.mxu0 %v862_v23  ;;  %4035 = vmatprep.subr.bf16.mxu1 %v3462_v27  ;;  %v3509_v23 = vunpack.c.h.s8.bf16 %v3117_v8  ;;  %v960_v27 = vunpack.c.l.s8.bf16 %v386_v14  ;;  %v3518_v36 = vunpack.c.l.s8.bf16 %v3126_v16  ;;  %v3150_v7 = vld [vmem:[#allocation10 + $0x308] sm:$0xff] }
 0x440   :  { %2686 = vmatpush1.bf16.msra.mxu0 %v861_v15  ;;  %4036 = vmatpush1.bf16.msra.mxu1 %v3461_v48  ;;  %v3125_v15 = vld [vmem:[#allocation10 + $0x240] sm:$0xff]  ;;  %v959_v48 = vunpack.c.l.s8.bf16 %v385_v39 }
 0x441   :  { %2687 = vmatprep.subr.bf16.mxu0 %v876_v44  ;;  %4037 = vmatprep.subr.bf16.mxu1 %v3470_v45  ;;  %v3517_v44 = vunpack.c.l.s8.bf16 %v3125_v15  ;;  %v3526_v45 = vunpack.c.h.s8.bf16 %v3126_v16 }
 0x444   :  { %2688 = vmatpush1.bf16.msra.mxu0 %v875_v38  ;;  %4038 = vmatpush1.bf16.msra.mxu1 %v3469_v43  ;;  %v973_v38 = vunpack.c.h.s8.bf16 %v385_v39  ;;  %v3525_v43 = vunpack.c.h.s8.bf16 %v3125_v15  ;;  %v3158_v39 = vld [vmem:[#allocation10 + $0x348] sm:$0xff] }
 0x445   :  { %2689 = vmatprep.subr.bf16.mxu0 %v890_v51  ;;  %4039 = vmatprep.subr.bf16.mxu1 %v3478_v30  ;;  %v988_v51 = vunpack.c.l.s8.bf16 %v400_v35  ;;  %v3534_v30 = vunpack.c.l.s8.bf16 %v3134_v37 }
 0x448   :  { %2690 = vmatpush1.bf16.msra.mxu0 %v889_v54  ;;  %4040 = vmatpush1.bf16.msra.mxu1 %v3477_v55  ;;  %v1002_v55 = vunpack.c.h.s8.bf16 %v400_v35  ;;  %v3157_v35 = vld [vmem:[#allocation10 + $0x340] sm:$0xff] }
 0x449   :  { %2691 = vmatprep.subr.bf16.mxu0 %v904_v56  ;;  %4041 = vmatprep.subr.bf16.mxu1 %v3486_v57  ;;  %v3542_v56 = vunpack.c.h.s8.bf16 %v3134_v37  ;;  %v414_v57 = vld [vmem:[#allocation5 + $0x538] sm:$0xff] }
 0x44c   :  { %2692 = vmatpush1.bf16.msra.mxu0 %v903_v2  ;;  %4042 = vmatpush1.bf16.msra.mxu1 %v3485_v3  ;;  %v1016_v3 = vunpack.c.l.s8.bf16 %v414_v57 }
 0x44d   :  { %2693 = vmatprep.subr.bf16.mxu0 %v918_v60  ;;  %4043 = vmatprep.subr.bf16.mxu1 %v3494_v61  ;;  %v3550_v60 = vunpack.c.l.s8.bf16 %v3142_v58  ;;  %v413_v61 = vld [vmem:[#allocation5 + $0x530] sm:$0xff] }
 0x44e   :  { %v1015_v63 = vunpack.c.l.s8.bf16 %v413_v61  ;;  %v1029_v8 = vunpack.c.h.s8.bf16 %v413_v61  ;;  %v3174_v61 = vld [vmem:[#allocation10 + $0x3c8] sm:$0xff] }
 0x450   :  { %2694 = vmatpush1.bf16.msra.mxu0 %v917_v0  ;;  %4044 = vmatpush1.bf16.msra.mxu1 %v3493_v4  ;;  %v3549_v0 = vunpack.c.l.s8.bf16 %v3141_v62  ;;  %v1030_v4 = vunpack.c.h.s8.bf16 %v414_v57  ;;  %v3165_v57 = vld [vmem:[#allocation10 + $0x380] sm:$0xff] }
 0x451   :  { %2706 = vmatprep.subr.bf16.mxu0 %v932_v5  ;;  %4056 = vmatprep.subr.bf16.mxu1 %v3502_v6  ;;  %v3558_v5 = vunpack.c.h.s8.bf16 %v3142_v58  ;;  %v428_v6 = vld [vmem:[#allocation5 + $0x5a8] sm:$0xff] }
 0x453   :  { %4046 = vmatmul.mubr.bf16.vlgmr.msra.gmra.mrb[12].mxu1 %v7267_v33  ;;  %2696 = vmatmul.mubr.bf16.vlgmr.msra.gmra.mrb[12].mxu0 %v7183_v46  ;;  %v974_v46 = vunpack.c.h.s8.bf16 %v386_v14  ;;  %v3149_v14 = vld [vmem:[#allocation10 + $0x300] sm:$0xff] }
 0x454   :  { %2707 = vmatpush1.bf16.msra.mxu0 %v931_v9  ;;  %4057 = vmatpush1.bf16.msra.mxu1 %v3501_v20  ;;  %v3557_v9 = vunpack.c.h.s8.bf16 %v3141_v62  ;;  %v1044_v20 = vunpack.c.l.s8.bf16 %v428_v6 }
 0x455   :  { %4088 = vmatprep.mubr.bf16.mxu1 %v7273_v41  ;;  %2708 = vmatprep.subr.bf16.mxu0 %v946_v21  ;;  %v3566_v21 = vunpack.c.l.s8.bf16 %v3150_v7 }
 0x456   :  { %4058 = vmatprep.subr.bf16.mxu1 %v3510_v11  ;;  %2738 = vmatprep.mubr.bf16.mxu0 %v7187_v53  ;;  %v3133_v53 = vld [vmem:[#allocation10 + $0x280] sm:$0xff] }
 0x457   :  { %v3533_v54 = vunpack.c.l.s8.bf16 %v3133_v53  ;;  %v3541_v2 = vunpack.c.h.s8.bf16 %v3133_v53  ;;  %v427_v11 = vld [vmem:[#allocation5 + $0x5a0] sm:$0xff] }
 0x458   :  { %2709 = vmatpush1.bf16.msra.mxu0 %v945_v22  ;;  %4059 = vmatpush1.bf16.msra.mxu1 %v3509_v23  ;;  %v1043_v16 = vunpack.c.l.s8.bf16 %v427_v11  ;;  %v3565_v22 = vunpack.c.l.s8.bf16 %v3149_v14  ;;  %v1058_v23 = vunpack.c.h.s8.bf16 %v428_v6  ;;  %v1057_v15 = vunpack.c.h.s8.bf16 %v427_v11  ;;  %v3173_v6 = vld [vmem:[#allocation10 + $0x3c0] sm:$0xff]  ;;  %v3182_v11 = vld [vmem:[#allocation10 + $0x408] sm:$0xff] }
 0x459   :  { %2710 = vmatprep.subr.bf16.mxu0 %v960_v27  ;;  %4060 = vmatprep.subr.bf16.mxu1 %v3518_v36  ;;  %v3574_v27 = vunpack.c.h.s8.bf16 %v3150_v7  ;;  %v442_v36 = vld [vmem:[#allocation5 + $0x618] sm:$0xff] }
 0x45c   :  { %2711 = vmatpush1.bf16.msra.mxu0 %v959_v48  ;;  %4061 = vmatpush1.bf16.msra.mxu1 %v3517_v44  ;;  %v3573_v48 = vunpack.c.h.s8.bf16 %v3149_v14  ;;  %v1072_v44 = vunpack.c.l.s8.bf16 %v442_v36 }
 0x45d   :  { %2712 = vmatprep.subr.bf16.mxu0 %v974_v46  ;;  %4062 = vmatprep.subr.bf16.mxu1 %v3526_v45  ;;  %v3582_v46 = vunpack.c.l.s8.bf16 %v3158_v39  ;;  %v441_v45 = vld [vmem:[#allocation5 + $0x610] sm:$0xff] }
 0x45e   :  { %v1071_v37 = vunpack.c.l.s8.bf16 %v441_v45  ;;  %v1085_v53 = vunpack.c.h.s8.bf16 %v441_v45  ;;  %v3190_v45 = vld [vmem:[#allocation10 + $0x448] sm:$0xff] }
 0x460   :  { %2713 = vmatpush1.bf16.msra.mxu0 %v973_v38  ;;  %4063 = vmatpush1.bf16.msra.mxu1 %v3525_v43  ;;  %v3581_v38 = vunpack.c.l.s8.bf16 %v3157_v35  ;;  %v1086_v43 = vunpack.c.h.s8.bf16 %v442_v36  ;;  %v3181_v36 = vld [vmem:[#allocation10 + $0x400] sm:$0xff] }
 0x461   :  { %2714 = vmatprep.subr.bf16.mxu0 %v988_v51  ;;  %4064 = vmatprep.subr.bf16.mxu1 %v3534_v30  ;;  %v3590_v51 = vunpack.c.h.s8.bf16 %v3158_v39  ;;  %v456_v30 = vld [vmem:[#allocation5 + $0x688] sm:$0xff] }
 0x464   :  { %2715 = vmatpush1.bf16.msra.mxu0 %v987_v31  ;;  %4065 = vmatpush1.bf16.msra.mxu1 %v3533_v54  ;;  %v3589_v31 = vunpack.c.h.s8.bf16 %v3157_v35  ;;  %v1100_v54 = vunpack.c.l.s8.bf16 %v456_v30 }
 0x465   :  { %2716 = vmatprep.subr.bf16.mxu0 %v1002_v55  ;;  %4066 = vmatprep.subr.bf16.mxu1 %v3542_v56  ;;  %v3598_v55 = vunpack.c.l.s8.bf16 %v3166_v47  ;;  %v455_v56 = vld [vmem:[#allocation5 + $0x680] sm:$0xff] }
 0x466   :  { %v1099_v58 = vunpack.c.l.s8.bf16 %v455_v56  ;;  %v1113_v62 = vunpack.c.h.s8.bf16 %v455_v56 }
 0x468   :  { %2717 = vmatpush1.bf16.msra.mxu0 %v1001_v59  ;;  %4067 = vmatpush1.bf16.msra.mxu1 %v3541_v2  ;;  %v3597_v59 = vunpack.c.l.s8.bf16 %v3165_v57  ;;  %v1114_v2 = vunpack.c.h.s8.bf16 %v456_v30  ;;  %v3189_v30 = vld [vmem:[#allocation10 + $0x440] sm:$0xff] }
 0x469   :  { %2718 = vmatprep.subr.bf16.mxu0 %v1016_v3  ;;  %4068 = vmatprep.subr.bf16.mxu1 %v3550_v60  ;;  %v3606_v3 = vunpack.c.h.s8.bf16 %v3166_v47  ;;  %v470_v60 = vld [vmem:[#allocation5 + $0x6f8] sm:$0xff] }
 0x46c   :  { %2719 = vmatpush1.bf16.msra.mxu0 %v1015_v63  ;;  %4069 = vmatpush1.bf16.msra.mxu1 %v3549_v0  ;;  %v3605_v63 = vunpack.c.h.s8.bf16 %v3165_v57  ;;  %v1128_v0 = vunpack.c.l.s8.bf16 %v470_v60  ;;  %v3653_v57 = vunpack.c.h.s8.bf16 %v3189_v30 }
 0x46d   :  { %2720 = vmatprep.subr.bf16.mxu0 %v1030_v4  ;;  %4070 = vmatprep.subr.bf16.mxu1 %v3558_v5  ;;  %v3614_v4 = vunpack.c.l.s8.bf16 %v3174_v61  ;;  %v469_v5 = vld [vmem:[#allocation5 + $0x6f0] sm:$0xff] }
 0x46e   :  { %v1127_v7 = vunpack.c.l.s8.bf16 %v469_v5  ;;  %v1141_v14 = vunpack.c.h.s8.bf16 %v469_v5 }
 0x470   :  { %2721 = vmatpush1.bf16.msra.mxu0 %v1029_v8  ;;  %4071 = vmatpush1.bf16.msra.mxu1 %v3557_v9  ;;  %v3613_v8 = vunpack.c.l.s8.bf16 %v3173_v6  ;;  %v1142_v9 = vunpack.c.h.s8.bf16 %v470_v60 }
 0x471   :  { %2722 = vmatprep.subr.bf16.mxu0 %v1044_v20  ;;  %4072 = vmatprep.subr.bf16.mxu1 %v3566_v21  ;;  %v3622_v20 = vunpack.c.h.s8.bf16 %v3174_v61  ;;  %v484_v21 = vld [vmem:[#allocation5 + $0x768] sm:$0xff] }
 0x474   :  { %2723 = vmatpush1.bf16.msra.mxu0 %v1043_v16  ;;  %4073 = vmatpush1.bf16.msra.mxu1 %v3565_v22  ;;  %v3621_v16 = vunpack.c.h.s8.bf16 %v3173_v6  ;;  %v1156_v22 = vunpack.c.l.s8.bf16 %v484_v21 }
 0x475   :  { %2724 = vmatprep.subr.bf16.mxu0 %v1058_v23  ;;  %4074 = vmatprep.subr.bf16.mxu1 %v3574_v27  ;;  %v3630_v23 = vunpack.c.l.s8.bf16 %v3182_v11  ;;  %v483_v27 = vld [vmem:[#allocation5 + $0x760] sm:$0xff] }
 0x476   :  { %v1155_v39 = vunpack.c.l.s8.bf16 %v483_v27  ;;  %v1169_v35 = vunpack.c.h.s8.bf16 %v483_v27 }
 0x478   :  { %2725 = vmatpush1.bf16.msra.mxu0 %v1057_v15  ;;  %4075 = vmatpush1.bf16.msra.mxu1 %v3573_v48  ;;  %v3629_v15 = vunpack.c.l.s8.bf16 %v3181_v36  ;;  %v1170_v48 = vunpack.c.h.s8.bf16 %v484_v21 }
 0x479   :  { %2726 = vmatprep.subr.bf16.mxu0 %v1072_v44  ;;  %4076 = vmatprep.subr.bf16.mxu1 %v3582_v46  ;;  %v3638_v44 = vunpack.c.h.s8.bf16 %v3182_v11  ;;  %v498_v46 = vld [vmem:[#allocation5 + $0x7d8] sm:$0xff] }
 0x47c   :  { %2727 = vmatpush1.bf16.msra.mxu0 %v1071_v37  ;;  %4077 = vmatpush1.bf16.msra.mxu1 %v3581_v38  ;;  %v3637_v37 = vunpack.c.h.s8.bf16 %v3181_v36  ;;  %v1184_v38 = vunpack.c.l.s8.bf16 %v498_v46 }
 0x47d   :  { %2728 = vmatprep.subr.bf16.mxu0 %v1086_v43  ;;  %4078 = vmatprep.subr.bf16.mxu1 %v3590_v51  ;;  %v3646_v43 = vunpack.c.l.s8.bf16 %v3190_v45  ;;  %v497_v51 = vld [vmem:[#allocation5 + $0x7d0] sm:$0xff] }
 0x47e   :  { %v1183_v47 = vunpack.c.l.s8.bf16 %v497_v51  ;;  %v1197_v56 = vunpack.c.h.s8.bf16 %v497_v51 }
 0x480   :  { %2729 = vmatpush1.bf16.msra.mxu0 %v1085_v53  ;;  %4079 = vmatpush1.bf16.msra.mxu1 %v3589_v31  ;;  %v3645_v53 = vunpack.c.l.s8.bf16 %v3189_v30  ;;  %v3654_v31 = vunpack.c.h.s8.bf16 %v3190_v45 }
 0x481   :  { %2730 = vmatprep.subr.bf16.mxu0 %v1100_v54  ;;  %4080 = vmatprep.subr.bf16.mxu1 %v3598_v55  ;;  %v512_v54 = vld [vmem:[#allocation5 + $0x848] sm:$0xff] }
 0x482   :  { %v3198_v55 = vld [vmem:[#allocation10 + $0x488] sm:$0xff]  ;;  %v1226_v61 = vunpack.c.h.s8.bf16 %v512_v54 }
 0x484   :  { %2731 = vmatpush1.bf16.msra.mxu0 %v1099_v58  ;;  %4081 = vmatpush1.bf16.msra.mxu1 %v3597_v59  ;;  %v1212_v58 = vunpack.c.l.s8.bf16 %v512_v54  ;;  %v3662_v59 = vunpack.c.l.s8.bf16 %v3198_v55 }
 0x485   :  { %2732 = vmatprep.subr.bf16.mxu0 %v1114_v2  ;;  %4082 = vmatprep.subr.bf16.mxu1 %v3606_v3  ;;  %v511_v2 = vld [vmem:[#allocation5 + $0x840] sm:$0xff] }
 0x486   :  { %v1211_v3 = vunpack.c.l.s8.bf16 %v511_v2 }
 0x488   :  { %2733 = vmatpush1.bf16.msra.mxu0 %v1113_v62  ;;  %4083 = vmatpush1.bf16.msra.mxu1 %v3605_v63  ;;  %v3670_v62 = vunpack.c.h.s8.bf16 %v3198_v55  ;;  %v526_v63 = vld [vmem:[#allocation5 + $0x8b8] sm:$0xff] }
 0x489   :  { %2734 = vmatprep.subr.bf16.mxu0 %v1128_v0  ;;  %4084 = vmatprep.subr.bf16.mxu1 %v3614_v4  ;;  %v3206_v0 = vld [vmem:[#allocation10 + $0x4c8] sm:$0xff]  ;;  %v1225_v4 = vunpack.c.h.s8.bf16 %v511_v2  ;;  %v1240_v6 = vunpack.c.l.s8.bf16 %v526_v63  ;;  %v1254_v11 = vunpack.c.h.s8.bf16 %v526_v63 }
 0x48c   :  { %2735 = vmatpush1.bf16.msra.mxu0 %v1127_v7  ;;  %4085 = vmatpush1.bf16.msra.mxu1 %v3613_v8  ;;  %v3678_v7 = vunpack.c.l.s8.bf16 %v3206_v0  ;;  %v525_v8 = vld [vmem:[#allocation5 + $0x8b0] sm:$0xff] }
 0x48d   :  { %2736 = vmatprep.subr.bf16.mxu0 %v1142_v9  ;;  %4086 = vmatprep.subr.bf16.mxu1 %v3622_v20  ;;  %v3205_v9 = vld [vmem:[#allocation10 + $0x4c0] sm:$0xff]  ;;  %v1239_v20 = vunpack.c.l.s8.bf16 %v525_v8 }
 0x48e   :  { %v3677_v21 = vunpack.c.l.s8.bf16 %v3205_v9  ;;  %v3685_v27 = vunpack.c.h.s8.bf16 %v3205_v9 }
 0x490   :  { %2737 = vmatpush1.bf16.msra.mxu0 %v1141_v14  ;;  %4087 = vmatpush1.bf16.msra.mxu1 %v3621_v16  ;;  %v3686_v14 = vunpack.c.h.s8.bf16 %v3206_v0  ;;  %v540_v16 = vld [vmem:[#allocation5 + $0x928] sm:$0xff] }
 0x491   :  { %2749 = vmatprep.subr.bf16.mxu0 %v1156_v22  ;;  %4099 = vmatprep.subr.bf16.mxu1 %v3630_v23  ;;  %v3214_v22 = vld [vmem:[#allocation10 + $0x508] sm:$0xff]  ;;  %v1253_v23 = vunpack.c.h.s8.bf16 %v525_v8  ;;  %v1268_v36 = vunpack.c.l.s8.bf16 %v540_v16  ;;  %v1282_v45 = vunpack.c.h.s8.bf16 %v540_v16 }
 0x493   :  { %4089 = vmatmul.mubr.bf16.vlgmr.msra.gmra.mrb[12].mxu1 %v7269_v34  ;;  %2739 = vmatmul.mubr.bf16.vlgmr.msra.gmra.mrb[12].mxu0 %v7195_v19  ;;  %v1198_v19 = vunpack.c.h.s8.bf16 %v498_v46 }
 0x494   :  { %2750 = vmatpush1.bf16.msra.mxu0 %v1155_v39  ;;  %4100 = vmatpush1.bf16.msra.mxu1 %v3629_v15  ;;  %v3694_v39 = vunpack.c.l.s8.bf16 %v3214_v22  ;;  %v539_v15 = vld [vmem:[#allocation5 + $0x920] sm:$0xff] }
 0x495   :  { %4131 = vmatprep.mubr.bf16.mxu1 %v7315_v49  ;;  %2751 = vmatprep.subr.bf16.mxu0 %v1170_v48  ;;  %v3213_v48 = vld [vmem:[#allocation10 + $0x500] sm:$0xff] }
 0x496   :  { %4101 = vmatprep.subr.bf16.mxu1 %v3638_v44  ;;  %2781 = vmatprep.mubr.bf16.mxu0 %v7203_v28  ;;  %v3197_v28 = vld [vmem:[#allocation10 + $0x480] sm:$0xff]  ;;  %v1267_v44 = vunpack.c.l.s8.bf16 %v539_v15  ;;  %v3693_v46 = vunpack.c.l.s8.bf16 %v3213_v48  ;;  %v3701_v51 = vunpack.c.h.s8.bf16 %v3213_v48 }
 0x497   :  { %v3661_v60 = vunpack.c.l.s8.bf16 %v3197_v28  ;;  %v3669_v5 = vunpack.c.h.s8.bf16 %v3197_v28 }
 0x498   :  { %2752 = vmatpush1.bf16.msra.mxu0 %v1169_v35  ;;  %4102 = vmatpush1.bf16.msra.mxu1 %v3637_v37  ;;  %v3702_v35 = vunpack.c.h.s8.bf16 %v3214_v22  ;;  %v554_v37 = vld [vmem:[#allocation5 + $0x998] sm:$0xff] }
 0x499   :  { %2753 = vmatprep.subr.bf16.mxu0 %v1184_v38  ;;  %4103 = vmatprep.subr.bf16.mxu1 %v3646_v43  ;;  %v3222_v38 = vld [vmem:[#allocation10 + $0x548] sm:$0xff]  ;;  %v1281_v43 = vunpack.c.h.s8.bf16 %v539_v15  ;;  %v1296_v30 = vunpack.c.l.s8.bf16 %v554_v37  ;;  %v1310_v55 = vunpack.c.h.s8.bf16 %v554_v37 }
 0x49c   :  { %2754 = vmatpush1.bf16.msra.mxu0 %v1183_v47  ;;  %4104 = vmatpush1.bf16.msra.mxu1 %v3645_v53  ;;  %v3710_v47 = vunpack.c.l.s8.bf16 %v3222_v38  ;;  %v553_v53 = vld [vmem:[#allocation5 + $0x990] sm:$0xff] }
 0x49d   :  { %2755 = vmatprep.subr.bf16.mxu0 %v1198_v19  ;;  %4105 = vmatprep.subr.bf16.mxu1 %v3654_v31  ;;  %v3221_v19 = vld [vmem:[#allocation10 + $0x540] sm:$0xff]  ;;  %v1295_v31 = vunpack.c.l.s8.bf16 %v553_v53 }
 0x49e   :  { %v3709_v54 = vunpack.c.l.s8.bf16 %v3221_v19  ;;  %v3717_v2 = vunpack.c.h.s8.bf16 %v3221_v19 }
 0x4a0   :  { %2756 = vmatpush1.bf16.msra.mxu0 %v1197_v56  ;;  %4106 = vmatpush1.bf16.msra.mxu1 %v3653_v57  ;;  %v3718_v56 = vunpack.c.h.s8.bf16 %v3222_v38  ;;  %v568_v57 = vld [vmem:[#allocation5 + $0xa08] sm:$0xff] }
 0x4a1   :  { %2757 = vmatprep.subr.bf16.mxu0 %v1212_v58  ;;  %4107 = vmatprep.subr.bf16.mxu1 %v3662_v59  ;;  %v3230_v58 = vld [vmem:[#allocation10 + $0x588] sm:$0xff]  ;;  %v1309_v59 = vunpack.c.h.s8.bf16 %v553_v53  ;;  %v1324_v28 = vunpack.c.l.s8.bf16 %v568_v57  ;;  %v1338_v0 = vunpack.c.h.s8.bf16 %v568_v57 }
 0x4a4   :  { %2758 = vmatpush1.bf16.msra.mxu0 %v1211_v3  ;;  %4108 = vmatpush1.bf16.msra.mxu1 %v3661_v60  ;;  %v3726_v3 = vunpack.c.l.s8.bf16 %v3230_v58  ;;  %v567_v60 = vld [vmem:[#allocation5 + $0xa00] sm:$0xff] }
 0x4a5   :  { %2759 = vmatprep.subr.bf16.mxu0 %v1226_v61  ;;  %4109 = vmatprep.subr.bf16.mxu1 %v3670_v62  ;;  %v3229_v61 = vld [vmem:[#allocation10 + $0x580] sm:$0xff]  ;;  %v1323_v62 = vunpack.c.l.s8.bf16 %v567_v60 }
 0x4a6   :  { %v3725_v63 = vunpack.c.l.s8.bf16 %v3229_v61  ;;  %v3733_v8 = vunpack.c.h.s8.bf16 %v3229_v61 }
 0x4a8   :  { %2760 = vmatpush1.bf16.msra.mxu0 %v1225_v4  ;;  %4110 = vmatpush1.bf16.msra.mxu1 %v3669_v5  ;;  %v3734_v4 = vunpack.c.h.s8.bf16 %v3230_v58  ;;  %v582_v5 = vld [vmem:[#allocation5 + $0xa78] sm:$0xff] }
 0x4a9   :  { %2761 = vmatprep.subr.bf16.mxu0 %v1240_v6  ;;  %4111 = vmatprep.subr.bf16.mxu1 %v3678_v7  ;;  %v3238_v6 = vld [vmem:[#allocation10 + $0x5c8] sm:$0xff]  ;;  %v1337_v7 = vunpack.c.h.s8.bf16 %v567_v60  ;;  %v1352_v9 = vunpack.c.l.s8.bf16 %v582_v5  ;;  %v1366_v22 = vunpack.c.h.s8.bf16 %v582_v5 }
 0x4ac   :  { %2762 = vmatpush1.bf16.msra.mxu0 %v1239_v20  ;;  %4112 = vmatpush1.bf16.msra.mxu1 %v3677_v21  ;;  %v3742_v20 = vunpack.c.l.s8.bf16 %v3238_v6  ;;  %v581_v21 = vld [vmem:[#allocation5 + $0xa70] sm:$0xff] }
 0x4ad   :  { %2763 = vmatprep.subr.bf16.mxu0 %v1254_v11  ;;  %4113 = vmatprep.subr.bf16.mxu1 %v3686_v14  ;;  %v3237_v11 = vld [vmem:[#allocation10 + $0x5c0] sm:$0xff]  ;;  %v1351_v14 = vunpack.c.l.s8.bf16 %v581_v21 }
 0x4ae   :  { %v3741_v16 = vunpack.c.l.s8.bf16 %v3237_v11  ;;  %v3749_v15 = vunpack.c.h.s8.bf16 %v3237_v11 }
 0x4b0   :  { %2764 = vmatpush1.bf16.msra.mxu0 %v1253_v23  ;;  %4114 = vmatpush1.bf16.msra.mxu1 %v3685_v27  ;;  %v3750_v23 = vunpack.c.h.s8.bf16 %v3238_v6  ;;  %v596_v27 = vld [vmem:[#allocation5 + $0xae8] sm:$0xff] }
 0x4b1   :  { %2765 = vmatprep.subr.bf16.mxu0 %v1268_v36  ;;  %4115 = vmatprep.subr.bf16.mxu1 %v3694_v39  ;;  %v3246_v36 = vld [vmem:[#allocation10 + $0x608] sm:$0xff]  ;;  %v1365_v39 = vunpack.c.h.s8.bf16 %v581_v21  ;;  %v1380_v48 = vunpack.c.l.s8.bf16 %v596_v27  ;;  %v1394_v38 = vunpack.c.h.s8.bf16 %v596_v27  ;;  %v637_v27 = vld [vmem:[#allocation5 + $0xc30] sm:$0xff] }
 0x4b2   :  { %v3270_v21 = vld [vmem:[#allocation10 + $0x6c8] sm:$0xff] }
 0x4b4   :  { %2766 = vmatpush1.bf16.msra.mxu0 %v1267_v44  ;;  %4116 = vmatpush1.bf16.msra.mxu1 %v3693_v46  ;;  %v3758_v44 = vunpack.c.l.s8.bf16 %v3246_v36  ;;  %v595_v46 = vld [vmem:[#allocation5 + $0xae0] sm:$0xff] }
 0x4b5   :  { %2767 = vmatprep.subr.bf16.mxu0 %v1282_v45  ;;  %4117 = vmatprep.subr.bf16.mxu1 %v3702_v35  ;;  %v3245_v45 = vld [vmem:[#allocation10 + $0x600] sm:$0xff]  ;;  %v1379_v35 = vunpack.c.l.s8.bf16 %v595_v46 }
 0x4b6   :  { %v3757_v37 = vunpack.c.l.s8.bf16 %v3245_v45  ;;  %v3765_v53 = vunpack.c.h.s8.bf16 %v3245_v45 }
 0x4b8   :  { %2768 = vmatpush1.bf16.msra.mxu0 %v1281_v43  ;;  %4118 = vmatpush1.bf16.msra.mxu1 %v3701_v51  ;;  %v3766_v43 = vunpack.c.h.s8.bf16 %v3246_v36  ;;  %v610_v51 = vld [vmem:[#allocation5 + $0xb58] sm:$0xff] }
 0x4b9   :  { %2769 = vmatprep.subr.bf16.mxu0 %v1296_v30  ;;  %4119 = vmatprep.subr.bf16.mxu1 %v3710_v47  ;;  %v3254_v30 = vld [vmem:[#allocation10 + $0x648] sm:$0xff]  ;;  %v1393_v47 = vunpack.c.h.s8.bf16 %v595_v46  ;;  %v1408_v19 = vunpack.c.l.s8.bf16 %v610_v51  ;;  %v3269_v36 = vld [vmem:[#allocation10 + $0x6c0] sm:$0xff]  ;;  %v3806_v46 = vunpack.c.l.s8.bf16 %v3270_v21 }
 0x4ba   :  { %v3782_v58 = vunpack.c.h.s8.bf16 %v3254_v30 }
 0x4bc   :  { %2770 = vmatpush1.bf16.msra.mxu0 %v1295_v31  ;;  %4120 = vmatpush1.bf16.msra.mxu1 %v3709_v54  ;;  %v3774_v31 = vunpack.c.l.s8.bf16 %v3254_v30  ;;  %v609_v54 = vld [vmem:[#allocation5 + $0xb50] sm:$0xff] }
 0x4bd   :  { %2771 = vmatprep.subr.bf16.mxu0 %v1310_v55  ;;  %4121 = vmatprep.subr.bf16.mxu1 %v3718_v56  ;;  %v3253_v55 = vld [vmem:[#allocation10 + $0x640] sm:$0xff]  ;;  %v1407_v56 = vunpack.c.l.s8.bf16 %v609_v54 }
 0x4be   :  { %v3773_v57 = vunpack.c.l.s8.bf16 %v3253_v55 }
 0x4c0   :  { %2772 = vmatpush1.bf16.msra.mxu0 %v1309_v59  ;;  %4122 = vmatpush1.bf16.msra.mxu1 %v3717_v2  ;;  %v624_v59 = vld [vmem:[#allocation5 + $0xbc8] sm:$0xff] }
 0x4c1   :  { %2773 = vmatprep.subr.bf16.mxu0 %v1324_v28  ;;  %4123 = vmatprep.subr.bf16.mxu1 %v3726_v3  ;;  %v3262_v2 = vld [vmem:[#allocation10 + $0x688] sm:$0xff]  ;;  %v1421_v28 = vunpack.c.h.s8.bf16 %v609_v54  ;;  %v3781_v3 = vunpack.c.h.s8.bf16 %v3253_v55  ;;  %v1436_v60 = vunpack.c.l.s8.bf16 %v624_v59  ;;  %v1450_v5 = vunpack.c.h.s8.bf16 %v624_v59 }
 0x4c2   :  { %v3790_v61 = vunpack.c.l.s8.bf16 %v3262_v2  ;;  %v3798_v6 = vunpack.c.h.s8.bf16 %v3262_v2  ;;  %v3805_v54 = vunpack.c.l.s8.bf16 %v3269_v36  ;;  %v3814_v59 = vunpack.c.h.s8.bf16 %v3270_v21 }
 0x4c4   :  { %2774 = vmatpush1.bf16.msra.mxu0 %v1323_v62  ;;  %4124 = vmatpush1.bf16.msra.mxu1 %v3725_v63  ;;  %v623_v62 = vld [vmem:[#allocation5 + $0xbc0] sm:$0xff] }
 0x4c5   :  { %2775 = vmatprep.subr.bf16.mxu0 %v1338_v0  ;;  %4125 = vmatprep.subr.bf16.mxu1 %v3734_v4  ;;  %v1435_v63 = vunpack.c.l.s8.bf16 %v623_v62  ;;  %v2836_v4 = vld [vmem:[#allocation7 + $0x8] sm:$0x3f] }
 0x4c6   :  { %v2878_v11 = vrot.slane %v2836_v4, %v7254_v29 }
 0x4c8   :  { %2776 = vmatpush1.bf16.msra.mxu0 %v1337_v7  ;;  %4126 = vmatpush1.bf16.msra.mxu1 %v3733_v8  ;;  %v638_v7 = vld [vmem:[#allocation5 + $0xc38] sm:$0xff]  ;;  %v2874_v8 = vrot.slane %v2836_v4, %v7248_v25 }
 0x4c9   :  { %2777 = vmatprep.subr.bf16.mxu0 %v1352_v9  ;;  %4127 = vmatprep.subr.bf16.mxu1 %v3742_v20  ;;  %v2938_v9 = vld [vmem:[#allocation8 + $0x8] sm:$0x3f]  ;;  %v2882_v20 = vrot.slane %v2836_v4, %v7251_v26 }
 0x4cc   :  { %2778 = vmatpush1.bf16.msra.mxu0 %v1351_v14  ;;  %4128 = vmatpush1.bf16.msra.mxu1 %v3741_v16  ;;  %v2886_v14 = vrot.slane %v2836_v4, %v7257_v32  ;;  %v1449_v16 = vunpack.c.h.s8.bf16 %v623_v62  ;;  %v3278_v62 = vld [vmem:[#allocation10 + $0x708] sm:$0xff] }
 0x4cd   :  { %2779 = vmatprep.subr.bf16.mxu0 %v1366_v22  ;;  %4129 = vmatprep.subr.bf16.mxu1 %v3750_v23  ;;  %v1464_v23 = vunpack.c.l.s8.bf16 %v638_v7 }
 0x4d0   :  { %2780 = vmatpush1.bf16.msra.mxu0 %v1365_v39  ;;  %4130 = vmatpush1.bf16.msra.mxu1 %v3749_v15  ;;  %v2976_v15 = vrot.slane %v2938_v9, %v7248_v25 }
 0x4d1   :  { %2792 = vmatprep.subr.bf16.mxu0 %v1380_v48  ;;  %4142 = vmatprep.subr.bf16.mxu1 %v3758_v44  ;;  %v2984_v44 = vrot.slane %v2938_v9, %v7251_v26 }
 0x4d3   :  { %4132 = vmatmul.mubr.bf16.vlgmr.msra.gmra.mrb[12].mxu1 %v7311_v42  ;;  %2782 = vmatmul.mubr.bf16.vlgmr.msra.gmra.mrb[12].mxu0 %v7211_v1  ;;  %v1422_v1 = vunpack.c.h.s8.bf16 %v610_v51  ;;  %v2988_v51 = vrot.slane %v2938_v9, %v7257_v32 }
 0x4d4   :  { %2793 = vmatpush1.bf16.msra.mxu0 %v1379_v35  ;;  %4143 = vmatpush1.bf16.msra.mxu1 %v3757_v37 }
 0x4d5   :  { %4174 = vmatprep.mubr.bf16.mxu1 %v7317_v50  ;;  %2794 = vmatprep.subr.bf16.mxu0 %v1394_v38  ;;  %v2980_v38 = vrot.slane %v2938_v9, %v7254_v29 }
 0x4d6   :  { %4144 = vmatprep.subr.bf16.mxu1 %v3766_v43  ;;  %2824 = vmatprep.mubr.bf16.mxu0 %v7219_v10  ;;  %v3261_v10 = vld [vmem:[#allocation10 + $0x680] sm:$0xff] }
 0x4d7   :  { %v3789_v0 = vunpack.c.l.s8.bf16 %v3261_v10  ;;  %v3797_v22 = vunpack.c.h.s8.bf16 %v3261_v10 }
 0x4d8   :  { %2795 = vmatpush1.bf16.msra.mxu0 %v1393_v47  ;;  %4145 = vmatpush1.bf16.msra.mxu1 %v3765_v53 }
 0x4d9   :  { %2796 = vmatprep.subr.bf16.mxu0 %v1408_v19  ;;  %4146 = vmatprep.subr.bf16.mxu1 %v3774_v31  ;;  %v1463_v31 = vunpack.c.l.s8.bf16 %v637_v27 }
 0x4dc   :  { %2797 = vmatpush1.bf16.msra.mxu0 %v1407_v56  ;;  %4147 = vmatpush1.bf16.msra.mxu1 %v3773_v57 }
 0x4dd   :  { %2798 = vmatprep.subr.bf16.mxu0 %v1422_v1  ;;  %4148 = vmatprep.subr.bf16.mxu1 %v3782_v58  ;;  %v1478_v58 = vunpack.c.h.s8.bf16 %v638_v7  ;;  %v3813_v7 = vunpack.c.h.s8.bf16 %v3269_v36 }
 0x4e0   :  { %2799 = vmatpush1.bf16.msra.mxu0 %v1421_v28  ;;  %4149 = vmatpush1.bf16.msra.mxu1 %v3781_v3 }
 0x4e1   :  { %2800 = vmatprep.subr.bf16.mxu0 %v1436_v60  ;;  %4150 = vmatprep.subr.bf16.mxu1 %v3790_v61  ;;  %v1477_v60 = vunpack.c.h.s8.bf16 %v637_v27  ;;  %v652_v61 = vld [vmem:[#allocation5 + $0xca8] sm:$0xff] }
 0x4e2   :  { %v1492_v21 = vunpack.c.l.s8.bf16 %v652_v61 }
 0x4e4   :  { %2801 = vmatpush1.bf16.msra.mxu0 %v1435_v63  ;;  %4151 = vmatpush1.bf16.msra.mxu1 %v3789_v0 }
 0x4e5   :  { %2802 = vmatprep.subr.bf16.mxu0 %v1450_v5  ;;  %4152 = vmatprep.subr.bf16.mxu1 %v3798_v6 }
 0x4e6   :  { %v2482_v39 = vpop.f32.mrb[8].mxu0  ;;  %v2654_v48 = vpop.f32.mrb[8].mxu1 }
 0x4e7   :  { %v2917_v45 = vmul.f32 %v2874_v8, %v2482_v39  ;;  %v2919_v35 = vmul.f32 %v2882_v20, %v2654_v48  ;;  %v2484_v37 = vpop.f32.mrb[9].mxu0  ;;  %v2656_v43 = vpop.f32.mrb[9].mxu1  ;;  %v1506_v39 = vunpack.c.h.s8.bf16 %v652_v61  ;;  %v666_v48 = vld [vmem:[#allocation5 + $0xd18] sm:$0xff]  ;;  %v3302_v61 = vld [vmem:[#allocation10 + $0x7c8] sm:$0xff] }
 0x4e8   :  { %v2918_v30 = vmul.f32 %v2878_v11, %v2484_v37  ;;  %v2920_v47 = vmul.f32 %v2886_v14, %v2656_v43  ;;  %v2486_v53 = vpop.f32.mrb[10].mxu0  ;;  %v2658_v19 = vpop.f32.mrb[10].mxu1  ;;  %2803 = vmatpush1.bf16.msra.mxu0 %v1449_v16  ;;  %4153 = vmatpush1.bf16.msra.mxu1 %v3797_v22  ;;  %v3277_v16 = vld [vmem:[#allocation10 + $0x700] sm:$0xff] }
 0x4e9   :  { %v2931_v55 = vmul.f32 %v2874_v8, %v2486_v53  ;;  %v2933_v56 = vmul.f32 %v2882_v20, %v2658_v19  ;;  %v2488_v57 = vpop.f32.mrb[11].mxu0  ;;  %v2660_v1 = vpop.f32.mrb[11].mxu1  ;;  %2804 = vmatprep.subr.bf16.mxu0 %v1464_v23  ;;  %v3019_v2 = vadd.f32 %v2976_v15, %v2917_v45  ;;  %4154 = vmatprep.subr.bf16.mxu1 %v3806_v46  ;;  %v3821_v36 = vunpack.c.l.s8.bf16 %v3277_v16  ;;  %v3285_v43 = vld [vmem:[#allocation10 + $0x740] sm:$0xff]  ;;  %v680_v19 = vld [vmem:[#allocation5 + $0xd88] sm:$0xff] }
 0x4ea   :  { %v2932_v28 = vmul.f32 %v2878_v11, %v2488_v57  ;;  %v2934_v3 = vmul.f32 %v2886_v14, %v2660_v1  ;;  %v7343_v10 = vadd.f32 %v2984_v44, %v2919_v35  ;;  %v3020_v63 = vadd.f32 %v2980_v38, %v2918_v30  ;;  %v651_v14 = vld [vmem:[#allocation5 + $0xca0] sm:$0xff] }
 0x4eb   :  { %v3033_v0 = vadd.f32 %v2976_v15, %v2931_v55  ;;  %v7345_v4 = vadd.f32 %v2984_v44, %v2933_v56  ;;  %v7347_v5 = vadd.f32 %v2988_v51, %v2920_v47  ;;  %v3822_v11 = vunpack.c.l.s8.bf16 %v3278_v62  ;;  %v3286_v44 = vld [vmem:[#allocation10 + $0x748] sm:$0xff] }
 0x4ec   :  { %v3034_v6 = vadd.f32 %v2980_v38, %v2932_v28  ;;  %v7349_v8 = vadd.f32 %v2988_v51, %v2934_v3  ;;  %2805 = vmatpush1.bf16.msra.mxu0 %v1463_v31  ;;  %4155 = vmatpush1.bf16.msra.mxu1 %v3805_v54  ;;  %v1491_v27 = vunpack.c.l.s8.bf16 %v651_v14  ;;  %v3830_v15 = vunpack.c.h.s8.bf16 %v3278_v62  ;;  %v665_v38 = vld [vmem:[#allocation5 + $0xd10] sm:$0xff]  ;;  %v3294_v31 = vld [vmem:[#allocation10 + $0x788] sm:$0xff] }
 0x4ed   :  { %v7351_v9 = vpack.c.bf16 %v3033_v0, %v3019_v2  ;;  %v3049_v20 = vpack.c.bf16 %v7345_v4, %v7343_v10  ;;  %2806 = vmatprep.subr.bf16.mxu0 %v1478_v58  ;;  %4156 = vmatprep.subr.bf16.mxu1 %v3814_v59  ;;  %v1505_v46 = vunpack.c.h.s8.bf16 %v651_v14  ;;  %v3829_v45 = vunpack.c.h.s8.bf16 %v3277_v16  ;;  %v679_v1 = vld [vmem:[#allocation5 + $0xd80] sm:$0xff] }
 0x4ee   :  { %v7355_v22 = vpack.c.bf16 %v3034_v6, %v3020_v63  ;;  %v3050_v23 = vpack.c.bf16 %v7349_v8, %v7347_v5  ;;  %v1520_v35 = vunpack.c.l.s8.bf16 %v666_v48  ;;  %v3838_v37 = vunpack.c.l.s8.bf16 %v3286_v44  ;;  %v3293_v58 = vld [vmem:[#allocation10 + $0x780] sm:$0xff]  ;;  %v6422_v5 = vld [vmem:[#allocation14 + $0x60] sm:$0xff]   ;;  %v6436_v4 = vld [vmem:[#allocation14 + $0xd8] sm:$0xff]  }
 0x4ef   :  { %v1519_v51 = vunpack.c.l.s8.bf16 %v665_v38  ;;  %v3837_v30 = vunpack.c.l.s8.bf16 %v3285_v43  ;;  %v1534_v47 = vunpack.c.h.s8.bf16 %v666_v48  ;;  %v3846_v53 = vunpack.c.h.s8.bf16 %v3286_v44 }
 0x4f0   :  { %2807 = vmatpush1.bf16.msra.mxu0 %v1477_v60  ;;  %4157 = vmatpush1.bf16.msra.mxu1 %v3813_v7  ;;  %v1533_v54 = vunpack.c.h.s8.bf16 %v665_v38  ;;  %v3845_v55 = vunpack.c.h.s8.bf16 %v3285_v43  ;;  %v1548_v56 = vunpack.c.l.s8.bf16 %v680_v19  ;;  %v3854_v57 = vunpack.c.l.s8.bf16 %v3294_v31  ;;  %v694_v60 = vld [vmem:[#allocation5 + $0xdf8] sm:$0xff]  ;;  %v693_v7 = vld [vmem:[#allocation5 + $0xdf0] sm:$0xff] }
 0x4f1   :  { %2808 = vmatprep.subr.bf16.mxu0 %v1492_v21  ;;  %4158 = vmatprep.subr.bf16.mxu1 %v3822_v11  ;;  %v1547_v59 = vunpack.c.l.s8.bf16 %v679_v1  ;;  %v3853_v2 = vunpack.c.l.s8.bf16 %v3293_v58  ;;  %v1562_v28 = vunpack.c.h.s8.bf16 %v680_v19  ;;  %v3862_v3 = vunpack.c.h.s8.bf16 %v3294_v31  ;;  %v3301_v21 = vld [vmem:[#allocation10 + $0x7c0] sm:$0xff] }
 0x4f2   :  { %v1561_v62 = vunpack.c.h.s8.bf16 %v679_v1  ;;  %v3861_v63 = vunpack.c.h.s8.bf16 %v3293_v58  ;;  %v1576_v0 = vunpack.c.l.s8.bf16 %v694_v60  ;;  %v3870_v6 = vunpack.c.l.s8.bf16 %v3302_v61 }
 0x4f3   :  { %v1575_v11 = vunpack.c.l.s8.bf16 %v693_v7  ;;  %v3869_v14 = vunpack.c.l.s8.bf16 %v3301_v21  ;;  %v1590_v16 = vunpack.c.h.s8.bf16 %v694_v60  ;;  %v3877_v48 = vunpack.c.h.s8.bf16 %v3301_v21 }
 0x4f4   :  { %2809 = vmatpush1.bf16.msra.mxu0 %v1491_v27  ;;  %4159 = vmatpush1.bf16.msra.mxu1 %v3821_v36  ;;  %v3878_v27 = vunpack.c.h.s8.bf16 %v3302_v61  ;;  %v3310_v36 = vld [vmem:[#allocation10 + $0x808] sm:$0xff]  ;;  %v3325_v61 = vld [vmem:[#allocation10 + $0x880] sm:$0xff] }
 0x4f5   :  { %2810 = vmatprep.subr.bf16.mxu0 %v1506_v39  ;;  %4160 = vmatprep.subr.bf16.mxu1 %v3830_v15  ;;  %v3056_v39 = vld [vmem:[#allocation10 + $0x18] sm:$0xff]  ;;  %v1589_v15 = vunpack.c.h.s8.bf16 %v693_v7  ;;  %v3886_v44 = vunpack.c.l.s8.bf16 %v3310_v36  ;;  %v3894_v43 = vunpack.c.h.s8.bf16 %v3310_v36 }
 0x4f8   :  { %2811 = vmatpush1.bf16.msra.mxu0 %v1505_v46  ;;  %4161 = vmatpush1.bf16.msra.mxu1 %v3829_v45  ;;  %v3376_v46 = vunpack.c.l.s8.bf16 %v3056_v39  ;;  %v3309_v45 = vld [vmem:[#allocation10 + $0x800] sm:$0xff] }
 0x4f9   :  { %2812 = vmatprep.subr.bf16.mxu0 %v1520_v35  ;;  %4162 = vmatprep.subr.bf16.mxu1 %v3838_v37  ;;  %v3055_v35 = vld [vmem:[#allocation10 + $0x10] sm:$0xff]  ;;  %v3885_v37 = vunpack.c.l.s8.bf16 %v3309_v45 }
 0x4fa   :  { %v3375_v38 = vunpack.c.l.s8.bf16 %v3055_v35  ;;  %v3383_v19 = vunpack.c.h.s8.bf16 %v3055_v35 }
 0x4fc   :  { %2813 = vmatpush1.bf16.msra.mxu0 %v1519_v51  ;;  %4163 = vmatpush1.bf16.msra.mxu1 %v3837_v30  ;;  %v3384_v51 = vunpack.c.h.s8.bf16 %v3056_v39  ;;  %v3318_v30 = vld [vmem:[#allocation10 + $0x848] sm:$0xff]  ;;  %v3333_v39 = vld [vmem:[#allocation10 + $0x8c0] sm:$0xff] }
 0x4fd   :  { %2814 = vmatprep.subr.bf16.mxu0 %v1534_v47  ;;  %4164 = vmatprep.subr.bf16.mxu1 %v3846_v53  ;;  %v3064_v47 = vld [vmem:[#allocation10 + $0x58] sm:$0xff]  ;;  %v3893_v53 = vunpack.c.h.s8.bf16 %v3309_v45  ;;  %v3902_v31 = vunpack.c.l.s8.bf16 %v3318_v30  ;;  %v3910_v1 = vunpack.c.h.s8.bf16 %v3318_v30 }
 0x4fe   :  { %v3400_v58 = vunpack.c.h.s8.bf16 %v3064_v47 }
 0x500   :  { %2815 = vmatpush1.bf16.msra.mxu0 %v1533_v54  ;;  %4165 = vmatpush1.bf16.msra.mxu1 %v3845_v55  ;;  %v3317_v54 = vld [vmem:[#allocation10 + $0x840] sm:$0xff]  ;;  %v3392_v55 = vunpack.c.l.s8.bf16 %v3064_v47 }
 0x501   :  { %2816 = vmatprep.subr.bf16.mxu0 %v1548_v56  ;;  %4166 = vmatprep.subr.bf16.mxu1 %v3854_v57  ;;  %v3063_v56 = vld [vmem:[#allocation10 + $0x50] sm:$0xff]  ;;  %v3901_v57 = vunpack.c.l.s8.bf16 %v3317_v54  ;;  %v3341_v47 = vld [vmem:[#allocation10 + $0x900] sm:$0xff] }
 0x504   :  { %2817 = vmatpush1.bf16.msra.mxu0 %v1547_v59  ;;  %4167 = vmatpush1.bf16.msra.mxu1 %v3853_v2  ;;  %v3326_v59 = vld [vmem:[#allocation10 + $0x888] sm:$0xff]  ;;  %v3072_v2 = vld [vmem:[#allocation10 + $0x98] sm:$0xff] }
 0x505   :  { %2818 = vmatprep.subr.bf16.mxu0 %v1562_v28  ;;  %4168 = vmatprep.subr.bf16.mxu1 %v3862_v3  ;;  %v3909_v28 = vunpack.c.h.s8.bf16 %v3317_v54  ;;  %v3399_v3 = vunpack.c.h.s8.bf16 %v3063_v56  ;;  %v3918_v60 = vunpack.c.l.s8.bf16 %v3326_v59  ;;  %v3926_v7 = vunpack.c.h.s8.bf16 %v3326_v59 }
 0x506   :  { %v3416_v21 = vunpack.c.h.s8.bf16 %v3072_v2 }
 0x508   :  { %2819 = vmatpush1.bf16.msra.mxu0 %v1561_v62  ;;  %4169 = vmatpush1.bf16.msra.mxu1 %v3861_v63  ;;  %v3408_v62 = vunpack.c.l.s8.bf16 %v3072_v2  ;;  %v3071_v63 = vld [vmem:[#allocation10 + $0x90] sm:$0xff]  ;;  %v3349_v2 = vld [vmem:[#allocation10 + $0x940] sm:$0xff] }
 0x509   :  { %2820 = vmatprep.subr.bf16.mxu0 %v1576_v0  ;;  %4170 = vmatprep.subr.bf16.mxu1 %v3870_v6  ;;  %v3917_v0 = vunpack.c.l.s8.bf16 %v3325_v61  ;;  %v3407_v6 = vunpack.c.l.s8.bf16 %v3071_v63 }
 0x50c   :  { %2821 = vmatpush1.bf16.msra.mxu0 %v1575_v11  ;;  %4171 = vmatpush1.bf16.msra.mxu1 %v3869_v14  ;;  %v3334_v11 = vld [vmem:[#allocation10 + $0x8c8] sm:$0xff]  ;;  %v3080_v14 = vld [vmem:[#allocation10 + $0xd8] sm:$0xff] }
 0x50d   :  { %2822 = vmatprep.subr.bf16.mxu0 %v1590_v16  ;;  %4172 = vmatprep.subr.bf16.mxu1 %v3878_v27  ;;  %v3925_v16 = vunpack.c.h.s8.bf16 %v3325_v61  ;;  %v3415_v27 = vunpack.c.h.s8.bf16 %v3071_v63  ;;  %v3934_v36 = vunpack.c.l.s8.bf16 %v3334_v11  ;;  %v3942_v45 = vunpack.c.h.s8.bf16 %v3334_v11 }
 0x50e   :  { %v3432_v35 = vunpack.c.h.s8.bf16 %v3080_v14 }
 0x510   :  { %2823 = vmatpush1.bf16.msra.mxu0 %v1589_v15  ;;  %4173 = vmatpush1.bf16.msra.mxu1 %v3877_v48  ;;  %v3424_v15 = vunpack.c.l.s8.bf16 %v3080_v14  ;;  %v3079_v48 = vld [vmem:[#allocation10 + $0xd0] sm:$0xff]  ;;  %v3357_v14 = vld [vmem:[#allocation10 + $0x980] sm:$0xff] }
 0x511   :  { %4185 = vmatprep.subr.bf16.mxu1 %v3886_v44  ;;  %4228 = vmatprep.subr.bf16.mxu0 %v3376_v46  ;;  %v3933_v44 = vunpack.c.l.s8.bf16 %v3333_v39  ;;  %v3423_v46 = vunpack.c.l.s8.bf16 %v3079_v48 }
 0x513   :  { %2825 = vmatmul.mubr.bf16.vlgmr.msra.gmra.mrb[12].mxu0 %v7227_v52  ;;  %4175 = vmatmul.mubr.bf16.vlgmr.msra.gmra.mrb[12].mxu1 %v7313_v24  ;;  %v3391_v52 = vunpack.c.l.s8.bf16 %v3063_v56 }
 0x514   :  { %4186 = vmatpush1.bf16.msra.mxu1 %v3885_v37  ;;  %4217 = vmatprep.mubr.bf16.mxu1 %v7355_v22  ;;  %v3342_v37 = vld [vmem:[#allocation10 + $0x908] sm:$0xff] }
 0x515   :  { %4229 = vmatpush1.bf16.msra.mxu0 %v3375_v38  ;;  %4260 = vmatprep.mubr.bf16.mxu0 %v7271_v40  ;;  %v3088_v38 = vld [vmem:[#allocation10 + $0x118] sm:$0xff]  ;;  %v3950_v30 = vunpack.c.l.s8.bf16 %v3342_v37 }
 0x516   :  { %4187 = vmatprep.subr.bf16.mxu1 %v3894_v43  ;;  %4230 = vmatprep.subr.bf16.mxu0 %v3384_v51  ;;  %v3941_v43 = vunpack.c.h.s8.bf16 %v3333_v39  ;;  %v3431_v51 = vunpack.c.h.s8.bf16 %v3079_v48  ;;  %v3448_v56 = vunpack.c.h.s8.bf16 %v3088_v38 }
 0x518   :  { %4188 = vmatpush1.bf16.msra.mxu1 %v3893_v53  ;;  %v3440_v53 = vunpack.c.l.s8.bf16 %v3088_v38  ;;  %v3365_v38 = vld [vmem:[#allocation10 + $0x9c0] sm:$0xff] }
 0x519   :  { %4231 = vmatpush1.bf16.msra.mxu0 %v3383_v19  ;;  %4189 = vmatprep.subr.bf16.mxu1 %v3902_v31  ;;  %v3087_v19 = vld [vmem:[#allocation10 + $0x110] sm:$0xff]  ;;  %v3949_v31 = vunpack.c.l.s8.bf16 %v3341_v47 }
 0x51a   :  { %4232 = vmatprep.subr.bf16.mxu0 %v3392_v55  ;;  %v3439_v54 = vunpack.c.l.s8.bf16 %v3087_v19  ;;  %v3958_v55 = vunpack.c.h.s8.bf16 %v3342_v37 }
 0x51c   :  { %4190 = vmatpush1.bf16.msra.mxu1 %v3901_v57  ;;  %v3350_v57 = vld [vmem:[#allocation10 + $0x948] sm:$0xff] }
 0x51d   :  { %4233 = vmatpush1.bf16.msra.mxu0 %v3391_v52  ;;  %4191 = vmatprep.subr.bf16.mxu1 %v3910_v1  ;;  %v3096_v52 = vld [vmem:[#allocation10 + $0x158] sm:$0xff]  ;;  %v3957_v1 = vunpack.c.h.s8.bf16 %v3341_v47  ;;  %v3966_v59 = vunpack.c.l.s8.bf16 %v3350_v57 }
 0x51e   :  { %4234 = vmatprep.subr.bf16.mxu0 %v3400_v58  ;;  %v3447_v58 = vunpack.c.h.s8.bf16 %v3087_v19  ;;  %v3464_v63 = vunpack.c.h.s8.bf16 %v3096_v52 }
 0x520   :  { %4192 = vmatpush1.bf16.msra.mxu1 %v3909_v28  ;;  %v3456_v28 = vunpack.c.l.s8.bf16 %v3096_v52  ;;  %v3057_v52 = vld [vmem:[#allocation10 + $0x20] sm:$0xff] }
 0x521   :  { %4235 = vmatpush1.bf16.msra.mxu0 %v3399_v3  ;;  %4193 = vmatprep.subr.bf16.mxu1 %v3918_v60  ;;  %v3095_v3 = vld [vmem:[#allocation10 + $0x150] sm:$0xff]  ;;  %v3965_v60 = vunpack.c.l.s8.bf16 %v3349_v2 }
 0x522   :  { %4236 = vmatprep.subr.bf16.mxu0 %v3408_v62  ;;  %v3455_v61 = vunpack.c.l.s8.bf16 %v3095_v3  ;;  %v3974_v62 = vunpack.c.h.s8.bf16 %v3350_v57 }
 0x524   :  { %4194 = vmatpush1.bf16.msra.mxu1 %v3917_v0  ;;  %v3358_v0 = vld [vmem:[#allocation10 + $0x988] sm:$0xff] }
 0x525   :  { %4237 = vmatpush1.bf16.msra.mxu0 %v3407_v6  ;;  %4195 = vmatprep.subr.bf16.mxu1 %v3926_v7  ;;  %v3104_v6 = vld [vmem:[#allocation10 + $0x198] sm:$0xff]  ;;  %v3973_v7 = vunpack.c.h.s8.bf16 %v3349_v2  ;;  %v3982_v11 = vunpack.c.l.s8.bf16 %v3358_v0 }
 0x526   :  { %4238 = vmatprep.subr.bf16.mxu0 %v3416_v21  ;;  %v3463_v21 = vunpack.c.h.s8.bf16 %v3095_v3  ;;  %v3480_v48 = vunpack.c.h.s8.bf16 %v3104_v6  ;;  %v3066_v3 = vld [vmem:[#allocation10 + $0x68] sm:$0xff] }
 0x528   :  { %4196 = vmatpush1.bf16.msra.mxu1 %v3925_v16  ;;  %v3472_v16 = vunpack.c.l.s8.bf16 %v3104_v6  ;;  %v3065_v6 = vld [vmem:[#allocation10 + $0x60] sm:$0xff] }
 0x529   :  { %4239 = vmatpush1.bf16.msra.mxu0 %v3415_v27  ;;  %4197 = vmatprep.subr.bf16.mxu1 %v3934_v36  ;;  %v3103_v27 = vld [vmem:[#allocation10 + $0x190] sm:$0xff]  ;;  %v3981_v36 = vunpack.c.l.s8.bf16 %v3357_v14 }
 0x52a   :  { %4240 = vmatprep.subr.bf16.mxu0 %v3424_v15  ;;  %v3471_v39 = vunpack.c.l.s8.bf16 %v3103_v27  ;;  %v3990_v15 = vunpack.c.h.s8.bf16 %v3358_v0  ;;  %v3394_v0 = vunpack.c.l.s8.bf16 %v3066_v3 }
 0x52c   :  { %4198 = vmatpush1.bf16.msra.mxu1 %v3933_v44  ;;  %v3366_v44 = vld [vmem:[#allocation10 + $0x9c8] sm:$0xff] }
 0x52d   :  { %4241 = vmatpush1.bf16.msra.mxu0 %v3423_v46  ;;  %4199 = vmatprep.subr.bf16.mxu1 %v3942_v45  ;;  %v3112_v46 = vld [vmem:[#allocation10 + $0x1d8] sm:$0xff]  ;;  %v3989_v45 = vunpack.c.h.s8.bf16 %v3357_v14  ;;  %v3998_v37 = vunpack.c.l.s8.bf16 %v3366_v44 }
 0x52e   :  { %4242 = vmatprep.subr.bf16.mxu0 %v3432_v35  ;;  %v3479_v35 = vunpack.c.h.s8.bf16 %v3103_v27  ;;  %v3496_v19 = vunpack.c.h.s8.bf16 %v3112_v46 }
 0x530   :  { %4200 = vmatpush1.bf16.msra.mxu1 %v3941_v43  ;;  %v3488_v43 = vunpack.c.l.s8.bf16 %v3112_v46  ;;  %v3073_v46 = vld [vmem:[#allocation10 + $0xa0] sm:$0xff] }
 0x531   :  { %4243 = vmatpush1.bf16.msra.mxu0 %v3431_v51  ;;  %4201 = vmatprep.subr.bf16.mxu1 %v3950_v30  ;;  %v3111_v51 = vld [vmem:[#allocation10 + $0x1d0] sm:$0xff]  ;;  %v3997_v30 = vunpack.c.l.s8.bf16 %v3365_v38 }
 0x532   :  { %4244 = vmatprep.subr.bf16.mxu0 %v3440_v53  ;;  %v3487_v47 = vunpack.c.l.s8.bf16 %v3111_v51  ;;  %v4006_v53 = vunpack.c.h.s8.bf16 %v3366_v44 }
 0x534   :  { %4202 = vmatpush1.bf16.msra.mxu1 %v3949_v31  ;;  %v3058_v31 = vld [vmem:[#allocation10 + $0x28] sm:$0xff] }
 0x535   :  { %4245 = vmatpush1.bf16.msra.mxu0 %v3439_v54  ;;  %4203 = vmatprep.subr.bf16.mxu1 %v3958_v55  ;;  %v3120_v54 = vld [vmem:[#allocation10 + $0x218] sm:$0xff]  ;;  %v4005_v55 = vunpack.c.h.s8.bf16 %v3365_v38  ;;  %v3378_v57 = vunpack.c.l.s8.bf16 %v3058_v31 }
 0x536   :  { %4246 = vmatprep.subr.bf16.mxu0 %v3448_v56  ;;  %v3495_v56 = vunpack.c.h.s8.bf16 %v3111_v51 }
 0x538   :  { %4204 = vmatpush1.bf16.msra.mxu1 %v3957_v1  ;;  %v3504_v1 = vunpack.c.l.s8.bf16 %v3120_v54 }
 0x539   :  { %4247 = vmatpush1.bf16.msra.mxu0 %v3447_v58  ;;  %4205 = vmatprep.subr.bf16.mxu1 %v3966_v59  ;;  %v3119_v58 = vld [vmem:[#allocation10 + $0x210] sm:$0xff]  ;;  %v3377_v59 = vunpack.c.l.s8.bf16 %v3057_v52 }
 0x53a   :  { %4248 = vmatprep.subr.bf16.mxu0 %v3456_v28  ;;  %v3503_v2 = vunpack.c.l.s8.bf16 %v3119_v58  ;;  %v3512_v28 = vunpack.c.h.s8.bf16 %v3120_v54  ;;  %v3081_v54 = vld [vmem:[#allocation10 + $0xe0] sm:$0xff] }
 0x53c   :  { %4206 = vmatpush1.bf16.msra.mxu1 %v3965_v60  ;;  %v3386_v60 = vunpack.c.h.s8.bf16 %v3058_v31 }
 0x53d   :  { %4249 = vmatpush1.bf16.msra.mxu0 %v3455_v61  ;;  %4207 = vmatprep.subr.bf16.mxu1 %v3974_v62  ;;  %v3128_v61 = vld [vmem:[#allocation10 + $0x258] sm:$0xff]  ;;  %v3385_v62 = vunpack.c.h.s8.bf16 %v3057_v52 }
 0x53e   :  { %4250 = vmatprep.subr.bf16.mxu0 %v3464_v63  ;;  %v3511_v63 = vunpack.c.h.s8.bf16 %v3119_v58  ;;  %v3528_v27 = vunpack.c.h.s8.bf16 %v3128_v61 }
 0x540   :  { %4208 = vmatpush1.bf16.msra.mxu1 %v3973_v7  ;;  %v3520_v7 = vunpack.c.l.s8.bf16 %v3128_v61  ;;  %v3089_v61 = vld [vmem:[#allocation10 + $0x120] sm:$0xff] }
 0x541   :  { %4251 = vmatpush1.bf16.msra.mxu0 %v3463_v21  ;;  %4209 = vmatprep.subr.bf16.mxu1 %v3982_v11  ;;  %v3127_v21 = vld [vmem:[#allocation10 + $0x250] sm:$0xff]  ;;  %v3393_v11 = vunpack.c.l.s8.bf16 %v3065_v6 }
 0x542   :  { %4252 = vmatprep.subr.bf16.mxu0 %v3472_v16  ;;  %v3519_v14 = vunpack.c.l.s8.bf16 %v3127_v21  ;;  %v3402_v16 = vunpack.c.h.s8.bf16 %v3066_v3 }
 0x544   :  { %4210 = vmatpush1.bf16.msra.mxu1 %v3981_v36  ;;  %v3074_v36 = vld [vmem:[#allocation10 + $0xa8] sm:$0xff] }
 0x545   :  { %4253 = vmatpush1.bf16.msra.mxu0 %v3471_v39  ;;  %4211 = vmatprep.subr.bf16.mxu1 %v3990_v15  ;;  %v3136_v39 = vld [vmem:[#allocation10 + $0x298] sm:$0xff]  ;;  %v3401_v15 = vunpack.c.h.s8.bf16 %v3065_v6  ;;  %v3410_v44 = vunpack.c.l.s8.bf16 %v3074_v36 }
 0x546   :  { %4254 = vmatprep.subr.bf16.mxu0 %v3480_v48  ;;  %v3527_v48 = vunpack.c.h.s8.bf16 %v3127_v21  ;;  %v3544_v51 = vunpack.c.h.s8.bf16 %v3136_v39 }
 0x548   :  { %4212 = vmatpush1.bf16.msra.mxu1 %v3989_v45  ;;  %v3536_v45 = vunpack.c.l.s8.bf16 %v3136_v39  ;;  %v3097_v39 = vld [vmem:[#allocation10 + $0x160] sm:$0xff] }
 0x549   :  { %4255 = vmatpush1.bf16.msra.mxu0 %v3479_v35  ;;  %4213 = vmatprep.subr.bf16.mxu1 %v3998_v37  ;;  %v3135_v35 = vld [vmem:[#allocation10 + $0x290] sm:$0xff]  ;;  %v3409_v37 = vunpack.c.l.s8.bf16 %v3073_v46 }
 0x54a   :  { %4256 = vmatprep.subr.bf16.mxu0 %v3488_v43  ;;  %v3535_v38 = vunpack.c.l.s8.bf16 %v3135_v35  ;;  %v3418_v43 = vunpack.c.h.s8.bf16 %v3074_v36 }
 0x54c   :  { %4214 = vmatpush1.bf16.msra.mxu1 %v3997_v30  ;;  %v3082_v30 = vld [vmem:[#allocation10 + $0xe8] sm:$0xff] }
 0x54d   :  { %4257 = vmatpush1.bf16.msra.mxu0 %v3487_v47  ;;  %4215 = vmatprep.subr.bf16.mxu1 %v4006_v53  ;;  %v3144_v47 = vld [vmem:[#allocation10 + $0x2d8] sm:$0xff]  ;;  %v3417_v53 = vunpack.c.h.s8.bf16 %v3073_v46  ;;  %v3426_v31 = vunpack.c.l.s8.bf16 %v3082_v30 }
 0x54e   :  { %4258 = vmatprep.subr.bf16.mxu0 %v3496_v19  ;;  %v3543_v19 = vunpack.c.h.s8.bf16 %v3135_v35  ;;  %v3560_v58 = vunpack.c.h.s8.bf16 %v3144_v47 }
 0x550   :  { %4216 = vmatpush1.bf16.msra.mxu1 %v4005_v55  ;;  %v3552_v55 = vunpack.c.l.s8.bf16 %v3144_v47  ;;  %v3105_v47 = vld [vmem:[#allocation10 + $0x1a0] sm:$0xff] }
 0x551   :  { %4259 = vmatpush1.bf16.msra.mxu0 %v3495_v56  ;;  %4443 = vmatprep.subr.bf16.mxu1 %v3378_v57  ;;  %v3143_v56 = vld [vmem:[#allocation10 + $0x2d0] sm:$0xff]  ;;  %v3425_v57 = vunpack.c.l.s8.bf16 %v3081_v54 }
 0x552   :  { %4271 = vmatprep.subr.bf16.mxu0 %v3504_v1  ;;  %v3551_v52 = vunpack.c.l.s8.bf16 %v3143_v56  ;;  %v3434_v1 = vunpack.c.h.s8.bf16 %v3082_v30  ;;  %v3559_v3 = vunpack.c.h.s8.bf16 %v3143_v56 }
 0x553   :  { %4218 = vmatmul.mubr.bf16.vlgmr.msra.gmra.mrb[12].mxu1 %v7351_v9 }
 0x554   :  { %4261 = vmatmul.mubr.bf16.vlgmr.msra.gmra.mrb[16].mxu0 %v7267_v33  ;;  %4444 = vmatpush1.bf16.msra.mxu1 %v3377_v59  ;;  %v3090_v59 = vld [vmem:[#allocation10 + $0x128] sm:$0xff] }
 0x555   :  { %4272 = vmatpush1.bf16.msra.mxu0 %v3503_v2  ;;  %4303 = vmatprep.mubr.bf16.mxu0 %v7273_v41  ;;  %v3152_v2 = vld [vmem:[#allocation10 + $0x318] sm:$0xff] }
 0x556   :  { %4475 = vmatprep.mubr.bf16.mxu1 %v7271_v40  ;;  %4273 = vmatprep.subr.bf16.mxu0 %v3512_v28  ;;  %v3433_v28 = vunpack.c.h.s8.bf16 %v3081_v54  ;;  %v3576_v21 = vunpack.c.h.s8.bf16 %v3152_v2 }
 0x557   :  { %4445 = vmatprep.subr.bf16.mxu1 %v3386_v60  ;;  %v3442_v60 = vunpack.c.l.s8.bf16 %v3090_v59 }
 0x558   :  { %4446 = vmatpush1.bf16.msra.mxu1 %v3385_v62  ;;  %v3568_v62 = vunpack.c.l.s8.bf16 %v3152_v2  ;;  %v3113_v2 = vld [vmem:[#allocation10 + $0x1e0] sm:$0xff] }
 0x559   :  { %4274 = vmatpush1.bf16.msra.mxu0 %v3511_v63  ;;  %4447 = vmatprep.subr.bf16.mxu1 %v3394_v0  ;;  %v3151_v63 = vld [vmem:[#allocation10 + $0x310] sm:$0xff]  ;;  %v3441_v0 = vunpack.c.l.s8.bf16 %v3089_v61 }
 0x55a   :  { %4275 = vmatprep.subr.bf16.mxu0 %v3520_v7  ;;  %v3567_v6 = vunpack.c.l.s8.bf16 %v3151_v63  ;;  %v3450_v7 = vunpack.c.h.s8.bf16 %v3090_v59 }
 0x55c   :  { %4448 = vmatpush1.bf16.msra.mxu1 %v3393_v11  ;;  %v3098_v11 = vld [vmem:[#allocation10 + $0x168] sm:$0xff] }
 0x55d   :  { %4276 = vmatpush1.bf16.msra.mxu0 %v3519_v14  ;;  %4449 = vmatprep.subr.bf16.mxu1 %v3402_v16  ;;  %v3160_v14 = vld [vmem:[#allocation10 + $0x358] sm:$0xff]  ;;  %v3449_v16 = vunpack.c.h.s8.bf16 %v3089_v61  ;;  %v3458_v36 = vunpack.c.l.s8.bf16 %v3098_v11 }
 0x55e   :  { %4277 = vmatprep.subr.bf16.mxu0 %v3528_v27  ;;  %v3575_v27 = vunpack.c.h.s8.bf16 %v3151_v63  ;;  %v3592_v35 = vunpack.c.h.s8.bf16 %v3160_v14 }
 0x560   :  { %4450 = vmatpush1.bf16.msra.mxu1 %v3401_v15  ;;  %v3584_v15 = vunpack.c.l.s8.bf16 %v3160_v14  ;;  %v3121_v14 = vld [vmem:[#allocation10 + $0x220] sm:$0xff] }
 0x561   :  { %4278 = vmatpush1.bf16.msra.mxu0 %v3527_v48  ;;  %4451 = vmatprep.subr.bf16.mxu1 %v3410_v44  ;;  %v3159_v48 = vld [vmem:[#allocation10 + $0x350] sm:$0xff]  ;;  %v3457_v44 = vunpack.c.l.s8.bf16 %v3097_v39 }
 0x562   :  { %4279 = vmatprep.subr.bf16.mxu0 %v3536_v45  ;;  %v3583_v46 = vunpack.c.l.s8.bf16 %v3159_v48  ;;  %v3466_v45 = vunpack.c.h.s8.bf16 %v3098_v11 }
 0x564   :  { %4452 = vmatpush1.bf16.msra.mxu1 %v3409_v37  ;;  %v3106_v37 = vld [vmem:[#allocation10 + $0x1a8] sm:$0xff] }
 0x565   :  { %4280 = vmatpush1.bf16.msra.mxu0 %v3535_v38  ;;  %4453 = vmatprep.subr.bf16.mxu1 %v3418_v43  ;;  %v3168_v38 = vld [vmem:[#allocation10 + $0x398] sm:$0xff]  ;;  %v3465_v43 = vunpack.c.h.s8.bf16 %v3097_v39  ;;  %v3474_v30 = vunpack.c.l.s8.bf16 %v3106_v37 }
 0x566   :  { %4281 = vmatprep.subr.bf16.mxu0 %v3544_v51  ;;  %v3591_v51 = vunpack.c.h.s8.bf16 %v3159_v48  ;;  %v3608_v56 = vunpack.c.h.s8.bf16 %v3168_v38  ;;  %v3130_v48 = vld [vmem:[#allocation10 + $0x268] sm:$0xff] }
 0x568   :  { %4454 = vmatpush1.bf16.msra.mxu1 %v3417_v53  ;;  %v3600_v53 = vunpack.c.l.s8.bf16 %v3168_v38  ;;  %v3129_v38 = vld [vmem:[#allocation10 + $0x260] sm:$0xff] }
 0x569   :  { %4282 = vmatpush1.bf16.msra.mxu0 %v3543_v19  ;;  %4455 = vmatprep.subr.bf16.mxu1 %v3426_v31  ;;  %v3167_v19 = vld [vmem:[#allocation10 + $0x390] sm:$0xff]  ;;  %v3473_v31 = vunpack.c.l.s8.bf16 %v3105_v47 }
 0x56a   :  { %4283 = vmatprep.subr.bf16.mxu0 %v3552_v55  ;;  %v3599_v54 = vunpack.c.l.s8.bf16 %v3167_v19  ;;  %v3482_v55 = vunpack.c.h.s8.bf16 %v3106_v37  ;;  %v3522_v37 = vunpack.c.l.s8.bf16 %v3130_v48 }
 0x56c   :  { %4456 = vmatpush1.bf16.msra.mxu1 %v3425_v57  ;;  %v3114_v57 = vld [vmem:[#allocation10 + $0x1e8] sm:$0xff] }
 0x56d   :  { %4284 = vmatpush1.bf16.msra.mxu0 %v3551_v52  ;;  %4457 = vmatprep.subr.bf16.mxu1 %v3434_v1  ;;  %v3176_v52 = vld [vmem:[#allocation10 + $0x3d8] sm:$0xff]  ;;  %v3481_v1 = vunpack.c.h.s8.bf16 %v3105_v47  ;;  %v3490_v59 = vunpack.c.l.s8.bf16 %v3114_v57 }
 0x56e   :  { %4285 = vmatprep.subr.bf16.mxu0 %v3560_v58  ;;  %v3607_v58 = vunpack.c.h.s8.bf16 %v3167_v19  ;;  %v3624_v63 = vunpack.c.h.s8.bf16 %v3176_v52 }
 0x570   :  { %4458 = vmatpush1.bf16.msra.mxu1 %v3433_v28  ;;  %v3616_v28 = vunpack.c.l.s8.bf16 %v3176_v52  ;;  %v3137_v52 = vld [vmem:[#allocation10 + $0x2a0] sm:$0xff] }
 0x571   :  { %4286 = vmatpush1.bf16.msra.mxu0 %v3559_v3  ;;  %4459 = vmatprep.subr.bf16.mxu1 %v3442_v60  ;;  %v3175_v3 = vld [vmem:[#allocation10 + $0x3d0] sm:$0xff]  ;;  %v3489_v60 = vunpack.c.l.s8.bf16 %v3113_v2 }
 0x572   :  { %4287 = vmatprep.subr.bf16.mxu0 %v3568_v62  ;;  %v3615_v61 = vunpack.c.l.s8.bf16 %v3175_v3  ;;  %v3498_v62 = vunpack.c.h.s8.bf16 %v3114_v57 }
 0x574   :  { %4460 = vmatpush1.bf16.msra.mxu1 %v3441_v0  ;;  %v3122_v0 = vld [vmem:[#allocation10 + $0x228] sm:$0xff] }
 0x575   :  { %4288 = vmatpush1.bf16.msra.mxu0 %v3567_v6  ;;  %4461 = vmatprep.subr.bf16.mxu1 %v3450_v7  ;;  %v3184_v6 = vld [vmem:[#allocation10 + $0x418] sm:$0xff]  ;;  %v3497_v7 = vunpack.c.h.s8.bf16 %v3113_v2  ;;  %v3506_v11 = vunpack.c.l.s8.bf16 %v3122_v0 }
 0x576   :  { %4289 = vmatprep.subr.bf16.mxu0 %v3576_v21  ;;  %v3623_v21 = vunpack.c.h.s8.bf16 %v3175_v3 }
 0x578   :  { %4462 = vmatpush1.bf16.msra.mxu1 %v3449_v16  ;;  %v3632_v16 = vunpack.c.l.s8.bf16 %v3184_v6 }
 0x579   :  { %4290 = vmatpush1.bf16.msra.mxu0 %v3575_v27  ;;  %4463 = vmatprep.subr.bf16.mxu1 %v3458_v36  ;;  %v3183_v27 = vld [vmem:[#allocation10 + $0x410] sm:$0xff]  ;;  %v3505_v36 = vunpack.c.l.s8.bf16 %v3121_v14 }
 0x57a   :  { %4291 = vmatprep.subr.bf16.mxu0 %v3584_v15  ;;  %v3631_v39 = vunpack.c.l.s8.bf16 %v3183_v27  ;;  %v3640_v15 = vunpack.c.h.s8.bf16 %v3184_v6  ;;  %v3145_v6 = vld [vmem:[#allocation10 + $0x2e0] sm:$0xff] }
 0x57c   :  { %4464 = vmatpush1.bf16.msra.mxu1 %v3457_v44  ;;  %v3514_v44 = vunpack.c.h.s8.bf16 %v3122_v0 }
 0x57d   :  { %4292 = vmatpush1.bf16.msra.mxu0 %v3583_v46  ;;  %4465 = vmatprep.subr.bf16.mxu1 %v3466_v45  ;;  %v3192_v46 = vld [vmem:[#allocation10 + $0x458] sm:$0xff]  ;;  %v3513_v45 = vunpack.c.h.s8.bf16 %v3121_v14 }
 0x57e   :  { %4293 = vmatprep.subr.bf16.mxu0 %v3592_v35  ;;  %v3639_v35 = vunpack.c.h.s8.bf16 %v3183_v27  ;;  %v3656_v19 = vunpack.c.h.s8.bf16 %v3192_v46 }
 0x580   :  { %4466 = vmatpush1.bf16.msra.mxu1 %v3465_v43  ;;  %v3648_v43 = vunpack.c.l.s8.bf16 %v3192_v46  ;;  %v3153_v46 = vld [vmem:[#allocation10 + $0x320] sm:$0xff] }
 0x581   :  { %4294 = vmatpush1.bf16.msra.mxu0 %v3591_v51  ;;  %4467 = vmatprep.subr.bf16.mxu1 %v3474_v30  ;;  %v3191_v51 = vld [vmem:[#allocation10 + $0x450] sm:$0xff]  ;;  %v3521_v30 = vunpack.c.l.s8.bf16 %v3129_v38 }
 0x582   :  { %4295 = vmatprep.subr.bf16.mxu0 %v3600_v53  ;;  %v3647_v47 = vunpack.c.l.s8.bf16 %v3191_v51  ;;  %v3530_v53 = vunpack.c.h.s8.bf16 %v3130_v48 }
 0x584   :  { %4468 = vmatpush1.bf16.msra.mxu1 %v3473_v31  ;;  %v3138_v31 = vld [vmem:[#allocation10 + $0x2a8] sm:$0xff] }
 0x585   :  { %4296 = vmatpush1.bf16.msra.mxu0 %v3599_v54  ;;  %4469 = vmatprep.subr.bf16.mxu1 %v3482_v55  ;;  %v3200_v54 = vld [vmem:[#allocation10 + $0x498] sm:$0xff]  ;;  %v3529_v55 = vunpack.c.h.s8.bf16 %v3129_v38  ;;  %v3538_v57 = vunpack.c.l.s8.bf16 %v3138_v31 }
 0x586   :  { %4297 = vmatprep.subr.bf16.mxu0 %v3608_v56  ;;  %v3655_v56 = vunpack.c.h.s8.bf16 %v3191_v51  ;;  %v3672_v3 = vunpack.c.h.s8.bf16 %v3200_v54 }
 0x588   :  { %4470 = vmatpush1.bf16.msra.mxu1 %v3481_v1  ;;  %v3664_v1 = vunpack.c.l.s8.bf16 %v3200_v54  ;;  %v3161_v54 = vld [vmem:[#allocation10 + $0x360] sm:$0xff] }
 0x589   :  { %4298 = vmatpush1.bf16.msra.mxu0 %v3607_v58  ;;  %4471 = vmatprep.subr.bf16.mxu1 %v3490_v59  ;;  %v3199_v58 = vld [vmem:[#allocation10 + $0x490] sm:$0xff]  ;;  %v3537_v59 = vunpack.c.l.s8.bf16 %v3137_v52 }
 0x58a   :  { %4299 = vmatprep.subr.bf16.mxu0 %v3616_v28  ;;  %v3663_v2 = vunpack.c.l.s8.bf16 %v3199_v58  ;;  %v3546_v28 = vunpack.c.h.s8.bf16 %v3138_v31 }
 0x58c   :  { %4472 = vmatpush1.bf16.msra.mxu1 %v3489_v60  ;;  %v3146_v60 = vld [vmem:[#allocation10 + $0x2e8] sm:$0xff] }
 0x58d   :  { %4300 = vmatpush1.bf16.msra.mxu0 %v3615_v61  ;;  %4473 = vmatprep.subr.bf16.mxu1 %v3498_v62  ;;  %v3208_v61 = vld [vmem:[#allocation10 + $0x4d8] sm:$0xff]  ;;  %v3545_v62 = vunpack.c.h.s8.bf16 %v3137_v52  ;;  %v3554_v0 = vunpack.c.l.s8.bf16 %v3146_v60 }
 0x58e   :  { %4301 = vmatprep.subr.bf16.mxu0 %v3624_v63  ;;  %v3671_v63 = vunpack.c.h.s8.bf16 %v3199_v58  ;;  %v3688_v27 = vunpack.c.h.s8.bf16 %v3208_v61 }
 0x590   :  { %4474 = vmatpush1.bf16.msra.mxu1 %v3497_v7  ;;  %v3680_v7 = vunpack.c.l.s8.bf16 %v3208_v61  ;;  %v3169_v61 = vld [vmem:[#allocation10 + $0x3a0] sm:$0xff] }
 0x591   :  { %4302 = vmatpush1.bf16.msra.mxu0 %v3623_v21  ;;  %4486 = vmatprep.subr.bf16.mxu1 %v3506_v11  ;;  %v3207_v21 = vld [vmem:[#allocation10 + $0x4d0] sm:$0xff]  ;;  %v3553_v11 = vunpack.c.l.s8.bf16 %v3145_v6 }
 0x592   :  { %4314 = vmatprep.subr.bf16.mxu0 %v3632_v16  ;;  %v3679_v14 = vunpack.c.l.s8.bf16 %v3207_v21  ;;  %v3562_v16 = vunpack.c.h.s8.bf16 %v3146_v60  ;;  %v3687_v48 = vunpack.c.h.s8.bf16 %v3207_v21 }
 0x593   :  { %4476 = vmatmul.mubr.bf16.vlgmr.msra.gmra.mrb[16].mxu1 %v7267_v33 }
 0x594   :  { %4304 = vmatmul.mubr.bf16.vlgmr.msra.gmra.mrb[16].mxu0 %v7269_v34  ;;  %4487 = vmatpush1.bf16.msra.mxu1 %v3505_v36  ;;  %v3154_v36 = vld [vmem:[#allocation10 + $0x328] sm:$0xff] }
 0x595   :  { %4315 = vmatpush1.bf16.msra.mxu0 %v3631_v39  ;;  %4346 = vmatprep.mubr.bf16.mxu0 %v7315_v49  ;;  %v3216_v39 = vld [vmem:[#allocation10 + $0x518] sm:$0xff] }
 0x596   :  { %4518 = vmatprep.mubr.bf16.mxu1 %v7273_v41  ;;  %4316 = vmatprep.subr.bf16.mxu0 %v3640_v15  ;;  %v3561_v15 = vunpack.c.h.s8.bf16 %v3145_v6  ;;  %v3704_v51 = vunpack.c.h.s8.bf16 %v3216_v39 }
 0x597   :  { %4488 = vmatprep.subr.bf16.mxu1 %v3514_v44  ;;  %v3570_v44 = vunpack.c.l.s8.bf16 %v3154_v36 }
 0x598   :  { %4489 = vmatpush1.bf16.msra.mxu1 %v3513_v45  ;;  %v3696_v45 = vunpack.c.l.s8.bf16 %v3216_v39  ;;  %v3177_v39 = vld [vmem:[#allocation10 + $0x3e0] sm:$0xff] }
 0x599   :  { %4317 = vmatpush1.bf16.msra.mxu0 %v3639_v35  ;;  %4490 = vmatprep.subr.bf16.mxu1 %v3522_v37  ;;  %v3215_v35 = vld [vmem:[#allocation10 + $0x510] sm:$0xff]  ;;  %v3569_v37 = vunpack.c.l.s8.bf16 %v3153_v46 }
 0x59a   :  { %4318 = vmatprep.subr.bf16.mxu0 %v3648_v43  ;;  %v3695_v38 = vunpack.c.l.s8.bf16 %v3215_v35  ;;  %v3578_v43 = vunpack.c.h.s8.bf16 %v3154_v36 }
 0x59c   :  { %4491 = vmatpush1.bf16.msra.mxu1 %v3521_v30  ;;  %v3162_v30 = vld [vmem:[#allocation10 + $0x368] sm:$0xff] }
 0x59d   :  { %4319 = vmatpush1.bf16.msra.mxu0 %v3647_v47  ;;  %4492 = vmatprep.subr.bf16.mxu1 %v3530_v53  ;;  %v3224_v47 = vld [vmem:[#allocation10 + $0x558] sm:$0xff]  ;;  %v3577_v53 = vunpack.c.h.s8.bf16 %v3153_v46  ;;  %v3586_v31 = vunpack.c.l.s8.bf16 %v3162_v30 }
 0x59e   :  { %4320 = vmatprep.subr.bf16.mxu0 %v3656_v19  ;;  %v3703_v19 = vunpack.c.h.s8.bf16 %v3215_v35  ;;  %v3720_v58 = vunpack.c.h.s8.bf16 %v3224_v47 }
 0x5a0   :  { %4493 = vmatpush1.bf16.msra.mxu1 %v3529_v55  ;;  %v3712_v55 = vunpack.c.l.s8.bf16 %v3224_v47  ;;  %v3185_v47 = vld [vmem:[#allocation10 + $0x420] sm:$0xff] }
 0x5a1   :  { %4321 = vmatpush1.bf16.msra.mxu0 %v3655_v56  ;;  %4494 = vmatprep.subr.bf16.mxu1 %v3538_v57  ;;  %v3223_v56 = vld [vmem:[#allocation10 + $0x550] sm:$0xff]  ;;  %v3585_v57 = vunpack.c.l.s8.bf16 %v3161_v54 }
 0x5a2   :  { %4322 = vmatprep.subr.bf16.mxu0 %v3664_v1  ;;  %v3711_v52 = vunpack.c.l.s8.bf16 %v3223_v56  ;;  %v3594_v1 = vunpack.c.h.s8.bf16 %v3162_v30 }
 0x5a4   :  { %4495 = vmatpush1.bf16.msra.mxu1 %v3537_v59  ;;  %v3170_v59 = vld [vmem:[#allocation10 + $0x3a8] sm:$0xff] }
 0x5a5   :  { %4323 = vmatpush1.bf16.msra.mxu0 %v3663_v2  ;;  %4496 = vmatprep.subr.bf16.mxu1 %v3546_v28  ;;  %v3232_v2 = vld [vmem:[#allocation10 + $0x598] sm:$0xff]  ;;  %v3593_v28 = vunpack.c.h.s8.bf16 %v3161_v54  ;;  %v3602_v60 = vunpack.c.l.s8.bf16 %v3170_v59 }
 0x5a6   :  { %4324 = vmatprep.subr.bf16.mxu0 %v3672_v3  ;;  %v3719_v3 = vunpack.c.h.s8.bf16 %v3223_v56  ;;  %v3736_v21 = vunpack.c.h.s8.bf16 %v3232_v2  ;;  %v3194_v56 = vld [vmem:[#allocation10 + $0x468] sm:$0xff] }
 0x5a8   :  { %4497 = vmatpush1.bf16.msra.mxu1 %v3545_v62  ;;  %v3728_v62 = vunpack.c.l.s8.bf16 %v3232_v2  ;;  %v3193_v2 = vld [vmem:[#allocation10 + $0x460] sm:$0xff] }
 0x5a9   :  { %4325 = vmatpush1.bf16.msra.mxu0 %v3671_v63  ;;  %4498 = vmatprep.subr.bf16.mxu1 %v3554_v0  ;;  %v3231_v63 = vld [vmem:[#allocation10 + $0x590] sm:$0xff]  ;;  %v3601_v0 = vunpack.c.l.s8.bf16 %v3169_v61 }
 0x5aa   :  { %4326 = vmatprep.subr.bf16.mxu0 %v3680_v7  ;;  %v3727_v6 = vunpack.c.l.s8.bf16 %v3231_v63  ;;  %v3610_v7 = vunpack.c.h.s8.bf16 %v3170_v59  ;;  %v3650_v59 = vunpack.c.l.s8.bf16 %v3194_v56 }
 0x5ac   :  { %4499 = vmatpush1.bf16.msra.mxu1 %v3553_v11  ;;  %v3178_v11 = vld [vmem:[#allocation10 + $0x3e8] sm:$0xff] }
 0x5ad   :  { %4327 = vmatpush1.bf16.msra.mxu0 %v3679_v14  ;;  %4500 = vmatprep.subr.bf16.mxu1 %v3562_v16  ;;  %v3240_v14 = vld [vmem:[#allocation10 + $0x5d8] sm:$0xff]  ;;  %v3609_v16 = vunpack.c.h.s8.bf16 %v3169_v61  ;;  %v3618_v36 = vunpack.c.l.s8.bf16 %v3178_v11 }
 0x5ae   :  { %4328 = vmatprep.subr.bf16.mxu0 %v3688_v27  ;;  %v3735_v27 = vunpack.c.h.s8.bf16 %v3231_v63  ;;  %v3752_v35 = vunpack.c.h.s8.bf16 %v3240_v14 }
 0x5b0   :  { %4501 = vmatpush1.bf16.msra.mxu1 %v3561_v15  ;;  %v3744_v15 = vunpack.c.l.s8.bf16 %v3240_v14  ;;  %v3201_v14 = vld [vmem:[#allocation10 + $0x4a0] sm:$0xff] }
 0x5b1   :  { %4329 = vmatpush1.bf16.msra.mxu0 %v3687_v48  ;;  %4502 = vmatprep.subr.bf16.mxu1 %v3570_v44  ;;  %v3239_v48 = vld [vmem:[#allocation10 + $0x5d0] sm:$0xff]  ;;  %v3617_v44 = vunpack.c.l.s8.bf16 %v3177_v39 }
 0x5b2   :  { %4330 = vmatprep.subr.bf16.mxu0 %v3696_v45  ;;  %v3743_v46 = vunpack.c.l.s8.bf16 %v3239_v48  ;;  %v3626_v45 = vunpack.c.h.s8.bf16 %v3178_v11 }
 0x5b4   :  { %4503 = vmatpush1.bf16.msra.mxu1 %v3569_v37  ;;  %v3186_v37 = vld [vmem:[#allocation10 + $0x428] sm:$0xff] }
 0x5b5   :  { %4331 = vmatpush1.bf16.msra.mxu0 %v3695_v38  ;;  %4504 = vmatprep.subr.bf16.mxu1 %v3578_v43  ;;  %v3248_v38 = vld [vmem:[#allocation10 + $0x618] sm:$0xff]  ;;  %v3625_v43 = vunpack.c.h.s8.bf16 %v3177_v39  ;;  %v3634_v30 = vunpack.c.l.s8.bf16 %v3186_v37 }
 0x5b6   :  { %4332 = vmatprep.subr.bf16.mxu0 %v3704_v51  ;;  %v3751_v51 = vunpack.c.h.s8.bf16 %v3239_v48 }
 0x5b8   :  { %4505 = vmatpush1.bf16.msra.mxu1 %v3577_v53  ;;  %v3760_v53 = vunpack.c.l.s8.bf16 %v3248_v38 }
 0x5b9   :  { %4333 = vmatpush1.bf16.msra.mxu0 %v3703_v19  ;;  %4506 = vmatprep.subr.bf16.mxu1 %v3586_v31  ;;  %v3247_v19 = vld [vmem:[#allocation10 + $0x610] sm:$0xff]  ;;  %v3633_v31 = vunpack.c.l.s8.bf16 %v3185_v47 }
 0x5ba   :  { %4334 = vmatprep.subr.bf16.mxu0 %v3712_v55  ;;  %v3759_v54 = vunpack.c.l.s8.bf16 %v3247_v19  ;;  %v3768_v55 = vunpack.c.h.s8.bf16 %v3248_v38  ;;  %v3673_v38 = vunpack.c.h.s8.bf16 %v3201_v14 }
 0x5bc   :  { %4507 = vmatpush1.bf16.msra.mxu1 %v3585_v57  ;;  %v3642_v57 = vunpack.c.h.s8.bf16 %v3186_v37 }
 0x5bd   :  { %4335 = vmatpush1.bf16.msra.mxu0 %v3711_v52  ;;  %4508 = vmatprep.subr.bf16.mxu1 %v3594_v1  ;;  %v3256_v52 = vld [vmem:[#allocation10 + $0x658] sm:$0xff]  ;;  %v3641_v1 = vunpack.c.h.s8.bf16 %v3185_v47 }
 0x5be   :  { %4336 = vmatprep.subr.bf16.mxu0 %v3720_v58  ;;  %v3767_v58 = vunpack.c.h.s8.bf16 %v3247_v19  ;;  %v3784_v63 = vunpack.c.h.s8.bf16 %v3256_v52  ;;  %v3271_v19 = vld [vmem:[#allocation10 + $0x6d0] sm:$0xff] }
 0x5c0   :  { %4509 = vmatpush1.bf16.msra.mxu1 %v3593_v28  ;;  %v3776_v28 = vunpack.c.l.s8.bf16 %v3256_v52 }
 0x5c1   :  { %4337 = vmatpush1.bf16.msra.mxu0 %v3719_v3  ;;  %4510 = vmatprep.subr.bf16.mxu1 %v3602_v60  ;;  %v3255_v3 = vld [vmem:[#allocation10 + $0x650] sm:$0xff]  ;;  %v3649_v60 = vunpack.c.l.s8.bf16 %v3193_v2 }
 0x5c2   :  { %4338 = vmatprep.subr.bf16.mxu0 %v3728_v62  ;;  %v3775_v61 = vunpack.c.l.s8.bf16 %v3255_v3  ;;  %v3658_v62 = vunpack.c.h.s8.bf16 %v3194_v56 }
 0x5c4   :  { %4511 = vmatpush1.bf16.msra.mxu1 %v3601_v0  ;;  %v3202_v0 = vld [vmem:[#allocation10 + $0x4a8] sm:$0xff] }
 0x5c5   :  { %4339 = vmatpush1.bf16.msra.mxu0 %v3727_v6  ;;  %4512 = vmatprep.subr.bf16.mxu1 %v3610_v7  ;;  %v3264_v6 = vld [vmem:[#allocation10 + $0x698] sm:$0xff]  ;;  %v3657_v7 = vunpack.c.h.s8.bf16 %v3193_v2  ;;  %v3666_v11 = vunpack.c.l.s8.bf16 %v3202_v0 }
 0x5c6   :  { %4340 = vmatprep.subr.bf16.mxu0 %v3736_v21  ;;  %v3783_v21 = vunpack.c.h.s8.bf16 %v3255_v3  ;;  %v3800_v48 = vunpack.c.h.s8.bf16 %v3264_v6 }
 0x5c8   :  { %4513 = vmatpush1.bf16.msra.mxu1 %v3609_v16  ;;  %v3792_v16 = vunpack.c.l.s8.bf16 %v3264_v6  ;;  %v3280_v6 = vld [vmem:[#allocation10 + $0x718] sm:$0xff] }
 0x5c9   :  { %4341 = vmatpush1.bf16.msra.mxu0 %v3735_v27  ;;  %4514 = vmatprep.subr.bf16.mxu1 %v3618_v36  ;;  %v3263_v27 = vld [vmem:[#allocation10 + $0x690] sm:$0xff]  ;;  %v3665_v36 = vunpack.c.l.s8.bf16 %v3201_v14 }
 0x5ca   :  { %4342 = vmatprep.subr.bf16.mxu0 %v3744_v15  ;;  %v3791_v39 = vunpack.c.l.s8.bf16 %v3263_v27  ;;  %v3674_v15 = vunpack.c.h.s8.bf16 %v3202_v0 }
 0x5cc   :  { %4515 = vmatpush1.bf16.msra.mxu1 %v3617_v44  ;;  %v3210_v44 = vld [vmem:[#allocation10 + $0x4e8] sm:$0xff] }
 0x5cd   :  { %4343 = vmatpush1.bf16.msra.mxu0 %v3743_v46  ;;  %4516 = vmatprep.subr.bf16.mxu1 %v3626_v45  ;;  %v6488_v46 = vld [vmem:[#allocation7 + $0x8] sm:$0x3f]  ;;  %v3690_v3 = vunpack.c.h.s8.bf16 %v3210_v44 }
 0x5ce   :  { %4344 = vmatprep.subr.bf16.mxu0 %v3752_v35  ;;  %v2890_v45 = vrot.slane %v6488_v46, %v7292_v12  ;;  %v3272_v35 = vld [vmem:[#allocation10 + $0x6d8] sm:$0xff]  ;;  %v2894_v37 = vrot.slane %v6488_v46, %v7298_v17 }
 0x5d0   :  { %4517 = vmatpush1.bf16.msra.mxu1 %v3625_v43  ;;  %v3799_v43 = vunpack.c.h.s8.bf16 %v3263_v27 }
 0x5d1   :  { %4345 = vmatpush1.bf16.msra.mxu0 %v3751_v51  ;;  %4529 = vmatprep.subr.bf16.mxu1 %v3634_v30  ;;  %v3682_v51 = vunpack.c.l.s8.bf16 %v3210_v44  ;;  %v3209_v30 = vld [vmem:[#allocation10 + $0x4e0] sm:$0xff] }
 0x5d2   :  { %4357 = vmatprep.subr.bf16.mxu0 %v3760_v53  ;;  %v3808_v53 = vunpack.c.l.s8.bf16 %v3272_v35 }
 0x5d3   :  { %4519 = vmatmul.mubr.bf16.vlgmr.msra.gmra.mrb[16].mxu1 %v7269_v34 }
 0x5d4   :  { %4347 = vmatmul.mubr.bf16.vlgmr.msra.gmra.mrb[16].mxu0 %v7311_v42  ;;  %4530 = vmatpush1.bf16.msra.mxu1 %v3633_v31 }
 0x5d5   :  { %4358 = vmatpush1.bf16.msra.mxu0 %v3759_v54  ;;  %4389 = vmatprep.mubr.bf16.mxu0 %v7317_v50  ;;  %v6489_v54 = vld [vmem:[#allocation8 + $0x8] sm:$0x3f] }
 0x5d6   :  { %4561 = vmatprep.mubr.bf16.mxu1 %v7315_v49  ;;  %4359 = vmatprep.subr.bf16.mxu0 %v3768_v55  ;;  %v2992_v55 = vrot.slane %v6489_v54, %v7292_v12  ;;  %v2996_v52 = vrot.slane %v6489_v54, %v7298_v17 }
 0x5d7   :  { %4531 = vmatprep.subr.bf16.mxu1 %v3642_v57 }
 0x5d8   :  { %4532 = vmatpush1.bf16.msra.mxu1 %v3641_v1 }
 0x5d9   :  { %4360 = vmatpush1.bf16.msra.mxu0 %v3767_v58  ;;  %4533 = vmatprep.subr.bf16.mxu1 %v3650_v59  ;;  %v3681_v58 = vunpack.c.l.s8.bf16 %v3209_v30 }
 0x5da   :  { %4361 = vmatprep.subr.bf16.mxu0 %v3776_v28  ;;  %v3807_v28 = vunpack.c.l.s8.bf16 %v3271_v19 }
 0x5dc   :  { %4534 = vmatpush1.bf16.msra.mxu1 %v3649_v60 }
 0x5dd   :  { %4362 = vmatpush1.bf16.msra.mxu0 %v3775_v61  ;;  %4535 = vmatprep.subr.bf16.mxu1 %v3658_v62  ;;  %v3816_v61 = vunpack.c.h.s8.bf16 %v3272_v35  ;;  %v3218_v62 = vld [vmem:[#allocation10 + $0x528] sm:$0xff]  ;;  %v3832_v35 = vunpack.c.h.s8.bf16 %v3280_v6 }
 0x5de   :  { %4363 = vmatprep.subr.bf16.mxu0 %v3784_v63  ;;  %v3698_v27 = vunpack.c.l.s8.bf16 %v3218_v62 }
 0x5e0   :  { %4536 = vmatpush1.bf16.msra.mxu1 %v3657_v7 }
 0x5e1   :  { %4364 = vmatpush1.bf16.msra.mxu0 %v3783_v21  ;;  %4537 = vmatprep.subr.bf16.mxu1 %v3666_v11  ;;  %v3689_v11 = vunpack.c.h.s8.bf16 %v3209_v30 }
 0x5e2   :  { %4365 = vmatprep.subr.bf16.mxu0 %v3792_v16  ;;  %v3815_v16 = vunpack.c.h.s8.bf16 %v3271_v19  ;;  %v3287_v19 = vld [vmem:[#allocation10 + $0x750] sm:$0xff] }
 0x5e3   :  { %v3839_v54 = vunpack.c.l.s8.bf16 %v3287_v19 }
 0x5e4   :  { %4538 = vmatpush1.bf16.msra.mxu1 %v3665_v36  ;;  %v3217_v36 = vld [vmem:[#allocation10 + $0x520] sm:$0xff] }
 0x5e5   :  { %4366 = vmatpush1.bf16.msra.mxu0 %v3791_v39  ;;  %4539 = vmatprep.subr.bf16.mxu1 %v3674_v15  ;;  %v3824_v39 = vunpack.c.l.s8.bf16 %v3280_v6  ;;  %v3279_v15 = vld [vmem:[#allocation10 + $0x710] sm:$0xff]  ;;  %v3697_v44 = vunpack.c.l.s8.bf16 %v3217_v36 }
 0x5e6   :  { %v2826_v47 = vpop.f32.mrb[12].mxu0  ;;  %4367 = vmatprep.subr.bf16.mxu0 %v3800_v48  ;;  %v3823_v46 = vunpack.c.l.s8.bf16 %v3279_v15 }
 0x5e7   :  { %v2921_v31 = vmul.f32 %v2890_v45, %v2826_v47  ;;  %v2828_v56 = vpop.f32.mrb[13].mxu0  ;;  %v3225_v47 = vld [vmem:[#allocation10 + $0x560] sm:$0xff] }
 0x5e8   :  { %v2922_v57 = vmul.f32 %v2894_v37, %v2828_v56  ;;  %v2830_v1 = vpop.f32.mrb[14].mxu0  ;;  %4540 = vmatpush1.bf16.msra.mxu1 %v3673_v38  ;;  %v3288_v38 = vld [vmem:[#allocation10 + $0x758] sm:$0xff] }
 0x5e9   :  { %v2935_v59 = vmul.f32 %v2890_v45, %v2830_v1  ;;  %4368 = vmatpush1.bf16.msra.mxu0 %v3799_v43  ;;  %v2832_v2 = vpop.f32.mrb[15].mxu0  ;;  %4541 = vmatprep.subr.bf16.mxu1 %v3682_v51  ;;  %v7379_v63 = vadd.f32 %v2992_v55, %v2921_v31  ;;  %v3706_v45 = vunpack.c.h.s8.bf16 %v3218_v62  ;;  %v3705_v43 = vunpack.c.h.s8.bf16 %v3217_v36 }
 0x5ea   :  { %v2936_v60 = vmul.f32 %v2894_v37, %v2832_v2  ;;  %4369 = vmatprep.subr.bf16.mxu0 %v3808_v53  ;;  %v7383_v7 = vadd.f32 %v2996_v52, %v2922_v57  ;;  %v3226_v37 = vld [vmem:[#allocation10 + $0x568] sm:$0xff]  ;;  %v3831_v51 = vunpack.c.h.s8.bf16 %v3279_v15  ;;  %v3840_v53 = vunpack.c.l.s8.bf16 %v3288_v38  ;;  %v3233_v2 = vld [vmem:[#allocation10 + $0x5a0] sm:$0xff] }
 0x5eb   :  { %v7381_v0 = vadd.f32 %v2992_v55, %v2935_v59  ;;  %v3714_v30 = vunpack.c.l.s8.bf16 %v3226_v37  ;;  %v3713_v31 = vunpack.c.l.s8.bf16 %v3225_v47  ;;  %v3722_v55 = vunpack.c.h.s8.bf16 %v3226_v37  ;;  %v3234_v57 = vld [vmem:[#allocation10 + $0x5a8] sm:$0xff]  ;;  %v3241_v15 = vld [vmem:[#allocation10 + $0x5e0] sm:$0xff] }
 0x5ec   :  { %v7385_v21 = vadd.f32 %v2996_v52, %v2936_v60  ;;  %4542 = vmatpush1.bf16.msra.mxu1 %v3681_v58  ;;  %v3848_v56 = vunpack.c.h.s8.bf16 %v3288_v38  ;;  %v3296_v52 = vld [vmem:[#allocation10 + $0x798] sm:$0xff]  ;;  %v3721_v1 = vunpack.c.h.s8.bf16 %v3225_v47  ;;  %v3847_v58 = vunpack.c.h.s8.bf16 %v3287_v19  ;;  %v3249_v19 = vld [vmem:[#allocation10 + $0x620] sm:$0xff] }
 0x5ed   :  { %v3051_v14 = vpack.c.bf16 %v7381_v0, %v7379_v63  ;;  %4370 = vmatpush1.bf16.msra.mxu0 %v3807_v28  ;;  %4543 = vmatprep.subr.bf16.mxu1 %v3690_v3  ;;  %v3730_v59 = vunpack.c.l.s8.bf16 %v3234_v57  ;;  %v3856_v28 = vunpack.c.l.s8.bf16 %v3296_v52  ;;  %v3295_v3 = vld [vmem:[#allocation10 + $0x790] sm:$0xff]  ;;  %v3729_v60 = vunpack.c.l.s8.bf16 %v3233_v2 }
 0x5ee   :  { %4371 = vmatprep.subr.bf16.mxu0 %v3816_v61  ;;  %v3052_v48 = vpack.c.bf16 %v7385_v21, %v7383_v7  ;;  %v3855_v61 = vunpack.c.l.s8.bf16 %v3295_v3  ;;  %v3738_v62 = vunpack.c.h.s8.bf16 %v3234_v57  ;;  %v3864_v6 = vunpack.c.h.s8.bf16 %v3296_v52  ;;  %v3258_v52 = vld [vmem:[#allocation10 + $0x668] sm:$0xff]  ;;  %v3195_v63 = vld [vmem:[#allocation10 + $0x470] sm:$0xff] }
 0x5ef   :  { %v3863_v36 = vunpack.c.h.s8.bf16 %v3295_v3  ;;  %v3257_v3 = vld [vmem:[#allocation10 + $0x660] sm:$0xff]  ;;  %v6437_v7 = vld [vmem:[#allocation14 + $0x98] sm:$0xff]  }
 0x5f0   :  { %4544 = vmatpush1.bf16.msra.mxu1 %v3689_v11  ;;  %v3242_v11 = vld [vmem:[#allocation10 + $0x5e8] sm:$0xff] }
 0x5f1   :  { %4372 = vmatpush1.bf16.msra.mxu0 %v3815_v16  ;;  %4545 = vmatprep.subr.bf16.mxu1 %v3698_v27  ;;  %v3304_v16 = vld [vmem:[#allocation10 + $0x7d8] sm:$0xff]  ;;  %v3737_v27 = vunpack.c.h.s8.bf16 %v3233_v2  ;;  %v3754_v37 = vunpack.c.h.s8.bf16 %v3242_v11 }
 0x5f2   :  { %4373 = vmatprep.subr.bf16.mxu0 %v3824_v39  ;;  %v3746_v39 = vunpack.c.l.s8.bf16 %v3242_v11  ;;  %v3880_v38 = vunpack.c.h.s8.bf16 %v3304_v16  ;;  %v3786_v11 = vunpack.c.h.s8.bf16 %v3258_v52 }
 0x5f4   :  { %4546 = vmatpush1.bf16.msra.mxu1 %v3697_v44  ;;  %v3872_v44 = vunpack.c.l.s8.bf16 %v3304_v16 }
 0x5f5   :  { %4374 = vmatpush1.bf16.msra.mxu0 %v3823_v46  ;;  %4547 = vmatprep.subr.bf16.mxu1 %v3706_v45  ;;  %v3303_v46 = vld [vmem:[#allocation10 + $0x7d0] sm:$0xff]  ;;  %v3745_v45 = vunpack.c.l.s8.bf16 %v3241_v15 }
 0x5f6   :  { %4375 = vmatprep.subr.bf16.mxu0 %v3832_v35  ;;  %v3871_v35 = vunpack.c.l.s8.bf16 %v3303_v46  ;;  %v3879_v47 = vunpack.c.h.s8.bf16 %v3303_v46  ;;  %v3265_v46 = vld [vmem:[#allocation10 + $0x6a0] sm:$0xff] }
 0x5f8   :  { %4548 = vmatpush1.bf16.msra.mxu1 %v3705_v43  ;;  %v3250_v43 = vld [vmem:[#allocation10 + $0x628] sm:$0xff] }
 0x5f9   :  { %4376 = vmatpush1.bf16.msra.mxu0 %v3831_v51  ;;  %4549 = vmatprep.subr.bf16.mxu1 %v3714_v30  ;;  %v3312_v51 = vld [vmem:[#allocation10 + $0x818] sm:$0xff]  ;;  %v3753_v30 = vunpack.c.h.s8.bf16 %v3241_v15 }
 0x5fa   :  { %4377 = vmatprep.subr.bf16.mxu0 %v3840_v53  ;;  %v3762_v53 = vunpack.c.l.s8.bf16 %v3250_v43  ;;  %v3896_v57 = vunpack.c.h.s8.bf16 %v3312_v51 }
 0x5fc   :  { %4550 = vmatpush1.bf16.msra.mxu1 %v3713_v31  ;;  %v3888_v31 = vunpack.c.l.s8.bf16 %v3312_v51 }
 0x5fd   :  { %4378 = vmatpush1.bf16.msra.mxu0 %v3839_v54  ;;  %4551 = vmatprep.subr.bf16.mxu1 %v3722_v55  ;;  %v3311_v54 = vld [vmem:[#allocation10 + $0x810] sm:$0xff]  ;;  %v3761_v55 = vunpack.c.l.s8.bf16 %v3249_v19 }
 0x5fe   :  { %4379 = vmatprep.subr.bf16.mxu0 %v3848_v56  ;;  %v3887_v56 = vunpack.c.l.s8.bf16 %v3311_v54  ;;  %v3895_v2 = vunpack.c.h.s8.bf16 %v3311_v54 }
 0x600   :  { %4552 = vmatpush1.bf16.msra.mxu1 %v3721_v1  ;;  %v3770_v1 = vunpack.c.h.s8.bf16 %v3250_v43 }
 0x601   :  { %4380 = vmatpush1.bf16.msra.mxu0 %v3847_v58  ;;  %4553 = vmatprep.subr.bf16.mxu1 %v3730_v59  ;;  %v3320_v58 = vld [vmem:[#allocation10 + $0x858] sm:$0xff]  ;;  %v3769_v59 = vunpack.c.h.s8.bf16 %v3249_v19 }
 0x602   :  { %4381 = vmatprep.subr.bf16.mxu0 %v3856_v28  ;;  %v3778_v28 = vunpack.c.l.s8.bf16 %v3258_v52  ;;  %v3912_v16 = vunpack.c.h.s8.bf16 %v3320_v58  ;;  %v3336_v19 = vld [vmem:[#allocation10 + $0x8d8] sm:$0xff]  ;;  %v3273_v52 = vld [vmem:[#allocation10 + $0x6e0] sm:$0xff] }
 0x604   :  { %4554 = vmatpush1.bf16.msra.mxu1 %v3729_v60  ;;  %v3904_v60 = vunpack.c.l.s8.bf16 %v3320_v58  ;;  %v3936_v58 = vunpack.c.l.s8.bf16 %v3336_v19 }
 0x605   :  { %4382 = vmatpush1.bf16.msra.mxu0 %v3855_v61  ;;  %4555 = vmatprep.subr.bf16.mxu1 %v3738_v62  ;;  %v3319_v61 = vld [vmem:[#allocation10 + $0x850] sm:$0xff]  ;;  %v3777_v62 = vunpack.c.l.s8.bf16 %v3257_v3 }
 0x606   :  { %4383 = vmatprep.subr.bf16.mxu0 %v3864_v6  ;;  %v3903_v6 = vunpack.c.l.s8.bf16 %v3319_v61  ;;  %v3911_v15 = vunpack.c.h.s8.bf16 %v3319_v61 }
 0x608   :  { %4556 = vmatpush1.bf16.msra.mxu1 %v3737_v27  ;;  %v3266_v27 = vld [vmem:[#allocation10 + $0x6a8] sm:$0xff] }
 0x609   :  { %4384 = vmatpush1.bf16.msra.mxu0 %v3863_v36  ;;  %4557 = vmatprep.subr.bf16.mxu1 %v3746_v39  ;;  %v3328_v36 = vld [vmem:[#allocation10 + $0x898] sm:$0xff]  ;;  %v3785_v39 = vunpack.c.h.s8.bf16 %v3257_v3  ;;  %v3802_v51 = vunpack.c.h.s8.bf16 %v3266_v27 }
 0x60a   :  { %4385 = vmatprep.subr.bf16.mxu0 %v3872_v44  ;;  %v3794_v44 = vunpack.c.l.s8.bf16 %v3266_v27 }
 0x60c   :  { %4558 = vmatpush1.bf16.msra.mxu1 %v3745_v45  ;;  %v3920_v45 = vunpack.c.l.s8.bf16 %v3328_v36 }
 0x60d   :  { %4386 = vmatpush1.bf16.msra.mxu0 %v3871_v35  ;;  %4559 = vmatprep.subr.bf16.mxu1 %v3754_v37  ;;  %v3327_v35 = vld [vmem:[#allocation10 + $0x890] sm:$0xff]  ;;  %v3793_v37 = vunpack.c.l.s8.bf16 %v3265_v46 }
 0x60e   :  { %4387 = vmatprep.subr.bf16.mxu0 %v3880_v38  ;;  %v4873_v38 = vld [vmem:[#allocation11] sm:$0xff]  ;;  %v3919_v43 = vunpack.c.l.s8.bf16 %v3327_v35 }
 0x60f   :  { %v4882_v54 = vrot.slane %v4873_v38, %v7254_v29 }
 0x610   :  { %4560 = vmatpush1.bf16.msra.mxu1 %v3753_v30  ;;  %v3928_v30 = vunpack.c.h.s8.bf16 %v3328_v36 }
 0x611   :  { %4388 = vmatpush1.bf16.msra.mxu0 %v3879_v47  ;;  %4572 = vmatprep.subr.bf16.mxu1 %v3762_v53  ;;  %v3274_v47 = vld [vmem:[#allocation10 + $0x6e8] sm:$0xff]  ;;  %v4878_v53 = vrot.slane %v4873_v38, %v7248_v25 }
 0x612   :  { %4400 = vmatprep.subr.bf16.mxu0 %v3888_v31  ;;  %v4931_v31 = vld [vmem:[#allocation13] sm:$0xff]  ;;  %v3818_v36 = vunpack.c.h.s8.bf16 %v3274_v47 }
 0x613   :  { %4562 = vmatmul.mubr.bf16.vlgmr.msra.gmra.mrb[16].mxu1 %v7311_v42  ;;  %v4940_v61 = vrot.slane %v4931_v31, %v7254_v29 }
 0x614   :  { %4390 = vmatmul.mubr.bf16.vlgmr.msra.gmra.mrb[16].mxu0 %v7313_v24  ;;  %4573 = vmatpush1.bf16.msra.mxu1 %v3761_v55  ;;  %v3801_v55 = vunpack.c.h.s8.bf16 %v3265_v46 }
 0x615   :  { %4401 = vmatpush1.bf16.msra.mxu0 %v3887_v56  ;;  %4432 = vmatprep.mubr.bf16.mxu0 %v7355_v22  ;;  %v3927_v56 = vunpack.c.h.s8.bf16 %v3327_v35  ;;  %v3344_v35 = vld [vmem:[#allocation10 + $0x918] sm:$0xff] }
 0x616   :  { %4604 = vmatprep.mubr.bf16.mxu1 %v7317_v50  ;;  %4402 = vmatprep.subr.bf16.mxu0 %v3896_v57  ;;  %v3810_v57 = vunpack.c.l.s8.bf16 %v3274_v47 }
 0x617   :  { %4574 = vmatprep.subr.bf16.mxu1 %v3770_v1 }
 0x618   :  { %4575 = vmatpush1.bf16.msra.mxu1 %v3769_v59  ;;  %v3335_v59 = vld [vmem:[#allocation10 + $0x8d0] sm:$0xff] }
 0x619   :  { %4403 = vmatpush1.bf16.msra.mxu0 %v3895_v2  ;;  %4576 = vmatprep.subr.bf16.mxu1 %v3778_v28  ;;  %v4936_v28 = vrot.slane %v4931_v31, %v7248_v25  ;;  %v3935_v27 = vunpack.c.l.s8.bf16 %v3335_v59  ;;  %v3343_v31 = vld [vmem:[#allocation10 + $0x910] sm:$0xff] }
 0x61a   :  { %4404 = vmatprep.subr.bf16.mxu0 %v3904_v60 }
 0x61c   :  { %4577 = vmatpush1.bf16.msra.mxu1 %v3777_v62 }
 0x61d   :  { %4405 = vmatpush1.bf16.msra.mxu0 %v3903_v6  ;;  %4578 = vmatprep.subr.bf16.mxu1 %v3786_v11  ;;  %v3809_v6 = vunpack.c.l.s8.bf16 %v3273_v52 }
 0x61e   :  { %4406 = vmatprep.subr.bf16.mxu0 %v3912_v16 }
 0x620   :  { %4579 = vmatpush1.bf16.msra.mxu1 %v3785_v39 }
 0x621   :  { %4407 = vmatpush1.bf16.msra.mxu0 %v3911_v15  ;;  %4580 = vmatprep.subr.bf16.mxu1 %v3794_v44  ;;  %v3944_v15 = vunpack.c.h.s8.bf16 %v3336_v19  ;;  %v3282_v44 = vld [vmem:[#allocation10 + $0x728] sm:$0xff]  ;;  %v3952_v19 = vunpack.c.l.s8.bf16 %v3344_v35 }
 0x622   :  { %4408 = vmatprep.subr.bf16.mxu0 %v3920_v45  ;;  %v3826_v47 = vunpack.c.l.s8.bf16 %v3282_v44 }
 0x624   :  { %4581 = vmatpush1.bf16.msra.mxu1 %v3793_v37 }
 0x625   :  { %4409 = vmatpush1.bf16.msra.mxu0 %v3919_v43  ;;  %4582 = vmatprep.subr.bf16.mxu1 %v3802_v51  ;;  %v3817_v43 = vunpack.c.h.s8.bf16 %v3273_v52  ;;  %v3960_v52 = vunpack.c.h.s8.bf16 %v3344_v35  ;;  %v3297_v35 = vld [vmem:[#allocation10 + $0x7a0] sm:$0xff] }
 0x626   :  { %v4219_v1 = vpop.f32.mrb[12].mxu1  ;;  %4410 = vmatprep.subr.bf16.mxu0 %v3928_v30  ;;  %v3943_v30 = vunpack.c.h.s8.bf16 %v3335_v59 }
 0x627   :  { %v4915_v2 = vmul.f32 %v4878_v53, %v4219_v1  ;;  %v4221_v3 = vpop.f32.mrb[13].mxu1  ;;  %v3290_v1 = vld [vmem:[#allocation10 + $0x768] sm:$0xff] }
 0x628   :  { %v4916_v60 = vmul.f32 %v4882_v54, %v4221_v3  ;;  %v4223_v62 = vpop.f32.mrb[14].mxu1  ;;  %4583 = vmatpush1.bf16.msra.mxu1 %v3801_v55  ;;  %v3289_v3 = vld [vmem:[#allocation10 + $0x760] sm:$0xff] }
 0x629   :  { %v4923_v11 = vmul.f32 %v4878_v53, %v4223_v62  ;;  %4411 = vmatpush1.bf16.msra.mxu0 %v3927_v56  ;;  %v4225_v16 = vpop.f32.mrb[15].mxu1  ;;  %4584 = vmatprep.subr.bf16.mxu1 %v3810_v57  ;;  %v7399_v46 = vadd.f32 %v4936_v28, %v4915_v2  ;;  %v3281_v53 = vld [vmem:[#allocation10 + $0x720] sm:$0xff]  ;;  %v3951_v56 = vunpack.c.l.s8.bf16 %v3343_v31  ;;  %v3834_v57 = vunpack.c.h.s8.bf16 %v3282_v44 }
 0x62a   :  { %v4924_v39 = vmul.f32 %v4882_v54, %v4225_v16  ;;  %4412 = vmatprep.subr.bf16.mxu0 %v3936_v58  ;;  %v7403_v37 = vadd.f32 %v4940_v61, %v4916_v60  ;;  %v3825_v55 = vunpack.c.l.s8.bf16 %v3281_v53  ;;  %v3352_v58 = vld [vmem:[#allocation10 + $0x958] sm:$0xff]  ;;  %v3833_v59 = vunpack.c.h.s8.bf16 %v3281_v53 }
 0x62b   :  { %v7401_v45 = vadd.f32 %v4936_v28, %v4923_v11  ;;  %v3959_v2 = vunpack.c.h.s8.bf16 %v3343_v31  ;;  %v3842_v28 = vunpack.c.l.s8.bf16 %v3290_v1  ;;  %v3968_v60 = vunpack.c.l.s8.bf16 %v3352_v58 }
 0x62c   :  { %v7405_v38 = vadd.f32 %v4940_v61, %v4924_v39  ;;  %4585 = vmatpush1.bf16.msra.mxu1 %v3809_v6  ;;  %v3351_v61 = vld [vmem:[#allocation10 + $0x950] sm:$0xff]  ;;  %v3841_v62 = vunpack.c.l.s8.bf16 %v3289_v3  ;;  %v3850_v11 = vunpack.c.h.s8.bf16 %v3290_v1  ;;  %v3976_v16 = vunpack.c.h.s8.bf16 %v3352_v58  ;;  %v3305_v58 = vld [vmem:[#allocation10 + $0x7e0] sm:$0xff] }
 0x62d   :  { %v5334_v51 = vpack.c.bf16 %v7401_v45, %v7399_v46  ;;  %4413 = vmatpush1.bf16.msra.mxu0 %v3935_v27  ;;  %4586 = vmatprep.subr.bf16.mxu1 %v3818_v36  ;;  %v3967_v6 = vunpack.c.l.s8.bf16 %v3351_v61  ;;  %v3298_v27 = vld [vmem:[#allocation10 + $0x7a8] sm:$0xff]  ;;  %v3360_v36 = vld [vmem:[#allocation10 + $0x998] sm:$0xff]  ;;  %v3849_v39 = vunpack.c.h.s8.bf16 %v3289_v3 }
 0x62e   :  { %4414 = vmatprep.subr.bf16.mxu0 %v3944_v15  ;;  %v5335_v54 = vpack.c.bf16 %v7405_v38, %v7403_v37  ;;  %v3975_v15 = vunpack.c.h.s8.bf16 %v3351_v61  ;;  %v3858_v44 = vunpack.c.l.s8.bf16 %v3298_v27  ;;  %v3992_v31 = vunpack.c.h.s8.bf16 %v3360_v36 }
 0x62f   :  { %v3659_v37 = vunpack.c.h.s8.bf16 %v3195_v63 }
 0x630   :  { %4587 = vmatpush1.bf16.msra.mxu1 %v3817_v43  ;;  %v3984_v43 = vunpack.c.l.s8.bf16 %v3360_v36  ;;  %v3313_v36 = vld [vmem:[#allocation10 + $0x820] sm:$0xff] }
 0x631   :  { %4415 = vmatpush1.bf16.msra.mxu0 %v3943_v30  ;;  %4588 = vmatprep.subr.bf16.mxu1 %v3826_v47  ;;  %v3359_v30 = vld [vmem:[#allocation10 + $0x990] sm:$0xff]  ;;  %v3857_v47 = vunpack.c.l.s8.bf16 %v3297_v35 }
 0x632   :  { %4416 = vmatprep.subr.bf16.mxu0 %v3952_v19  ;;  %v3983_v53 = vunpack.c.l.s8.bf16 %v3359_v30  ;;  %v3866_v19 = vunpack.c.h.s8.bf16 %v3298_v27 }
 0x634   :  { %4589 = vmatpush1.bf16.msra.mxu1 %v3825_v55  ;;  %v3306_v55 = vld [vmem:[#allocation10 + $0x7e8] sm:$0xff] }
 0x635   :  { %4417 = vmatpush1.bf16.msra.mxu0 %v3951_v56  ;;  %4590 = vmatprep.subr.bf16.mxu1 %v3834_v57  ;;  %v3368_v56 = vld [vmem:[#allocation10 + $0x9d8] sm:$0xff]  ;;  %v3865_v57 = vunpack.c.h.s8.bf16 %v3297_v35  ;;  %v3874_v1 = vunpack.c.l.s8.bf16 %v3306_v55 }
 0x636   :  { %4418 = vmatprep.subr.bf16.mxu0 %v3960_v52  ;;  %v3991_v52 = vunpack.c.h.s8.bf16 %v3359_v30  ;;  %v4008_v61 = vunpack.c.h.s8.bf16 %v3368_v56  ;;  %v3322_v30 = vld [vmem:[#allocation10 + $0x868] sm:$0xff] }
 0x638   :  { %4591 = vmatpush1.bf16.msra.mxu1 %v3833_v59  ;;  %v4000_v59 = vunpack.c.l.s8.bf16 %v3368_v56  ;;  %v3321_v56 = vld [vmem:[#allocation10 + $0x860] sm:$0xff] }
 0x639   :  { %4419 = vmatpush1.bf16.msra.mxu0 %v3959_v2  ;;  %4592 = vmatprep.subr.bf16.mxu1 %v3842_v28  ;;  %v3367_v2 = vld [vmem:[#allocation10 + $0x9d0] sm:$0xff]  ;;  %v3873_v28 = vunpack.c.l.s8.bf16 %v3305_v58 }
 0x63a   :  { %4420 = vmatprep.subr.bf16.mxu0 %v3968_v60  ;;  %v3999_v3 = vunpack.c.l.s8.bf16 %v3367_v2  ;;  %v3882_v60 = vunpack.c.h.s8.bf16 %v3306_v55  ;;  %v3906_v55 = vunpack.c.l.s8.bf16 %v3322_v30 }
 0x63c   :  { %4593 = vmatpush1.bf16.msra.mxu1 %v3841_v62  ;;  %v3314_v62 = vld [vmem:[#allocation10 + $0x828] sm:$0xff] }
 0x63d   :  { %4421 = vmatpush1.bf16.msra.mxu0 %v3967_v6  ;;  %4594 = vmatprep.subr.bf16.mxu1 %v3850_v11  ;;  %v3060_v6 = vld [vmem:[#allocation10 + $0x38] sm:$0xff]  ;;  %v3881_v11 = vunpack.c.h.s8.bf16 %v3305_v58  ;;  %v3890_v27 = vunpack.c.l.s8.bf16 %v3314_v62 }
 0x63e   :  { %4422 = vmatprep.subr.bf16.mxu0 %v3976_v16  ;;  %v4007_v16 = vunpack.c.h.s8.bf16 %v3367_v2 }
 0x640   :  { %4595 = vmatpush1.bf16.msra.mxu1 %v3849_v39  ;;  %v3380_v39 = vunpack.c.l.s8.bf16 %v3060_v6 }
 0x641   :  { %4423 = vmatpush1.bf16.msra.mxu0 %v3975_v15  ;;  %4596 = vmatprep.subr.bf16.mxu1 %v3858_v44  ;;  %v3059_v15 = vld [vmem:[#allocation10 + $0x30] sm:$0xff]  ;;  %v3889_v44 = vunpack.c.l.s8.bf16 %v3313_v36 }
 0x642   :  { %4424 = vmatprep.subr.bf16.mxu0 %v3984_v43  ;;  %v3379_v35 = vunpack.c.l.s8.bf16 %v3059_v15  ;;  %v3898_v43 = vunpack.c.h.s8.bf16 %v3314_v62  ;;  %v3329_v62 = vld [vmem:[#allocation10 + $0x8a0] sm:$0xff] }
 0x644   :  { %4597 = vmatpush1.bf16.msra.mxu1 %v3857_v47  ;;  %v3388_v47 = vunpack.c.h.s8.bf16 %v3060_v6 }
 0x645   :  { %4425 = vmatpush1.bf16.msra.mxu0 %v3983_v53  ;;  %4598 = vmatprep.subr.bf16.mxu1 %v3866_v19  ;;  %v3068_v53 = vld [vmem:[#allocation10 + $0x78] sm:$0xff]  ;;  %v3897_v19 = vunpack.c.h.s8.bf16 %v3313_v36 }
 0x646   :  { %4426 = vmatprep.subr.bf16.mxu0 %v3992_v31  ;;  %v3387_v31 = vunpack.c.h.s8.bf16 %v3059_v15  ;;  %v3404_v2 = vunpack.c.h.s8.bf16 %v3068_v53  ;;  %v3338_v15 = vld [vmem:[#allocation10 + $0x8e8] sm:$0xff] }
 0x648   :  { %4599 = vmatpush1.bf16.msra.mxu1 %v3865_v57  ;;  %v3396_v57 = vunpack.c.l.s8.bf16 %v3068_v53 }
 0x649   :  { %4427 = vmatpush1.bf16.msra.mxu0 %v3991_v52  ;;  %4600 = vmatprep.subr.bf16.mxu1 %v3874_v1  ;;  %v3067_v52 = vld [vmem:[#allocation10 + $0x70] sm:$0xff]  ;;  %v3905_v1 = vunpack.c.l.s8.bf16 %v3321_v56 }
 0x64a   :  { %4428 = vmatprep.subr.bf16.mxu0 %v4000_v59  ;;  %v3395_v58 = vunpack.c.l.s8.bf16 %v3067_v52  ;;  %v3914_v59 = vunpack.c.h.s8.bf16 %v3322_v30  ;;  %v3938_v30 = vunpack.c.l.s8.bf16 %v3338_v15 }
 0x64c   :  { %4601 = vmatpush1.bf16.msra.mxu1 %v3873_v28  ;;  %v3330_v28 = vld [vmem:[#allocation10 + $0x8a8] sm:$0xff] }
 0x64d   :  { %4429 = vmatpush1.bf16.msra.mxu0 %v3999_v3  ;;  %4602 = vmatprep.subr.bf16.mxu1 %v3882_v60  ;;  %v3076_v3 = vld [vmem:[#allocation10 + $0xb8] sm:$0xff]  ;;  %v3913_v60 = vunpack.c.h.s8.bf16 %v3321_v56  ;;  %v3930_v36 = vunpack.c.h.s8.bf16 %v3330_v28  ;;  %v3946_v56 = vunpack.c.h.s8.bf16 %v3338_v15  ;;  %v3353_v15 = vld [vmem:[#allocation10 + $0x960] sm:$0xff] }
 0x64e   :  { %4430 = vmatprep.subr.bf16.mxu0 %v4008_v61  ;;  %v3403_v61 = vunpack.c.h.s8.bf16 %v3067_v52  ;;  %v3412_v6 = vunpack.c.l.s8.bf16 %v3076_v3  ;;  %v3346_v52 = vld [vmem:[#allocation10 + $0x928] sm:$0xff] }
 0x650   :  { %4603 = vmatpush1.bf16.msra.mxu1 %v3881_v11  ;;  %v3075_v11 = vld [vmem:[#allocation10 + $0xb0] sm:$0xff] }
 0x651   :  { %4431 = vmatpush1.bf16.msra.mxu0 %v4007_v16  ;;  %4615 = vmatprep.subr.bf16.mxu1 %v3890_v27  ;;  %v3921_v16 = vunpack.c.l.s8.bf16 %v3329_v62  ;;  %v3411_v27 = vunpack.c.l.s8.bf16 %v3075_v11 }
 0x652   :  { %4658 = vmatprep.subr.bf16.mxu0 %v3380_v39  ;;  %v3420_v39 = vunpack.c.h.s8.bf16 %v3076_v3 }
 0x653   :  { %4605 = vmatmul.mubr.bf16.vlgmr.msra.gmra.mrb[16].mxu1 %v7313_v24 }
 0x654   :  { %4433 = vmatmul.mubr.bf16.vlgmr.msra.gmra.mrb[16].mxu0 %v7351_v9  ;;  %4616 = vmatpush1.bf16.msra.mxu1 %v3889_v44  ;;  %v3084_v44 = vld [vmem:[#allocation10 + $0xf8] sm:$0xff] }
 0x655   :  { %4647 = vmatprep.mubr.bf16.mxu1 %v7355_v22  ;;  %4659 = vmatpush1.bf16.msra.mxu0 %v3379_v35  ;;  %v3929_v35 = vunpack.c.h.s8.bf16 %v3329_v62  ;;  %v3428_v53 = vunpack.c.l.s8.bf16 %v3084_v44  ;;  %v3962_v62 = vunpack.c.h.s8.bf16 %v3346_v52 }
 0x656   :  { %4690 = vmatprep.mubr.bf16.mxu0 %v7271_v40  ;;  %4617 = vmatprep.subr.bf16.mxu1 %v3898_v43  ;;  %v3922_v40 = vunpack.c.l.s8.bf16 %v3330_v28  ;;  %v3419_v43 = vunpack.c.h.s8.bf16 %v3075_v11  ;;  %v3345_v28 = vld [vmem:[#allocation10 + $0x920] sm:$0xff]  ;;  %v3354_v11 = vld [vmem:[#allocation10 + $0x968] sm:$0xff] }
 0x657   :  { %4660 = vmatprep.subr.bf16.mxu0 %v3388_v47  ;;  %v3337_v47 = vld [vmem:[#allocation10 + $0x8e0] sm:$0xff] }
 0x658   :  { %4618 = vmatpush1.bf16.msra.mxu1 %v3897_v19  ;;  %v3083_v19 = vld [vmem:[#allocation10 + $0xf0] sm:$0xff] }
 0x659   :  { %4661 = vmatpush1.bf16.msra.mxu0 %v3387_v31  ;;  %4619 = vmatprep.subr.bf16.mxu1 %v3906_v55  ;;  %v3937_v31 = vunpack.c.l.s8.bf16 %v3337_v47  ;;  %v3427_v55 = vunpack.c.l.s8.bf16 %v3083_v19 }
 0x65a   :  { %4662 = vmatprep.subr.bf16.mxu0 %v3396_v57  ;;  %v3436_v57 = vunpack.c.h.s8.bf16 %v3084_v44 }
 0x65c   :  { %4620 = vmatpush1.bf16.msra.mxu1 %v3905_v1  ;;  %v3092_v1 = vld [vmem:[#allocation10 + $0x138] sm:$0xff] }
 0x65d   :  { %4663 = vmatpush1.bf16.msra.mxu0 %v3395_v58  ;;  %4621 = vmatprep.subr.bf16.mxu1 %v3914_v59  ;;  %v3945_v58 = vunpack.c.h.s8.bf16 %v3337_v47  ;;  %v3435_v59 = vunpack.c.h.s8.bf16 %v3083_v19  ;;  %v3444_v3 = vunpack.c.l.s8.bf16 %v3092_v1  ;;  %v3978_v47 = vunpack.c.h.s8.bf16 %v3354_v11  ;;  %v3362_v19 = vld [vmem:[#allocation10 + $0x9a8] sm:$0xff] }
 0x65e   :  { %4664 = vmatprep.subr.bf16.mxu0 %v3404_v2  ;;  %v3954_v2 = vunpack.c.l.s8.bf16 %v3346_v52  ;;  %v3361_v52 = vld [vmem:[#allocation10 + $0x9a0] sm:$0xff] }
 0x660   :  { %4622 = vmatpush1.bf16.msra.mxu1 %v3913_v60  ;;  %v3091_v60 = vld [vmem:[#allocation10 + $0x130] sm:$0xff] }
 0x661   :  { %4665 = vmatpush1.bf16.msra.mxu0 %v3403_v61  ;;  %4623 = vmatprep.subr.bf16.mxu1 %v3922_v40  ;;  %v3953_v61 = vunpack.c.l.s8.bf16 %v3345_v28  ;;  %v3443_v40 = vunpack.c.l.s8.bf16 %v3091_v60 }
 0x662   :  { %4666 = vmatprep.subr.bf16.mxu0 %v3412_v6  ;;  %v3452_v6 = vunpack.c.h.s8.bf16 %v3092_v1 }
 0x664   :  { %4624 = vmatpush1.bf16.msra.mxu1 %v3921_v16  ;;  %v3100_v16 = vld [vmem:[#allocation10 + $0x178] sm:$0xff] }
 0x665   :  { %4667 = vmatpush1.bf16.msra.mxu0 %v3411_v27  ;;  %4625 = vmatprep.subr.bf16.mxu1 %v3930_v36  ;;  %v3961_v27 = vunpack.c.h.s8.bf16 %v3345_v28  ;;  %v3451_v36 = vunpack.c.h.s8.bf16 %v3091_v60  ;;  %v3460_v44 = vunpack.c.l.s8.bf16 %v3100_v16  ;;  %v3994_v28 = vunpack.c.h.s8.bf16 %v3362_v19  ;;  %v3370_v60 = vld [vmem:[#allocation10 + $0x9e8] sm:$0xff] }
 0x666   :  { %4668 = vmatprep.subr.bf16.mxu0 %v3420_v39  ;;  %v3970_v39 = vunpack.c.l.s8.bf16 %v3354_v11  ;;  %v3369_v11 = vld [vmem:[#allocation10 + $0x9e0] sm:$0xff] }
 0x668   :  { %4626 = vmatpush1.bf16.msra.mxu1 %v3929_v35  ;;  %v3099_v35 = vld [vmem:[#allocation10 + $0x170] sm:$0xff] }
 0x669   :  { %4669 = vmatpush1.bf16.msra.mxu0 %v3419_v43  ;;  %4627 = vmatprep.subr.bf16.mxu1 %v3938_v30  ;;  %v3969_v43 = vunpack.c.l.s8.bf16 %v3353_v15  ;;  %v3459_v30 = vunpack.c.l.s8.bf16 %v3099_v35 }
 0x66a   :  { %4670 = vmatprep.subr.bf16.mxu0 %v3428_v53  ;;  %v3468_v53 = vunpack.c.h.s8.bf16 %v3100_v16 }
 0x66c   :  { %4628 = vmatpush1.bf16.msra.mxu1 %v3937_v31  ;;  %v3108_v31 = vld [vmem:[#allocation10 + $0x1b8] sm:$0xff] }
 0x66d   :  { %4671 = vmatpush1.bf16.msra.mxu0 %v3427_v55  ;;  %4629 = vmatprep.subr.bf16.mxu1 %v3946_v56  ;;  %v3977_v55 = vunpack.c.h.s8.bf16 %v3353_v15  ;;  %v3467_v56 = vunpack.c.h.s8.bf16 %v3099_v35  ;;  %v3476_v1 = vunpack.c.l.s8.bf16 %v3108_v31  ;;  %v4010_v15 = vunpack.c.h.s8.bf16 %v3370_v60  ;;  %v3124_v35 = vld [vmem:[#allocation10 + $0x238] sm:$0xff] }
 0x66e   :  { %4672 = vmatprep.subr.bf16.mxu0 %v3436_v57  ;;  %v3986_v57 = vunpack.c.l.s8.bf16 %v3362_v19  ;;  %v3123_v19 = vld [vmem:[#allocation10 + $0x230] sm:$0xff] }
 0x670   :  { %4630 = vmatpush1.bf16.msra.mxu1 %v3945_v58  ;;  %v3107_v58 = vld [vmem:[#allocation10 + $0x1b0] sm:$0xff] }
 0x671   :  { %4673 = vmatpush1.bf16.msra.mxu0 %v3435_v59  ;;  %4631 = vmatprep.subr.bf16.mxu1 %v3954_v2  ;;  %v3985_v59 = vunpack.c.l.s8.bf16 %v3361_v52  ;;  %v3475_v2 = vunpack.c.l.s8.bf16 %v3107_v58 }
 0x672   :  { %4674 = vmatprep.subr.bf16.mxu0 %v3444_v3  ;;  %v3484_v3 = vunpack.c.h.s8.bf16 %v3108_v31  ;;  %v6415_v31 = vld [vmem:[#allocation14] sm:$0xff]  }
 0x674   :  { %4632 = vmatpush1.bf16.msra.mxu1 %v3953_v61  ;;  %v3116_v61 = vld [vmem:[#allocation10 + $0x1f8] sm:$0xff] }
 0x675   :  { %4675 = vmatpush1.bf16.msra.mxu0 %v3443_v40  ;;  %4633 = vmatprep.subr.bf16.mxu1 %v3962_v62  ;;  %v3993_v40 = vunpack.c.h.s8.bf16 %v3361_v52  ;;  %v3483_v62 = vunpack.c.h.s8.bf16 %v3107_v58  ;;  %v3492_v16 = vunpack.c.l.s8.bf16 %v3116_v61  ;;  %v3132_v52 = vld [vmem:[#allocation10 + $0x278] sm:$0xff]  ;;  %v3515_v58 = vunpack.c.h.s8.bf16 %v3123_v19 }
 0x676   :  { %4676 = vmatprep.subr.bf16.mxu0 %v3452_v6  ;;  %v4002_v6 = vunpack.c.l.s8.bf16 %v3370_v60  ;;  %v6420_v60 = vld [vmem:[#allocation14 + $0x58] sm:$0xff]  }
 0x678   :  { %4634 = vmatpush1.bf16.msra.mxu1 %v3961_v27  ;;  %v3115_v27 = vld [vmem:[#allocation10 + $0x1f0] sm:$0xff] }
 0x679   :  { %4677 = vmatpush1.bf16.msra.mxu0 %v3451_v36  ;;  %4635 = vmatprep.subr.bf16.mxu1 %v3970_v39  ;;  %v4001_v36 = vunpack.c.l.s8.bf16 %v3369_v11  ;;  %v3491_v39 = vunpack.c.l.s8.bf16 %v3115_v27 }
 0x67a   :  { %4678 = vmatprep.subr.bf16.mxu0 %v3460_v44  ;;  %v3500_v44 = vunpack.c.h.s8.bf16 %v3116_v61  ;;  %v3532_v61 = vunpack.c.h.s8.bf16 %v3132_v52 }
 0x67c   :  { %4636 = vmatpush1.bf16.msra.mxu1 %v3969_v43  ;;  %v4009_v43 = vunpack.c.h.s8.bf16 %v3369_v11 }
 0x67d   :  { %4679 = vmatpush1.bf16.msra.mxu0 %v3459_v30  ;;  %4637 = vmatprep.subr.bf16.mxu1 %v3978_v47  ;;  %v3499_v30 = vunpack.c.h.s8.bf16 %v3115_v27  ;;  %v6414_v47 = vld [vmem:[#allocation14 + $0x40] sm:$0xff]  }
 0x67e   :  { %4680 = vmatprep.subr.bf16.mxu0 %v3468_v53  ;;  %v3508_v53 = vunpack.c.l.s8.bf16 %v3124_v35 }
 0x680   :  { %4638 = vmatpush1.bf16.msra.mxu1 %v3977_v55  ;;  %v3507_v55 = vunpack.c.l.s8.bf16 %v3123_v19 }
 0x681   :  { %4681 = vmatpush1.bf16.msra.mxu0 %v3467_v56  ;;  %4639 = vmatprep.subr.bf16.mxu1 %v3986_v57  ;;  %v3516_v56 = vunpack.c.h.s8.bf16 %v3124_v35  ;;  %v6416_v57 = vld [vmem:[#allocation14 + $0x48] sm:$0xff]  }
 0x682   :  { %4682 = vmatprep.subr.bf16.mxu0 %v3476_v1  ;;  %v6417_v1 = vld [vmem:[#allocation14 + $0x8] sm:$0xff]  }
 0x684   :  { %4640 = vmatpush1.bf16.msra.mxu1 %v3985_v59  ;;  %v6418_v59 = vld [vmem:[#allocation14 + $0x50] sm:$0xff]  }
 0x685   :  { %4683 = vmatpush1.bf16.msra.mxu0 %v3475_v2  ;;  %4641 = vmatprep.subr.bf16.mxu1 %v3994_v28  ;;  %v3524_v2 = vunpack.c.l.s8.bf16 %v3132_v52  ;;  %v3131_v28 = vld [vmem:[#allocation10 + $0x270] sm:$0xff] }
 0x686   :  { %4684 = vmatprep.subr.bf16.mxu0 %v3484_v3  ;;  %v6419_v3 = vld [vmem:[#allocation14 + $0x10] sm:$0xff]  }
 0x688   :  { %4642 = vmatpush1.bf16.msra.mxu1 %v3993_v40  ;;  %v3140_v40 = vld [vmem:[#allocation10 + $0x2b8] sm:$0xff] }
 0x689   :  { %4685 = vmatpush1.bf16.msra.mxu0 %v3483_v62  ;;  %4643 = vmatprep.subr.bf16.mxu1 %v4002_v6  ;;  %v3531_v62 = vunpack.c.h.s8.bf16 %v3131_v28  ;;  %v3540_v8 = vunpack.c.l.s8.bf16 %v3140_v40  ;;  %v6423_v6 = vld [vmem:[#allocation14 + $0x20] sm:$0xff]   ;;  %v3548_v27 = vunpack.c.h.s8.bf16 %v3140_v40 }
 0x68a   :  { %4686 = vmatprep.subr.bf16.mxu0 %v3492_v16  ;;  %v6424_v16 = vld [vmem:[#allocation14 + $0x68] sm:$0xff]  }
 0x68c   :  { %4644 = vmatpush1.bf16.msra.mxu1 %v4001_v36  ;;  %v3148_v36 = vld [vmem:[#allocation10 + $0x2f8] sm:$0xff] }
 0x68d   :  { %4687 = vmatpush1.bf16.msra.mxu0 %v3491_v39  ;;  %4645 = vmatprep.subr.bf16.mxu1 %v4010_v15  ;;  %v6425_v39 = vld [vmem:[#allocation14 + $0x28] sm:$0xff]   ;;  %v3556_v35 = vunpack.c.l.s8.bf16 %v3148_v36  ;;  %v3564_v19 = vunpack.c.h.s8.bf16 %v3148_v36 }
 0x68e   :  { %4688 = vmatprep.subr.bf16.mxu0 %v3500_v44  ;;  %v6426_v44 = vld [vmem:[#allocation14 + $0x70] sm:$0xff]   ;;  %v3180_v36 = vld [vmem:[#allocation10 + $0x3f8] sm:$0xff] }
 0x690   :  { %4646 = vmatpush1.bf16.msra.mxu1 %v4009_v43  ;;  %v3147_v43 = vld [vmem:[#allocation10 + $0x2f0] sm:$0xff] }
 0x691   :  { %4689 = vmatpush1.bf16.msra.mxu0 %v3499_v30  ;;  %6160 = vmatprep.subr.bf16.mxu1 %v6414_v47  ;;  %v6427_v30 = vld [vmem:[#allocation14 + $0x30] sm:$0xff]   ;;  %v3555_v47 = vunpack.c.l.s8.bf16 %v3147_v43 }
 0x692   :  { %4701 = vmatprep.subr.bf16.mxu0 %v3508_v53  ;;  %v6428_v53 = vld [vmem:[#allocation14 + $0x78] sm:$0xff]  }
 0x693   :  { %4648 = vmatmul.mubr.bf16.vlgmr.msra.gmra.mrb[16].mxu1 %v7351_v9 }
 0x694   :  { %4691 = vmatmul.mubr.bf16.vlgmr.msra.gmra.mrb[20].mxu0 %v7267_v33  ;;  %6161 = vmatpush3.bf16.msra.mxu1 %v6415_v31  ;;  %v3523_v33 = vunpack.c.l.s8.bf16 %v3131_v28  ;;  %v3156_v31 = vld [vmem:[#allocation10 + $0x338] sm:$0xff] }
 0x695   :  { %4702 = vmatpush1.bf16.msra.mxu0 %v3507_v55  ;;  %4733 = vmatprep.mubr.bf16.mxu0 %v7273_v41  ;;  %v6421_v41 = vld [vmem:[#allocation14 + $0x18] sm:$0xff]   ;;  %v3572_v52 = vunpack.c.l.s8.bf16 %v3156_v31  ;;  %v3580_v28 = vunpack.c.h.s8.bf16 %v3156_v31  ;;  %v5343_v31 = vld [vmem:[#allocation17 + $0x8] sm:$0xff] }
 0x696   :  { %5284 = vmatprep.mubr.bf16.mxu1 %v3050_v23  ;;  %4703 = vmatprep.subr.bf16.mxu0 %v3516_v56  ;;  %v3139_v23 = vld [vmem:[#allocation10 + $0x2b0] sm:$0xff]  ;;  %v6429_v55 = vld [vmem:[#allocation14 + $0x38] sm:$0xff]   ;;  %v3563_v56 = vunpack.c.h.s8.bf16 %v3147_v43 }
 0x697   :  { %6162 = vmatprep.subr.bf16.mxu1 %v6416_v57  ;;  %v3539_v11 = vunpack.c.l.s8.bf16 %v3139_v23  ;;  %v3547_v15 = vunpack.c.h.s8.bf16 %v3139_v23  ;;  %v6430_v57 = vld [vmem:[#allocation14 + $0xc0] sm:$0xff]  }
 0x698   :  { %6163 = vmatpush3.bf16.msra.mxu1 %v6417_v1  ;;  %v3155_v1 = vld [vmem:[#allocation10 + $0x330] sm:$0xff] }
 0x699   :  { %4704 = vmatpush1.bf16.msra.mxu0 %v3515_v58  ;;  %6164 = vmatprep.subr.bf16.mxu1 %v6418_v59  ;;  %v6431_v58 = vld [vmem:[#allocation14 + $0x80] sm:$0xff]   ;;  %v3571_v59 = vunpack.c.l.s8.bf16 %v3155_v1 }
 0x69a   :  { %4705 = vmatprep.subr.bf16.mxu0 %v3524_v2  ;;  %v6432_v2 = vld [vmem:[#allocation14 + $0xc8] sm:$0xff]   ;;  %v3171_v23 = vld [vmem:[#allocation10 + $0x3b0] sm:$0xff] }
 0x69b   :  { %v3179_v43 = vld [vmem:[#allocation10 + $0x3f0] sm:$0xff] }
 0x69c   :  { %6165 = vmatpush3.bf16.msra.mxu1 %v6419_v3  ;;  %v3164_v3 = vld [vmem:[#allocation10 + $0x378] sm:$0xff] }
 0x69d   :  { %4706 = vmatpush1.bf16.msra.mxu0 %v3523_v33  ;;  %6166 = vmatprep.subr.bf16.mxu1 %v6420_v60  ;;  %v6433_v33 = vld [vmem:[#allocation14 + $0x88] sm:$0xff]   ;;  %v3579_v60 = vunpack.c.h.s8.bf16 %v3155_v1  ;;  %v3588_v40 = vunpack.c.l.s8.bf16 %v3164_v3 }
 0x69e   :  { %4707 = vmatprep.subr.bf16.mxu0 %v3532_v61  ;;  %v6434_v61 = vld [vmem:[#allocation14 + $0xd0] sm:$0xff]   ;;  %v5342_v1 = vld [vmem:[#allocation17] sm:$0xff] }
 0x6a0   :  { %6167 = vmatpush3.bf16.msra.mxu1 %v6421_v41  ;;  %v3163_v41 = vld [vmem:[#allocation10 + $0x370] sm:$0xff] }
 0x6a1   :  { %4708 = vmatpush1.bf16.msra.mxu0 %v3531_v62  ;;  %6168 = vmatprep.subr.bf16.mxu1 %v6422_v5  ;;  %v6435_v62 = vld [vmem:[#allocation14 + $0x90] sm:$0xff]   ;;  %v3587_v10 = vunpack.c.l.s8.bf16 %v3163_v41  ;;  %v3172_v5 = vld [vmem:[#allocation10 + $0x3b8] sm:$0xff]  ;;  %v3595_v21 = vunpack.c.h.s8.bf16 %v3163_v41 }
 0x6a2   :  { %4709 = vmatprep.subr.bf16.mxu0 %v3540_v8  ;;  %v3604_v8 = vunpack.c.l.s8.bf16 %v3172_v5 }
 0x6a4   :  { %6169 = vmatpush3.bf16.msra.mxu1 %v6423_v6  ;;  %v6439_v6 = vld [vmem:[#allocation14 + $0xa0] sm:$0xff]  }
 0x6a5   :  { %4710 = vmatpush1.bf16.msra.mxu0 %v3539_v11  ;;  %6170 = vmatprep.subr.bf16.mxu1 %v6424_v16  ;;  %v3603_v11 = vunpack.c.l.s8.bf16 %v3171_v23  ;;  %v6440_v16 = vld [vmem:[#allocation14 + $0xe8] sm:$0xff]  }
 0x6a6   :  { %4711 = vmatprep.subr.bf16.mxu0 %v3548_v27  ;;  %v3612_v27 = vunpack.c.h.s8.bf16 %v3172_v5  ;;  %v3204_v5 = vld [vmem:[#allocation10 + $0x4b8] sm:$0xff] }
 0x6a8   :  { %6171 = vmatpush3.bf16.msra.mxu1 %v6425_v39  ;;  %v6441_v39 = vld [vmem:[#allocation14 + $0xa8] sm:$0xff]  }
 0x6a9   :  { %4712 = vmatpush1.bf16.msra.mxu0 %v3547_v15  ;;  %6172 = vmatprep.subr.bf16.mxu1 %v6426_v44  ;;  %v3611_v15 = vunpack.c.h.s8.bf16 %v3171_v23  ;;  %v6442_v44 = vld [vmem:[#allocation14 + $0xf0] sm:$0xff]  }
 0x6aa   :  { %4713 = vmatprep.subr.bf16.mxu0 %v3556_v35  ;;  %v3620_v35 = vunpack.c.l.s8.bf16 %v3180_v36 }
 0x6ac   :  { %6173 = vmatpush3.bf16.msra.mxu1 %v6427_v30  ;;  %v6443_v30 = vld [vmem:[#allocation14 + $0xb0] sm:$0xff]  }
 0x6ad   :  { %4714 = vmatpush1.bf16.msra.mxu0 %v3555_v47  ;;  %6174 = vmatprep.subr.bf16.mxu1 %v6428_v53  ;;  %v3619_v47 = vunpack.c.l.s8.bf16 %v3179_v43  ;;  %v6444_v53 = vld [vmem:[#allocation14 + $0xf8] sm:$0xff]  }
 0x6ae   :  { %4715 = vmatprep.subr.bf16.mxu0 %v3564_v19  ;;  %v3628_v19 = vunpack.c.h.s8.bf16 %v3180_v36 }
 0x6b0   :  { %6175 = vmatpush3.bf16.msra.mxu1 %v6429_v55  ;;  %v3188_v55 = vld [vmem:[#allocation10 + $0x438] sm:$0xff] }
 0x6b1   :  { %4716 = vmatpush1.bf16.msra.mxu0 %v3563_v56  ;;  %6182 = vmatprep.subr.bf16.mxu1 %v6430_v57  ;;  %v6445_v56 = vld [vmem:[#allocation14 + $0xb8] sm:$0xff]   ;;  %v3627_v57 = vunpack.c.h.s8.bf16 %v3179_v43  ;;  %v3211_v43 = vld [vmem:[#allocation10 + $0x4f0] sm:$0xff] }
 0x6b2   :  { %4717 = vmatprep.subr.bf16.mxu0 %v3572_v52  ;;  %v5407_v52 = vunpack.c.l.s8.bf16 %v5343_v31 }
 0x6b3   :  { %5285 = vmatmul.mubr.bf16.vlgmr.msra.gmra.mrb[20].mxu1 %v3049_v20  ;;  %v3596_v20 = vunpack.c.h.s8.bf16 %v3164_v3  ;;  %v3644_v3 = vunpack.c.h.s8.bf16 %v3188_v55 }
 0x6b4   :  { %6183 = vmatpush3.bf16.msra.mxu1 %v6431_v58  ;;  %5325 = vmatprep.mubr.bf16.mxu1 %v3052_v48  ;;  %v6438_v48 = vld [vmem:[#allocation14 + $0xe0] sm:$0xff]   ;;  %v3636_v58 = vunpack.c.l.s8.bf16 %v3188_v55  ;;  %v3220_v55 = vld [vmem:[#allocation10 + $0x538] sm:$0xff] }
 0x6b5   :  { %4718 = vmatpush1.bf16.msra.mxu0 %v3571_v59  ;;  %6184 = vmatprep.subr.bf16.mxu1 %v6432_v2  ;;  %v3187_v59 = vld [vmem:[#allocation10 + $0x430] sm:$0xff]  ;;  %v5406_v2 = vunpack.c.l.s8.bf16 %v5342_v1 }
 0x6b6   :  { %4719 = vmatprep.subr.bf16.mxu0 %v3580_v28  ;;  %v3635_v28 = vunpack.c.l.s8.bf16 %v3187_v59  ;;  %v3643_v41 = vunpack.c.h.s8.bf16 %v3187_v59  ;;  %v3219_v59 = vld [vmem:[#allocation10 + $0x530] sm:$0xff] }
 0x6b8   :  { %6185 = vmatpush3.bf16.msra.mxu1 %v6433_v33  ;;  %v5345_v33 = vld [vmem:[#allocation17 + $0x18] sm:$0xff] }
 0x6b9   :  { %4720 = vmatpush1.bf16.msra.mxu0 %v3579_v60  ;;  %6186 = vmatprep.subr.bf16.mxu1 %v6434_v61  ;;  %v5409_v60 = vunpack.c.h.s8.bf16 %v5343_v31  ;;  %v3196_v61 = vld [vmem:[#allocation10 + $0x478] sm:$0xff] }
 0x6ba   :  { %4721 = vmatprep.subr.bf16.mxu0 %v3588_v40  ;;  %v5408_v40 = vunpack.c.h.s8.bf16 %v5342_v1  ;;  %v5351_v31 = vld [vmem:[#allocation17 + $0x48] sm:$0xff]  ;;  %v5350_v1 = vld [vmem:[#allocation17 + $0x40] sm:$0xff] }
 0x6bc   :  { %6187 = vmatpush3.bf16.msra.mxu1 %v6435_v62  ;;  %v5411_v62 = vunpack.c.l.s8.bf16 %v5345_v33 }
 0x6bd   :  { %4722 = vmatpush1.bf16.msra.mxu0 %v3587_v10  ;;  %6188 = vmatprep.subr.bf16.mxu1 %v6436_v4  ;;  %v5344_v10 = vld [vmem:[#allocation17 + $0x10] sm:$0xff]  ;;  %v3652_v4 = vunpack.c.l.s8.bf16 %v3196_v61 }
 0x6be   :  { %4723 = vmatprep.subr.bf16.mxu0 %v3596_v20  ;;  %v5410_v0 = vunpack.c.l.s8.bf16 %v5344_v10  ;;  %v3660_v20 = vunpack.c.h.s8.bf16 %v3196_v61  ;;  %v3228_v61 = vld [vmem:[#allocation10 + $0x578] sm:$0xff] }
 0x6c0   :  { %6189 = vmatpush3.bf16.msra.mxu1 %v6437_v7  ;;  %v5412_v7 = vunpack.c.h.s8.bf16 %v5344_v10  ;;  %v5352_v10 = vld [vmem:[#allocation17 + $0x50] sm:$0xff] }
 0x6c1   :  { %4724 = vmatpush1.bf16.msra.mxu0 %v3595_v21  ;;  %6190 = vmatprep.subr.bf16.mxu1 %v6438_v48  ;;  %v3668_v21 = vunpack.c.l.s8.bf16 %v3204_v5  ;;  %v3203_v48 = vld [vmem:[#allocation10 + $0x4b0] sm:$0xff] }
 0x6c2   :  { %4725 = vmatprep.subr.bf16.mxu0 %v3604_v8  ;;  %v3667_v23 = vunpack.c.l.s8.bf16 %v3203_v48 }
 0x6c4   :  { %6191 = vmatpush3.bf16.msra.mxu1 %v6439_v6 }
 0x6c5   :  { %4726 = vmatpush1.bf16.msra.mxu0 %v3603_v11  ;;  %6192 = vmatprep.subr.bf16.mxu1 %v6440_v16  ;;  %v3676_v11 = vunpack.c.h.s8.bf16 %v3204_v5  ;;  %v5349_v16 = vld [vmem:[#allocation17 + $0x38] sm:$0xff]  ;;  %v3236_v5 = vld [vmem:[#allocation10 + $0x5b8] sm:$0xff] }
 0x6c6   :  { %4727 = vmatprep.subr.bf16.mxu0 %v3612_v27  ;;  %v3212_v27 = vld [vmem:[#allocation10 + $0x4f8] sm:$0xff] }
 0x6c8   :  { %6193 = vmatpush3.bf16.msra.mxu1 %v6441_v39  ;;  %v3675_v39 = vunpack.c.h.s8.bf16 %v3203_v48  ;;  %v3235_v48 = vld [vmem:[#allocation10 + $0x5b0] sm:$0xff] }
 0x6c9   :  { %4728 = vmatpush1.bf16.msra.mxu0 %v3611_v15  ;;  %6194 = vmatprep.subr.bf16.mxu1 %v6442_v44  ;;  %v5419_v15 = vunpack.c.l.s8.bf16 %v5349_v16  ;;  %v5348_v44 = vld [vmem:[#allocation17 + $0x30] sm:$0xff] }
 0x6ca   :  { %4729 = vmatprep.subr.bf16.mxu0 %v3620_v35  ;;  %v3684_v35 = vunpack.c.l.s8.bf16 %v3212_v27 }
 0x6cc   :  { %6195 = vmatpush3.bf16.msra.mxu1 %v6443_v30  ;;  %v5418_v30 = vunpack.c.l.s8.bf16 %v5348_v44 }
 0x6cd   :  { %4730 = vmatpush1.bf16.msra.mxu0 %v3619_v47  ;;  %6196 = vmatprep.subr.bf16.mxu1 %v6444_v53  ;;  %v3683_v47 = vunpack.c.l.s8.bf16 %v3211_v43  ;;  %v5421_v53 = vunpack.c.h.s8.bf16 %v5349_v16  ;;  %v5357_v16 = vld [vmem:[#allocation17 + $0x78] sm:$0xff] }
 0x6ce   :  { %4731 = vmatprep.subr.bf16.mxu0 %v3628_v19  ;;  %v3692_v19 = vunpack.c.h.s8.bf16 %v3212_v27  ;;  %v3244_v27 = vld [vmem:[#allocation10 + $0x5f8] sm:$0xff] }
 0x6d0   :  { %6197 = vmatpush3.bf16.msra.mxu1 %v6445_v56  ;;  %v5420_v56 = vunpack.c.h.s8.bf16 %v5348_v44  ;;  %v5356_v44 = vld [vmem:[#allocation17 + $0x70] sm:$0xff] }
 0x6d1   :  { %4732 = vmatpush1.bf16.msra.mxu0 %v3627_v57  ;;  %5534 = vmatprep.subr.bf16.mxu1 %v5407_v52  ;;  %v3691_v57 = vunpack.c.h.s8.bf16 %v3211_v43  ;;  %v5423_v52 = vunpack.c.l.s8.bf16 %v5351_v31  ;;  %v3243_v43 = vld [vmem:[#allocation10 + $0x5f0] sm:$0xff] }
 0x6d2   :  { %4744 = vmatprep.subr.bf16.mxu0 %v3636_v58  ;;  %v3700_v58 = vunpack.c.l.s8.bf16 %v3220_v55 }
 0x6d3   :  { %5326 = vmatmul.mubr.bf16.vlgmr.msra.gmra.mrb[24].mxu1 %v3051_v14  ;;  %v5413_v14 = vunpack.c.h.s8.bf16 %v5345_v33  ;;  %v3708_v33 = vunpack.c.h.s8.bf16 %v3220_v55  ;;  %v3252_v55 = vld [vmem:[#allocation10 + $0x638] sm:$0xff] }
 0x6d4   :  { %4734 = vmatmul.mubr.bf16.vlgmr.msra.gmra.mrb[20].mxu0 %v7269_v34  ;;  %5535 = vmatpush1.bf16.msra.mxu1 %v5406_v2  ;;  %v3651_v34 = vunpack.c.l.s8.bf16 %v3195_v63  ;;  %v5422_v2 = vunpack.c.l.s8.bf16 %v5350_v1  ;;  %v3227_v63 = vld [vmem:[#allocation10 + $0x570] sm:$0xff] }
 0x6d5   :  { %4745 = vmatpush1.bf16.msra.mxu0 %v3635_v28  ;;  %4776 = vmatprep.mubr.bf16.mxu0 %v7315_v49  ;;  %v5347_v49 = vld [vmem:[#allocation17 + $0x28] sm:$0xff]  ;;  %v3699_v28 = vunpack.c.l.s8.bf16 %v3219_v59 }
 0x6d6   :  { %5566 = vmatprep.mubr.bf16.mxu1 %v5335_v54  ;;  %4746 = vmatprep.subr.bf16.mxu0 %v3644_v3  ;;  %v5415_v38 = vunpack.c.l.s8.bf16 %v5347_v49  ;;  %v5346_v54 = vld [vmem:[#allocation17 + $0x20] sm:$0xff]  ;;  %v5417_v6 = vunpack.c.h.s8.bf16 %v5347_v49  ;;  %v5425_v3 = vunpack.c.h.s8.bf16 %v5351_v31  ;;  %v5355_v49 = vld [vmem:[#allocation17 + $0x68] sm:$0xff] }
 0x6d7   :  { %5536 = vmatprep.subr.bf16.mxu1 %v5409_v60  ;;  %v5414_v8 = vunpack.c.l.s8.bf16 %v5346_v54  ;;  %v5416_v36 = vunpack.c.h.s8.bf16 %v5346_v54  ;;  %v5353_v60 = vld [vmem:[#allocation17 + $0x58] sm:$0xff]  ;;  %v5354_v54 = vld [vmem:[#allocation17 + $0x60] sm:$0xff]  ;;  %v5359_v31 = vld [vmem:[#allocation17 + $0x88] sm:$0xff] }
 0x6d8   :  { %5537 = vmatpush1.bf16.msra.mxu1 %v5408_v40  ;;  %v5424_v40 = vunpack.c.h.s8.bf16 %v5350_v1  ;;  %v5358_v1 = vld [vmem:[#allocation17 + $0x80] sm:$0xff] }
 0x6d9   :  { %4747 = vmatpush1.bf16.msra.mxu0 %v3643_v41  ;;  %5538 = vmatprep.subr.bf16.mxu1 %v5411_v62  ;;  %v3707_v41 = vunpack.c.h.s8.bf16 %v3219_v59  ;;  %v5427_v62 = vunpack.c.l.s8.bf16 %v5353_v60  ;;  %v3251_v59 = vld [vmem:[#allocation10 + $0x630] sm:$0xff] }
 0x6da   :  { %4748 = vmatprep.subr.bf16.mxu0 %v3652_v4  ;;  %v3716_v4 = vunpack.c.l.s8.bf16 %v3228_v61 }
 0x6dc   :  { %5539 = vmatpush1.bf16.msra.mxu1 %v5410_v0  ;;  %v5426_v0 = vunpack.c.l.s8.bf16 %v5352_v10 }
 0x6dd   :  { %4749 = vmatpush1.bf16.msra.mxu0 %v3651_v34  ;;  %5540 = vmatprep.subr.bf16.mxu1 %v5413_v14  ;;  %v3715_v34 = vunpack.c.l.s8.bf16 %v3227_v63  ;;  %v5429_v14 = vunpack.c.h.s8.bf16 %v5353_v60  ;;  %v5361_v60 = vld [vmem:[#allocation17 + $0x98] sm:$0xff] }
 0x6de   :  { %4750 = vmatprep.subr.bf16.mxu0 %v3660_v20  ;;  %v3724_v20 = vunpack.c.h.s8.bf16 %v3228_v61  ;;  %v3260_v61 = vld [vmem:[#allocation10 + $0x678] sm:$0xff]  ;;  %v5445_v45 = vunpack.c.h.s8.bf16 %v5361_v60 }
 0x6e0   :  { %5541 = vmatpush1.bf16.msra.mxu1 %v5412_v7  ;;  %v5428_v7 = vunpack.c.h.s8.bf16 %v5352_v10  ;;  %v5360_v10 = vld [vmem:[#allocation17 + $0x90] sm:$0xff] }
 0x6e1   :  { %4751 = vmatpush1.bf16.msra.mxu0 %v3659_v37  ;;  %5542 = vmatprep.subr.bf16.mxu1 %v5415_v38  ;;  %v3723_v37 = vunpack.c.h.s8.bf16 %v3227_v63  ;;  %v5431_v38 = vunpack.c.l.s8.bf16 %v5355_v49  ;;  %v3259_v63 = vld [vmem:[#allocation10 + $0x670] sm:$0xff] }
 0x6e2   :  { %4752 = vmatprep.subr.bf16.mxu0 %v3668_v21  ;;  %v3732_v21 = vunpack.c.l.s8.bf16 %v3236_v5  ;;  %v3779_v46 = vunpack.c.l.s8.bf16 %v3259_v63 }
 0x6e4   :  { %5543 = vmatpush1.bf16.msra.mxu1 %v5414_v8  ;;  %v5430_v8 = vunpack.c.l.s8.bf16 %v5354_v54 }
 0x6e5   :  { %4753 = vmatpush1.bf16.msra.mxu0 %v3667_v23  ;;  %5544 = vmatprep.subr.bf16.mxu1 %v5417_v6  ;;  %v3731_v23 = vunpack.c.l.s8.bf16 %v3235_v48  ;;  %v5433_v6 = vunpack.c.h.s8.bf16 %v5355_v49  ;;  %v5362_v49 = vld [vmem:[#allocation17 + $0xa0] sm:$0xff] }
 0x6e6   :  { %4754 = vmatprep.subr.bf16.mxu0 %v3676_v11  ;;  %v3740_v11 = vunpack.c.h.s8.bf16 %v3236_v5 }
 0x6e8   :  { %5545 = vmatpush1.bf16.msra.mxu1 %v5416_v36  ;;  %v5432_v36 = vunpack.c.h.s8.bf16 %v5354_v54 }
 0x6e9   :  { %4755 = vmatpush1.bf16.msra.mxu0 %v3675_v39  ;;  %5546 = vmatprep.subr.bf16.mxu1 %v5419_v15  ;;  %v3739_v39 = vunpack.c.h.s8.bf16 %v3235_v48  ;;  %v5435_v15 = vunpack.c.l.s8.bf16 %v5357_v16  ;;  %v5365_v48 = vld [vmem:[#allocation17 + $0xb8] sm:$0xff] }
 0x6ea   :  { %4756 = vmatprep.subr.bf16.mxu0 %v3684_v35  ;;  %v3748_v35 = vunpack.c.l.s8.bf16 %v3244_v27 }
 0x6ec   :  { %5547 = vmatpush1.bf16.msra.mxu1 %v5418_v30  ;;  %v5434_v30 = vunpack.c.l.s8.bf16 %v5356_v44 }
 0x6ed   :  { %4757 = vmatpush1.bf16.msra.mxu0 %v3683_v47  ;;  %5548 = vmatprep.subr.bf16.mxu1 %v5421_v53  ;;  %v3747_v47 = vunpack.c.l.s8.bf16 %v3243_v43  ;;  %v5437_v53 = vunpack.c.h.s8.bf16 %v5357_v16 }
 0x6ee   :  { %4758 = vmatprep.subr.bf16.mxu0 %v3692_v19  ;;  %v3756_v19 = vunpack.c.h.s8.bf16 %v3244_v27 }
 0x6f0   :  { %5549 = vmatpush1.bf16.msra.mxu1 %v5420_v56  ;;  %v5436_v56 = vunpack.c.h.s8.bf16 %v5356_v44  ;;  %v3275_v44 = vld [vmem:[#allocation10 + $0x6f0] sm:$0xff] }
 0x6f1   :  { %4759 = vmatpush1.bf16.msra.mxu0 %v3691_v57  ;;  %5550 = vmatprep.subr.bf16.mxu1 %v5423_v52  ;;  %v3755_v57 = vunpack.c.h.s8.bf16 %v3243_v43  ;;  %v5439_v52 = vunpack.c.l.s8.bf16 %v5359_v31 }
 0x6f2   :  { %4760 = vmatprep.subr.bf16.mxu0 %v3700_v58  ;;  %v3764_v58 = vunpack.c.l.s8.bf16 %v3252_v55 }
 0x6f4   :  { %5551 = vmatpush1.bf16.msra.mxu1 %v5422_v2  ;;  %v5438_v2 = vunpack.c.l.s8.bf16 %v5358_v1 }
 0x6f5   :  { %4761 = vmatpush1.bf16.msra.mxu0 %v3699_v28  ;;  %5552 = vmatprep.subr.bf16.mxu1 %v5425_v3  ;;  %v3763_v28 = vunpack.c.l.s8.bf16 %v3251_v59  ;;  %v3772_v3 = vunpack.c.h.s8.bf16 %v3252_v55 }
 0x6f6   :  { %4762 = vmatprep.subr.bf16.mxu0 %v3708_v33  ;;  %v5441_v33 = vunpack.c.h.s8.bf16 %v5359_v31 }
 0x6f8   :  { %5553 = vmatpush1.bf16.msra.mxu1 %v5424_v40  ;;  %v5440_v40 = vunpack.c.h.s8.bf16 %v5358_v1 }
 0x6f9   :  { %4763 = vmatpush1.bf16.msra.mxu0 %v3707_v41  ;;  %5554 = vmatprep.subr.bf16.mxu1 %v5427_v62  ;;  %v3771_v41 = vunpack.c.h.s8.bf16 %v3251_v59  ;;  %v5443_v62 = vunpack.c.l.s8.bf16 %v5361_v60 }
 0x6fa   :  { %4764 = vmatprep.subr.bf16.mxu0 %v3716_v4  ;;  %v3780_v4 = vunpack.c.l.s8.bf16 %v3260_v61 }
 0x6fc   :  { %5555 = vmatpush1.bf16.msra.mxu1 %v5426_v0  ;;  %v5442_v0 = vunpack.c.l.s8.bf16 %v5360_v10 }
 0x6fd   :  { %4765 = vmatpush1.bf16.msra.mxu0 %v3715_v34  ;;  %5556 = vmatprep.subr.bf16.mxu1 %v5429_v14  ;;  %v3268_v34 = vld [vmem:[#allocation10 + $0x6b8] sm:$0xff]  ;;  %v5444_v14 = vunpack.c.h.s8.bf16 %v5360_v10 }
 0x6fe   :  { %4766 = vmatprep.subr.bf16.mxu0 %v3724_v20  ;;  %v3796_v5 = vunpack.c.l.s8.bf16 %v3268_v34 }
 0x700   :  { %5557 = vmatpush1.bf16.msra.mxu1 %v5428_v7  ;;  %v3267_v7 = vld [vmem:[#allocation10 + $0x6b0] sm:$0xff] }
 0x701   :  { %4767 = vmatpush1.bf16.msra.mxu0 %v3723_v37  ;;  %5558 = vmatprep.subr.bf16.mxu1 %v5431_v38  ;;  %v5446_v37 = vunpack.c.l.s8.bf16 %v5362_v49  ;;  %v3795_v38 = vunpack.c.l.s8.bf16 %v3267_v7  ;;  %v3803_v27 = vunpack.c.h.s8.bf16 %v3267_v7 }
 0x702   :  { %4768 = vmatprep.subr.bf16.mxu0 %v3732_v21  ;;  %v3804_v21 = vunpack.c.h.s8.bf16 %v3268_v34  ;;  %v5369_v34 = vld [vmem:[#allocation17 + $0xd8] sm:$0xff] }
 0x704   :  { %5559 = vmatpush1.bf16.msra.mxu1 %v5430_v8  ;;  %v3276_v8 = vld [vmem:[#allocation10 + $0x6f8] sm:$0xff] }
 0x705   :  { %4769 = vmatpush1.bf16.msra.mxu0 %v3731_v23  ;;  %5560 = vmatprep.subr.bf16.mxu1 %v5433_v6  ;;  %v7440_v23 = vld [vmem:[#allocation11] sm:$0xff]  ;;  %v3820_v59 = vunpack.c.h.s8.bf16 %v3276_v8 }
 0x706   :  { %4770 = vmatprep.subr.bf16.mxu0 %v3740_v11  ;;  %v4886_v6 = vrot.slane %v7440_v23, %v7251_v26  ;;  %v5448_v11 = vunpack.c.h.s8.bf16 %v5362_v49  ;;  %v4890_v16 = vrot.slane %v7440_v23, %v7257_v32  ;;  %v5459_v49 = vunpack.c.l.s8.bf16 %v5369_v34 }
 0x708   :  { %5561 = vmatpush1.bf16.msra.mxu1 %v5432_v36  ;;  %v5451_v36 = vunpack.c.l.s8.bf16 %v5365_v48 }
 0x709   :  { %4771 = vmatpush1.bf16.msra.mxu0 %v3739_v39  ;;  %5562 = vmatprep.subr.bf16.mxu1 %v5435_v15  ;;  %v5364_v39 = vld [vmem:[#allocation17 + $0xb0] sm:$0xff]  ;;  %v3812_v15 = vunpack.c.l.s8.bf16 %v3276_v8  ;;  %v5371_v8 = vld [vmem:[#allocation17 + $0xe8] sm:$0xff] }
 0x70a   :  { %4772 = vmatprep.subr.bf16.mxu0 %v3748_v35  ;;  %v5452_v60 = vunpack.c.h.s8.bf16 %v5364_v39 }
 0x70c   :  { %5563 = vmatpush1.bf16.msra.mxu1 %v5434_v30  ;;  %v7446_v30 = vld [vmem:[#allocation13] sm:$0xff] }
 0x70d   :  { %4773 = vmatpush1.bf16.msra.mxu0 %v3747_v47  ;;  %5564 = vmatprep.subr.bf16.mxu1 %v5437_v53  ;;  %v4944_v47 = vrot.slane %v7446_v30, %v7251_v26  ;;  %v4948_v55 = vrot.slane %v7446_v30, %v7257_v32 }
 0x70e   :  { %4774 = vmatprep.subr.bf16.mxu0 %v3756_v19  ;;  %v5450_v19 = vunpack.c.l.s8.bf16 %v5364_v39 }
 0x710   :  { %5565 = vmatpush1.bf16.msra.mxu1 %v5436_v56 }
 0x711   :  { %4775 = vmatpush1.bf16.msra.mxu0 %v3755_v57  ;;  %5577 = vmatprep.subr.bf16.mxu1 %v5439_v52  ;;  %v3811_v57 = vunpack.c.l.s8.bf16 %v3275_v44  ;;  %v5453_v52 = vunpack.c.h.s8.bf16 %v5365_v48 }
 0x712   :  { %4787 = vmatprep.subr.bf16.mxu0 %v3764_v58 }
 0x713   :  { %5567 = vmatmul.mubr.bf16.vlgmr.msra.gmra.mrb[28].mxu1 %v5334_v51  ;;  %v5363_v51 = vld [vmem:[#allocation17 + $0xa8] sm:$0xff] }
 0x714   :  { %4777 = vmatmul.mubr.bf16.vlgmr.msra.gmra.mrb[20].mxu0 %v7311_v42  ;;  %5578 = vmatpush1.bf16.msra.mxu1 %v5438_v2  ;;  %v3788_v42 = vunpack.c.h.s8.bf16 %v3260_v61  ;;  %v5447_v20 = vunpack.c.l.s8.bf16 %v5363_v51  ;;  %v5449_v54 = vunpack.c.h.s8.bf16 %v5363_v51 }
 0x715   :  { %4788 = vmatpush1.bf16.msra.mxu0 %v3763_v28  ;;  %4819 = vmatprep.mubr.bf16.mxu0 %v7317_v50  ;;  %v3787_v50 = vunpack.c.h.s8.bf16 %v3259_v63  ;;  %v3284_v28 = vld [vmem:[#allocation10 + $0x738] sm:$0xff]  ;;  %v3283_v63 = vld [vmem:[#allocation10 + $0x730] sm:$0xff] }
 0x716   :  { %4789 = vmatprep.subr.bf16.mxu0 %v3772_v3  ;;  %5579 = vmatprep.subr.bf16.mxu1 %v5441_v33  ;;  %v5367_v3 = vld [vmem:[#allocation17 + $0xc8] sm:$0xff]  ;;  %v3828_v10 = vunpack.c.l.s8.bf16 %v3284_v28  ;;  %v3836_v51 = vunpack.c.h.s8.bf16 %v3284_v28 }
 0x718   :  { %5580 = vmatpush1.bf16.msra.mxu1 %v5440_v40  ;;  %v3819_v40 = vunpack.c.h.s8.bf16 %v3275_v44 }
 0x719   :  { %4790 = vmatpush1.bf16.msra.mxu0 %v3771_v41  ;;  %5581 = vmatprep.subr.bf16.mxu1 %v5443_v62  ;;  %v5366_v41 = vld [vmem:[#allocation17 + $0xc0] sm:$0xff] }
 0x71a   :  { %4791 = vmatprep.subr.bf16.mxu0 %v3780_v4  ;;  %v5455_v4 = vunpack.c.l.s8.bf16 %v5367_v3 }
 0x71c   :  { %5582 = vmatpush1.bf16.msra.mxu1 %v5442_v0 }
 0x71d   :  { %4792 = vmatpush1.bf16.msra.mxu0 %v3779_v46  ;;  %5583 = vmatprep.subr.bf16.mxu1 %v5445_v45  ;;  %v5454_v46 = vunpack.c.l.s8.bf16 %v5366_v41  ;;  %v3827_v45 = vunpack.c.l.s8.bf16 %v3283_v63 }
 0x71e   :  { %4793 = vmatprep.subr.bf16.mxu0 %v3788_v42  ;;  %v5457_v42 = vunpack.c.h.s8.bf16 %v5367_v3  ;;  %v5375_v3 = vld [vmem:[#allocation17 + $0x108] sm:$0xff] }
 0x720   :  { %5584 = vmatpush1.bf16.msra.mxu1 %v5444_v14  ;;  %v3292_v14 = vld [vmem:[#allocation10 + $0x778] sm:$0xff] }
 0x721   :  { %4794 = vmatpush1.bf16.msra.mxu0 %v3787_v50  ;;  %5585 = vmatprep.subr.bf16.mxu1 %v5447_v20  ;;  %v5456_v50 = vunpack.c.h.s8.bf16 %v5366_v41  ;;  %v3835_v20 = vunpack.c.h.s8.bf16 %v3283_v63  ;;  %v3844_v7 = vunpack.c.l.s8.bf16 %v3292_v14  ;;  %v3852_v48 = vunpack.c.h.s8.bf16 %v3292_v14  ;;  %v5374_v41 = vld [vmem:[#allocation17 + $0x100] sm:$0xff] }
 0x722   :  { %4795 = vmatprep.subr.bf16.mxu0 %v3796_v5  ;;  %v5368_v5 = vld [vmem:[#allocation17 + $0xd0] sm:$0xff]  ;;  %v5470_v63 = vunpack.c.l.s8.bf16 %v5374_v41 }
 0x724   :  { %5586 = vmatpush1.bf16.msra.mxu1 %v5446_v37  ;;  %v3291_v37 = vld [vmem:[#allocation10 + $0x770] sm:$0xff] }
 0x725   :  { %4796 = vmatpush1.bf16.msra.mxu0 %v3795_v38  ;;  %5587 = vmatprep.subr.bf16.mxu1 %v5449_v54  ;;  %v5458_v38 = vunpack.c.l.s8.bf16 %v5368_v5  ;;  %v3843_v54 = vunpack.c.l.s8.bf16 %v3291_v37 }
 0x726   :  { %4797 = vmatprep.subr.bf16.mxu0 %v3804_v21  ;;  %v5461_v21 = vunpack.c.h.s8.bf16 %v5369_v34  ;;  %v5472_v34 = vunpack.c.h.s8.bf16 %v5374_v41  ;;  %v5383_v41 = vld [vmem:[#allocation17 + $0x148] sm:$0xff] }
 0x727   :  { %v4434_v35 = vpop.f32.mrb[16].mxu0 }
 0x728   :  { %v4917_v43 = vmul.f32 %v4886_v6, %v4434_v35  ;;  %v4436_v53 = vpop.f32.mrb[17].mxu0  ;;  %5588 = vmatpush1.bf16.msra.mxu1 %v5448_v11  ;;  %v5460_v11 = vunpack.c.h.s8.bf16 %v5368_v5  ;;  %v3323_v5 = vld [vmem:[#allocation10 + $0x870] sm:$0xff] }
 0x729   :  { %v4918_v31 = vmul.f32 %v4890_v16, %v4436_v53  ;;  %v4438_v56 = vpop.f32.mrb[18].mxu0  ;;  %4798 = vmatpush1.bf16.msra.mxu0 %v3803_v27  ;;  %5589 = vmatprep.subr.bf16.mxu1 %v5451_v36  ;;  %v5463_v27 = vunpack.c.l.s8.bf16 %v5371_v8  ;;  %v5370_v36 = vld [vmem:[#allocation17 + $0xe0] sm:$0xff]  ;;  %v5373_v53 = vld [vmem:[#allocation17 + $0xf8] sm:$0xff] }
 0x72a   :  { %v4925_v1 = vmul.f32 %v4886_v6, %v4438_v56  ;;  %v4440_v58 = vpop.f32.mrb[19].mxu0  ;;  %4799 = vmatprep.subr.bf16.mxu0 %v3812_v15  ;;  %v7452_v26 = vadd.f32 %v4944_v47, %v4917_v43  ;;  %v3300_v6 = vld [vmem:[#allocation10 + $0x7b8] sm:$0xff]  ;;  %v3299_v15 = vld [vmem:[#allocation10 + $0x7b0] sm:$0xff]  ;;  %v5462_v44 = vunpack.c.l.s8.bf16 %v5370_v36  ;;  %v5465_v43 = vunpack.c.h.s8.bf16 %v5371_v8 }
 0x72b   :  { %v4926_v2 = vmul.f32 %v4890_v16, %v4440_v58  ;;  %v4976_v61 = vadd.f32 %v4948_v55, %v4918_v31  ;;  %v3851_v16 = vunpack.c.h.s8.bf16 %v3291_v37  ;;  %v3860_v39 = vunpack.c.l.s8.bf16 %v3300_v6  ;;  %v3332_v37 = vld [vmem:[#allocation10 + $0x8b8] sm:$0xff]  ;;  %v3331_v8 = vld [vmem:[#allocation10 + $0x8b0] sm:$0xff] }
 0x72c   :  { %v7454_v33 = vadd.f32 %v4944_v47, %v4925_v1  ;;  %5590 = vmatpush1.bf16.msra.mxu1 %v5450_v19  ;;  %v3859_v35 = vunpack.c.l.s8.bf16 %v3299_v15  ;;  %v3868_v47 = vunpack.c.h.s8.bf16 %v3300_v6  ;;  %v3308_v19 = vld [vmem:[#allocation10 + $0x7f8] sm:$0xff]  ;;  %v5464_v31 = vunpack.c.h.s8.bf16 %v5370_v36  ;;  %v3307_v1 = vld [vmem:[#allocation10 + $0x7f0] sm:$0xff] }
 0x72d   :  { %v4984_v32 = vadd.f32 %v4948_v55, %v4926_v2  ;;  %4800 = vmatpush1.bf16.msra.mxu0 %v3811_v57  ;;  %5591 = vmatprep.subr.bf16.mxu1 %v5453_v52  ;;  %v3867_v55 = vunpack.c.h.s8.bf16 %v3299_v15  ;;  %v5467_v56 = vunpack.c.l.s8.bf16 %v5373_v53  ;;  %v5372_v57 = vld [vmem:[#allocation17 + $0xf0] sm:$0xff]  ;;  %v3876_v52 = vunpack.c.l.s8.bf16 %v3308_v19  ;;  %v5381_v36 = vld [vmem:[#allocation17 + $0x138] sm:$0xff]  ;;  %v3340_v15 = vld [vmem:[#allocation10 + $0x8f8] sm:$0xff] }
 0x72e   :  { %v5336_v62 = vpack.c.bf16 %v7454_v33, %v7452_v26  ;;  %4801 = vmatprep.subr.bf16.mxu0 %v3820_v59  ;;  %v5466_v58 = vunpack.c.l.s8.bf16 %v5372_v57  ;;  %v3875_v59 = vunpack.c.l.s8.bf16 %v3307_v1  ;;  %v5469_v2 = vunpack.c.h.s8.bf16 %v5373_v53  ;;  %v5380_v53 = vld [vmem:[#allocation17 + $0x130] sm:$0xff] }
 0x72f   :  { %v5337_v0 = vpack.c.bf16 %v4984_v32, %v4976_v61  ;;  %v3884_v28 = vunpack.c.h.s8.bf16 %v3308_v19  ;;  %v5468_v61 = vunpack.c.h.s8.bf16 %v5372_v57  ;;  %v3883_v32 = vunpack.c.h.s8.bf16 %v3307_v1 }
 0x730   :  { %5592 = vmatpush1.bf16.msra.mxu1 %v5452_v60  ;;  %v3316_v60 = vld [vmem:[#allocation10 + $0x838] sm:$0xff]  ;;  %v3907_v26 = vunpack.c.l.s8.bf16 %v3323_v5  ;;  %v4952_v57 = vrot.slane %v7446_v30, %v7292_v12 }
 0x731   :  { %4802 = vmatpush1.bf16.msra.mxu0 %v3819_v40  ;;  %5609 = vmatprep.mubr.bf16.mxu1 %v5337_v0  ;;  %v5471_v40 = vunpack.c.l.s8.bf16 %v5375_v3 }
 0x732   :  { %4803 = vmatprep.subr.bf16.mxu0 %v3828_v10  ;;  %5593 = vmatprep.subr.bf16.mxu1 %v5455_v4  ;;  %v3892_v10 = vunpack.c.l.s8.bf16 %v3316_v60  ;;  %v3315_v4 = vld [vmem:[#allocation10 + $0x830] sm:$0xff] }
 0x733   :  { %v3891_v0 = vunpack.c.l.s8.bf16 %v3315_v4  ;;  %v3899_v14 = vunpack.c.h.s8.bf16 %v3315_v4  ;;  %v3348_v4 = vld [vmem:[#allocation10 + $0x938] sm:$0xff] }
 0x734   :  { %5594 = vmatpush1.bf16.msra.mxu1 %v5454_v46  ;;  %v3900_v46 = vunpack.c.h.s8.bf16 %v3316_v60 }
 0x735   :  { %4804 = vmatpush1.bf16.msra.mxu0 %v3827_v45  ;;  %5595 = vmatprep.subr.bf16.mxu1 %v5457_v42  ;;  %v5473_v45 = vunpack.c.h.s8.bf16 %v5375_v3  ;;  %v5377_v42 = vld [vmem:[#allocation17 + $0x118] sm:$0xff] }
 0x736   :  { %4805 = vmatprep.subr.bf16.mxu0 %v3836_v51  ;;  %v3324_v51 = vld [vmem:[#allocation10 + $0x878] sm:$0xff]  ;;  %v5477_v33 = vunpack.c.h.s8.bf16 %v5377_v42 }
 0x738   :  { %5596 = vmatpush1.bf16.msra.mxu1 %v5456_v50  ;;  %v5475_v50 = vunpack.c.l.s8.bf16 %v5377_v42  ;;  %v5487_v42 = vunpack.c.l.s8.bf16 %v5383_v41 }
 0x739   :  { %4806 = vmatpush1.bf16.msra.mxu0 %v3835_v20  ;;  %5597 = vmatprep.subr.bf16.mxu1 %v5459_v49  ;;  %v5376_v20 = vld [vmem:[#allocation17 + $0x110] sm:$0xff]  ;;  %v3908_v49 = vunpack.c.l.s8.bf16 %v3324_v51 }
 0x73a   :  { %4807 = vmatprep.subr.bf16.mxu0 %v3844_v7  ;;  %v5474_v7 = vunpack.c.l.s8.bf16 %v5376_v20 }
 0x73c   :  { %5598 = vmatpush1.bf16.msra.mxu1 %v5458_v38  ;;  %v5476_v38 = vunpack.c.h.s8.bf16 %v5376_v20 }
 0x73d   :  { %4808 = vmatpush1.bf16.msra.mxu0 %v3843_v54  ;;  %5599 = vmatprep.subr.bf16.mxu1 %v5461_v21  ;;  %v5378_v21 = vld [vmem:[#allocation17 + $0x120] sm:$0xff] }
 0x73e   :  { %4809 = vmatprep.subr.bf16.mxu0 %v3852_v48  ;;  %v3924_v48 = vunpack.c.l.s8.bf16 %v3332_v37  ;;  %v5478_v6 = vunpack.c.l.s8.bf16 %v5378_v21 }
 0x740   :  { %5600 = vmatpush1.bf16.msra.mxu1 %v5460_v11  ;;  %v3923_v11 = vunpack.c.l.s8.bf16 %v3331_v8 }
 0x741   :  { %4810 = vmatpush1.bf16.msra.mxu0 %v3851_v16  ;;  %5601 = vmatprep.subr.bf16.mxu1 %v5463_v27  ;;  %v3932_v27 = vunpack.c.h.s8.bf16 %v3332_v37 }
 0x742   :  { %4811 = vmatprep.subr.bf16.mxu0 %v3860_v39  ;;  %v4894_v39 = vrot.slane %v7440_v23, %v7292_v12 }
 0x744   :  { %5602 = vmatpush1.bf16.msra.mxu1 %v5462_v44  ;;  %v4898_v44 = vrot.slane %v7440_v23, %v7298_v17 }
 0x745   :  { %4812 = vmatpush1.bf16.msra.mxu0 %v3859_v35  ;;  %5603 = vmatprep.subr.bf16.mxu1 %v5465_v43  ;;  %v5480_v35 = vunpack.c.h.s8.bf16 %v5378_v21  ;;  %v3931_v43 = vunpack.c.h.s8.bf16 %v3331_v8 }
 0x746   :  { %4813 = vmatprep.subr.bf16.mxu0 %v3868_v47  ;;  %v5483_v47 = vunpack.c.l.s8.bf16 %v5381_v36 }
 0x748   :  { %5604 = vmatpush1.bf16.msra.mxu1 %v5464_v31  ;;  %v3940_v31 = vunpack.c.l.s8.bf16 %v3340_v15 }
 0x749   :  { %4814 = vmatpush1.bf16.msra.mxu0 %v3867_v55  ;;  %5605 = vmatprep.subr.bf16.mxu1 %v5467_v56  ;;  %v3339_v55 = vld [vmem:[#allocation10 + $0x8f0] sm:$0xff] }
 0x74a   :  { %4815 = vmatprep.subr.bf16.mxu0 %v3876_v52  ;;  %v3939_v60 = vunpack.c.l.s8.bf16 %v3339_v55 }
 0x74c   :  { %5606 = vmatpush1.bf16.msra.mxu1 %v5466_v58  ;;  %v4956_v58 = vrot.slane %v7446_v30, %v7298_v17 }
 0x74d   :  { %4816 = vmatpush1.bf16.msra.mxu0 %v3875_v59  ;;  %5607 = vmatprep.subr.bf16.mxu1 %v5469_v2  ;;  %v5482_v2 = vunpack.c.l.s8.bf16 %v5380_v53 }
 0x74e   :  { %4817 = vmatprep.subr.bf16.mxu0 %v3884_v28 }
 0x750   :  { %5608 = vmatpush1.bf16.msra.mxu1 %v5468_v61  ;;  %v5485_v61 = vunpack.c.h.s8.bf16 %v5381_v36 }
 0x751   :  { %4818 = vmatpush1.bf16.msra.mxu0 %v3883_v32  ;;  %5620 = vmatprep.subr.bf16.mxu1 %v5471_v40  ;;  %v3948_v40 = vunpack.c.h.s8.bf16 %v3340_v15  ;;  %v5386_v15 = vld [vmem:[#allocation17 + $0x160] sm:$0xff] }
 0x752   :  { %4830 = vmatprep.subr.bf16.mxu0 %v3892_v10 }
 0x753   :  { %5610 = vmatmul.mubr.bf16.vlgmr.msra.gmra.mrb[28].mxu1 %v5336_v62  ;;  %v5379_v62 = vld [vmem:[#allocation17 + $0x128] sm:$0xff] }
 0x754   :  { %4820 = vmatmul.mubr.bf16.vlgmr.msra.gmra.mrb[20].mxu0 %v7313_v24  ;;  %5621 = vmatpush1.bf16.msra.mxu1 %v5470_v63  ;;  %v3916_v24 = vunpack.c.h.s8.bf16 %v3324_v51  ;;  %v5479_v54 = vunpack.c.l.s8.bf16 %v5379_v62  ;;  %v5481_v16 = vunpack.c.h.s8.bf16 %v5379_v62  ;;  %v5382_v51 = vld [vmem:[#allocation17 + $0x140] sm:$0xff] }
 0x755   :  { %4831 = vmatpush1.bf16.msra.mxu0 %v3891_v0  ;;  %4862 = vmatprep.mubr.bf16.mxu0 %v7355_v22  ;;  %v3915_v22 = vunpack.c.h.s8.bf16 %v3323_v5  ;;  %v5484_v0 = vunpack.c.h.s8.bf16 %v5380_v53  ;;  %v5486_v20 = vunpack.c.l.s8.bf16 %v5382_v51  ;;  %v5489_v5 = vunpack.c.h.s8.bf16 %v5383_v41 }
 0x756   :  { %4832 = vmatprep.subr.bf16.mxu0 %v3900_v46  ;;  %5622 = vmatprep.subr.bf16.mxu1 %v5473_v45  ;;  %v3947_v45 = vunpack.c.h.s8.bf16 %v3339_v55  ;;  %v3372_v55 = vld [vmem:[#allocation10 + $0x9f8] sm:$0xff] }
 0x758   :  { %5623 = vmatpush1.bf16.msra.mxu1 %v5472_v34 }
 0x759   :  { %4833 = vmatpush1.bf16.msra.mxu0 %v3899_v14  ;;  %5624 = vmatprep.subr.bf16.mxu1 %v5475_v50  ;;  %v3956_v14 = vunpack.c.l.s8.bf16 %v3348_v4  ;;  %v3347_v50 = vld [vmem:[#allocation10 + $0x930] sm:$0xff] }
 0x75a   :  { %4834 = vmatprep.subr.bf16.mxu0 %v3908_v49  ;;  %v3955_v49 = vunpack.c.l.s8.bf16 %v3347_v50  ;;  %v3963_v62 = vunpack.c.h.s8.bf16 %v3347_v50  ;;  %v6446_v50 = vld [vmem:[#allocation22] ss:$8 sps:$4 sm:$0xff]  }
 0x75c   :  { %5625 = vmatpush1.bf16.msra.mxu1 %v5474_v7  ;;  %v3964_v7 = vunpack.c.h.s8.bf16 %v3348_v4 }
 0x75d   :  { %4835 = vmatpush1.bf16.msra.mxu0 %v3907_v26  ;;  %5626 = vmatprep.subr.bf16.mxu1 %v5477_v33  ;;  %v5385_v26 = vld [vmem:[#allocation17 + $0x158] sm:$0xff]  ;;  %v3356_v33 = vld [vmem:[#allocation10 + $0x978] sm:$0xff] }
 0x75e   :  { %4836 = vmatprep.subr.bf16.mxu0 %v3916_v24  ;;  %v5488_v24 = vunpack.c.h.s8.bf16 %v5382_v51  ;;  %v5491_v37 = vunpack.c.l.s8.bf16 %v5385_v26  ;;  %v5493_v8 = vunpack.c.h.s8.bf16 %v5385_v26  ;;  %v5390_v51 = vld [vmem:[#allocation17 + $0x180] sm:$0xff]  ;;  %v6449_v26 = vld [vmem:[#allocation22 + $0x10] ss:$8 sps:$4 sm:$0xff]  }
 0x760   :  { %5627 = vmatpush1.bf16.msra.mxu1 %v5476_v38  ;;  %v5384_v38 = vld [vmem:[#allocation17 + $0x150] sm:$0xff] }
 0x761   :  { %4837 = vmatpush1.bf16.msra.mxu0 %v3915_v22  ;;  %5628 = vmatprep.subr.bf16.mxu1 %v5479_v54  ;;  %v3972_v22 = vunpack.c.l.s8.bf16 %v3356_v33  ;;  %v3355_v54 = vld [vmem:[#allocation10 + $0x970] sm:$0xff]  ;;  %v5490_v21 = vunpack.c.l.s8.bf16 %v5384_v38 }
 0x762   :  { %4838 = vmatprep.subr.bf16.mxu0 %v3924_v48  ;;  %v3971_v48 = vunpack.c.l.s8.bf16 %v3355_v54  ;;  %v3979_v36 = vunpack.c.h.s8.bf16 %v3355_v54  ;;  %v6455_v54 = vld [vmem:[#allocation22 + $0x30] ss:$8 sps:$4 sm:$0xff]  }
 0x764   :  { %5629 = vmatpush1.bf16.msra.mxu1 %v5478_v6  ;;  %v3980_v6 = vunpack.c.h.s8.bf16 %v3356_v33  ;;  %v6888_v33 = vmov 0  }
 0x765   :  { %4839 = vmatpush1.bf16.msra.mxu0 %v3923_v11  ;;  %5630 = vmatprep.subr.bf16.mxu1 %v5481_v16  ;;  %v5387_v11 = vld [vmem:[#allocation17 + $0x168] sm:$0xff] }
 0x766   :  { %v4649_v19 = vpop.f32.mrb[16].mxu1  ;;  %4840 = vmatprep.subr.bf16.mxu0 %v3932_v27  ;;  %v3364_v16 = vld [vmem:[#allocation10 + $0x9b8] sm:$0xff]  ;;  %v5492_v27 = vunpack.c.h.s8.bf16 %v5384_v38  ;;  %v5497_v53 = vunpack.c.h.s8.bf16 %v5387_v11 }
 0x767   :  { %v4919_v56 = vmul.f32 %v4894_v39, %v4649_v19  ;;  %v4651_v52 = vpop.f32.mrb[17].mxu1  ;;  %v3996_v19 = vunpack.c.h.s8.bf16 %v3364_v16 }
 0x768   :  { %v4920_v1 = vmul.f32 %v4898_v44, %v4651_v52  ;;  %v4653_v59 = vpop.f32.mrb[18].mxu1  ;;  %5631 = vmatpush1.bf16.msra.mxu1 %v5480_v35  ;;  %v3363_v35 = vld [vmem:[#allocation10 + $0x9b0] sm:$0xff] }
 0x769   :  { %v4927_v28 = vmul.f32 %v4894_v39, %v4653_v59  ;;  %4841 = vmatpush1.bf16.msra.mxu0 %v3931_v43  ;;  %v4655_v3 = vpop.f32.mrb[19].mxu1  ;;  %5632 = vmatprep.subr.bf16.mxu1 %v5483_v47  ;;  %v7471_v10 = vadd.f32 %v4952_v57, %v4919_v56  ;;  %v5495_v39 = vunpack.c.l.s8.bf16 %v5387_v11  ;;  %v5494_v43 = vunpack.c.l.s8.bf16 %v5386_v15  ;;  %v6458_v11 = vld [vmem:[#allocation22 + $0x40] ss:$8 sps:$4 sm:$0xff]  }
 0x76a   :  { %v4928_v32 = vmul.f32 %v4898_v44, %v4655_v3  ;;  %4842 = vmatprep.subr.bf16.mxu0 %v3940_v31  ;;  %v4978_v63 = vadd.f32 %v4956_v58, %v4920_v1  ;;  %v3988_v44 = vunpack.c.l.s8.bf16 %v3364_v16  ;;  %v3987_v47 = vunpack.c.l.s8.bf16 %v3363_v35  ;;  %v5389_v31 = vld [vmem:[#allocation17 + $0x178] sm:$0xff]  ;;  %v5388_v1 = vld [vmem:[#allocation17 + $0x170] sm:$0xff] }
 0x76b   :  { %v7473_v12 = vadd.f32 %v4952_v57, %v4927_v28  ;;  %v5496_v56 = vunpack.c.h.s8.bf16 %v5386_v15  ;;  %v3995_v57 = vunpack.c.h.s8.bf16 %v3363_v35  ;;  %v5499_v52 = vunpack.c.l.s8.bf16 %v5389_v31  ;;  %v6094_v15 = vld [vmem:[#allocation16] ss:$0 sm:$0xff] }
 0x76c   :  { %v4986_v17 = vadd.f32 %v4956_v58, %v4928_v32  ;;  %5633 = vmatpush1.bf16.msra.mxu1 %v5482_v2  ;;  %v4004_v59 = vunpack.c.l.s8.bf16 %v3372_v55  ;;  %v3371_v2 = vld [vmem:[#allocation10 + $0x9f0] sm:$0xff]  ;;  %v5501_v41 = vunpack.c.h.s8.bf16 %v5389_v31 }
 0x76d   :  { %v5338_v46 = vpack.c.bf16 %v7473_v12, %v7471_v10  ;;  %4843 = vmatpush1.bf16.msra.mxu0 %v3939_v60  ;;  %5634 = vmatprep.subr.bf16.mxu1 %v5485_v61  ;;  %v5498_v61 = vunpack.c.l.s8.bf16 %v5388_v1  ;;  %v6457_v12 = vld [vmem:[#allocation22 + $0x34] ss:$8 sps:$4 sm:$0xff]  }
 0x76e   :  { %4844 = vmatprep.subr.bf16.mxu0 %v3948_v40  ;;  %v5339_v34 = vpack.c.bf16 %v4986_v17, %v4978_v63  ;;  %v4003_v40 = vunpack.c.l.s8.bf16 %v3371_v2  ;;  %v4012_v63 = vunpack.c.h.s8.bf16 %v3372_v55  ;;  %v5391_v17 = vld [vmem:[#allocation17 + $0x188] sm:$0xff] }
 0x770   :  { %5635 = vmatpush1.bf16.msra.mxu1 %v5484_v0  ;;  %5652 = vmatprep.mubr.bf16.mxu1 %v5339_v34  ;;  %v5500_v0 = vunpack.c.h.s8.bf16 %v5388_v1  ;;  %v6448_v34 = vld [vmem:[#allocation22 + $0x4] ss:$8 sps:$4 sm:$0xff]   ;;  %v6464_v1 = vld [vmem:[#allocation22 + $0x60] ss:$8 sps:$4 sm:$0xff]  }
 0x771   :  { %4845 = vmatpush1.bf16.msra.mxu0 %v3947_v45  ;;  %5636 = vmatprep.subr.bf16.mxu1 %v5487_v42  ;;  %v4011_v45 = vunpack.c.h.s8.bf16 %v3371_v2  ;;  %v5503_v42 = vunpack.c.l.s8.bf16 %v5391_v17 }
 0x772   :  { %4846 = vmatprep.subr.bf16.mxu0 %v3956_v14  ;;  %v5502_v14 = vunpack.c.l.s8.bf16 %v5390_v51 }
 0x774   :  { %5637 = vmatpush1.bf16.msra.mxu1 %v5486_v20  ;;  %v6451_v20 = vld [vmem:[#allocation22 + $0x14] ss:$8 sps:$4 sm:$0xff]  }
 0x775   :  { %4847 = vmatpush1.bf16.msra.mxu0 %v3955_v49  ;;  %5638 = vmatprep.subr.bf16.mxu1 %v5489_v5  ;;  %v5505_v49 = vunpack.c.h.s8.bf16 %v5391_v17  ;;  %v5393_v5 = vld [vmem:[#allocation17 + $0x198] sm:$0xff] }
 0x776   :  { %4848 = vmatprep.subr.bf16.mxu0 %v3964_v7  ;;  %v5504_v7 = vunpack.c.h.s8.bf16 %v5390_v51  ;;  %v5509_v10 = vunpack.c.h.s8.bf16 %v5393_v5 }
 0x778   :  { %5639 = vmatpush1.bf16.msra.mxu1 %v5488_v24  ;;  %v5507_v24 = vunpack.c.l.s8.bf16 %v5393_v5 }
 0x779   :  { %4849 = vmatpush1.bf16.msra.mxu0 %v3963_v62  ;;  %5640 = vmatprep.subr.bf16.mxu1 %v5491_v37  ;;  %v5392_v62 = vld [vmem:[#allocation17 + $0x190] sm:$0xff] }
 0x77a   :  { %4850 = vmatprep.subr.bf16.mxu0 %v3972_v22  ;;  %v6454_v37 = vld [vmem:[#allocation22 + $0x24] ss:$8 sps:$4 sm:$0xff]   ;;  %v5506_v38 = vunpack.c.l.s8.bf16 %v5392_v62  ;;  %v6452_v22 = vld [vmem:[#allocation22 + $0x20] ss:$8 sps:$4 sm:$0xff]  }
 0x77c   :  { %5641 = vmatpush1.bf16.msra.mxu1 %v5490_v21 }
 0x77d   :  { %4851 = vmatpush1.bf16.msra.mxu0 %v3971_v48  ;;  %5642 = vmatprep.subr.bf16.mxu1 %v5493_v8  ;;  %v5394_v48 = vld [vmem:[#allocation17 + $0x1a0] sm:$0xff]  ;;  %v6460_v8 = vld [vmem:[#allocation22 + $0x44] ss:$8 sps:$4 sm:$0xff]  }
 0x77e   :  { %4852 = vmatprep.subr.bf16.mxu0 %v3980_v6  ;;  %v5510_v6 = vunpack.c.l.s8.bf16 %v5394_v48 }
 0x780   :  { %5643 = vmatpush1.bf16.msra.mxu1 %v5492_v27  ;;  %v6463_v27 = vld [vmem:[#allocation22 + $0x54] ss:$8 sps:$4 sm:$0xff]  }
 0x781   :  { %4853 = vmatpush1.bf16.msra.mxu0 %v3979_v36  ;;  %5644 = vmatprep.subr.bf16.mxu1 %v5495_v39  ;;  %v5397_v36 = vld [vmem:[#allocation17 + $0x1b8] sm:$0xff]  ;;  %v5512_v39 = vunpack.c.h.s8.bf16 %v5394_v48 }
 0x782   :  { %4854 = vmatprep.subr.bf16.mxu0 %v3988_v44  ;;  %v6461_v44 = vld [vmem:[#allocation22 + $0x50] ss:$8 sps:$4 sm:$0xff]   ;;  %v5515_v35 = vunpack.c.l.s8.bf16 %v5397_v36 }
 0x783   :  { %v6474_v48 = vld [vmem:[#allocation23 + $0x50] sm:$0xff]  }
 0x784   :  { %5645 = vmatpush1.bf16.msra.mxu1 %v5494_v43  ;;  %v5396_v43 = vld [vmem:[#allocation17 + $0x1b0] sm:$0xff] }
 0x785   :  { %4855 = vmatpush1.bf16.msra.mxu0 %v3987_v47  ;;  %5646 = vmatprep.subr.bf16.mxu1 %v5497_v53  ;;  %v6466_v53 = vld [vmem:[#allocation22 + $0x64] ss:$8 sps:$4 sm:$0xff]  }
 0x786   :  { %v6176_v58 = vpop.f32.mrb[20].mxu1  ;;  %4856 = vmatprep.subr.bf16.mxu0 %v3996_v19 }
 0x787   :  { %v6177_v28 = vpop.f32.mrb[21].mxu1 }
 0x788   :  { %v7477_v3 = vadd.f32 %v6177_v28, %v6176_v58  ;;  %v6179_v60 = vpop.f32.mrb[22].mxu1  ;;  %5647 = vmatpush1.bf16.msra.mxu1 %v5496_v56  ;;  %v5517_v58 = vunpack.c.h.s8.bf16 %v5397_v36  ;;  %v4902_v36 = vrot.slane %v7440_v23, %v7295_v13 }
 0x789   :  { %4857 = vmatpush1.bf16.msra.mxu0 %v3995_v57  ;;  %v6180_v32 = vpop.f32.mrb[23].mxu1  ;;  %5648 = vmatprep.subr.bf16.mxu1 %v5499_v52  ;;  %v5514_v57 = vunpack.c.l.s8.bf16 %v5396_v43 }
 0x78a   :  { %v7479_v4 = vadd.f32 %v6180_v32, %v6179_v60  ;;  %4858 = vmatprep.subr.bf16.mxu0 %v4004_v59  ;;  %v5287_v31 = vadd.f32 %v7477_v3, %v6094_v15  ;;  %v6469_v60 = vld [vmem:[#allocation22 + $0x74] ss:$8 sps:$4 sm:$0xff]   ;;  %v6467_v3 = vld [vmem:[#allocation22 + $0x70] ss:$8 sps:$4 sm:$0xff]  }
 0x78c   :  { %5649 = vmatpush1.bf16.msra.mxu1 %v5498_v61  ;;  %v5290_v59 = vadd.f32 %v7479_v4, %v6094_v15  ;;  %v5399_v61 = vld [vmem:[#allocation17 + $0x1c8] sm:$0xff] }
 0x78d   :  { %4859 = vmatpush1.bf16.msra.mxu0 %v4003_v40  ;;  %5650 = vmatprep.subr.bf16.mxu1 %v5501_v41  ;;  %v5516_v40 = vunpack.c.h.s8.bf16 %v5396_v43  ;;  %v5519_v41 = vunpack.c.l.s8.bf16 %v5399_v61  ;;  %v5521_v4 = vunpack.c.h.s8.bf16 %v5399_v61  ;;  %v6480_v61 = vld [vmem:[#allocation23 + $0x68] sm:$0xff]  }
 0x78e   :  { %4860 = vmatprep.subr.bf16.mxu0 %v4012_v63  ;;  %v5398_v63 = vld [vmem:[#allocation17 + $0x1c0] sm:$0xff] }
 0x790   :  { %5651 = vmatpush1.bf16.msra.mxu1 %v5500_v0  ;;  %v5518_v0 = vunpack.c.l.s8.bf16 %v5398_v63 }
 0x791   :  { %4861 = vmatpush1.bf16.msra.mxu0 %v4011_v45  ;;  %5663 = vmatprep.subr.bf16.mxu1 %v5503_v42  ;;  %v5401_v45 = vld [vmem:[#allocation17 + $0x1d8] sm:$0xff]  ;;  %v5520_v42 = vunpack.c.h.s8.bf16 %v5398_v63 }
 0x792   :  { %5819 = vmatprep.subr.bf16.mxu0 %v6448_v34  ;;  %v5523_v51 = vunpack.c.l.s8.bf16 %v5401_v45  ;;  %v5400_v34 = vld [vmem:[#allocation17 + $0x1d0] sm:$0xff] }
 0x793   :  { %5653 = vmatmul.mubr.bf16.vlgmr.msra.gmra.mrb[28].mxu1 %v5338_v46  ;;  %v5508_v46 = vunpack.c.h.s8.bf16 %v5392_v62  ;;  %v5405_v62 = vld [vmem:[#allocation17 + $0x1f8] sm:$0xff] }
 0x794   :  { %4863 = vmatmul.mubr.bf16.vlgmr.msra.gmra.mrb[20].mxu0 %v7351_v9  ;;  %5664 = vmatpush1.bf16.msra.mxu1 %v5502_v14  ;;  %v5395_v9 = vld [vmem:[#allocation17 + $0x1a8] sm:$0xff]  ;;  %v5522_v14 = vunpack.c.l.s8.bf16 %v5400_v34 }
 0x795   :  { %5820 = vmatpush1.bf16.msra.mxu0 %v6446_v50  ;;  %5851 = vmatprep.mubr.bf16.mxu0 %v6888_v33  ;;  %v5511_v21 = vunpack.c.l.s8.bf16 %v5395_v9  ;;  %v5513_v16 = vunpack.c.h.s8.bf16 %v5395_v9  ;;  %v5525_v50 = vunpack.c.h.s8.bf16 %v5401_v45  ;;  %v6470_v9 = vld [vmem:[#allocation23 + $0x40] sm:$0xff]  }
 0x796   :  { %5821 = vmatprep.subr.bf16.mxu0 %v6451_v20  ;;  %5665 = vmatprep.subr.bf16.mxu1 %v5505_v49  ;;  %v5403_v20 = vld [vmem:[#allocation17 + $0x1e8] sm:$0xff]  ;;  %v5524_v49 = vunpack.c.h.s8.bf16 %v5400_v34 }
 0x797   :  { %v5527_v5 = vunpack.c.l.s8.bf16 %v5403_v20  ;;  %v5529_v33 = vunpack.c.h.s8.bf16 %v5403_v20 }
 0x798   :  { %5666 = vmatpush1.bf16.msra.mxu1 %v5504_v7  ;;  %v5402_v7 = vld [vmem:[#allocation17 + $0x1e0] sm:$0xff] }
 0x799   :  { %5822 = vmatpush1.bf16.msra.mxu0 %v6449_v26  ;;  %5667 = vmatprep.subr.bf16.mxu1 %v5507_v24  ;;  %v5526_v26 = vunpack.c.l.s8.bf16 %v5402_v7  ;;  %v5528_v24 = vunpack.c.h.s8.bf16 %v5402_v7 }
 0x79a   :  { %5823 = vmatprep.subr.bf16.mxu0 %v6454_v37  ;;  %v5531_v37 = vunpack.c.l.s8.bf16 %v5405_v62 }
 0x79c   :  { %5668 = vmatpush1.bf16.msra.mxu1 %v5506_v38  ;;  %v5404_v38 = vld [vmem:[#allocation17 + $0x1f0] sm:$0xff] }
 0x79d   :  { %5824 = vmatpush1.bf16.msra.mxu0 %v6452_v22  ;;  %5669 = vmatprep.subr.bf16.mxu1 %v5509_v10  ;;  %v5530_v22 = vunpack.c.l.s8.bf16 %v5404_v38  ;;  %v5533_v10 = vunpack.c.h.s8.bf16 %v5405_v62 }
 0x79e   :  { %5825 = vmatprep.subr.bf16.mxu0 %v6457_v12  ;;  %v5532_v12 = vunpack.c.h.s8.bf16 %v5404_v38 }
 0x7a0   :  { %5670 = vmatpush1.bf16.msra.mxu1 %v5508_v46  ;;  %v6471_v46 = vld [vmem:[#allocation23] sm:$0xff]  }
 0x7a1   :  { %5826 = vmatpush1.bf16.msra.mxu0 %v6455_v54  ;;  %5671 = vmatprep.subr.bf16.mxu1 %v5511_v21  ;;  %v6472_v54 = vld [vmem:[#allocation23 + $0x48] sm:$0xff]  }
 0x7a2   :  { %5827 = vmatprep.subr.bf16.mxu0 %v6460_v8  ;;  %v6473_v21 = vld [vmem:[#allocation23 + $0x8] sm:$0xff]   ;;  %v6475_v8 = vld [vmem:[#allocation23 + $0x10] sm:$0xff]  }
 0x7a4   :  { %5672 = vmatpush1.bf16.msra.mxu1 %v5510_v6  ;;  %v6476_v6 = vld [vmem:[#allocation23 + $0x58] sm:$0xff]  }
 0x7a5   :  { %5828 = vmatpush1.bf16.msra.mxu0 %v6458_v11  ;;  %5673 = vmatprep.subr.bf16.mxu1 %v5513_v16  ;;  %v6477_v11 = vld [vmem:[#allocation23 + $0x18] sm:$0xff]   ;;  %v6478_v16 = vld [vmem:[#allocation23 + $0x60] sm:$0xff]  }
 0x7a6   :  { %v6198_v47 = vpop.f32.mrb[24].mxu1  ;;  %5829 = vmatprep.subr.bf16.mxu0 %v6463_v27  ;;  %v6479_v27 = vld [vmem:[#allocation23 + $0x20] sm:$0xff]  }
 0x7a7   :  { %v6199_v19 = vpop.f32.mrb[25].mxu1 }
 0x7a8   :  { %v6200_v55 = vadd.f32 %v6199_v19, %v6198_v47  ;;  %v6201_v56 = vpop.f32.mrb[26].mxu1  ;;  %5674 = vmatpush1.bf16.msra.mxu1 %v5512_v39  ;;  %v4906_v39 = vrot.slane %v7440_v23, %v7301_v18 }
 0x7a9   :  { %5830 = vmatpush1.bf16.msra.mxu0 %v6461_v44  ;;  %v6202_v52 = vpop.f32.mrb[27].mxu1  ;;  %5675 = vmatprep.subr.bf16.mxu1 %v5515_v35  ;;  %v4960_v35 = vrot.slane %v7446_v30, %v7295_v13 }
 0x7aa   :  { %v5328_v2 = vadd.f32 %v6200_v55, %v5287_v31  ;;  %v6203_v28 = vadd.f32 %v6202_v52, %v6201_v56  ;;  %5831 = vmatprep.subr.bf16.mxu0 %v6466_v53  ;;  %v4964_v53 = vrot.slane %v7446_v30, %v7301_v18  ;;  %v6482_v18 = vld [vmem:[#allocation23 + $0x70] sm:$0xff]  }
 0x7ab   :  { %v6483_v30 = vld [vmem:[#allocation23 + $0x30] sm:$0xff]  }
 0x7ac   :  { %v5331_v32 = vadd.f32 %v6203_v28, %v5290_v59  ;;  %5676 = vmatpush1.bf16.msra.mxu1 %v5514_v57 }
 0x7ad   :  { %5832 = vmatpush1.bf16.msra.mxu0 %v6464_v1  ;;  %5677 = vmatprep.subr.bf16.mxu1 %v5517_v58 }
 0x7ae   :  { %v5722_v17 = vpack.c.bf16 %v5331_v32, %v5328_v2  ;;  %5833 = vmatprep.subr.bf16.mxu0 %v6469_v60  ;;  %v6481_v32 = vld [vmem:[#allocation23 + $0x28] sm:$0xff]  }
 0x7b0   :  { %5678 = vmatpush1.bf16.msra.mxu1 %v5516_v40  ;;  %v6484_v40 = vld [vmem:[#allocation23 + $0x78] sm:$0xff]  }
 0x7b1   :  { %5834 = vmatpush1.bf16.msra.mxu0 %v6467_v3  ;;  %5679 = vmatprep.subr.bf16.mxu1 %v5519_v41  ;;  %v6485_v3 = vld [vmem:[#allocation23 + $0x38] sm:$0xff]  }
 0x7b2   :  { %6204 = vmatprep.subr.bf16.mxu0 %v6470_v9  ;;  %v5706_v41 = vld [vmem:[#allocation19] sm:$0x3] }
 0x7b3   :  { %v5711_v63 = vrot.slane %v5706_v41, %v7248_v25 }
 0x7b4   :  { %5852 = vmatmul.mubr.bf16.vlgmr.msra.gmra.mrb[24].mxu0 %v5722_v17  ;;  %5680 = vmatpush1.bf16.msra.mxu1 %v5518_v0  ;;  %v5715_v17 = vrot.slane %v5706_v41, %v7254_v29 }
 0x7b5   :  { %5681 = vmatprep.subr.bf16.mxu1 %v5521_v4  ;;  %6205 = vmatpush3.bf16.msra.mxu0 %v6471_v46  ;;  %v5866_v4 = vld [vmem:[#allocation20] sm:$0x3]  ;;  %v6143_v46 = vld [vmem:[#allocation25] ss:$0 sm:$0xff] }
 0x7b6   :  { %6206 = vmatprep.subr.bf16.mxu0 %v6472_v54  ;;  %v5875_v7 = vrot.slane %v5866_v4, %v7254_v29 }
 0x7b8   :  { %5682 = vmatpush1.bf16.msra.mxu1 %v5520_v42 }
 0x7b9   :  { %5683 = vmatprep.subr.bf16.mxu1 %v5523_v51  ;;  %6207 = vmatpush3.bf16.msra.mxu0 %v6473_v21 }
 0x7ba   :  { %6208 = vmatprep.subr.bf16.mxu0 %v6474_v48 }
 0x7bc   :  { %5684 = vmatpush1.bf16.msra.mxu1 %v5522_v14 }
 0x7bd   :  { %5685 = vmatprep.subr.bf16.mxu1 %v5525_v50  ;;  %6209 = vmatpush3.bf16.msra.mxu0 %v6475_v8  ;;  %v5871_v50 = vrot.slane %v5866_v4, %v7248_v25 }
 0x7be   :  { %6210 = vmatprep.subr.bf16.mxu0 %v6476_v6 }
 0x7c0   :  { %5686 = vmatpush1.bf16.msra.mxu1 %v5524_v49 }
 0x7c1   :  { %5687 = vmatprep.subr.bf16.mxu1 %v5527_v5  ;;  %6211 = vmatpush3.bf16.msra.mxu0 %v6477_v11 }
 0x7c2   :  { %6212 = vmatprep.subr.bf16.mxu0 %v6478_v16 }
 0x7c4   :  { %5688 = vmatpush1.bf16.msra.mxu1 %v5526_v26 }
 0x7c5   :  { %5689 = vmatprep.subr.bf16.mxu1 %v5529_v33  ;;  %6213 = vmatpush3.bf16.msra.mxu0 %v6479_v27 }
 0x7c6   :  { %6214 = vmatprep.subr.bf16.mxu0 %v6480_v61 }
 0x7c8   :  { %5690 = vmatpush1.bf16.msra.mxu1 %v5528_v24 }
 0x7c9   :  { %5691 = vmatprep.subr.bf16.mxu1 %v5531_v37  ;;  %6215 = vmatpush3.bf16.msra.mxu0 %v6481_v32 }
 0x7ca   :  { %6216 = vmatprep.subr.bf16.mxu0 %v6482_v18 }
 0x7cc   :  { %5692 = vmatpush1.bf16.msra.mxu1 %v5530_v22 }
 0x7cd   :  { %5693 = vmatprep.subr.bf16.mxu1 %v5533_v10  ;;  %6217 = vmatpush3.bf16.msra.mxu0 %v6483_v30 }
 0x7ce   :  { %6218 = vmatprep.subr.bf16.mxu0 %v6484_v40 }
 0x7d0   :  { %5694 = vmatpush1.bf16.msra.mxu1 %v5532_v12 }
 0x7d1   :  { %6219 = vmatpush3.bf16.msra.mxu0 %v6485_v3 }
 0x867   :  { %v4864_v15 = vpop.f32.mrb[20].mxu0 }
 0x868   :  { %v4921_v44 = vmul.f32 %v4902_v36, %v4864_v15  ;;  %v4866_v43 = vpop.f32.mrb[21].mxu0 }
 0x869   :  { %v4922_v47 = vmul.f32 %v4906_v39, %v4866_v43  ;;  %v4868_v19 = vpop.f32.mrb[22].mxu0 }
 0x86a   :  { %v4929_v31 = vmul.f32 %v4902_v36, %v4868_v19  ;;  %v4870_v55 = vpop.f32.mrb[23].mxu0  ;;  %v4979_v57 = vadd.f32 %v4960_v35, %v4921_v44 }
 0x86b   :  { %v4930_v56 = vmul.f32 %v4906_v39, %v4870_v55  ;;  %v4980_v1 = vadd.f32 %v4964_v53, %v4922_v47 }
 0x86c   :  { %v4987_v52 = vadd.f32 %v4960_v35, %v4929_v31 }
 0x86d   :  { %v4988_v58 = vadd.f32 %v4964_v53, %v4930_v56 }
 0x86e   :  { %v5340_v59 = vpack.c.bf16 %v4987_v52, %v4979_v57 }
 0x86f   :  { %v5341_v23 = vpack.c.bf16 %v4988_v58, %v4980_v1 }
 0x871   :  { %5695 = vmatprep.mubr.bf16.mxu1 %v5341_v23 }
 0x872   :  { %5696 = vmatmul.mubr.bf16.vlgmr.msra.gmra.mrb[28].mxu1 %v5340_v59 }
 0x887   :  { %v5853_v2 = vpop.f32.mrb[24].mxu0 }
 0x888   :  { %v5855_v28 = vpop.f32.mrb[25].mxu0 }
 0x889   :  { %v5857_v13 = vpop.f32.mrb[26].mxu0 }
 0x88a   :  { %v5859_v60 = vpop.f32.mrb[27].mxu0 }
 0x945   :  { %v5697_v0 = vpop.f32.mrb[28].mxu1 }
 0x946   :  { %v5718_v45 = vmul.f32 %v5711_v63, %v5697_v0  ;;  %v5699_v42 = vpop.f32.mrb[29].mxu1 }
 0x947   :  { %v5719_v51 = vmul.f32 %v5715_v17, %v5699_v42  ;;  %v5701_v34 = vpop.f32.mrb[30].mxu1 }
 0x948   :  { %v5862_v14 = vadd.f32 %v5853_v2, %v5718_v45  ;;  %v5720_v20 = vmul.f32 %v5711_v63, %v5701_v34  ;;  %v5703_v49 = vpop.f32.mrb[31].mxu1 }
 0x949   :  { %v5863_v5 = vadd.f32 %v5855_v28, %v5719_v51  ;;  %v5721_v26 = vmul.f32 %v5715_v17, %v5703_v49 }
 0x94a   :  { %v5864_v33 = vadd.f32 %v5857_v13, %v5720_v20  ;;  %v5878_v62 = vadd.f32 %v5871_v50, %v5862_v14 }
 0x94b   :  { %v5865_v24 = vadd.f32 %v5859_v60, %v5721_v26  ;;  %v5879_v38 = vadd.f32 %v5875_v7, %v5863_v5 }
 0x94c   :  { %v5880_v37 = vadd.f32 %v5871_v50, %v5864_v33 }
 0x94d   :  { %v5881_v22 = vadd.f32 %v5875_v7, %v5865_v24 }
 0x94e   :  { %v5882_v10 = vpack.c.bf16 %v5880_v37, %v5878_v62 }
 0x94f   :  { %v5883_v12 = vpack.c.bf16 %v5881_v22, %v5879_v38 }
 0x951   :  { %6051 = vmatprep.mubr.bf16.mxu0 %v5883_v12 }
 0x952   :  { %6052 = vmatmul.mubr.bf16.vlgmr.msra.gmra.mrb[28].mxu0 %v5882_v10 }
 0xa25   :  { %v6220_v9 = vpop.f32.mrb[28].mxu0 }
 0xa26   :  { %v6221_v54 = vpop.f32.mrb[29].mxu0 }
 0xa27   :  { %v6222_v25 = vadd.f32 %v6221_v54, %v6220_v9  ;;  %v6223_v21 = vpop.f32.mrb[30].mxu0 }
 0xa28   :  { %v6224_v48 = vpop.f32.mrb[31].mxu0 }
 0xa29   :  { %v6054_v29 = vadd.f32 %v6222_v25, %v6143_v46  ;;  %v6225_v8 = vadd.f32 %v6224_v48, %v6223_v21 }
 0xa2b   :  { %6060 = vst [vmem:[#allocation26] sm:$0xff] %v6054_v29  ;;  %v6057_v6 = vadd.f32 %v6225_v8, %v6143_v46 }
 0xa2d   :  { %6061 = vst [vmem:[#allocation26 + $0x8] sm:$0xff] %v6057_v6 }
 0xa2e   :  { %6833 = shalt.err (!%p6830_p12)
}
 0xa2f   :  { %s7532_s3 = sld [smem:[#allocation36_spill]] }
 0xa35   :  { %s6834_s4 = scalar_lea.hbm %s7532_s3, 256 }
 0xa36   :  { %p6835_p13 = scmp.ne.s32.totalorder %s7532_s3, %s6834_s4  ;;  %p6838_p0 = scmp.lt.u32.totalorder %s6834_s4, %s7532_s3 }
 0xa38   :  { %p6840_p1 = pnand %p6838_p0, %p6835_p13 }
 0xa3a   :  { %6843 = shalt.err (!%p6840_p1)
}
 0xa3b   :  { %6073 = dma.vmem_to_hbm [thread:$0]  %s6068_s24, 256, %s7532_s3, [#allocation4], %s6885_s10, %s6885_s10, %s6886_s28  }
 0xa3c   :  { %6860 = dma.done.wait [#allocation4], 256  }
 0xa3d   :  { %6861 = vsyncadd [#allocation4], 4294967040 }
 0xa3e   :  { %6077 = vsyncpa [#allocation3], 1 }
 0xa3f   :  { %6078 = vsyncpa [#allocation6], 1 }
 0xa40   :  { %6079 = vsyncpa [#allocation9], 1 }
 0xa41   :  { %6080 = vsyncpa [#allocation12], 1 }
 0xa42   :  { %6081 = vsyncpa [#allocation15], 1 }
 0xa43   :  { %6082 = vsyncpa [#allocation18], 1 }
 0xa44   :  { %6083 = vsyncpa [#allocation21], 1 }
 0xa45   :  { %6084 = vsyncpa [#allocation24], 1 }
 0xa46   :  { %6085 = vsyncpa [#allocation4], 1 }

</bundles_post_ra>
